<compile_context>
chip_gen: v5e
topology: v5e:2x2
jax: 0.10.0
libtpu: 0.0.40
codegen_flags: <defaults>
</compile_context>

<pallas_src>
import numpy as np

import jax
import jax.numpy as jnp
from jax.experimental import pallas as pl
from jax.experimental.pallas import tpu as pltpu

GRU_LAYERS = 4
EPS = 1e-10

_VMEM = pl.BlockSpec(memory_space=pltpu.MemorySpace.VMEM)


def _vmem(n):
    return [pl.BlockSpec(memory_space=pltpu.MemorySpace.VMEM)] * n


# ---------------------------------------------------------------------------
# In-kernel helpers (operate on values already loaded from VMEM refs)
# ---------------------------------------------------------------------------
def _mlp2(x, w1, b1, w2, b2):
    """Linear -> LeakyReLU(0.2) -> Linear  (the _MultiLayerPercep block)."""
    h = jnp.dot(x, w1, preferred_element_type=jnp.float32) + b1
    h = jnp.where(h >= 0.0, h, 0.2 * h)
    return jnp.dot(h, w2, preferred_element_type=jnp.float32) + b2


def _pair_score(xa, xb, w1, b1, w2, b2):
    """Score MLP applied to concat([xa, xb], -1); first-layer weight is split
    so no lane-dim concat is needed inside the kernel."""
    d = xa.shape[-1]
    h = (jnp.dot(xa, w1[:d, :], preferred_element_type=jnp.float32)
         + jnp.dot(xb, w1[d:, :], preferred_element_type=jnp.float32) + b1)
    h = jnp.where(h >= 0.0, h, 0.2 * h)
    return jnp.dot(h, w2, preferred_element_type=jnp.float32) + b2


def _masked_att_agg(scores, mask, values, seg):
    """Per-segment masked exp-softmax + weighted row-sum, as MXU matmuls.

    scores/mask: (N, 1), values: (N, D), seg: (G, N) 0/1 membership matrix.
    Reproduces  a = exp(s) * m ; a /= (sum_seg a + eps) ; out = sum_seg a * v.
    Scores are shifted by the global max before exp, which only rescales the
    eps term and keeps exp() <= 1 (no inf * 0 -> NaN hazard).
    """
    s = scores - jnp.max(scores, axis=0, keepdims=True)
    a = jnp.exp(s) * mask                                                 # (N, 1)
    num = jnp.dot(seg, a * values, preferred_element_type=jnp.float32)    # (G, D)
    den = jnp.dot(seg, a, preferred_element_type=jnp.float32) + EPS       # (G, 1)
    return num * pl.reciprocal(den, approx=True)


# ---------------------------------------------------------------------------
# Kernel 1: item <- its users, fused with the 4-layer GRU
# ---------------------------------------------------------------------------
def _item_users_gru_kernel(pe_ref, q_ref, mask_ref, seg_ref,
                           gw1_ref, gb1_ref, gw2_ref, gb2_ref,
                           w1w_ref, w1b_ref,
                           aw1_ref, ab1_ref, aw2_ref, ab2_ref,
                           uw_ref, ub_ref,
                           wih_ref, whh_ref, bih_ref, bhh_ref, h0_ref,
                           zl_ref, zs_ref, gx_scr):
    f32 = jnp.float32
    N = pe_ref.shape[0]            # = T * B, rows are time-major (n = t*B + b)
    H = q_ref.shape[1]
    B = h0_ref.shape[1]
    T = N // B
    L = wih_ref.shape[0]

    # ---- y_ji = g_u([p_i ; e_ij]) ------------------------------------------
    y = _mlp2(pe_ref[...], gw1_ref[...], gb1_ref[...], gw2_ref[...], gb2_ref[...])

    # ---- w1 projection of y and q in a single stacked matmul ---------------
    yq = jnp.concatenate([y, q_ref[...]], axis=0)                  # (2N, H)
    w1yq = jnp.dot(yq, w1w_ref[...], preferred_element_type=f32) + w1b_ref[...]
    w1y = w1yq[:N, :]
    w1q = w1yq[N:, :]

    # ---- attention over each item's users (scores never leave VMEM) --------
    s = _pair_score(w1y, w1q, aw1_ref[...], ab1_ref[...], aw2_ref[...], ab2_ref[...])
    agg = _masked_att_agg(s, mask_ref[...], w1y, seg_ref[...])     # (B, H)
    zl_ref[...] = jnp.maximum(
        jnp.dot(agg, uw_ref[...], preferred_element_type=f32) + ub_ref[...], 0.0)

    # ---- 4-layer GRU over y (time-major rows), statically unrolled ---------
    # Layer-0 input matmul hoisted to one (T*B, H) @ (H, 3H) matmul; staged in
    # VMEM scratch so the per-step chunks are plain (aligned-base) ref loads.
    gx_scr[...] = jnp.dot(y, wih_ref[0], preferred_element_type=f32) + bih_ref[0]
    gx_list = [gx_scr[t * B:(t + 1) * B, :] for t in range(T)]

    for l in range(L):
        whh = whh_ref[l]
        bhh = bhh_ref[l]
        h = h0_ref[l]                                              # (B, H)
        last = l == L - 1
        if not last:
            wih_nxt = wih_ref[l + 1]
            bih_nxt = bih_ref[l + 1]
        nxt = []
        for t in range(T):
            gx = gx_list[t]                                        # (B, 3H)
            gh = jnp.dot(h, whh, preferred_element_type=f32) + bhh
            # one sigmoid (EUP push) covers both r and z gates
            rz = jax.nn.sigmoid(gx[:, :2 * H] + gh[:, :2 * H])
            r = rz[:, :H]
            z = rz[:, H:]
            n_gate = jnp.tanh(gx[:, 2 * H:] + r * gh[:, 2 * H:])
            h = (1.0 - z) * n_gate + z * h
            if not last:
                # next layer's input transform: independent of this layer's
                # remaining recurrence, so it overlaps with it.
                nxt.append(jnp.dot(h, wih_nxt, preferred_element_type=f32) + bih_nxt)
        gx_list = nxt
    zs_ref[...] = h


# ---------------------------------------------------------------------------
# Kernel 2: friend items <- their users
# ---------------------------------------------------------------------------
def _friend_users_kernel(pes_ref, qs_ref, mask_ref, seg_ref,
                         gw1_ref, gb1_ref, gw2_ref, gb2_ref,
                         w2w_ref, w2b_ref,
                         fw1_ref, fb1_ref, fw2_ref, fb2_ref,
                         iw_ref, ib_ref,
                         zkl_ref):
    f32 = jnp.float32
    N = pes_ref.shape[0]

    y = _mlp2(pes_ref[...], gw1_ref[...], gb1_ref[...], gw2_ref[...], gb2_ref[...])
    yq = jnp.concatenate([y, qs_ref[...]], axis=0)
    w2yq = jnp.dot(yq, w2w_ref[...], preferred_element_type=f32) + w2b_ref[...]
    w2y = w2yq[:N, :]
    w2q = w2yq[N:, :]

    s = _pair_score(w2y, w2q, fw1_ref[...], fb1_ref[...], fw2_ref[...], fb2_ref[...])
    # NOTE: the weighted-sum values are y_ji_s itself (not its w2 projection).
    agg = _masked_att_agg(s, mask_ref[...], y, seg_ref[...])       # (B*F, D)
    zkl_ref[...] = jnp.maximum(
        jnp.dot(agg, iw_ref[...], preferred_element_type=f32) + ib_ref[...], 0.0)


# ---------------------------------------------------------------------------
# Kernel 3: item <- friend items, fused with the final combine MLP
# ---------------------------------------------------------------------------
def _friends_combine_kernel(zkl_ref, itemf_ref, mask_ref, zjl_ref, zjs_ref,
                            selT_ref, seg_ref,
                            w3w_ref, w3b_ref,
                            kw1_ref, kb1_ref, kw2_ref, kb2_ref,
                            nw_ref, nb_ref,
                            c1w_ref, c1b_ref, c2w_ref, c2b_ref,
                            z_ref):
    f32 = jnp.float32
    G = zkl_ref.shape[0]
    D = zjl_ref.shape[1]

    # The reference re-runs gru(y_ji, h0) once per friend item, which yields
    # the same z_jS every time -> broadcast it to the friend rows (matmul).
    zks = jnp.dot(selT_ref[...], zjs_ref[...], preferred_element_type=f32)   # (G, D)
    zka = zkl_ref[...] * zks                          # dropout (eval) = identity

    # w3 projection of z_kA and the friend-item embeddings, stacked.
    zi = jnp.concatenate([zka, itemf_ref[...]], axis=0)            # (2G, D)
    w3zi = jnp.dot(zi, w3w_ref[...], preferred_element_type=f32) + w3b_ref[...]
    w3z = w3zi[:G, :]
    w3i = w3zi[G:, :]

    kappa = _pair_score(w3z, w3i, kw1_ref[...], kb1_ref[...], kw2_ref[...], kb2_ref[...])
    agg = _masked_att_agg(kappa, mask_ref[...], zka, seg_ref[...])  # (B, D)
    zjn = jnp.maximum(
        jnp.dot(agg, nw_ref[...], preferred_element_type=f32) + nb_ref[...], 0.0)

    # combine MLP (dropouts are identity in eval); first-layer weight is split
    # so the [z_jA ; z_jN] lane concat is not needed.
    zja = zjl_ref[...] * zjs_ref[...]
    h1 = jnp.maximum(
        jnp.dot(zja, c1w_ref[:D, :], preferred_element_type=f32)
        + jnp.dot(zjn, c1w_ref[D:, :], preferred_element_type=f32)
        + c1b_ref[...], 0.0)
    z_ref[...] = jnp.maximum(
        jnp.dot(h1, c2w_ref[...], preferred_element_type=f32) + c2b_ref[...], 0.0)


# ---------------------------------------------------------------------------
# pallas_call wrappers
# ---------------------------------------------------------------------------
def _item_users_gru(pe, q, mask, seg, params, *, batch, emb, seq_len):
    gw1, gb1, gw2, gb2 = params["g_u"]
    w1w, w1b = params["w1"]
    aw1, ab1, aw2, ab2 = params["item_users_att_i"]
    uw, ub = params["aggre_users_i"]
    gru = params["gru"]
    return pl.pallas_call(
        _item_users_gru_kernel,
        out_shape=(jax.ShapeDtypeStruct((batch, emb), jnp.float32),
                   jax.ShapeDtypeStruct((batch, emb), jnp.float32)),
        in_specs=_vmem(21),
        out_specs=(_VMEM, _VMEM),
        scratch_shapes=[pltpu.VMEM((seq_len * batch, 3 * emb), jnp.float32)],
    )(pe, q, mask, seg,
      gw1, gb1.reshape(1, -1), gw2, gb2.reshape(1, -1),
      w1w, w1b.reshape(1, -1),
      aw1, ab1.reshape(1, -1), aw2, ab2.reshape(1, -1),
      uw, ub.reshape(1, -1),
      gru["wih"], gru["whh"],
      gru["bih"].reshape(GRU_LAYERS, 1, -1), gru["bhh"].reshape(GRU_LAYERS, 1, -1),
      params["h0"])


def _friend_users(pes, qs, mask, seg, params):
    gw1, gb1, gw2, gb2 = params["g_u"]
    w2w, w2b = params["w2"]
    fw1, fb1, fw2, fb2 = params["i_friends_att"]
    iw, ib = params["aggre_i_friends"]
    n_groups = seg.shape[0]
    d = qs.shape[1]
    return pl.pallas_call(
        _friend_users_kernel,
        out_shape=jax.ShapeDtypeStruct((n_groups, d), jnp.float32),
        in_specs=_vmem(16),
        out_specs=_VMEM,
    )(pes, qs, mask, seg,
      gw1, gb1.reshape(1, -1), gw2, gb2.reshape(1, -1),
      w2w, w2b.reshape(1, -1),
      fw1, fb1.reshape(1, -1), fw2, fb2.reshape(1, -1),
      iw, ib.reshape(1, -1))


def _friends_combine(zkl, itemf, mask, zjl, zjs, selT, seg, params):
    w3w, w3b = params["w3"]
    kw1, kb1, kw2, kb2 = params["if_friends_att"]
    nw, nb = params["aggre_if_friends"]
    c1w, c1b = params["combine_l1"]
    c2w, c2b = params["combine_l2"]
    b, d = zjl.shape
    return pl.pallas_call(
        _friends_combine_kernel,
        out_shape=jax.ShapeDtypeStruct((b, d), jnp.float32),
        in_specs=_vmem(19),
        out_specs=_VMEM,
    )(zkl, itemf, mask, zjl, zjs, selT, seg,
      w3w, w3b.reshape(1, -1),
      kw1, kb1.reshape(1, -1), kw2, kb2.reshape(1, -1),
      nw, nb.reshape(1, -1),
      c1w, c1b.reshape(1, -1), c2w, c2b.reshape(1, -1))


# ---------------------------------------------------------------------------
# Forward pass (only embedding gathers / index prep remain in plain JAX)
# ---------------------------------------------------------------------------
def item_model_forward(params, iids, i_user_pad, i_item_pad, i_item_user_pad):
    user_emb = params["user_emb"]
    item_emb = params["item_emb"]
    rate_emb = params["rate_emb"]
    D = user_emb.shape[1]
    B, U, _ = i_user_pad.shape
    F_ = i_item_pad.shape[1]
    U2 = i_item_user_pad.shape[2]

    # -------- item <- its users (+ GRU).  Rows are TIME-MAJOR (n = u*B + b)
    # so the fused kernel feeds the GRU without any transpose.
    uid_t = jnp.transpose(i_user_pad[:, :, 0])                    # (U, B)
    rid_t = jnp.transpose(i_user_pad[:, :, 1])
    mask_t = (uid_t > 0).astype(jnp.float32)                      # (U, B)
    pe = jnp.concatenate([user_emb[uid_t], rate_emb[rid_t]],
                         axis=-1).reshape(U * B, 2 * D)           # [p_i ; e_ij]
    q_j = (mask_t[:, :, None] * item_emb[iids][None, :, :]).reshape(U * B, D)
    seg_a = jnp.asarray(
        (np.arange(U * B)[None, :] % B == np.arange(B)[:, None]).astype(np.float32))
    z_jL, z_jS = _item_users_gru(pe, q_j, mask_t.reshape(U * B, 1), seg_a, params,
                                 batch=B, emb=D, seq_len=U)

    # -------- friend items <- their users.  Rows flattened (b, f, u2).
    uid_s = i_item_user_pad[..., 0]                               # (B, F, U2)
    rid_s = i_item_user_pad[..., 1]
    mask_s = (uid_s > 0).astype(jnp.float32)
    item_f = item_emb[i_item_pad]                                 # (B, F, D)
    pes = jnp.concatenate([user_emb[uid_s], rate_emb[rid_s]],
                          axis=-1).reshape(B * F_ * U2, 2 * D)
    q_s = (mask_s[..., None] * item_f[:, :, None, :]).reshape(B * F_ * U2, D)
    seg_b = jnp.asarray(
        (np.arange(B * F_ * U2)[None, :] // U2
         == np.arange(B * F_)[:, None]).astype(np.float32))
    z_kL = _friend_users(pes, q_s, mask_s.reshape(B * F_ * U2, 1), seg_b, params)

    # -------- item <- friend items, fused with the final combine MLP.
    mask_si = (i_item_pad > 0).astype(jnp.float32).reshape(B * F_, 1)
    np_sel = (np.arange(B * F_)[None, :] // F_
              == np.arange(B)[:, None]).astype(np.float32)        # (B, B*F)
    z = _friends_combine(z_kL, item_f.reshape(B * F_, D), mask_si, z_jL, z_jS,
                         jnp.asarray(np_sel.T), jnp.asarray(np_sel), params)
    return z


# ---------------------------------------------------------------------------
# Deterministic synthetic parameter init (shapes from _ItemModel.__init__)
# ---------------------------------------------------------------------------
def init_params(key, emb_dim, n_users, n_items, n_rates, batch_size):
    D = emb_dim
    keys = iter(jax.random.split(key, 64))

    def nrm(shape, scale=0.1):
        return scale * jax.random.normal(next(keys), shape, jnp.float32)

    def lin(d_in, d_out):
        return (nrm((d_in, d_out)), nrm((d_out,), 0.05))

    def mlp2_params(d_in, d_out):
        return lin(d_in, d_in // 2) + lin(d_in // 2, d_out)

    gru = {
        "wih": nrm((GRU_LAYERS, D, 3 * D)),
        "whh": nrm((GRU_LAYERS, D, 3 * D)),
        "bih": nrm((GRU_LAYERS, 3 * D), 0.05),
        "bhh": nrm((GRU_LAYERS, 3 * D), 0.05),
    }

    return {
        "user_emb": nrm((n_users, D)),
        "item_emb": nrm((n_items, D)),
        "rate_emb": nrm((n_rates, D)),
        "w1": lin(D, D),
        "w2": lin(D, D),
        "w3": lin(D, D),
        "g_u": mlp2_params(2 * D, D),
        "item_users_att_i": mlp2_params(2 * D, 1),
        "aggre_users_i": lin(D, D),
        "i_friends_att": mlp2_params(2 * D, 1),
        "aggre_i_friends": lin(D, D),
        "if_friends_att": mlp2_params(2 * D, 1),
        "aggre_if_friends": lin(D, D),
        "gru": gru,
        "h0": nrm((GRU_LAYERS, batch_size, D), 1.0),
        "combine_l1": lin(2 * D, 2 * D),
        "combine_l2": lin(2 * D, D),
    }


# ---------------------------------------------------------------------------
if __name__ == "__main__":
    D, B, U, F_, U2 = 32, 2, 8, 4, 8        # emb_dim, batch, users, friend items, their users
    NU, NI, NR = 20, 16, 6                  # embedding table sizes

    params = init_params(jax.random.PRNGKey(42), D, NU, NI, NR, B)

    key = jax.random.PRNGKey(0)
    k1, k2, k3, k4, k5, k6 = jax.random.split(key, 6)
    iids = jax.random.randint(k1, (B,), 1, NI, dtype=jnp.int32)
    i_user_pad = jnp.stack(
        [jax.random.randint(k2, (B, U), 0, NU, dtype=jnp.int32),
         jax.random.randint(k3, (B, U), 0, NR, dtype=jnp.int32)], axis=-1)
    i_item_pad = jax.random.randint(k4, (B, F_), 0, NI, dtype=jnp.int32)
    i_item_user_pad = jnp.stack(
        [jax.random.randint(k5, (B, F_, U2), 0, NU, dtype=jnp.int32),
         jax.random.randint(k6, (B, F_, U2), 0, NR, dtype=jnp.int32)], axis=-1)

    forward = jax.jit(item_model_forward)
    z = forward(params, iids, i_user_pad, i_item_pad, i_item_user_pad)
    z = jax.block_until_ready(z)

    assert z.shape == (B, D), z.shape
    assert bool(jnp.all(jnp.isfinite(z)))
    print("KERNEL_OK")
</pallas_src>

<mosaic_0001>
module attributes {stable_mosaic.version = 11 : i64} {
  func.func @_friend_users_kernel(%arg0: memref<64x64xf32, #tpu.memory_space<vmem>>, %arg1: memref<64x32xf32, #tpu.memory_space<vmem>>, %arg2: memref<64x1xf32, #tpu.memory_space<vmem>>, %arg3: memref<8x64xf32, #tpu.memory_space<vmem>>, %arg4: memref<64x32xf32, #tpu.memory_space<vmem>>, %arg5: memref<1x32xf32, #tpu.memory_space<vmem>>, %arg6: memref<32x32xf32, #tpu.memory_space<vmem>>, %arg7: memref<1x32xf32, #tpu.memory_space<vmem>>, %arg8: memref<32x32xf32, #tpu.memory_space<vmem>>, %arg9: memref<1x32xf32, #tpu.memory_space<vmem>>, %arg10: memref<64x32xf32, #tpu.memory_space<vmem>>, %arg11: memref<1x32xf32, #tpu.memory_space<vmem>>, %arg12: memref<32x1xf32, #tpu.memory_space<vmem>>, %arg13: memref<1x1xf32, #tpu.memory_space<vmem>>, %arg14: memref<32x32xf32, #tpu.memory_space<vmem>>, %arg15: memref<1x32xf32, #tpu.memory_space<vmem>>, %arg16: memref<8x32xf32, #tpu.memory_space<vmem>>) attributes {dimension_semantics = [], scalar_prefetch = 0 : i64, scratch_operands = 0 : i64, tpu.core_type = #tpu.core_type<tc>} {
    %c0 = arith.constant 0 : index
    %c0_0 = arith.constant 0 : index
    %0 = vector.load %arg0[%c0, %c0_0] : memref<64x64xf32, #tpu.memory_space<vmem>>, vector<64x64xf32>
    %c0_1 = arith.constant 0 : index
    %c0_2 = arith.constant 0 : index
    %1 = vector.load %arg4[%c0_1, %c0_2] : memref<64x32xf32, #tpu.memory_space<vmem>>, vector<64x32xf32>
    %c0_3 = arith.constant 0 : index
    %c0_4 = arith.constant 0 : index
    %2 = vector.load %arg5[%c0_3, %c0_4] : memref<1x32xf32, #tpu.memory_space<vmem>>, vector<1x32xf32>
    %c0_5 = arith.constant 0 : index
    %c0_6 = arith.constant 0 : index
    %3 = vector.load %arg6[%c0_5, %c0_6] : memref<32x32xf32, #tpu.memory_space<vmem>>, vector<32x32xf32>
    %c0_7 = arith.constant 0 : index
    %c0_8 = arith.constant 0 : index
    %4 = vector.load %arg7[%c0_7, %c0_8] : memref<1x32xf32, #tpu.memory_space<vmem>>, vector<1x32xf32>
    %cst = arith.constant dense<0.000000e+00> : vector<64x32xf32>
    %5 = tpu.matmul %0, %1, %cst {dimension_numbers = #tpu.dot_dimension_numbers<[1], [0], [0], [1], [0, 0, 1, 1], [], []>} : vector<64x64xf32>, vector<64x32xf32>, vector<64x32xf32> -> vector<64x32xf32>
    %6 = vector.broadcast %2 : vector<1x32xf32> to vector<64x32xf32>
    %7 = arith.addf %5, %6 : vector<64x32xf32>
    %cst_9 = arith.constant 0.000000e+00 : f32
    %8 = vector.broadcast %cst_9 : f32 to vector<64x32xf32>
    %9 = arith.cmpf oge, %7, %8 : vector<64x32xf32>
    %cst_10 = arith.constant 2.000000e-01 : f32
    %10 = vector.broadcast %cst_10 : f32 to vector<64x32xf32>
    %11 = arith.mulf %10, %7 : vector<64x32xf32>
    %12 = arith.select %9, %7, %11 : vector<64x32xi1>, vector<64x32xf32>
    %cst_11 = arith.constant dense<0.000000e+00> : vector<64x32xf32>
    %13 = tpu.matmul %12, %3, %cst_11 {dimension_numbers = #tpu.dot_dimension_numbers<[1], [0], [0], [1], [0, 0, 1, 1], [], []>} : vector<64x32xf32>, vector<32x32xf32>, vector<64x32xf32> -> vector<64x32xf32>
    %14 = vector.broadcast %4 : vector<1x32xf32> to vector<64x32xf32>
    %15 = arith.addf %13, %14 : vector<64x32xf32>
    %c0_12 = arith.constant 0 : index
    %c0_13 = arith.constant 0 : index
    %16 = vector.load %arg1[%c0_12, %c0_13] : memref<64x32xf32, #tpu.memory_space<vmem>>, vector<64x32xf32>
    %17 = tpu.concatenate %15, %16 in 0 : vector<64x32xf32>, vector<64x32xf32> -> vector<128x32xf32>
    %c0_14 = arith.constant 0 : index
    %c0_15 = arith.constant 0 : index
    %18 = vector.load %arg8[%c0_14, %c0_15] : memref<32x32xf32, #tpu.memory_space<vmem>>, vector<32x32xf32>
    %cst_16 = arith.constant dense<0.000000e+00> : vector<128x32xf32>
    %19 = tpu.matmul %17, %18, %cst_16 {dimension_numbers = #tpu.dot_dimension_numbers<[1], [0], [0], [1], [0, 0, 1, 1], [], []>} : vector<128x32xf32>, vector<32x32xf32>, vector<128x32xf32> -> vector<128x32xf32>
    %c0_17 = arith.constant 0 : index
    %c0_18 = arith.constant 0 : index
    %20 = vector.load %arg9[%c0_17, %c0_18] : memref<1x32xf32, #tpu.memory_space<vmem>>, vector<1x32xf32>
    %21 = vector.broadcast %20 : vector<1x32xf32> to vector<128x32xf32>
    %22 = arith.addf %19, %21 : vector<128x32xf32>
    %23 = vector.extract_strided_slice %22 {offsets = [0, 0], sizes = [64, 32], strides = [1, 1]} : vector<128x32xf32> to vector<64x32xf32>
    %24 = vector.extract_strided_slice %22 {offsets = [64, 0], sizes = [64, 32], strides = [1, 1]} : vector<128x32xf32> to vector<64x32xf32>
    %c0_19 = arith.constant 0 : index
    %c0_20 = arith.constant 0 : index
    %25 = vector.load %arg10[%c0_19, %c0_20] : memref<64x32xf32, #tpu.memory_space<vmem>>, vector<64x32xf32>
    %c0_21 = arith.constant 0 : index
    %c0_22 = arith.constant 0 : index
    %26 = vector.load %arg11[%c0_21, %c0_22] : memref<1x32xf32, #tpu.memory_space<vmem>>, vector<1x32xf32>
    %c0_23 = arith.constant 0 : index
    %c0_24 = arith.constant 0 : index
    %27 = vector.load %arg12[%c0_23, %c0_24] : memref<32x1xf32, #tpu.memory_space<vmem>>, vector<32x1xf32>
    %c0_25 = arith.constant 0 : index
    %c0_26 = arith.constant 0 : index
    %28 = vector.load %arg13[%c0_25, %c0_26] : memref<1x1xf32, #tpu.memory_space<vmem>>, vector<1x1xf32>
    %29 = vector.extract_strided_slice %25 {offsets = [0, 0], sizes = [32, 32], strides = [1, 1]} : vector<64x32xf32> to vector<32x32xf32>
    %cst_27 = arith.constant dense<0.000000e+00> : vector<64x32xf32>
    %30 = tpu.matmul %23, %29, %cst_27 {dimension_numbers = #tpu.dot_dimension_numbers<[1], [0], [0], [1], [0, 0, 1, 1], [], []>} : vector<64x32xf32>, vector<32x32xf32>, vector<64x32xf32> -> vector<64x32xf32>
    %31 = vector.extract_strided_slice %25 {offsets = [32, 0], sizes = [32, 32], strides = [1, 1]} : vector<64x32xf32> to vector<32x32xf32>
    %cst_28 = arith.constant dense<0.000000e+00> : vector<64x32xf32>
    %32 = tpu.matmul %24, %31, %cst_28 {dimension_numbers = #tpu.dot_dimension_numbers<[1], [0], [0], [1], [0, 0, 1, 1], [], []>} : vector<64x32xf32>, vector<32x32xf32>, vector<64x32xf32> -> vector<64x32xf32>
    %33 = arith.addf %30, %32 : vector<64x32xf32>
    %34 = vector.broadcast %26 : vector<1x32xf32> to vector<64x32xf32>
    %35 = arith.addf %33, %34 : vector<64x32xf32>
    %cst_29 = arith.constant 0.000000e+00 : f32
    %36 = vector.broadcast %cst_29 : f32 to vector<64x32xf32>
    %37 = arith.cmpf oge, %35, %36 : vector<64x32xf32>
    %cst_30 = arith.constant 2.000000e-01 : f32
    %38 = vector.broadcast %cst_30 : f32 to vector<64x32xf32>
    %39 = arith.mulf %38, %35 : vector<64x32xf32>
    %40 = arith.select %37, %35, %39 : vector<64x32xi1>, vector<64x32xf32>
    %cst_31 = arith.constant dense<0.000000e+00> : vector<64x1xf32>
    %41 = tpu.matmul %40, %27, %cst_31 {dimension_numbers = #tpu.dot_dimension_numbers<[1], [0], [0], [1], [0, 0, 1, 1], [], []>} : vector<64x32xf32>, vector<32x1xf32>, vector<64x1xf32> -> vector<64x1xf32>
    %42 = vector.broadcast %28 : vector<1x1xf32> to vector<64x1xf32>
    %43 = arith.addf %41, %42 : vector<64x1xf32>
    %c0_32 = arith.constant 0 : index
    %c0_33 = arith.constant 0 : index
    %44 = vector.load %arg2[%c0_32, %c0_33] : memref<64x1xf32, #tpu.memory_space<vmem>>, vector<64x1xf32>
    %c0_34 = arith.constant 0 : index
    %c0_35 = arith.constant 0 : index
    %45 = vector.load %arg3[%c0_34, %c0_35] : memref<8x64xf32, #tpu.memory_space<vmem>>, vector<8x64xf32>
    %cst_36 = arith.constant dense<0xFF800000> : vector<1xf32>
    %46 = vector.multi_reduction <maximumf>, %43, %cst_36 [0] : vector<64x1xf32> to vector<1xf32>
    %47 = vector.shape_cast %46 : vector<1xf32> to vector<1x1xf32>
    %48 = vector.broadcast %47 : vector<1x1xf32> to vector<64x1xf32>
    %49 = arith.subf %43, %48 : vector<64x1xf32>
    %50 = math.exp %49 : vector<64x1xf32>
    %51 = arith.mulf %50, %44 : vector<64x1xf32>
    %52 = vector.broadcast %51 : vector<64x1xf32> to vector<64x32xf32>
    %53 = arith.mulf %52, %15 : vector<64x32xf32>
    %cst_37 = arith.constant dense<0.000000e+00> : vector<8x32xf32>
    %54 = tpu.matmul %45, %53, %cst_37 {dimension_numbers = #tpu.dot_dimension_numbers<[1], [0], [0], [1], [0, 0, 1, 1], [], []>} : vector<8x64xf32>, vector<64x32xf32>, vector<8x32xf32> -> vector<8x32xf32>
    %cst_38 = arith.constant dense<0.000000e+00> : vector<8x1xf32>
    %55 = tpu.matmul %45, %51, %cst_38 {dimension_numbers = #tpu.dot_dimension_numbers<[1], [0], [0], [1], [0, 0, 1, 1], [], []>} : vector<8x64xf32>, vector<64x1xf32>, vector<8x1xf32> -> vector<8x1xf32>
    %cst_39 = arith.constant 1.000000e-10 : f32
    %56 = vector.broadcast %cst_39 : f32 to vector<8x1xf32>
    %57 = arith.addf %55, %56 : vector<8x1xf32>
    %58 = tpu.reciprocal %57 {approx = true} : vector<8x1xf32> -> vector<8x1xf32>
    %59 = vector.broadcast %58 : vector<8x1xf32> to vector<8x32xf32>
    %60 = arith.mulf %54, %59 : vector<8x32xf32>
    %c0_40 = arith.constant 0 : index
    %c0_41 = arith.constant 0 : index
    %61 = vector.load %arg14[%c0_40, %c0_41] : memref<32x32xf32, #tpu.memory_space<vmem>>, vector<32x32xf32>
    %cst_42 = arith.constant dense<0.000000e+00> : vector<8x32xf32>
    %62 = tpu.matmul %60, %61, %cst_42 {dimension_numbers = #tpu.dot_dimension_numbers<[1], [0], [0], [1], [0, 0, 1, 1], [], []>} : vector<8x32xf32>, vector<32x32xf32>, vector<8x32xf32> -> vector<8x32xf32>
    %c0_43 = arith.constant 0 : index
    %c0_44 = arith.constant 0 : index
    %63 = vector.load %arg15[%c0_43, %c0_44] : memref<1x32xf32, #tpu.memory_space<vmem>>, vector<1x32xf32>
    %64 = vector.broadcast %63 : vector<1x32xf32> to vector<8x32xf32>
    %65 = arith.addf %62, %64 : vector<8x32xf32>
    %cst_45 = arith.constant 0.000000e+00 : f32
    %66 = vector.broadcast %cst_45 : f32 to vector<8x32xf32>
    %67 = arith.maximumf %65, %66 : vector<8x32xf32>
    %c0_46 = arith.constant 0 : index
    %c0_47 = arith.constant 0 : index
    %68 = vector.load %arg16[%c0_46, %c0_47] : memref<8x32xf32, #tpu.memory_space<vmem>>, vector<8x32xf32>
    tpu.vector_store %arg16[%c0_46, %c0_47], %67 {strides = array<i32>} : memref<8x32xf32, #tpu.memory_space<vmem>>, vector<8x32xf32>,
    return
  }
}

module attributes {stable_mosaic.version = 11 : i64} {
  func.func @_friends_combine_kernel(%arg0: memref<8x32xf32, #tpu.memory_space<vmem>>, %arg1: memref<8x32xf32, #tpu.memory_space<vmem>>, %arg2: memref<8x1xf32, #tpu.memory_space<vmem>>, %arg3: memref<2x32xf32, #tpu.memory_space<vmem>>, %arg4: memref<2x32xf32, #tpu.memory_space<vmem>>, %arg5: memref<8x2xf32, #tpu.memory_space<vmem>>, %arg6: memref<2x8xf32, #tpu.memory_space<vmem>>, %arg7: memref<32x32xf32, #tpu.memory_space<vmem>>, %arg8: memref<1x32xf32, #tpu.memory_space<vmem>>, %arg9: memref<64x32xf32, #tpu.memory_space<vmem>>, %arg10: memref<1x32xf32, #tpu.memory_space<vmem>>, %arg11: memref<32x1xf32, #tpu.memory_space<vmem>>, %arg12: memref<1x1xf32, #tpu.memory_space<vmem>>, %arg13: memref<32x32xf32, #tpu.memory_space<vmem>>, %arg14: memref<1x32xf32, #tpu.memory_space<vmem>>, %arg15: memref<64x64xf32, #tpu.memory_space<vmem>>, %arg16: memref<1x64xf32, #tpu.memory_space<vmem>>, %arg17: memref<64x32xf32, #tpu.memory_space<vmem>>, %arg18: memref<1x32xf32, #tpu.memory_space<vmem>>, %arg19: memref<2x32xf32, #tpu.memory_space<vmem>>) attributes {dimension_semantics = [], scalar_prefetch = 0 : i64, scratch_operands = 0 : i64, tpu.core_type = #tpu.core_type<tc>} {
    %c0 = arith.constant 0 : index
    %c0_0 = arith.constant 0 : index
    %0 = vector.load %arg5[%c0, %c0_0] : memref<8x2xf32, #tpu.memory_space<vmem>>, vector<8x2xf32>
    %c0_1 = arith.constant 0 : index
    %c0_2 = arith.constant 0 : index
    %1 = vector.load %arg4[%c0_1, %c0_2] : memref<2x32xf32, #tpu.memory_space<vmem>>, vector<2x32xf32>
    %cst = arith.constant dense<0.000000e+00> : vector<8x32xf32>
    %2 = tpu.matmul %0, %1, %cst {dimension_numbers = #tpu.dot_dimension_numbers<[1], [0], [0], [1], [0, 0, 1, 1], [], []>} : vector<8x2xf32>, vector<2x32xf32>, vector<8x32xf32> -> vector<8x32xf32>
    %c0_3 = arith.constant 0 : index
    %c0_4 = arith.constant 0 : index
    %3 = vector.load %arg0[%c0_3, %c0_4] : memref<8x32xf32, #tpu.memory_space<vmem>>, vector<8x32xf32>
    %4 = arith.mulf %3, %2 : vector<8x32xf32>
    %c0_5 = arith.constant 0 : index
    %c0_6 = arith.constant 0 : index
    %5 = vector.load %arg1[%c0_5, %c0_6] : memref<8x32xf32, #tpu.memory_space<vmem>>, vector<8x32xf32>
    %6 = tpu.concatenate %4, %5 in 0 : vector<8x32xf32>, vector<8x32xf32> -> vector<16x32xf32>
    %c0_7 = arith.constant 0 : index
    %c0_8 = arith.constant 0 : index
    %7 = vector.load %arg7[%c0_7, %c0_8] : memref<32x32xf32, #tpu.memory_space<vmem>>, vector<32x32xf32>
    %cst_9 = arith.constant dense<0.000000e+00> : vector<16x32xf32>
    %8 = tpu.matmul %6, %7, %cst_9 {dimension_numbers = #tpu.dot_dimension_numbers<[1], [0], [0], [1], [0, 0, 1, 1], [], []>} : vector<16x32xf32>, vector<32x32xf32>, vector<16x32xf32> -> vector<16x32xf32>
    %c0_10 = arith.constant 0 : index
    %c0_11 = arith.constant 0 : index
    %9 = vector.load %arg8[%c0_10, %c0_11] : memref<1x32xf32, #tpu.memory_space<vmem>>, vector<1x32xf32>
    %10 = vector.broadcast %9 : vector<1x32xf32> to vector<16x32xf32>
    %11 = arith.addf %8, %10 : vector<16x32xf32>
    %12 = vector.extract_strided_slice %11 {offsets = [0, 0], sizes = [8, 32], strides = [1, 1]} : vector<16x32xf32> to vector<8x32xf32>
    %13 = vector.extract_strided_slice %11 {offsets = [8, 0], sizes = [8, 32], strides = [1, 1]} : vector<16x32xf32> to vector<8x32xf32>
    %c0_12 = arith.constant 0 : index
    %c0_13 = arith.constant 0 : index
    %14 = vector.load %arg9[%c0_12, %c0_13] : memref<64x32xf32, #tpu.memory_space<vmem>>, vector<64x32xf32>
    %c0_14 = arith.constant 0 : index
    %c0_15 = arith.constant 0 : index
    %15 = vector.load %arg10[%c0_14, %c0_15] : memref<1x32xf32, #tpu.memory_space<vmem>>, vector<1x32xf32>
    %c0_16 = arith.constant 0 : index
    %c0_17 = arith.constant 0 : index
    %16 = vector.load %arg11[%c0_16, %c0_17] : memref<32x1xf32, #tpu.memory_space<vmem>>, vector<32x1xf32>
    %c0_18 = arith.constant 0 : index
    %c0_19 = arith.constant 0 : index
    %17 = vector.load %arg12[%c0_18, %c0_19] : memref<1x1xf32, #tpu.memory_space<vmem>>, vector<1x1xf32>
    %18 = vector.extract_strided_slice %14 {offsets = [0, 0], sizes = [32, 32], strides = [1, 1]} : vector<64x32xf32> to vector<32x32xf32>
    %cst_20 = arith.constant dense<0.000000e+00> : vector<8x32xf32>
    %19 = tpu.matmul %12, %18, %cst_20 {dimension_numbers = #tpu.dot_dimension_numbers<[1], [0], [0], [1], [0, 0, 1, 1], [], []>} : vector<8x32xf32>, vector<32x32xf32>, vector<8x32xf32> -> vector<8x32xf32>
    %20 = vector.extract_strided_slice %14 {offsets = [32, 0], sizes = [32, 32], strides = [1, 1]} : vector<64x32xf32> to vector<32x32xf32>
    %cst_21 = arith.constant dense<0.000000e+00> : vector<8x32xf32>
    %21 = tpu.matmul %13, %20, %cst_21 {dimension_numbers = #tpu.dot_dimension_numbers<[1], [0], [0], [1], [0, 0, 1, 1], [], []>} : vector<8x32xf32>, vector<32x32xf32>, vector<8x32xf32> -> vector<8x32xf32>
    %22 = arith.addf %19, %21 : vector<8x32xf32>
    %23 = vector.broadcast %15 : vector<1x32xf32> to vector<8x32xf32>
    %24 = arith.addf %22, %23 : vector<8x32xf32>
    %cst_22 = arith.constant 0.000000e+00 : f32
    %25 = vector.broadcast %cst_22 : f32 to vector<8x32xf32>
    %26 = arith.cmpf oge, %24, %25 : vector<8x32xf32>
    %cst_23 = arith.constant 2.000000e-01 : f32
    %27 = vector.broadcast %cst_23 : f32 to vector<8x32xf32>
    %28 = arith.mulf %27, %24 : vector<8x32xf32>
    %29 = arith.select %26, %24, %28 : vector<8x32xi1>, vector<8x32xf32>
    %cst_24 = arith.constant dense<0.000000e+00> : vector<8x1xf32>
    %30 = tpu.matmul %29, %16, %cst_24 {dimension_numbers = #tpu.dot_dimension_numbers<[1], [0], [0], [1], [0, 0, 1, 1], [], []>} : vector<8x32xf32>, vector<32x1xf32>, vector<8x1xf32> -> vector<8x1xf32>
    %31 = vector.broadcast %17 : vector<1x1xf32> to vector<8x1xf32>
    %32 = arith.addf %30, %31 : vector<8x1xf32>
    %c0_25 = arith.constant 0 : index
    %c0_26 = arith.constant 0 : index
    %33 = vector.load %arg2[%c0_25, %c0_26] : memref<8x1xf32, #tpu.memory_space<vmem>>, vector<8x1xf32>
    %c0_27 = arith.constant 0 : index
    %c0_28 = arith.constant 0 : index
    %34 = vector.load %arg6[%c0_27, %c0_28] : memref<2x8xf32, #tpu.memory_space<vmem>>, vector<2x8xf32>
    %cst_29 = arith.constant dense<0xFF800000> : vector<1xf32>
    %35 = vector.multi_reduction <maximumf>, %32, %cst_29 [0] : vector<8x1xf32> to vector<1xf32>
    %36 = vector.shape_cast %35 : vector<1xf32> to vector<1x1xf32>
    %37 = vector.broadcast %36 : vector<1x1xf32> to vector<8x1xf32>
    %38 = arith.subf %32, %37 : vector<8x1xf32>
    %39 = math.exp %38 : vector<8x1xf32>
    %40 = arith.mulf %39, %33 : vector<8x1xf32>
    %41 = vector.broadcast %40 : vector<8x1xf32> to vector<8x32xf32>
    %42 = arith.mulf %41, %4 : vector<8x32xf32>
    %cst_30 = arith.constant dense<0.000000e+00> : vector<2x32xf32>
    %43 = tpu.matmul %34, %42, %cst_30 {dimension_numbers = #tpu.dot_dimension_numbers<[1], [0], [0], [1], [0, 0, 1, 1], [], []>} : vector<2x8xf32>, vector<8x32xf32>, vector<2x32xf32> -> vector<2x32xf32>
    %cst_31 = arith.constant dense<0.000000e+00> : vector<2x1xf32>
    %44 = tpu.matmul %34, %40, %cst_31 {dimension_numbers = #tpu.dot_dimension_numbers<[1], [0], [0], [1], [0, 0, 1, 1], [], []>} : vector<2x8xf32>, vector<8x1xf32>, vector<2x1xf32> -> vector<2x1xf32>
    %cst_32 = arith.constant 1.000000e-10 : f32
    %45 = vector.broadcast %cst_32 : f32 to vector<2x1xf32>
    %46 = arith.addf %44, %45 : vector<2x1xf32>
    %47 = tpu.reciprocal %46 {approx = true} : vector<2x1xf32> -> vector<2x1xf32>
    %48 = vector.broadcast %47 : vector<2x1xf32> to vector<2x32xf32>
    %49 = arith.mulf %43, %48 : vector<2x32xf32>
    %c0_33 = arith.constant 0 : index
    %c0_34 = arith.constant 0 : index
    %50 = vector.load %arg13[%c0_33, %c0_34] : memref<32x32xf32, #tpu.memory_space<vmem>>, vector<32x32xf32>
    %cst_35 = arith.constant dense<0.000000e+00> : vector<2x32xf32>
    %51 = tpu.matmul %49, %50, %cst_35 {dimension_numbers = #tpu.dot_dimension_numbers<[1], [0], [0], [1], [0, 0, 1, 1], [], []>} : vector<2x32xf32>, vector<32x32xf32>, vector<2x32xf32> -> vector<2x32xf32>
    %c0_36 = arith.constant 0 : index
    %c0_37 = arith.constant 0 : index
    %52 = vector.load %arg14[%c0_36, %c0_37] : memref<1x32xf32, #tpu.memory_space<vmem>>, vector<1x32xf32>
    %53 = vector.broadcast %52 : vector<1x32xf32> to vector<2x32xf32>
    %54 = arith.addf %51, %53 : vector<2x32xf32>
    %cst_38 = arith.constant 0.000000e+00 : f32
    %55 = vector.broadcast %cst_38 : f32 to vector<2x32xf32>
    %56 = arith.maximumf %54, %55 : vector<2x32xf32>
    %c0_39 = arith.constant 0 : index
    %c0_40 = arith.constant 0 : index
    %57 = vector.load %arg3[%c0_39, %c0_40] : memref<2x32xf32, #tpu.memory_space<vmem>>, vector<2x32xf32>
    %c0_41 = arith.constant 0 : index
    %c0_42 = arith.constant 0 : index
    %58 = vector.load %arg4[%c0_41, %c0_42] : memref<2x32xf32, #tpu.memory_space<vmem>>, vector<2x32xf32>
    %59 = arith.mulf %57, %58 : vector<2x32xf32>
    %c0_43 = arith.constant 0 : index
    %c0_44 = arith.constant 0 : index
    %60 = vector.load %arg15[%c0_43, %c0_44] : memref<64x64xf32, #tpu.memory_space<vmem>>, vector<32x64xf32>
    %cst_45 = arith.constant dense<0.000000e+00> : vector<2x64xf32>
    %61 = tpu.matmul %59, %60, %cst_45 {dimension_numbers = #tpu.dot_dimension_numbers<[1], [0], [0], [1], [0, 0, 1, 1], [], []>} : vector<2x32xf32>, vector<32x64xf32>, vector<2x64xf32> -> vector<2x64xf32>
    %c32 = arith.constant 32 : index
    %c0_46 = arith.constant 0 : index
    %62 = vector.load %arg15[%c32, %c0_46] : memref<64x64xf32, #tpu.memory_space<vmem>>, vector<32x64xf32>
    %cst_47 = arith.constant dense<0.000000e+00> : vector<2x64xf32>
    %63 = tpu.matmul %56, %62, %cst_47 {dimension_numbers = #tpu.dot_dimension_numbers<[1], [0], [0], [1], [0, 0, 1, 1], [], []>} : vector<2x32xf32>, vector<32x64xf32>, vector<2x64xf32> -> vector<2x64xf32>
    %64 = arith.addf %61, %63 : vector<2x64xf32>
    %c0_48 = arith.constant 0 : index
    %c0_49 = arith.constant 0 : index
    %65 = vector.load %arg16[%c0_48, %c0_49] : memref<1x64xf32, #tpu.memory_space<vmem>>, vector<1x64xf32>
    %66 = vector.broadcast %65 : vector<1x64xf32> to vector<2x64xf32>
    %67 = arith.addf %64, %66 : vector<2x64xf32>
    %cst_50 = arith.constant 0.000000e+00 : f32
    %68 = vector.broadcast %cst_50 : f32 to vector<2x64xf32>
    %69 = arith.maximumf %67, %68 : vector<2x64xf32>
    %c0_51 = arith.constant 0 : index
    %c0_52 = arith.constant 0 : index
    %70 = vector.load %arg17[%c0_51, %c0_52] : memref<64x32xf32, #tpu.memory_space<vmem>>, vector<64x32xf32>
    %cst_53 = arith.constant dense<0.000000e+00> : vector<2x32xf32>
    %71 = tpu.matmul %69, %70, %cst_53 {dimension_numbers = #tpu.dot_dimension_numbers<[1], [0], [0], [1], [0, 0, 1, 1], [], []>} : vector<2x64xf32>, vector<64x32xf32>, vector<2x32xf32> -> vector<2x32xf32>
    %c0_54 = arith.constant 0 : index
    %c0_55 = arith.constant 0 : index
    %72 = vector.load %arg18[%c0_54, %c0_55] : memref<1x32xf32, #tpu.memory_space<vmem>>, vector<1x32xf32>
    %73 = vector.broadcast %72 : vector<1x32xf32> to vector<2x32xf32>
    %74 = arith.addf %71, %73 : vector<2x32xf32>
    %cst_56 = arith.constant 0.000000e+00 : f32
    %75 = vector.broadcast %cst_56 : f32 to vector<2x32xf32>
    %76 = arith.maximumf %74, %75 : vector<2x32xf32>
    %c0_57 = arith.constant 0 : index
    %c0_58 = arith.constant 0 : index
    %77 = vector.load %arg19[%c0_57, %c0_58] : memref<2x32xf32, #tpu.memory_space<vmem>>, vector<2x32xf32>
    tpu.vector_store %arg19[%c0_57, %c0_58], %76 {strides = array<i32>} : memref<2x32xf32, #tpu.memory_space<vmem>>, vector<2x32xf32>,
    return
  }
}

module attributes {stable_mosaic.version = 11 : i64} {
  func.func @_item_users_gru_kernel(%arg0: memref<16x64xf32, #tpu.memory_space<vmem>>, %arg1: memref<16x32xf32, #tpu.memory_space<vmem>>, %arg2: memref<16x1xf32, #tpu.memory_space<vmem>>, %arg3: memref<2x16xf32, #tpu.memory_space<vmem>>, %arg4: memref<64x32xf32, #tpu.memory_space<vmem>>, %arg5: memref<1x32xf32, #tpu.memory_space<vmem>>, %arg6: memref<32x32xf32, #tpu.memory_space<vmem>>, %arg7: memref<1x32xf32, #tpu.memory_space<vmem>>, %arg8: memref<32x32xf32, #tpu.memory_space<vmem>>, %arg9: memref<1x32xf32, #tpu.memory_space<vmem>>, %arg10: memref<64x32xf32, #tpu.memory_space<vmem>>, %arg11: memref<1x32xf32, #tpu.memory_space<vmem>>, %arg12: memref<32x1xf32, #tpu.memory_space<vmem>>, %arg13: memref<1x1xf32, #tpu.memory_space<vmem>>, %arg14: memref<32x32xf32, #tpu.memory_space<vmem>>, %arg15: memref<1x32xf32, #tpu.memory_space<vmem>>, %arg16: memref<4x32x96xf32, #tpu.memory_space<vmem>>, %arg17: memref<4x32x96xf32, #tpu.memory_space<vmem>>, %arg18: memref<4x1x96xf32, #tpu.memory_space<vmem>>, %arg19: memref<4x1x96xf32, #tpu.memory_space<vmem>>, %arg20: memref<4x2x32xf32, #tpu.memory_space<vmem>>, %arg21: memref<2x32xf32, #tpu.memory_space<vmem>>, %arg22: memref<2x32xf32, #tpu.memory_space<vmem>>, %arg23: memref<16x96xf32, #tpu.memory_space<vmem>>) attributes {dimension_semantics = [], scalar_prefetch = 0 : i64, scratch_operands = 1 : i64, tpu.core_type = #tpu.core_type<tc>} {
    %c0 = arith.constant 0 : index
    %c0_0 = arith.constant 0 : index
    %0 = vector.load %arg0[%c0, %c0_0] : memref<16x64xf32, #tpu.memory_space<vmem>>, vector<16x64xf32>
    %c0_1 = arith.constant 0 : index
    %c0_2 = arith.constant 0 : index
    %1 = vector.load %arg4[%c0_1, %c0_2] : memref<64x32xf32, #tpu.memory_space<vmem>>, vector<64x32xf32>
    %c0_3 = arith.constant 0 : index
    %c0_4 = arith.constant 0 : index
    %2 = vector.load %arg5[%c0_3, %c0_4] : memref<1x32xf32, #tpu.memory_space<vmem>>, vector<1x32xf32>
    %c0_5 = arith.constant 0 : index
    %c0_6 = arith.constant 0 : index
    %3 = vector.load %arg6[%c0_5, %c0_6] : memref<32x32xf32, #tpu.memory_space<vmem>>, vector<32x32xf32>
    %c0_7 = arith.constant 0 : index
    %c0_8 = arith.constant 0 : index
    %4 = vector.load %arg7[%c0_7, %c0_8] : memref<1x32xf32, #tpu.memory_space<vmem>>, vector<1x32xf32>
    %cst = arith.constant dense<0.000000e+00> : vector<16x32xf32>
    %5 = tpu.matmul %0, %1, %cst {dimension_numbers = #tpu.dot_dimension_numbers<[1], [0], [0], [1], [0, 0, 1, 1], [], []>} : vector<16x64xf32>, vector<64x32xf32>, vector<16x32xf32> -> vector<16x32xf32>
    %6 = vector.broadcast %2 : vector<1x32xf32> to vector<16x32xf32>
    %7 = arith.addf %5, %6 : vector<16x32xf32>
    %cst_9 = arith.constant 0.000000e+00 : f32
    %8 = vector.broadcast %cst_9 : f32 to vector<16x32xf32>
    %9 = arith.cmpf oge, %7, %8 : vector<16x32xf32>
    %cst_10 = arith.constant 2.000000e-01 : f32
    %10 = vector.broadcast %cst_10 : f32 to vector<16x32xf32>
    %11 = arith.mulf %10, %7 : vector<16x32xf32>
    %12 = arith.select %9, %7, %11 : vector<16x32xi1>, vector<16x32xf32>
    %cst_11 = arith.constant dense<0.000000e+00> : vector<16x32xf32>
    %13 = tpu.matmul %12, %3, %cst_11 {dimension_numbers = #tpu.dot_dimension_numbers<[1], [0], [0], [1], [0, 0, 1, 1], [], []>} : vector<16x32xf32>, vector<32x32xf32>, vector<16x32xf32> -> vector<16x32xf32>
    %14 = vector.broadcast %4 : vector<1x32xf32> to vector<16x32xf32>
    %15 = arith.addf %13, %14 : vector<16x32xf32>
    %c0_12 = arith.constant 0 : index
    %c0_13 = arith.constant 0 : index
    %16 = vector.load %arg1[%c0_12, %c0_13] : memref<16x32xf32, #tpu.memory_space<vmem>>, vector<16x32xf32>
    %17 = tpu.concatenate %15, %16 in 0 : vector<16x32xf32>, vector<16x32xf32> -> vector<32x32xf32>
    %c0_14 = arith.constant 0 : index
    %c0_15 = arith.constant 0 : index
    %18 = vector.load %arg8[%c0_14, %c0_15] : memref<32x32xf32, #tpu.memory_space<vmem>>, vector<32x32xf32>
    %cst_16 = arith.constant dense<0.000000e+00> : vector<32x32xf32>
    %19 = tpu.matmul %17, %18, %cst_16 {dimension_numbers = #tpu.dot_dimension_numbers<[1], [0], [0], [1], [0, 0, 1, 1], [], []>} : vector<32x32xf32>, vector<32x32xf32>, vector<32x32xf32> -> vector<32x32xf32>
    %c0_17 = arith.constant 0 : index
    %c0_18 = arith.constant 0 : index
    %20 = vector.load %arg9[%c0_17, %c0_18] : memref<1x32xf32, #tpu.memory_space<vmem>>, vector<1x32xf32>
    %21 = vector.broadcast %20 : vector<1x32xf32> to vector<32x32xf32>
    %22 = arith.addf %19, %21 : vector<32x32xf32>
    %23 = vector.extract_strided_slice %22 {offsets = [0, 0], sizes = [16, 32], strides = [1, 1]} : vector<32x32xf32> to vector<16x32xf32>
    %24 = vector.extract_strided_slice %22 {offsets = [16, 0], sizes = [16, 32], strides = [1, 1]} : vector<32x32xf32> to vector<16x32xf32>
    %c0_19 = arith.constant 0 : index
    %c0_20 = arith.constant 0 : index
    %25 = vector.load %arg10[%c0_19, %c0_20] : memref<64x32xf32, #tpu.memory_space<vmem>>, vector<64x32xf32>
    %c0_21 = arith.constant 0 : index
    %c0_22 = arith.constant 0 : index
    %26 = vector.load %arg11[%c0_21, %c0_22] : memref<1x32xf32, #tpu.memory_space<vmem>>, vector<1x32xf32>
    %c0_23 = arith.constant 0 : index
    %c0_24 = arith.constant 0 : index
    %27 = vector.load %arg12[%c0_23, %c0_24] : memref<32x1xf32, #tpu.memory_space<vmem>>, vector<32x1xf32>
    %c0_25 = arith.constant 0 : index
    %c0_26 = arith.constant 0 : index
    %28 = vector.load %arg13[%c0_25, %c0_26] : memref<1x1xf32, #tpu.memory_space<vmem>>, vector<1x1xf32>
    %29 = vector.extract_strided_slice %25 {offsets = [0, 0], sizes = [32, 32], strides = [1, 1]} : vector<64x32xf32> to vector<32x32xf32>
    %cst_27 = arith.constant dense<0.000000e+00> : vector<16x32xf32>
    %30 = tpu.matmul %23, %29, %cst_27 {dimension_numbers = #tpu.dot_dimension_numbers<[1], [0], [0], [1], [0, 0, 1, 1], [], []>} : vector<16x32xf32>, vector<32x32xf32>, vector<16x32xf32> -> vector<16x32xf32>
    %31 = vector.extract_strided_slice %25 {offsets = [32, 0], sizes = [32, 32], strides = [1, 1]} : vector<64x32xf32> to vector<32x32xf32>
    %cst_28 = arith.constant dense<0.000000e+00> : vector<16x32xf32>
    %32 = tpu.matmul %24, %31, %cst_28 {dimension_numbers = #tpu.dot_dimension_numbers<[1], [0], [0], [1], [0, 0, 1, 1], [], []>} : vector<16x32xf32>, vector<32x32xf32>, vector<16x32xf32> -> vector<16x32xf32>
    %33 = arith.addf %30, %32 : vector<16x32xf32>
    %34 = vector.broadcast %26 : vector<1x32xf32> to vector<16x32xf32>
    %35 = arith.addf %33, %34 : vector<16x32xf32>
    %cst_29 = arith.constant 0.000000e+00 : f32
    %36 = vector.broadcast %cst_29 : f32 to vector<16x32xf32>
    %37 = arith.cmpf oge, %35, %36 : vector<16x32xf32>
    %cst_30 = arith.constant 2.000000e-01 : f32
    %38 = vector.broadcast %cst_30 : f32 to vector<16x32xf32>
    %39 = arith.mulf %38, %35 : vector<16x32xf32>
    %40 = arith.select %37, %35, %39 : vector<16x32xi1>, vector<16x32xf32>
    %cst_31 = arith.constant dense<0.000000e+00> : vector<16x1xf32>
    %41 = tpu.matmul %40, %27, %cst_31 {dimension_numbers = #tpu.dot_dimension_numbers<[1], [0], [0], [1], [0, 0, 1, 1], [], []>} : vector<16x32xf32>, vector<32x1xf32>, vector<16x1xf32> -> vector<16x1xf32>
    %42 = vector.broadcast %28 : vector<1x1xf32> to vector<16x1xf32>
    %43 = arith.addf %41, %42 : vector<16x1xf32>
    %c0_32 = arith.constant 0 : index
    %c0_33 = arith.constant 0 : index
    %44 = vector.load %arg2[%c0_32, %c0_33] : memref<16x1xf32, #tpu.memory_space<vmem>>, vector<16x1xf32>
    %c0_34 = arith.constant 0 : index
    %c0_35 = arith.constant 0 : index
    %45 = vector.load %arg3[%c0_34, %c0_35] : memref<2x16xf32, #tpu.memory_space<vmem>>, vector<2x16xf32>
    %cst_36 = arith.constant dense<0xFF800000> : vector<1xf32>
    %46 = vector.multi_reduction <maximumf>, %43, %cst_36 [0] : vector<16x1xf32> to vector<1xf32>
    %47 = vector.shape_cast %46 : vector<1xf32> to vector<1x1xf32>
    %48 = vector.broadcast %47 : vector<1x1xf32> to vector<16x1xf32>
    %49 = arith.subf %43, %48 : vector<16x1xf32>
    %50 = math.exp %49 : vector<16x1xf32>
    %51 = arith.mulf %50, %44 : vector<16x1xf32>
    %52 = vector.broadcast %51 : vector<16x1xf32> to vector<16x32xf32>
    %53 = arith.mulf %52, %23 : vector<16x32xf32>
    %cst_37 = arith.constant dense<0.000000e+00> : vector<2x32xf32>
    %54 = tpu.matmul %45, %53, %cst_37 {dimension_numbers = #tpu.dot_dimension_numbers<[1], [0], [0], [1], [0, 0, 1, 1], [], []>} : vector<2x16xf32>, vector<16x32xf32>, vector<2x32xf32> -> vector<2x32xf32>
    %cst_38 = arith.constant dense<0.000000e+00> : vector<2x1xf32>
    %55 = tpu.matmul %45, %51, %cst_38 {dimension_numbers = #tpu.dot_dimension_numbers<[1], [0], [0], [1], [0, 0, 1, 1], [], []>} : vector<2x16xf32>, vector<16x1xf32>, vector<2x1xf32> -> vector<2x1xf32>
    %cst_39 = arith.constant 1.000000e-10 : f32
    %56 = vector.broadcast %cst_39 : f32 to vector<2x1xf32>
    %57 = arith.addf %55, %56 : vector<2x1xf32>
    %58 = tpu.reciprocal %57 {approx = true} : vector<2x1xf32> -> vector<2x1xf32>
    %59 = vector.broadcast %58 : vector<2x1xf32> to vector<2x32xf32>
    %60 = arith.mulf %54, %59 : vector<2x32xf32>
    %c0_40 = arith.constant 0 : index
    %c0_41 = arith.constant 0 : index
    %61 = vector.load %arg14[%c0_40, %c0_41] : memref<32x32xf32, #tpu.memory_space<vmem>>, vector<32x32xf32>
    %cst_42 = arith.constant dense<0.000000e+00> : vector<2x32xf32>
    %62 = tpu.matmul %60, %61, %cst_42 {dimension_numbers = #tpu.dot_dimension_numbers<[1], [0], [0], [1], [0, 0, 1, 1], [], []>} : vector<2x32xf32>, vector<32x32xf32>, vector<2x32xf32> -> vector<2x32xf32>
    %c0_43 = arith.constant 0 : index
    %c0_44 = arith.constant 0 : index
    %63 = vector.load %arg15[%c0_43, %c0_44] : memref<1x32xf32, #tpu.memory_space<vmem>>, vector<1x32xf32>
    %64 = vector.broadcast %63 : vector<1x32xf32> to vector<2x32xf32>
    %65 = arith.addf %62, %64 : vector<2x32xf32>
    %cst_45 = arith.constant 0.000000e+00 : f32
    %66 = vector.broadcast %cst_45 : f32 to vector<2x32xf32>
    %67 = arith.maximumf %65, %66 : vector<2x32xf32>
    %c0_46 = arith.constant 0 : index
    %c0_47 = arith.constant 0 : index
    %68 = vector.load %arg21[%c0_46, %c0_47] : memref<2x32xf32, #tpu.memory_space<vmem>>, vector<2x32xf32>
    tpu.vector_store %arg21[%c0_46, %c0_47], %67 {strides = array<i32>} : memref<2x32xf32, #tpu.memory_space<vmem>>, vector<2x32xf32>,
    %c0_48 = arith.constant 0 : index
    %c0_49 = arith.constant 0 : index
    %c0_50 = arith.constant 0 : index
    %69 = vector.load %arg16[%c0_48, %c0_49, %c0_50] : memref<4x32x96xf32, #tpu.memory_space<vmem>>, vector<1x32x96xf32>
    %70 = vector.shape_cast %69 : vector<1x32x96xf32> to vector<32x96xf32>
    %cst_51 = arith.constant dense<0.000000e+00> : vector<16x96xf32>
    %71 = tpu.matmul %15, %70, %cst_51 {dimension_numbers = #tpu.dot_dimension_numbers<[1], [0], [0], [1], [0, 0, 1, 1], [], []>} : vector<16x32xf32>, vector<32x96xf32>, vector<16x96xf32> -> vector<16x96xf32>
    %c0_52 = arith.constant 0 : index
    %c0_53 = arith.constant 0 : index
    %c0_54 = arith.constant 0 : index
    %72 = vector.load %arg18[%c0_52, %c0_53, %c0_54] : memref<4x1x96xf32, #tpu.memory_space<vmem>>, vector<1x1x96xf32>
    %73 = vector.shape_cast %72 : vector<1x1x96xf32> to vector<1x96xf32>
    %74 = vector.broadcast %73 : vector<1x96xf32> to vector<16x96xf32>
    %75 = arith.addf %71, %74 : vector<16x96xf32>
    %c0_55 = arith.constant 0 : index
    %c0_56 = arith.constant 0 : index
    %76 = vector.load %arg23[%c0_55, %c0_56] : memref<16x96xf32, #tpu.memory_space<vmem>>, vector<16x96xf32>
    tpu.vector_store %arg23[%c0_55, %c0_56], %75 {strides = array<i32>} : memref<16x96xf32, #tpu.memory_space<vmem>>, vector<16x96xf32>,
    %c0_57 = arith.constant 0 : index
    %c0_58 = arith.constant 0 : index
    %77 = vector.load %arg23[%c0_57, %c0_58] : memref<16x96xf32, #tpu.memory_space<vmem>>, vector<2x96xf32>
    %c2 = arith.constant 2 : index
    %c0_59 = arith.constant 0 : index
    %78 = vector.load %arg23[%c2, %c0_59] : memref<16x96xf32, #tpu.memory_space<vmem>>, vector<2x96xf32>
    %c4 = arith.constant 4 : index
    %c0_60 = arith.constant 0 : index
    %79 = vector.load %arg23[%c4, %c0_60] : memref<16x96xf32, #tpu.memory_space<vmem>>, vector<2x96xf32>
    %c6 = arith.constant 6 : index
    %c0_61 = arith.constant 0 : index
    %80 = vector.load %arg23[%c6, %c0_61] : memref<16x96xf32, #tpu.memory_space<vmem>>, vector<2x96xf32>
    %c8 = arith.constant 8 : index
    %c0_62 = arith.constant 0 : index
    %81 = vector.load %arg23[%c8, %c0_62] : memref<16x96xf32, #tpu.memory_space<vmem>>, vector<2x96xf32>
    %c10 = arith.constant 10 : index
    %c0_63 = arith.constant 0 : index
    %82 = vector.load %arg23[%c10, %c0_63] : memref<16x96xf32, #tpu.memory_space<vmem>>, vector<2x96xf32>
    %c12 = arith.constant 12 : index
    %c0_64 = arith.constant 0 : index
    %83 = vector.load %arg23[%c12, %c0_64] : memref<16x96xf32, #tpu.memory_space<vmem>>, vector<2x96xf32>
    %c14 = arith.constant 14 : index
    %c0_65 = arith.constant 0 : index
    %84 = vector.load %arg23[%c14, %c0_65] : memref<16x96xf32, #tpu.memory_space<vmem>>, vector<2x96xf32>
    %c0_66 = arith.constant 0 : index
    %c0_67 = arith.constant 0 : index
    %c0_68 = arith.constant 0 : index
    %85 = vector.load %arg17[%c0_66, %c0_67, %c0_68] : memref<4x32x96xf32, #tpu.memory_space<vmem>>, vector<1x32x96xf32>
    %86 = vector.shape_cast %85 : vector<1x32x96xf32> to vector<32x96xf32>
    %c0_69 = arith.constant 0 : index
    %c0_70 = arith.constant 0 : index
    %c0_71 = arith.constant 0 : index
    %87 = vector.load %arg19[%c0_69, %c0_70, %c0_71] : memref<4x1x96xf32, #tpu.memory_space<vmem>>, vector<1x1x96xf32>
    %88 = vector.shape_cast %87 : vector<1x1x96xf32> to vector<1x96xf32>
    %c0_72 = arith.constant 0 : index
    %c0_73 = arith.constant 0 : index
    %c0_74 = arith.constant 0 : index
    %89 = vector.load %arg20[%c0_72, %c0_73, %c0_74] : memref<4x2x32xf32, #tpu.memory_space<vmem>>, vector<1x2x32xf32>
    %90 = vector.shape_cast %89 : vector<1x2x32xf32> to vector<2x32xf32>
    %c1 = arith.constant 1 : index
    %c0_75 = arith.constant 0 : index
    %c0_76 = arith.constant 0 : index
    %91 = vector.load %arg16[%c1, %c0_75, %c0_76] : memref<4x32x96xf32, #tpu.memory_space<vmem>>, vector<1x32x96xf32>
    %92 = vector.shape_cast %91 : vector<1x32x96xf32> to vector<32x96xf32>
    %c1_77 = arith.constant 1 : index
    %c0_78 = arith.constant 0 : index
    %c0_79 = arith.constant 0 : index
    %93 = vector.load %arg18[%c1_77, %c0_78, %c0_79] : memref<4x1x96xf32, #tpu.memory_space<vmem>>, vector<1x1x96xf32>
    %94 = vector.shape_cast %93 : vector<1x1x96xf32> to vector<1x96xf32>
    %cst_80 = arith.constant dense<0.000000e+00> : vector<2x96xf32>
    %95 = tpu.matmul %90, %86, %cst_80 {dimension_numbers = #tpu.dot_dimension_numbers<[1], [0], [0], [1], [0, 0, 1, 1], [], []>} : vector<2x32xf32>, vector<32x96xf32>, vector<2x96xf32> -> vector<2x96xf32>
    %96 = vector.broadcast %88 : vector<1x96xf32> to vector<2x96xf32>
    %97 = arith.addf %95, %96 : vector<2x96xf32>
    %98 = vector.extract_strided_slice %77 {offsets = [0, 0], sizes = [2, 64], strides = [1, 1]} : vector<2x96xf32> to vector<2x64xf32>
    %99 = vector.extract_strided_slice %97 {offsets = [0, 0], sizes = [2, 64], strides = [1, 1]} : vector<2x96xf32> to vector<2x64xf32>
    %100 = arith.addf %98, %99 : vector<2x64xf32>
    %101 = arith.negf %100 : vector<2x64xf32>
    %102 = math.exp %101 : vector<2x64xf32>
    %cst_81 = arith.constant 1.000000e+00 : f32
    %103 = vector.broadcast %cst_81 : f32 to vector<2x64xf32>
    %104 = arith.addf %103, %102 : vector<2x64xf32>
    %105 = arith.divf %103, %104 : vector<2x64xf32>
    %106 = vector.extract_strided_slice %105 {offsets = [0, 0], sizes = [2, 32], strides = [1, 1]} : vector<2x64xf32> to vector<2x32xf32>
    %107 = vector.extract_strided_slice %105 {offsets = [0, 32], sizes = [2, 32], strides = [1, 1]} : vector<2x64xf32> to vector<2x32xf32>
    %108 = vector.extract_strided_slice %77 {offsets = [0, 64], sizes = [2, 32], strides = [1, 1]} : vector<2x96xf32> to vector<2x32xf32>
    %109 = vector.extract_strided_slice %97 {offsets = [0, 64], sizes = [2, 32], strides = [1, 1]} : vector<2x96xf32> to vector<2x32xf32>
    %110 = arith.mulf %106, %109 : vector<2x32xf32>
    %111 = arith.addf %108, %110 : vector<2x32xf32>
    %112 = math.tanh %111 : vector<2x32xf32>
    %cst_82 = arith.constant 1.000000e+00 : f32
    %113 = vector.broadcast %cst_82 : f32 to vector<2x32xf32>
    %114 = arith.subf %113, %107 : vector<2x32xf32>
    %115 = arith.mulf %114, %112 : vector<2x32xf32>
    %116 = arith.mulf %107, %90 : vector<2x32xf32>
    %117 = arith.addf %115, %116 : vector<2x32xf32>
    %cst_83 = arith.constant dense<0.000000e+00> : vector<2x96xf32>
    %118 = tpu.matmul %117, %92, %cst_83 {dimension_numbers = #tpu.dot_dimension_numbers<[1], [0], [0], [1], [0, 0, 1, 1], [], []>} : vector<2x32xf32>, vector<32x96xf32>, vector<2x96xf32> -> vector<2x96xf32>
    %119 = vector.broadcast %94 : vector<1x96xf32> to vector<2x96xf32>
    %120 = arith.addf %118, %119 : vector<2x96xf32>
    %cst_84 = arith.constant dense<0.000000e+00> : vector<2x96xf32>
    %121 = tpu.matmul %117, %86, %cst_84 {dimension_numbers = #tpu.dot_dimension_numbers<[1], [0], [0], [1], [0, 0, 1, 1], [], []>} : vector<2x32xf32>, vector<32x96xf32>, vector<2x96xf32> -> vector<2x96xf32>
    %122 = vector.broadcast %88 : vector<1x96xf32> to vector<2x96xf32>
    %123 = arith.addf %121, %122 : vector<2x96xf32>
    %124 = vector.extract_strided_slice %78 {offsets = [0, 0], sizes = [2, 64], strides = [1, 1]} : vector<2x96xf32> to vector<2x64xf32>
    %125 = vector.extract_strided_slice %123 {offsets = [0, 0], sizes = [2, 64], strides = [1, 1]} : vector<2x96xf32> to vector<2x64xf32>
    %126 = arith.addf %124, %125 : vector<2x64xf32>
    %127 = arith.negf %126 : vector<2x64xf32>
    %128 = math.exp %127 : vector<2x64xf32>
    %cst_85 = arith.constant 1.000000e+00 : f32
    %129 = vector.broadcast %cst_85 : f32 to vector<2x64xf32>
    %130 = arith.addf %129, %128 : vector<2x64xf32>
    %131 = arith.divf %129, %130 : vector<2x64xf32>
    %132 = vector.extract_strided_slice %131 {offsets = [0, 0], sizes = [2, 32], strides = [1, 1]} : vector<2x64xf32> to vector<2x32xf32>
    %133 = vector.extract_strided_slice %131 {offsets = [0, 32], sizes = [2, 32], strides = [1, 1]} : vector<2x64xf32> to vector<2x32xf32>
    %134 = vector.extract_strided_slice %78 {offsets = [0, 64], sizes = [2, 32], strides = [1, 1]} : vector<2x96xf32> to vector<2x32xf32>
    %135 = vector.extract_strided_slice %123 {offsets = [0, 64], sizes = [2, 32], strides = [1, 1]} : vector<2x96xf32> to vector<2x32xf32>
    %136 = arith.mulf %132, %135 : vector<2x32xf32>
    %137 = arith.addf %134, %136 : vector<2x32xf32>
    %138 = math.tanh %137 : vector<2x32xf32>
    %cst_86 = arith.constant 1.000000e+00 : f32
    %139 = vector.broadcast %cst_86 : f32 to vector<2x32xf32>
    %140 = arith.subf %139, %133 : vector<2x32xf32>
    %141 = arith.mulf %140, %138 : vector<2x32xf32>
    %142 = arith.mulf %133, %117 : vector<2x32xf32>
    %143 = arith.addf %141, %142 : vector<2x32xf32>
    %cst_87 = arith.constant dense<0.000000e+00> : vector<2x96xf32>
    %144 = tpu.matmul %143, %92, %cst_87 {dimension_numbers = #tpu.dot_dimension_numbers<[1], [0], [0], [1], [0, 0, 1, 1], [], []>} : vector<2x32xf32>, vector<32x96xf32>, vector<2x96xf32> -> vector<2x96xf32>
    %145 = vector.broadcast %94 : vector<1x96xf32> to vector<2x96xf32>
    %146 = arith.addf %144, %145 : vector<2x96xf32>
    %cst_88 = arith.constant dense<0.000000e+00> : vector<2x96xf32>
    %147 = tpu.matmul %143, %86, %cst_88 {dimension_numbers = #tpu.dot_dimension_numbers<[1], [0], [0], [1], [0, 0, 1, 1], [], []>} : vector<2x32xf32>, vector<32x96xf32>, vector<2x96xf32> -> vector<2x96xf32>
    %148 = vector.broadcast %88 : vector<1x96xf32> to vector<2x96xf32>
    %149 = arith.addf %147, %148 : vector<2x96xf32>
    %150 = vector.extract_strided_slice %79 {offsets = [0, 0], sizes = [2, 64], strides = [1, 1]} : vector<2x96xf32> to vector<2x64xf32>
    %151 = vector.extract_strided_slice %149 {offsets = [0, 0], sizes = [2, 64], strides = [1, 1]} : vector<2x96xf32> to vector<2x64xf32>
    %152 = arith.addf %150, %151 : vector<2x64xf32>
    %153 = arith.negf %152 : vector<2x64xf32>
    %154 = math.exp %153 : vector<2x64xf32>
    %cst_89 = arith.constant 1.000000e+00 : f32
    %155 = vector.broadcast %cst_89 : f32 to vector<2x64xf32>
    %156 = arith.addf %155, %154 : vector<2x64xf32>
    %157 = arith.divf %155, %156 : vector<2x64xf32>
    %158 = vector.extract_strided_slice %157 {offsets = [0, 0], sizes = [2, 32], strides = [1, 1]} : vector<2x64xf32> to vector<2x32xf32>
    %159 = vector.extract_strided_slice %157 {offsets = [0, 32], sizes = [2, 32], strides = [1, 1]} : vector<2x64xf32> to vector<2x32xf32>
    %160 = vector.extract_strided_slice %79 {offsets = [0, 64], sizes = [2, 32], strides = [1, 1]} : vector<2x96xf32> to vector<2x32xf32>
    %161 = vector.extract_strided_slice %149 {offsets = [0, 64], sizes = [2, 32], strides = [1, 1]} : vector<2x96xf32> to vector<2x32xf32>
    %162 = arith.mulf %158, %161 : vector<2x32xf32>
    %163 = arith.addf %160, %162 : vector<2x32xf32>
    %164 = math.tanh %163 : vector<2x32xf32>
    %cst_90 = arith.constant 1.000000e+00 : f32
    %165 = vector.broadcast %cst_90 : f32 to vector<2x32xf32>
    %166 = arith.subf %165, %159 : vector<2x32xf32>
    %167 = arith.mulf %166, %164 : vector<2x32xf32>
    %168 = arith.mulf %159, %143 : vector<2x32xf32>
    %169 = arith.addf %167, %168 : vector<2x32xf32>
    %cst_91 = arith.constant dense<0.000000e+00> : vector<2x96xf32>
    %170 = tpu.matmul %169, %92, %cst_91 {dimension_numbers = #tpu.dot_dimension_numbers<[1], [0], [0], [1], [0, 0, 1, 1], [], []>} : vector<2x32xf32>, vector<32x96xf32>, vector<2x96xf32> -> vector<2x96xf32>
    %171 = vector.broadcast %94 : vector<1x96xf32> to vector<2x96xf32>
    %172 = arith.addf %170, %171 : vector<2x96xf32>
    %cst_92 = arith.constant dense<0.000000e+00> : vector<2x96xf32>
    %173 = tpu.matmul %169, %86, %cst_92 {dimension_numbers = #tpu.dot_dimension_numbers<[1], [0], [0], [1], [0, 0, 1, 1], [], []>} : vector<2x32xf32>, vector<32x96xf32>, vector<2x96xf32> -> vector<2x96xf32>
    %174 = vector.broadcast %88 : vector<1x96xf32> to vector<2x96xf32>
    %175 = arith.addf %173, %174 : vector<2x96xf32>
    %176 = vector.extract_strided_slice %80 {offsets = [0, 0], sizes = [2, 64], strides = [1, 1]} : vector<2x96xf32> to vector<2x64xf32>
    %177 = vector.extract_strided_slice %175 {offsets = [0, 0], sizes = [2, 64], strides = [1, 1]} : vector<2x96xf32> to vector<2x64xf32>
    %178 = arith.addf %176, %177 : vector<2x64xf32>
    %179 = arith.negf %178 : vector<2x64xf32>
    %180 = math.exp %179 : vector<2x64xf32>
    %cst_93 = arith.constant 1.000000e+00 : f32
    %181 = vector.broadcast %cst_93 : f32 to vector<2x64xf32>
    %182 = arith.addf %181, %180 : vector<2x64xf32>
    %183 = arith.divf %181, %182 : vector<2x64xf32>
    %184 = vector.extract_strided_slice %183 {offsets = [0, 0], sizes = [2, 32], strides = [1, 1]} : vector<2x64xf32> to vector<2x32xf32>
    %185 = vector.extract_strided_slice %183 {offsets = [0, 32], sizes = [2, 32], strides = [1, 1]} : vector<2x64xf32> to vector<2x32xf32>
    %186 = vector.extract_strided_slice %80 {offsets = [0, 64], sizes = [2, 32], strides = [1, 1]} : vector<2x96xf32> to vector<2x32xf32>
    %187 = vector.extract_strided_slice %175 {offsets = [0, 64], sizes = [2, 32], strides = [1, 1]} : vector<2x96xf32> to vector<2x32xf32>
    %188 = arith.mulf %184, %187 : vector<2x32xf32>
    %189 = arith.addf %186, %188 : vector<2x32xf32>
    %190 = math.tanh %189 : vector<2x32xf32>
    %cst_94 = arith.constant 1.000000e+00 : f32
    %191 = vector.broadcast %cst_94 : f32 to vector<2x32xf32>
    %192 = arith.subf %191, %185 : vector<2x32xf32>
    %193 = arith.mulf %192, %190 : vector<2x32xf32>
    %194 = arith.mulf %185, %169 : vector<2x32xf32>
    %195 = arith.addf %193, %194 : vector<2x32xf32>
    %cst_95 = arith.constant dense<0.000000e+00> : vector<2x96xf32>
    %196 = tpu.matmul %195, %92, %cst_95 {dimension_numbers = #tpu.dot_dimension_numbers<[1], [0], [0], [1], [0, 0, 1, 1], [], []>} : vector<2x32xf32>, vector<32x96xf32>, vector<2x96xf32> -> vector<2x96xf32>
    %197 = vector.broadcast %94 : vector<1x96xf32> to vector<2x96xf32>
    %198 = arith.addf %196, %197 : vector<2x96xf32>
    %cst_96 = arith.constant dense<0.000000e+00> : vector<2x96xf32>
    %199 = tpu.matmul %195, %86, %cst_96 {dimension_numbers = #tpu.dot_dimension_numbers<[1], [0], [0], [1], [0, 0, 1, 1], [], []>} : vector<2x32xf32>, vector<32x96xf32>, vector<2x96xf32> -> vector<2x96xf32>
    %200 = vector.broadcast %88 : vector<1x96xf32> to vector<2x96xf32>
    %201 = arith.addf %199, %200 : vector<2x96xf32>
    %202 = vector.extract_strided_slice %81 {offsets = [0, 0], sizes = [2, 64], strides = [1, 1]} : vector<2x96xf32> to vector<2x64xf32>
    %203 = vector.extract_strided_slice %201 {offsets = [0, 0], sizes = [2, 64], strides = [1, 1]} : vector<2x96xf32> to vector<2x64xf32>
    %204 = arith.addf %202, %203 : vector<2x64xf32>
    %205 = arith.negf %204 : vector<2x64xf32>
    %206 = math.exp %205 : vector<2x64xf32>
    %cst_97 = arith.constant 1.000000e+00 : f32
    %207 = vector.broadcast %cst_97 : f32 to vector<2x64xf32>
    %208 = arith.addf %207, %206 : vector<2x64xf32>
    %209 = arith.divf %207, %208 : vector<2x64xf32>
    %210 = vector.extract_strided_slice %209 {offsets = [0, 0], sizes = [2, 32], strides = [1, 1]} : vector<2x64xf32> to vector<2x32xf32>
    %211 = vector.extract_strided_slice %209 {offsets = [0, 32], sizes = [2, 32], strides = [1, 1]} : vector<2x64xf32> to vector<2x32xf32>
    %212 = vector.extract_strided_slice %81 {offsets = [0, 64], sizes = [2, 32], strides = [1, 1]} : vector<2x96xf32> to vector<2x32xf32>
    %213 = vector.extract_strided_slice %201 {offsets = [0, 64], sizes = [2, 32], strides = [1, 1]} : vector<2x96xf32> to vector<2x32xf32>
    %214 = arith.mulf %210, %213 : vector<2x32xf32>
    %215 = arith.addf %212, %214 : vector<2x32xf32>
    %216 = math.tanh %215 : vector<2x32xf32>
    %cst_98 = arith.constant 1.000000e+00 : f32
    %217 = vector.broadcast %cst_98 : f32 to vector<2x32xf32>
    %218 = arith.subf %217, %211 : vector<2x32xf32>
    %219 = arith.mulf %218, %216 : vector<2x32xf32>
    %220 = arith.mulf %211, %195 : vector<2x32xf32>
    %221 = arith.addf %219, %220 : vector<2x32xf32>
    %cst_99 = arith.constant dense<0.000000e+00> : vector<2x96xf32>
    %222 = tpu.matmul %221, %92, %cst_99 {dimension_numbers = #tpu.dot_dimension_numbers<[1], [0], [0], [1], [0, 0, 1, 1], [], []>} : vector<2x32xf32>, vector<32x96xf32>, vector<2x96xf32> -> vector<2x96xf32>
    %223 = vector.broadcast %94 : vector<1x96xf32> to vector<2x96xf32>
    %224 = arith.addf %222, %223 : vector<2x96xf32>
    %cst_100 = arith.constant dense<0.000000e+00> : vector<2x96xf32>
    %225 = tpu.matmul %221, %86, %cst_100 {dimension_numbers = #tpu.dot_dimension_numbers<[1], [0], [0], [1], [0, 0, 1, 1], [], []>} : vector<2x32xf32>, vector<32x96xf32>, vector<2x96xf32> -> vector<2x96xf32>
    %226 = vector.broadcast %88 : vector<1x96xf32> to vector<2x96xf32>
    %227 = arith.addf %225, %226 : vector<2x96xf32>
    %228 = vector.extract_strided_slice %82 {offsets = [0, 0], sizes = [2, 64], strides = [1, 1]} : vector<2x96xf32> to vector<2x64xf32>
    %229 = vector.extract_strided_slice %227 {offsets = [0, 0], sizes = [2, 64], strides = [1, 1]} : vector<2x96xf32> to vector<2x64xf32>
    %230 = arith.addf %228, %229 : vector<2x64xf32>
    %231 = arith.negf %230 : vector<2x64xf32>
    %232 = math.exp %231 : vector<2x64xf32>
    %cst_101 = arith.constant 1.000000e+00 : f32
    %233 = vector.broadcast %cst_101 : f32 to vector<2x64xf32>
    %234 = arith.addf %233, %232 : vector<2x64xf32>
    %235 = arith.divf %233, %234 : vector<2x64xf32>
    %236 = vector.extract_strided_slice %235 {offsets = [0, 0], sizes = [2, 32], strides = [1, 1]} : vector<2x64xf32> to vector<2x32xf32>
    %237 = vector.extract_strided_slice %235 {offsets = [0, 32], sizes = [2, 32], strides = [1, 1]} : vector<2x64xf32> to vector<2x32xf32>
    %238 = vector.extract_strided_slice %82 {offsets = [0, 64], sizes = [2, 32], strides = [1, 1]} : vector<2x96xf32> to vector<2x32xf32>
    %239 = vector.extract_strided_slice %227 {offsets = [0, 64], sizes = [2, 32], strides = [1, 1]} : vector<2x96xf32> to vector<2x32xf32>
    %240 = arith.mulf %236, %239 : vector<2x32xf32>
    %241 = arith.addf %238, %240 : vector<2x32xf32>
    %242 = math.tanh %241 : vector<2x32xf32>
    %cst_102 = arith.constant 1.000000e+00 : f32
    %243 = vector.broadcast %cst_102 : f32 to vector<2x32xf32>
    %244 = arith.subf %243, %237 : vector<2x32xf32>
    %245 = arith.mulf %244, %242 : vector<2x32xf32>
    %246 = arith.mulf %237, %221 : vector<2x32xf32>
    %247 = arith.addf %245, %246 : vector<2x32xf32>
    %cst_103 = arith.constant dense<0.000000e+00> : vector<2x96xf32>
    %248 = tpu.matmul %247, %92, %cst_103 {dimension_numbers = #tpu.dot_dimension_numbers<[1], [0], [0], [1], [0, 0, 1, 1], [], []>} : vector<2x32xf32>, vector<32x96xf32>, vector<2x96xf32> -> vector<2x96xf32>
    %249 = vector.broadcast %94 : vector<1x96xf32> to vector<2x96xf32>
    %250 = arith.addf %248, %249 : vector<2x96xf32>
    %cst_104 = arith.constant dense<0.000000e+00> : vector<2x96xf32>
    %251 = tpu.matmul %247, %86, %cst_104 {dimension_numbers = #tpu.dot_dimension_numbers<[1], [0], [0], [1], [0, 0, 1, 1], [], []>} : vector<2x32xf32>, vector<32x96xf32>, vector<2x96xf32> -> vector<2x96xf32>
    %252 = vector.broadcast %88 : vector<1x96xf32> to vector<2x96xf32>
    %253 = arith.addf %251, %252 : vector<2x96xf32>
    %254 = vector.extract_strided_slice %83 {offsets = [0, 0], sizes = [2, 64], strides = [1, 1]} : vector<2x96xf32> to vector<2x64xf32>
    %255 = vector.extract_strided_slice %253 {offsets = [0, 0], sizes = [2, 64], strides = [1, 1]} : vector<2x96xf32> to vector<2x64xf32>
    %256 = arith.addf %254, %255 : vector<2x64xf32>
    %257 = arith.negf %256 : vector<2x64xf32>
    %258 = math.exp %257 : vector<2x64xf32>
    %cst_105 = arith.constant 1.000000e+00 : f32
    %259 = vector.broadcast %cst_105 : f32 to vector<2x64xf32>
    %260 = arith.addf %259, %258 : vector<2x64xf32>
    %261 = arith.divf %259, %260 : vector<2x64xf32>
    %262 = vector.extract_strided_slice %261 {offsets = [0, 0], sizes = [2, 32], strides = [1, 1]} : vector<2x64xf32> to vector<2x32xf32>
    %263 = vector.extract_strided_slice %261 {offsets = [0, 32], sizes = [2, 32], strides = [1, 1]} : vector<2x64xf32> to vector<2x32xf32>
    %264 = vector.extract_strided_slice %83 {offsets = [0, 64], sizes = [2, 32], strides = [1, 1]} : vector<2x96xf32> to vector<2x32xf32>
    %265 = vector.extract_strided_slice %253 {offsets = [0, 64], sizes = [2, 32], strides = [1, 1]} : vector<2x96xf32> to vector<2x32xf32>
    %266 = arith.mulf %262, %265 : vector<2x32xf32>
    %267 = arith.addf %264, %266 : vector<2x32xf32>
    %268 = math.tanh %267 : vector<2x32xf32>
    %cst_106 = arith.constant 1.000000e+00 : f32
    %269 = vector.broadcast %cst_106 : f32 to vector<2x32xf32>
    %270 = arith.subf %269, %263 : vector<2x32xf32>
    %271 = arith.mulf %270, %268 : vector<2x32xf32>
    %272 = arith.mulf %263, %247 : vector<2x32xf32>
    %273 = arith.addf %271, %272 : vector<2x32xf32>
    %cst_107 = arith.constant dense<0.000000e+00> : vector<2x96xf32>
    %274 = tpu.matmul %273, %92, %cst_107 {dimension_numbers = #tpu.dot_dimension_numbers<[1], [0], [0], [1], [0, 0, 1, 1], [], []>} : vector<2x32xf32>, vector<32x96xf32>, vector<2x96xf32> -> vector<2x96xf32>
    %275 = vector.broadcast %94 : vector<1x96xf32> to vector<2x96xf32>
    %276 = arith.addf %274, %275 : vector<2x96xf32>
    %cst_108 = arith.constant dense<0.000000e+00> : vector<2x96xf32>
    %277 = tpu.matmul %273, %86, %cst_108 {dimension_numbers = #tpu.dot_dimension_numbers<[1], [0], [0], [1], [0, 0, 1, 1], [], []>} : vector<2x32xf32>, vector<32x96xf32>, vector<2x96xf32> -> vector<2x96xf32>
    %278 = vector.broadcast %88 : vector<1x96xf32> to vector<2x96xf32>
    %279 = arith.addf %277, %278 : vector<2x96xf32>
    %280 = vector.extract_strided_slice %84 {offsets = [0, 0], sizes = [2, 64], strides = [1, 1]} : vector<2x96xf32> to vector<2x64xf32>
    %281 = vector.extract_strided_slice %279 {offsets = [0, 0], sizes = [2, 64], strides = [1, 1]} : vector<2x96xf32> to vector<2x64xf32>
    %282 = arith.addf %280, %281 : vector<2x64xf32>
    %283 = arith.negf %282 : vector<2x64xf32>
    %284 = math.exp %283 : vector<2x64xf32>
    %cst_109 = arith.constant 1.000000e+00 : f32
    %285 = vector.broadcast %cst_109 : f32 to vector<2x64xf32>
    %286 = arith.addf %285, %284 : vector<2x64xf32>
    %287 = arith.divf %285, %286 : vector<2x64xf32>
    %288 = vector.extract_strided_slice %287 {offsets = [0, 0], sizes = [2, 32], strides = [1, 1]} : vector<2x64xf32> to vector<2x32xf32>
    %289 = vector.extract_strided_slice %287 {offsets = [0, 32], sizes = [2, 32], strides = [1, 1]} : vector<2x64xf32> to vector<2x32xf32>
    %290 = vector.extract_strided_slice %84 {offsets = [0, 64], sizes = [2, 32], strides = [1, 1]} : vector<2x96xf32> to vector<2x32xf32>
    %291 = vector.extract_strided_slice %279 {offsets = [0, 64], sizes = [2, 32], strides = [1, 1]} : vector<2x96xf32> to vector<2x32xf32>
    %292 = arith.mulf %288, %291 : vector<2x32xf32>
    %293 = arith.addf %290, %292 : vector<2x32xf32>
    %294 = math.tanh %293 : vector<2x32xf32>
    %cst_110 = arith.constant 1.000000e+00 : f32
    %295 = vector.broadcast %cst_110 : f32 to vector<2x32xf32>
    %296 = arith.subf %295, %289 : vector<2x32xf32>
    %297 = arith.mulf %296, %294 : vector<2x32xf32>
    %298 = arith.mulf %289, %273 : vector<2x32xf32>
    %299 = arith.addf %297, %298 : vector<2x32xf32>
    %cst_111 = arith.constant dense<0.000000e+00> : vector<2x96xf32>
    %300 = tpu.matmul %299, %92, %cst_111 {dimension_numbers = #tpu.dot_dimension_numbers<[1], [0], [0], [1], [0, 0, 1, 1], [], []>} : vector<2x32xf32>, vector<32x96xf32>, vector<2x96xf32> -> vector<2x96xf32>
    %301 = vector.broadcast %94 : vector<1x96xf32> to vector<2x96xf32>
    %302 = arith.addf %300, %301 : vector<2x96xf32>
    %c1_112 = arith.constant 1 : index
    %c0_113 = arith.constant 0 : index
    %c0_114 = arith.constant 0 : index
    %303 = vector.load %arg17[%c1_112, %c0_113, %c0_114] : memref<4x32x96xf32, #tpu.memory_space<vmem>>, vector<1x32x96xf32>
    %304 = vector.shape_cast %303 : vector<1x32x96xf32> to vector<32x96xf32>
    %c1_115 = arith.constant 1 : index
    %c0_116 = arith.constant 0 : index
    %c0_117 = arith.constant 0 : index
    %305 = vector.load %arg19[%c1_115, %c0_116, %c0_117] : memref<4x1x96xf32, #tpu.memory_space<vmem>>, vector<1x1x96xf32>
    %306 = vector.shape_cast %305 : vector<1x1x96xf32> to vector<1x96xf32>
    %c1_118 = arith.constant 1 : index
    %c0_119 = arith.constant 0 : index
    %c0_120 = arith.constant 0 : index
    %307 = vector.load %arg20[%c1_118, %c0_119, %c0_120] : memref<4x2x32xf32, #tpu.memory_space<vmem>>, vector<1x2x32xf32>
    %308 = vector.shape_cast %307 : vector<1x2x32xf32> to vector<2x32xf32>
    %c2_121 = arith.constant 2 : index
    %c0_122 = arith.constant 0 : index
    %c0_123 = arith.constant 0 : index
    %309 = vector.load %arg16[%c2_121, %c0_122, %c0_123] : memref<4x32x96xf32, #tpu.memory_space<vmem>>, vector<1x32x96xf32>
    %310 = vector.shape_cast %309 : vector<1x32x96xf32> to vector<32x96xf32>
    %c2_124 = arith.constant 2 : index
    %c0_125 = arith.constant 0 : index
    %c0_126 = arith.constant 0 : index
    %311 = vector.load %arg18[%c2_124, %c0_125, %c0_126] : memref<4x1x96xf32, #tpu.memory_space<vmem>>, vector<1x1x96xf32>
    %312 = vector.shape_cast %311 : vector<1x1x96xf32> to vector<1x96xf32>
    %cst_127 = arith.constant dense<0.000000e+00> : vector<2x96xf32>
    %313 = tpu.matmul %308, %304, %cst_127 {dimension_numbers = #tpu.dot_dimension_numbers<[1], [0], [0], [1], [0, 0, 1, 1], [], []>} : vector<2x32xf32>, vector<32x96xf32>, vector<2x96xf32> -> vector<2x96xf32>
    %314 = vector.broadcast %306 : vector<1x96xf32> to vector<2x96xf32>
    %315 = arith.addf %313, %314 : vector<2x96xf32>
    %316 = vector.extract_strided_slice %120 {offsets = [0, 0], sizes = [2, 64], strides = [1, 1]} : vector<2x96xf32> to vector<2x64xf32>
    %317 = vector.extract_strided_slice %315 {offsets = [0, 0], sizes = [2, 64], strides = [1, 1]} : vector<2x96xf32> to vector<2x64xf32>
    %318 = arith.addf %316, %317 : vector<2x64xf32>
    %319 = arith.negf %318 : vector<2x64xf32>
    %320 = math.exp %319 : vector<2x64xf32>
    %cst_128 = arith.constant 1.000000e+00 : f32
    %321 = vector.broadcast %cst_128 : f32 to vector<2x64xf32>
    %322 = arith.addf %321, %320 : vector<2x64xf32>
    %323 = arith.divf %321, %322 : vector<2x64xf32>
    %324 = vector.extract_strided_slice %323 {offsets = [0, 0], sizes = [2, 32], strides = [1, 1]} : vector<2x64xf32> to vector<2x32xf32>
    %325 = vector.extract_strided_slice %323 {offsets = [0, 32], sizes = [2, 32], strides = [1, 1]} : vector<2x64xf32> to vector<2x32xf32>
    %326 = vector.extract_strided_slice %120 {offsets = [0, 64], sizes = [2, 32], strides = [1, 1]} : vector<2x96xf32> to vector<2x32xf32>
    %327 = vector.extract_strided_slice %315 {offsets = [0, 64], sizes = [2, 32], strides = [1, 1]} : vector<2x96xf32> to vector<2x32xf32>
    %328 = arith.mulf %324, %327 : vector<2x32xf32>
    %329 = arith.addf %326, %328 : vector<2x32xf32>
    %330 = math.tanh %329 : vector<2x32xf32>
    %cst_129 = arith.constant 1.000000e+00 : f32
    %331 = vector.broadcast %cst_129 : f32 to vector<2x32xf32>
    %332 = arith.subf %331, %325 : vector<2x32xf32>
    %333 = arith.mulf %332, %330 : vector<2x32xf32>
    %334 = arith.mulf %325, %308 : vector<2x32xf32>
    %335 = arith.addf %333, %334 : vector<2x32xf32>
    %cst_130 = arith.constant dense<0.000000e+00> : vector<2x96xf32>
    %336 = tpu.matmul %335, %310, %cst_130 {dimension_numbers = #tpu.dot_dimension_numbers<[1], [0], [0], [1], [0, 0, 1, 1], [], []>} : vector<2x32xf32>, vector<32x96xf32>, vector<2x96xf32> -> vector<2x96xf32>
    %337 = vector.broadcast %312 : vector<1x96xf32> to vector<2x96xf32>
    %338 = arith.addf %336, %337 : vector<2x96xf32>
    %cst_131 = arith.constant dense<0.000000e+00> : vector<2x96xf32>
    %339 = tpu.matmul %335, %304, %cst_131 {dimension_numbers = #tpu.dot_dimension_numbers<[1], [0], [0], [1], [0, 0, 1, 1], [], []>} : vector<2x32xf32>, vector<32x96xf32>, vector<2x96xf32> -> vector<2x96xf32>
    %340 = vector.broadcast %306 : vector<1x96xf32> to vector<2x96xf32>
    %341 = arith.addf %339, %340 : vector<2x96xf32>
    %342 = vector.extract_strided_slice %146 {offsets = [0, 0], sizes = [2, 64], strides = [1, 1]} : vector<2x96xf32> to vector<2x64xf32>
    %343 = vector.extract_strided_slice %341 {offsets = [0, 0], sizes = [2, 64], strides = [1, 1]} : vector<2x96xf32> to vector<2x64xf32>
    %344 = arith.addf %342, %343 : vector<2x64xf32>
    %345 = arith.negf %344 : vector<2x64xf32>
    %346 = math.exp %345 : vector<2x64xf32>
    %cst_132 = arith.constant 1.000000e+00 : f32
    %347 = vector.broadcast %cst_132 : f32 to vector<2x64xf32>
    %348 = arith.addf %347, %346 : vector<2x64xf32>
    %349 = arith.divf %347, %348 : vector<2x64xf32>
    %350 = vector.extract_strided_slice %349 {offsets = [0, 0], sizes = [2, 32], strides = [1, 1]} : vector<2x64xf32> to vector<2x32xf32>
    %351 = vector.extract_strided_slice %349 {offsets = [0, 32], sizes = [2, 32], strides = [1, 1]} : vector<2x64xf32> to vector<2x32xf32>
    %352 = vector.extract_strided_slice %146 {offsets = [0, 64], sizes = [2, 32], strides = [1, 1]} : vector<2x96xf32> to vector<2x32xf32>
    %353 = vector.extract_strided_slice %341 {offsets = [0, 64], sizes = [2, 32], strides = [1, 1]} : vector<2x96xf32> to vector<2x32xf32>
    %354 = arith.mulf %350, %353 : vector<2x32xf32>
    %355 = arith.addf %352, %354 : vector<2x32xf32>
    %356 = math.tanh %355 : vector<2x32xf32>
    %cst_133 = arith.constant 1.000000e+00 : f32
    %357 = vector.broadcast %cst_133 : f32 to vector<2x32xf32>
    %358 = arith.subf %357, %351 : vector<2x32xf32>
    %359 = arith.mulf %358, %356 : vector<2x32xf32>
    %360 = arith.mulf %351, %335 : vector<2x32xf32>
    %361 = arith.addf %359, %360 : vector<2x32xf32>
    %cst_134 = arith.constant dense<0.000000e+00> : vector<2x96xf32>
    %362 = tpu.matmul %361, %310, %cst_134 {dimension_numbers = #tpu.dot_dimension_numbers<[1], [0], [0], [1], [0, 0, 1, 1], [], []>} : vector<2x32xf32>, vector<32x96xf32>, vector<2x96xf32> -> vector<2x96xf32>
    %363 = vector.broadcast %312 : vector<1x96xf32> to vector<2x96xf32>
    %364 = arith.addf %362, %363 : vector<2x96xf32>
    %cst_135 = arith.constant dense<0.000000e+00> : vector<2x96xf32>
    %365 = tpu.matmul %361, %304, %cst_135 {dimension_numbers = #tpu.dot_dimension_numbers<[1], [0], [0], [1], [0, 0, 1, 1], [], []>} : vector<2x32xf32>, vector<32x96xf32>, vector<2x96xf32> -> vector<2x96xf32>
    %366 = vector.broadcast %306 : vector<1x96xf32> to vector<2x96xf32>
    %367 = arith.addf %365, %366 : vector<2x96xf32>
    %368 = vector.extract_strided_slice %172 {offsets = [0, 0], sizes = [2, 64], strides = [1, 1]} : vector<2x96xf32> to vector<2x64xf32>
    %369 = vector.extract_strided_slice %367 {offsets = [0, 0], sizes = [2, 64], strides = [1, 1]} : vector<2x96xf32> to vector<2x64xf32>
    %370 = arith.addf %368, %369 : vector<2x64xf32>
    %371 = arith.negf %370 : vector<2x64xf32>
    %372 = math.exp %371 : vector<2x64xf32>
    %cst_136 = arith.constant 1.000000e+00 : f32
    %373 = vector.broadcast %cst_136 : f32 to vector<2x64xf32>
    %374 = arith.addf %373, %372 : vector<2x64xf32>
    %375 = arith.divf %373, %374 : vector<2x64xf32>
    %376 = vector.extract_strided_slice %375 {offsets = [0, 0], sizes = [2, 32], strides = [1, 1]} : vector<2x64xf32> to vector<2x32xf32>
    %377 = vector.extract_strided_slice %375 {offsets = [0, 32], sizes = [2, 32], strides = [1, 1]} : vector<2x64xf32> to vector<2x32xf32>
    %378 = vector.extract_strided_slice %172 {offsets = [0, 64], sizes = [2, 32], strides = [1, 1]} : vector<2x96xf32> to vector<2x32xf32>
    %379 = vector.extract_strided_slice %367 {offsets = [0, 64], sizes = [2, 32], strides = [1, 1]} : vector<2x96xf32> to vector<2x32xf32>
    %380 = arith.mulf %376, %379 : vector<2x32xf32>
    %381 = arith.addf %378, %380 : vector<2x32xf32>
    %382 = math.tanh %381 : vector<2x32xf32>
    %cst_137 = arith.constant 1.000000e+00 : f32
    %383 = vector.broadcast %cst_137 : f32 to vector<2x32xf32>
    %384 = arith.subf %383, %377 : vector<2x32xf32>
    %385 = arith.mulf %384, %382 : vector<2x32xf32>
    %386 = arith.mulf %377, %361 : vector<2x32xf32>
    %387 = arith.addf %385, %386 : vector<2x32xf32>
    %cst_138 = arith.constant dense<0.000000e+00> : vector<2x96xf32>
    %388 = tpu.matmul %387, %310, %cst_138 {dimension_numbers = #tpu.dot_dimension_numbers<[1], [0], [0], [1], [0, 0, 1, 1], [], []>} : vector<2x32xf32>, vector<32x96xf32>, vector<2x96xf32> -> vector<2x96xf32>
    %389 = vector.broadcast %312 : vector<1x96xf32> to vector<2x96xf32>
    %390 = arith.addf %388, %389 : vector<2x96xf32>
    %cst_139 = arith.constant dense<0.000000e+00> : vector<2x96xf32>
    %391 = tpu.matmul %387, %304, %cst_139 {dimension_numbers = #tpu.dot_dimension_numbers<[1], [0], [0], [1], [0, 0, 1, 1], [], []>} : vector<2x32xf32>, vector<32x96xf32>, vector<2x96xf32> -> vector<2x96xf32>
    %392 = vector.broadcast %306 : vector<1x96xf32> to vector<2x96xf32>
    %393 = arith.addf %391, %392 : vector<2x96xf32>
    %394 = vector.extract_strided_slice %198 {offsets = [0, 0], sizes = [2, 64], strides = [1, 1]} : vector<2x96xf32> to vector<2x64xf32>
    %395 = vector.extract_strided_slice %393 {offsets = [0, 0], sizes = [2, 64], strides = [1, 1]} : vector<2x96xf32> to vector<2x64xf32>
    %396 = arith.addf %394, %395 : vector<2x64xf32>
    %397 = arith.negf %396 : vector<2x64xf32>
    %398 = math.exp %397 : vector<2x64xf32>
    %cst_140 = arith.constant 1.000000e+00 : f32
    %399 = vector.broadcast %cst_140 : f32 to vector<2x64xf32>
    %400 = arith.addf %399, %398 : vector<2x64xf32>
    %401 = arith.divf %399, %400 : vector<2x64xf32>
    %402 = vector.extract_strided_slice %401 {offsets = [0, 0], sizes = [2, 32], strides = [1, 1]} : vector<2x64xf32> to vector<2x32xf32>
    %403 = vector.extract_strided_slice %401 {offsets = [0, 32], sizes = [2, 32], strides = [1, 1]} : vector<2x64xf32> to vector<2x32xf32>
    %404 = vector.extract_strided_slice %198 {offsets = [0, 64], sizes = [2, 32], strides = [1, 1]} : vector<2x96xf32> to vector<2x32xf32>
    %405 = vector.extract_strided_slice %393 {offsets = [0, 64], sizes = [2, 32], strides = [1, 1]} : vector<2x96xf32> to vector<2x32xf32>
    %406 = arith.mulf %402, %405 : vector<2x32xf32>
    %407 = arith.addf %404, %406 : vector<2x32xf32>
    %408 = math.tanh %407 : vector<2x32xf32>
    %cst_141 = arith.constant 1.000000e+00 : f32
    %409 = vector.broadcast %cst_141 : f32 to vector<2x32xf32>
    %410 = arith.subf %409, %403 : vector<2x32xf32>
    %411 = arith.mulf %410, %408 : vector<2x32xf32>
    %412 = arith.mulf %403, %387 : vector<2x32xf32>
    %413 = arith.addf %411, %412 : vector<2x32xf32>
    %cst_142 = arith.constant dense<0.000000e+00> : vector<2x96xf32>
    %414 = tpu.matmul %413, %310, %cst_142 {dimension_numbers = #tpu.dot_dimension_numbers<[1], [0], [0], [1], [0, 0, 1, 1], [], []>} : vector<2x32xf32>, vector<32x96xf32>, vector<2x96xf32> -> vector<2x96xf32>
    %415 = vector.broadcast %312 : vector<1x96xf32> to vector<2x96xf32>
    %416 = arith.addf %414, %415 : vector<2x96xf32>
    %cst_143 = arith.constant dense<0.000000e+00> : vector<2x96xf32>
    %417 = tpu.matmul %413, %304, %cst_143 {dimension_numbers = #tpu.dot_dimension_numbers<[1], [0], [0], [1], [0, 0, 1, 1], [], []>} : vector<2x32xf32>, vector<32x96xf32>, vector<2x96xf32> -> vector<2x96xf32>
    %418 = vector.broadcast %306 : vector<1x96xf32> to vector<2x96xf32>
    %419 = arith.addf %417, %418 : vector<2x96xf32>
    %420 = vector.extract_strided_slice %224 {offsets = [0, 0], sizes = [2, 64], strides = [1, 1]} : vector<2x96xf32> to vector<2x64xf32>
    %421 = vector.extract_strided_slice %419 {offsets = [0, 0], sizes = [2, 64], strides = [1, 1]} : vector<2x96xf32> to vector<2x64xf32>
    %422 = arith.addf %420, %421 : vector<2x64xf32>
    %423 = arith.negf %422 : vector<2x64xf32>
    %424 = math.exp %423 : vector<2x64xf32>
    %cst_144 = arith.constant 1.000000e+00 : f32
    %425 = vector.broadcast %cst_144 : f32 to vector<2x64xf32>
    %426 = arith.addf %425, %424 : vector<2x64xf32>
    %427 = arith.divf %425, %426 : vector<2x64xf32>
    %428 = vector.extract_strided_slice %427 {offsets = [0, 0], sizes = [2, 32], strides = [1, 1]} : vector<2x64xf32> to vector<2x32xf32>
    %429 = vector.extract_strided_slice %427 {offsets = [0, 32], sizes = [2, 32], strides = [1, 1]} : vector<2x64xf32> to vector<2x32xf32>
    %430 = vector.extract_strided_slice %224 {offsets = [0, 64], sizes = [2, 32], strides = [1, 1]} : vector<2x96xf32> to vector<2x32xf32>
    %431 = vector.extract_strided_slice %419 {offsets = [0, 64], sizes = [2, 32], strides = [1, 1]} : vector<2x96xf32> to vector<2x32xf32>
    %432 = arith.mulf %428, %431 : vector<2x32xf32>
    %433 = arith.addf %430, %432 : vector<2x32xf32>
    %434 = math.tanh %433 : vector<2x32xf32>
    %cst_145 = arith.constant 1.000000e+00 : f32
    %435 = vector.broadcast %cst_145 : f32 to vector<2x32xf32>
    %436 = arith.subf %435, %429 : vector<2x32xf32>
    %437 = arith.mulf %436, %434 : vector<2x32xf32>
    %438 = arith.mulf %429, %413 : vector<2x32xf32>
    %439 = arith.addf %437, %438 : vector<2x32xf32>
    %cst_146 = arith.constant dense<0.000000e+00> : vector<2x96xf32>
    %440 = tpu.matmul %439, %310, %cst_146 {dimension_numbers = #tpu.dot_dimension_numbers<[1], [0], [0], [1], [0, 0, 1, 1], [], []>} : vector<2x32xf32>, vector<32x96xf32>, vector<2x96xf32> -> vector<2x96xf32>
    %441 = vector.broadcast %312 : vector<1x96xf32> to vector<2x96xf32>
    %442 = arith.addf %440, %441 : vector<2x96xf32>
    %cst_147 = arith.constant dense<0.000000e+00> : vector<2x96xf32>
    %443 = tpu.matmul %439, %304, %cst_147 {dimension_numbers = #tpu.dot_dimension_numbers<[1], [0], [0], [1], [0, 0, 1, 1], [], []>} : vector<2x32xf32>, vector<32x96xf32>, vector<2x96xf32> -> vector<2x96xf32>
    %444 = vector.broadcast %306 : vector<1x96xf32> to vector<2x96xf32>
    %445 = arith.addf %443, %444 : vector<2x96xf32>
    %446 = vector.extract_strided_slice %250 {offsets = [0, 0], sizes = [2, 64], strides = [1, 1]} : vector<2x96xf32> to vector<2x64xf32>
    %447 = vector.extract_strided_slice %445 {offsets = [0, 0], sizes = [2, 64], strides = [1, 1]} : vector<2x96xf32> to vector<2x64xf32>
    %448 = arith.addf %446, %447 : vector<2x64xf32>
    %449 = arith.negf %448 : vector<2x64xf32>
    %450 = math.exp %449 : vector<2x64xf32>
    %cst_148 = arith.constant 1.000000e+00 : f32
    %451 = vector.broadcast %cst_148 : f32 to vector<2x64xf32>
    %452 = arith.addf %451, %450 : vector<2x64xf32>
    %453 = arith.divf %451, %452 : vector<2x64xf32>
    %454 = vector.extract_strided_slice %453 {offsets = [0, 0], sizes = [2, 32], strides = [1, 1]} : vector<2x64xf32> to vector<2x32xf32>
    %455 = vector.extract_strided_slice %453 {offsets = [0, 32], sizes = [2, 32], strides = [1, 1]} : vector<2x64xf32> to vector<2x32xf32>
    %456 = vector.extract_strided_slice %250 {offsets = [0, 64], sizes = [2, 32], strides = [1, 1]} : vector<2x96xf32> to vector<2x32xf32>
    %457 = vector.extract_strided_slice %445 {offsets = [0, 64], sizes = [2, 32], strides = [1, 1]} : vector<2x96xf32> to vector<2x32xf32>
    %458 = arith.mulf %454, %457 : vector<2x32xf32>
    %459 = arith.addf %456, %458 : vector<2x32xf32>
    %460 = math.tanh %459 : vector<2x32xf32>
    %cst_149 = arith.constant 1.000000e+00 : f32
    %461 = vector.broadcast %cst_149 : f32 to vector<2x32xf32>
    %462 = arith.subf %461, %455 : vector<2x32xf32>
    %463 = arith.mulf %462, %460 : vector<2x32xf32>
    %464 = arith.mulf %455, %439 : vector<2x32xf32>
    %465 = arith.addf %463, %464 : vector<2x32xf32>
    %cst_150 = arith.constant dense<0.000000e+00> : vector<2x96xf32>
    %466 = tpu.matmul %465, %310, %cst_150 {dimension_numbers = #tpu.dot_dimension_numbers<[1], [0], [0], [1], [0, 0, 1, 1], [], []>} : vector<2x32xf32>, vector<32x96xf32>, vector<2x96xf32> -> vector<2x96xf32>
    %467 = vector.broadcast %312 : vector<1x96xf32> to vector<2x96xf32>
    %468 = arith.addf %466, %467 : vector<2x96xf32>
    %cst_151 = arith.constant dense<0.000000e+00> : vector<2x96xf32>
    %469 = tpu.matmul %465, %304, %cst_151 {dimension_numbers = #tpu.dot_dimension_numbers<[1], [0], [0], [1], [0, 0, 1, 1], [], []>} : vector<2x32xf32>, vector<32x96xf32>, vector<2x96xf32> -> vector<2x96xf32>
    %470 = vector.broadcast %306 : vector<1x96xf32> to vector<2x96xf32>
    %471 = arith.addf %469, %470 : vector<2x96xf32>
    %472 = vector.extract_strided_slice %276 {offsets = [0, 0], sizes = [2, 64], strides = [1, 1]} : vector<2x96xf32> to vector<2x64xf32>
    %473 = vector.extract_strided_slice %471 {offsets = [0, 0], sizes = [2, 64], strides = [1, 1]} : vector<2x96xf32> to vector<2x64xf32>
    %474 = arith.addf %472, %473 : vector<2x64xf32>
    %475 = arith.negf %474 : vector<2x64xf32>
    %476 = math.exp %475 : vector<2x64xf32>
    %cst_152 = arith.constant 1.000000e+00 : f32
    %477 = vector.broadcast %cst_152 : f32 to vector<2x64xf32>
    %478 = arith.addf %477, %476 : vector<2x64xf32>
    %479 = arith.divf %477, %478 : vector<2x64xf32>
    %480 = vector.extract_strided_slice %479 {offsets = [0, 0], sizes = [2, 32], strides = [1, 1]} : vector<2x64xf32> to vector<2x32xf32>
    %481 = vector.extract_strided_slice %479 {offsets = [0, 32], sizes = [2, 32], strides = [1, 1]} : vector<2x64xf32> to vector<2x32xf32>
    %482 = vector.extract_strided_slice %276 {offsets = [0, 64], sizes = [2, 32], strides = [1, 1]} : vector<2x96xf32> to vector<2x32xf32>
    %483 = vector.extract_strided_slice %471 {offsets = [0, 64], sizes = [2, 32], strides = [1, 1]} : vector<2x96xf32> to vector<2x32xf32>
    %484 = arith.mulf %480, %483 : vector<2x32xf32>
    %485 = arith.addf %482, %484 : vector<2x32xf32>
    %486 = math.tanh %485 : vector<2x32xf32>
    %cst_153 = arith.constant 1.000000e+00 : f32
    %487 = vector.broadcast %cst_153 : f32 to vector<2x32xf32>
    %488 = arith.subf %487, %481 : vector<2x32xf32>
    %489 = arith.mulf %488, %486 : vector<2x32xf32>
    %490 = arith.mulf %481, %465 : vector<2x32xf32>
    %491 = arith.addf %489, %490 : vector<2x32xf32>
    %cst_154 = arith.constant dense<0.000000e+00> : vector<2x96xf32>
    %492 = tpu.matmul %491, %310, %cst_154 {dimension_numbers = #tpu.dot_dimension_numbers<[1], [0], [0], [1], [0, 0, 1, 1], [], []>} : vector<2x32xf32>, vector<32x96xf32>, vector<2x96xf32> -> vector<2x96xf32>
    %493 = vector.broadcast %312 : vector<1x96xf32> to vector<2x96xf32>
    %494 = arith.addf %492, %493 : vector<2x96xf32>
    %cst_155 = arith.constant dense<0.000000e+00> : vector<2x96xf32>
    %495 = tpu.matmul %491, %304, %cst_155 {dimension_numbers = #tpu.dot_dimension_numbers<[1], [0], [0], [1], [0, 0, 1, 1], [], []>} : vector<2x32xf32>, vector<32x96xf32>, vector<2x96xf32> -> vector<2x96xf32>
    %496 = vector.broadcast %306 : vector<1x96xf32> to vector<2x96xf32>
    %497 = arith.addf %495, %496 : vector<2x96xf32>
    %498 = vector.extract_strided_slice %302 {offsets = [0, 0], sizes = [2, 64], strides = [1, 1]} : vector<2x96xf32> to vector<2x64xf32>
    %499 = vector.extract_strided_slice %497 {offsets = [0, 0], sizes = [2, 64], strides = [1, 1]} : vector<2x96xf32> to vector<2x64xf32>
    %500 = arith.addf %498, %499 : vector<2x64xf32>
    %501 = arith.negf %500 : vector<2x64xf32>
    %502 = math.exp %501 : vector<2x64xf32>
    %cst_156 = arith.constant 1.000000e+00 : f32
    %503 = vector.broadcast %cst_156 : f32 to vector<2x64xf32>
    %504 = arith.addf %503, %502 : vector<2x64xf32>
    %505 = arith.divf %503, %504 : vector<2x64xf32>
    %506 = vector.extract_strided_slice %505 {offsets = [0, 0], sizes = [2, 32], strides = [1, 1]} : vector<2x64xf32> to vector<2x32xf32>
    %507 = vector.extract_strided_slice %505 {offsets = [0, 32], sizes = [2, 32], strides = [1, 1]} : vector<2x64xf32> to vector<2x32xf32>
    %508 = vector.extract_strided_slice %302 {offsets = [0, 64], sizes = [2, 32], strides = [1, 1]} : vector<2x96xf32> to vector<2x32xf32>
    %509 = vector.extract_strided_slice %497 {offsets = [0, 64], sizes = [2, 32], strides = [1, 1]} : vector<2x96xf32> to vector<2x32xf32>
    %510 = arith.mulf %506, %509 : vector<2x32xf32>
    %511 = arith.addf %508, %510 : vector<2x32xf32>
    %512 = math.tanh %511 : vector<2x32xf32>
    %cst_157 = arith.constant 1.000000e+00 : f32
    %513 = vector.broadcast %cst_157 : f32 to vector<2x32xf32>
    %514 = arith.subf %513, %507 : vector<2x32xf32>
    %515 = arith.mulf %514, %512 : vector<2x32xf32>
    %516 = arith.mulf %507, %491 : vector<2x32xf32>
    %517 = arith.addf %515, %516 : vector<2x32xf32>
    %cst_158 = arith.constant dense<0.000000e+00> : vector<2x96xf32>
    %518 = tpu.matmul %517, %310, %cst_158 {dimension_numbers = #tpu.dot_dimension_numbers<[1], [0], [0], [1], [0, 0, 1, 1], [], []>} : vector<2x32xf32>, vector<32x96xf32>, vector<2x96xf32> -> vector<2x96xf32>
    %519 = vector.broadcast %312 : vector<1x96xf32> to vector<2x96xf32>
    %520 = arith.addf %518, %519 : vector<2x96xf32>
    %c2_159 = arith.constant 2 : index
    %c0_160 = arith.constant 0 : index
    %c0_161 = arith.constant 0 : index
    %521 = vector.load %arg17[%c2_159, %c0_160, %c0_161] : memref<4x32x96xf32, #tpu.memory_space<vmem>>, vector<1x32x96xf32>
    %522 = vector.shape_cast %521 : vector<1x32x96xf32> to vector<32x96xf32>
    %c2_162 = arith.constant 2 : index
    %c0_163 = arith.constant 0 : index
    %c0_164 = arith.constant 0 : index
    %523 = vector.load %arg19[%c2_162, %c0_163, %c0_164] : memref<4x1x96xf32, #tpu.memory_space<vmem>>, vector<1x1x96xf32>
    %524 = vector.shape_cast %523 : vector<1x1x96xf32> to vector<1x96xf32>
    %c2_165 = arith.constant 2 : index
    %c0_166 = arith.constant 0 : index
    %c0_167 = arith.constant 0 : index
    %525 = vector.load %arg20[%c2_165, %c0_166, %c0_167] : memref<4x2x32xf32, #tpu.memory_space<vmem>>, vector<1x2x32xf32>
    %526 = vector.shape_cast %525 : vector<1x2x32xf32> to vector<2x32xf32>
    %c3 = arith.constant 3 : index
    %c0_168 = arith.constant 0 : index
    %c0_169 = arith.constant 0 : index
    %527 = vector.load %arg16[%c3, %c0_168, %c0_169] : memref<4x32x96xf32, #tpu.memory_space<vmem>>, vector<1x32x96xf32>
    %528 = vector.shape_cast %527 : vector<1x32x96xf32> to vector<32x96xf32>
    %c3_170 = arith.constant 3 : index
    %c0_171 = arith.constant 0 : index
    %c0_172 = arith.constant 0 : index
    %529 = vector.load %arg18[%c3_170, %c0_171, %c0_172] : memref<4x1x96xf32, #tpu.memory_space<vmem>>, vector<1x1x96xf32>
    %530 = vector.shape_cast %529 : vector<1x1x96xf32> to vector<1x96xf32>
    %cst_173 = arith.constant dense<0.000000e+00> : vector<2x96xf32>
    %531 = tpu.matmul %526, %522, %cst_173 {dimension_numbers = #tpu.dot_dimension_numbers<[1], [0], [0], [1], [0, 0, 1, 1], [], []>} : vector<2x32xf32>, vector<32x96xf32>, vector<2x96xf32> -> vector<2x96xf32>
    %532 = vector.broadcast %524 : vector<1x96xf32> to vector<2x96xf32>
    %533 = arith.addf %531, %532 : vector<2x96xf32>
    %534 = vector.extract_strided_slice %338 {offsets = [0, 0], sizes = [2, 64], strides = [1, 1]} : vector<2x96xf32> to vector<2x64xf32>
    %535 = vector.extract_strided_slice %533 {offsets = [0, 0], sizes = [2, 64], strides = [1, 1]} : vector<2x96xf32> to vector<2x64xf32>
    %536 = arith.addf %534, %535 : vector<2x64xf32>
    %537 = arith.negf %536 : vector<2x64xf32>
    %538 = math.exp %537 : vector<2x64xf32>
    %cst_174 = arith.constant 1.000000e+00 : f32
    %539 = vector.broadcast %cst_174 : f32 to vector<2x64xf32>
    %540 = arith.addf %539, %538 : vector<2x64xf32>
    %541 = arith.divf %539, %540 : vector<2x64xf32>
    %542 = vector.extract_strided_slice %541 {offsets = [0, 0], sizes = [2, 32], strides = [1, 1]} : vector<2x64xf32> to vector<2x32xf32>
    %543 = vector.extract_strided_slice %541 {offsets = [0, 32], sizes = [2, 32], strides = [1, 1]} : vector<2x64xf32> to vector<2x32xf32>
    %544 = vector.extract_strided_slice %338 {offsets = [0, 64], sizes = [2, 32], strides = [1, 1]} : vector<2x96xf32> to vector<2x32xf32>
    %545 = vector.extract_strided_slice %533 {offsets = [0, 64], sizes = [2, 32], strides = [1, 1]} : vector<2x96xf32> to vector<2x32xf32>
    %546 = arith.mulf %542, %545 : vector<2x32xf32>
    %547 = arith.addf %544, %546 : vector<2x32xf32>
    %548 = math.tanh %547 : vector<2x32xf32>
    %cst_175 = arith.constant 1.000000e+00 : f32
    %549 = vector.broadcast %cst_175 : f32 to vector<2x32xf32>
    %550 = arith.subf %549, %543 : vector<2x32xf32>
    %551 = arith.mulf %550, %548 : vector<2x32xf32>
    %552 = arith.mulf %543, %526 : vector<2x32xf32>
    %553 = arith.addf %551, %552 : vector<2x32xf32>
    %cst_176 = arith.constant dense<0.000000e+00> : vector<2x96xf32>
    %554 = tpu.matmul %553, %528, %cst_176 {dimension_numbers = #tpu.dot_dimension_numbers<[1], [0], [0], [1], [0, 0, 1, 1], [], []>} : vector<2x32xf32>, vector<32x96xf32>, vector<2x96xf32> -> vector<2x96xf32>
    %555 = vector.broadcast %530 : vector<1x96xf32> to vector<2x96xf32>
    %556 = arith.addf %554, %555 : vector<2x96xf32>
    %cst_177 = arith.constant dense<0.000000e+00> : vector<2x96xf32>
    %557 = tpu.matmul %553, %522, %cst_177 {dimension_numbers = #tpu.dot_dimension_numbers<[1], [0], [0], [1], [0, 0, 1, 1], [], []>} : vector<2x32xf32>, vector<32x96xf32>, vector<2x96xf32> -> vector<2x96xf32>
    %558 = vector.broadcast %524 : vector<1x96xf32> to vector<2x96xf32>
    %559 = arith.addf %557, %558 : vector<2x96xf32>
    %560 = vector.extract_strided_slice %364 {offsets = [0, 0], sizes = [2, 64], strides = [1, 1]} : vector<2x96xf32> to vector<2x64xf32>
    %561 = vector.extract_strided_slice %559 {offsets = [0, 0], sizes = [2, 64], strides = [1, 1]} : vector<2x96xf32> to vector<2x64xf32>
    %562 = arith.addf %560, %561 : vector<2x64xf32>
    %563 = arith.negf %562 : vector<2x64xf32>
    %564 = math.exp %563 : vector<2x64xf32>
    %cst_178 = arith.constant 1.000000e+00 : f32
    %565 = vector.broadcast %cst_178 : f32 to vector<2x64xf32>
    %566 = arith.addf %565, %564 : vector<2x64xf32>
    %567 = arith.divf %565, %566 : vector<2x64xf32>
    %568 = vector.extract_strided_slice %567 {offsets = [0, 0], sizes = [2, 32], strides = [1, 1]} : vector<2x64xf32> to vector<2x32xf32>
    %569 = vector.extract_strided_slice %567 {offsets = [0, 32], sizes = [2, 32], strides = [1, 1]} : vector<2x64xf32> to vector<2x32xf32>
    %570 = vector.extract_strided_slice %364 {offsets = [0, 64], sizes = [2, 32], strides = [1, 1]} : vector<2x96xf32> to vector<2x32xf32>
    %571 = vector.extract_strided_slice %559 {offsets = [0, 64], sizes = [2, 32], strides = [1, 1]} : vector<2x96xf32> to vector<2x32xf32>
    %572 = arith.mulf %568, %571 : vector<2x32xf32>
    %573 = arith.addf %570, %572 : vector<2x32xf32>
    %574 = math.tanh %573 : vector<2x32xf32>
    %cst_179 = arith.constant 1.000000e+00 : f32
    %575 = vector.broadcast %cst_179 : f32 to vector<2x32xf32>
    %576 = arith.subf %575, %569 : vector<2x32xf32>
    %577 = arith.mulf %576, %574 : vector<2x32xf32>
    %578 = arith.mulf %569, %553 : vector<2x32xf32>
    %579 = arith.addf %577, %578 : vector<2x32xf32>
    %cst_180 = arith.constant dense<0.000000e+00> : vector<2x96xf32>
    %580 = tpu.matmul %579, %528, %cst_180 {dimension_numbers = #tpu.dot_dimension_numbers<[1], [0], [0], [1], [0, 0, 1, 1], [], []>} : vector<2x32xf32>, vector<32x96xf32>, vector<2x96xf32> -> vector<2x96xf32>
    %581 = vector.broadcast %530 : vector<1x96xf32> to vector<2x96xf32>
    %582 = arith.addf %580, %581 : vector<2x96xf32>
    %cst_181 = arith.constant dense<0.000000e+00> : vector<2x96xf32>
    %583 = tpu.matmul %579, %522, %cst_181 {dimension_numbers = #tpu.dot_dimension_numbers<[1], [0], [0], [1], [0, 0, 1, 1], [], []>} : vector<2x32xf32>, vector<32x96xf32>, vector<2x96xf32> -> vector<2x96xf32>
    %584 = vector.broadcast %524 : vector<1x96xf32> to vector<2x96xf32>
    %585 = arith.addf %583, %584 : vector<2x96xf32>
    %586 = vector.extract_strided_slice %390 {offsets = [0, 0], sizes = [2, 64], strides = [1, 1]} : vector<2x96xf32> to vector<2x64xf32>
    %587 = vector.extract_strided_slice %585 {offsets = [0, 0], sizes = [2, 64], strides = [1, 1]} : vector<2x96xf32> to vector<2x64xf32>
    %588 = arith.addf %586, %587 : vector<2x64xf32>
    %589 = arith.negf %588 : vector<2x64xf32>
    %590 = math.exp %589 : vector<2x64xf32>
    %cst_182 = arith.constant 1.000000e+00 : f32
    %591 = vector.broadcast %cst_182 : f32 to vector<2x64xf32>
    %592 = arith.addf %591, %590 : vector<2x64xf32>
    %593 = arith.divf %591, %592 : vector<2x64xf32>
    %594 = vector.extract_strided_slice %593 {offsets = [0, 0], sizes = [2, 32], strides = [1, 1]} : vector<2x64xf32> to vector<2x32xf32>
    %595 = vector.extract_strided_slice %593 {offsets = [0, 32], sizes = [2, 32], strides = [1, 1]} : vector<2x64xf32> to vector<2x32xf32>
    %596 = vector.extract_strided_slice %390 {offsets = [0, 64], sizes = [2, 32], strides = [1, 1]} : vector<2x96xf32> to vector<2x32xf32>
    %597 = vector.extract_strided_slice %585 {offsets = [0, 64], sizes = [2, 32], strides = [1, 1]} : vector<2x96xf32> to vector<2x32xf32>
    %598 = arith.mulf %594, %597 : vector<2x32xf32>
    %599 = arith.addf %596, %598 : vector<2x32xf32>
    %600 = math.tanh %599 : vector<2x32xf32>
    %cst_183 = arith.constant 1.000000e+00 : f32
    %601 = vector.broadcast %cst_183 : f32 to vector<2x32xf32>
    %602 = arith.subf %601, %595 : vector<2x32xf32>
    %603 = arith.mulf %602, %600 : vector<2x32xf32>
    %604 = arith.mulf %595, %579 : vector<2x32xf32>
    %605 = arith.addf %603, %604 : vector<2x32xf32>
    %cst_184 = arith.constant dense<0.000000e+00> : vector<2x96xf32>
    %606 = tpu.matmul %605, %528, %cst_184 {dimension_numbers = #tpu.dot_dimension_numbers<[1], [0], [0], [1], [0, 0, 1, 1], [], []>} : vector<2x32xf32>, vector<32x96xf32>, vector<2x96xf32> -> vector<2x96xf32>
    %607 = vector.broadcast %530 : vector<1x96xf32> to vector<2x96xf32>
    %608 = arith.addf %606, %607 : vector<2x96xf32>
    %cst_185 = arith.constant dense<0.000000e+00> : vector<2x96xf32>
    %609 = tpu.matmul %605, %522, %cst_185 {dimension_numbers = #tpu.dot_dimension_numbers<[1], [0], [0], [1], [0, 0, 1, 1], [], []>} : vector<2x32xf32>, vector<32x96xf32>, vector<2x96xf32> -> vector<2x96xf32>
    %610 = vector.broadcast %524 : vector<1x96xf32> to vector<2x96xf32>
    %611 = arith.addf %609, %610 : vector<2x96xf32>
    %612 = vector.extract_strided_slice %416 {offsets = [0, 0], sizes = [2, 64], strides = [1, 1]} : vector<2x96xf32> to vector<2x64xf32>
    %613 = vector.extract_strided_slice %611 {offsets = [0, 0], sizes = [2, 64], strides = [1, 1]} : vector<2x96xf32> to vector<2x64xf32>
    %614 = arith.addf %612, %613 : vector<2x64xf32>
    %615 = arith.negf %614 : vector<2x64xf32>
    %616 = math.exp %615 : vector<2x64xf32>
    %cst_186 = arith.constant 1.000000e+00 : f32
    %617 = vector.broadcast %cst_186 : f32 to vector<2x64xf32>
    %618 = arith.addf %617, %616 : vector<2x64xf32>
    %619 = arith.divf %617, %618 : vector<2x64xf32>
    %620 = vector.extract_strided_slice %619 {offsets = [0, 0], sizes = [2, 32], strides = [1, 1]} : vector<2x64xf32> to vector<2x32xf32>
    %621 = vector.extract_strided_slice %619 {offsets = [0, 32], sizes = [2, 32], strides = [1, 1]} : vector<2x64xf32> to vector<2x32xf32>
    %622 = vector.extract_strided_slice %416 {offsets = [0, 64], sizes = [2, 32], strides = [1, 1]} : vector<2x96xf32> to vector<2x32xf32>
    %623 = vector.extract_strided_slice %611 {offsets = [0, 64], sizes = [2, 32], strides = [1, 1]} : vector<2x96xf32> to vector<2x32xf32>
    %624 = arith.mulf %620, %623 : vector<2x32xf32>
    %625 = arith.addf %622, %624 : vector<2x32xf32>
    %626 = math.tanh %625 : vector<2x32xf32>
    %cst_187 = arith.constant 1.000000e+00 : f32
    %627 = vector.broadcast %cst_187 : f32 to vector<2x32xf32>
    %628 = arith.subf %627, %621 : vector<2x32xf32>
    %629 = arith.mulf %628, %626 : vector<2x32xf32>
    %630 = arith.mulf %621, %605 : vector<2x32xf32>
    %631 = arith.addf %629, %630 : vector<2x32xf32>
    %cst_188 = arith.constant dense<0.000000e+00> : vector<2x96xf32>
    %632 = tpu.matmul %631, %528, %cst_188 {dimension_numbers = #tpu.dot_dimension_numbers<[1], [0], [0], [1], [0, 0, 1, 1], [], []>} : vector<2x32xf32>, vector<32x96xf32>, vector<2x96xf32> -> vector<2x96xf32>
    %633 = vector.broadcast %530 : vector<1x96xf32> to vector<2x96xf32>
    %634 = arith.addf %632, %633 : vector<2x96xf32>
    %cst_189 = arith.constant dense<0.000000e+00> : vector<2x96xf32>
    %635 = tpu.matmul %631, %522, %cst_189 {dimension_numbers = #tpu.dot_dimension_numbers<[1], [0], [0], [1], [0, 0, 1, 1], [], []>} : vector<2x32xf32>, vector<32x96xf32>, vector<2x96xf32> -> vector<2x96xf32>
    %636 = vector.broadcast %524 : vector<1x96xf32> to vector<2x96xf32>
    %637 = arith.addf %635, %636 : vector<2x96xf32>
    %638 = vector.extract_strided_slice %442 {offsets = [0, 0], sizes = [2, 64], strides = [1, 1]} : vector<2x96xf32> to vector<2x64xf32>
    %639 = vector.extract_strided_slice %637 {offsets = [0, 0], sizes = [2, 64], strides = [1, 1]} : vector<2x96xf32> to vector<2x64xf32>
    %640 = arith.addf %638, %639 : vector<2x64xf32>
    %641 = arith.negf %640 : vector<2x64xf32>
    %642 = math.exp %641 : vector<2x64xf32>
    %cst_190 = arith.constant 1.000000e+00 : f32
    %643 = vector.broadcast %cst_190 : f32 to vector<2x64xf32>
    %644 = arith.addf %643, %642 : vector<2x64xf32>
    %645 = arith.divf %643, %644 : vector<2x64xf32>
    %646 = vector.extract_strided_slice %645 {offsets = [0, 0], sizes = [2, 32], strides = [1, 1]} : vector<2x64xf32> to vector<2x32xf32>
    %647 = vector.extract_strided_slice %645 {offsets = [0, 32], sizes = [2, 32], strides = [1, 1]} : vector<2x64xf32> to vector<2x32xf32>
    %648 = vector.extract_strided_slice %442 {offsets = [0, 64], sizes = [2, 32], strides = [1, 1]} : vector<2x96xf32> to vector<2x32xf32>
    %649 = vector.extract_strided_slice %637 {offsets = [0, 64], sizes = [2, 32], strides = [1, 1]} : vector<2x96xf32> to vector<2x32xf32>
    %650 = arith.mulf %646, %649 : vector<2x32xf32>
    %651 = arith.addf %648, %650 : vector<2x32xf32>
    %652 = math.tanh %651 : vector<2x32xf32>
    %cst_191 = arith.constant 1.000000e+00 : f32
    %653 = vector.broadcast %cst_191 : f32 to vector<2x32xf32>
    %654 = arith.subf %653, %647 : vector<2x32xf32>
    %655 = arith.mulf %654, %652 : vector<2x32xf32>
    %656 = arith.mulf %647, %631 : vector<2x32xf32>
    %657 = arith.addf %655, %656 : vector<2x32xf32>
    %cst_192 = arith.constant dense<0.000000e+00> : vector<2x96xf32>
    %658 = tpu.matmul %657, %528, %cst_192 {dimension_numbers = #tpu.dot_dimension_numbers<[1], [0], [0], [1], [0, 0, 1, 1], [], []>} : vector<2x32xf32>, vector<32x96xf32>, vector<2x96xf32> -> vector<2x96xf32>
    %659 = vector.broadcast %530 : vector<1x96xf32> to vector<2x96xf32>
    %660 = arith.addf %658, %659 : vector<2x96xf32>
    %cst_193 = arith.constant dense<0.000000e+00> : vector<2x96xf32>
    %661 = tpu.matmul %657, %522, %cst_193 {dimension_numbers = #tpu.dot_dimension_numbers<[1], [0], [0], [1], [0, 0, 1, 1], [], []>} : vector<2x32xf32>, vector<32x96xf32>, vector<2x96xf32> -> vector<2x96xf32>
    %662 = vector.broadcast %524 : vector<1x96xf32> to vector<2x96xf32>
    %663 = arith.addf %661, %662 : vector<2x96xf32>
    %664 = vector.extract_strided_slice %468 {offsets = [0, 0], sizes = [2, 64], strides = [1, 1]} : vector<2x96xf32> to vector<2x64xf32>
    %665 = vector.extract_strided_slice %663 {offsets = [0, 0], sizes = [2, 64], strides = [1, 1]} : vector<2x96xf32> to vector<2x64xf32>
    %666 = arith.addf %664, %665 : vector<2x64xf32>
    %667 = arith.negf %666 : vector<2x64xf32>
    %668 = math.exp %667 : vector<2x64xf32>
    %cst_194 = arith.constant 1.000000e+00 : f32
    %669 = vector.broadcast %cst_194 : f32 to vector<2x64xf32>
    %670 = arith.addf %669, %668 : vector<2x64xf32>
    %671 = arith.divf %669, %670 : vector<2x64xf32>
    %672 = vector.extract_strided_slice %671 {offsets = [0, 0], sizes = [2, 32], strides = [1, 1]} : vector<2x64xf32> to vector<2x32xf32>
    %673 = vector.extract_strided_slice %671 {offsets = [0, 32], sizes = [2, 32], strides = [1, 1]} : vector<2x64xf32> to vector<2x32xf32>
    %674 = vector.extract_strided_slice %468 {offsets = [0, 64], sizes = [2, 32], strides = [1, 1]} : vector<2x96xf32> to vector<2x32xf32>
    %675 = vector.extract_strided_slice %663 {offsets = [0, 64], sizes = [2, 32], strides = [1, 1]} : vector<2x96xf32> to vector<2x32xf32>
    %676 = arith.mulf %672, %675 : vector<2x32xf32>
    %677 = arith.addf %674, %676 : vector<2x32xf32>
    %678 = math.tanh %677 : vector<2x32xf32>
    %cst_195 = arith.constant 1.000000e+00 : f32
    %679 = vector.broadcast %cst_195 : f32 to vector<2x32xf32>
    %680 = arith.subf %679, %673 : vector<2x32xf32>
    %681 = arith.mulf %680, %678 : vector<2x32xf32>
    %682 = arith.mulf %673, %657 : vector<2x32xf32>
    %683 = arith.addf %681, %682 : vector<2x32xf32>
    %cst_196 = arith.constant dense<0.000000e+00> : vector<2x96xf32>
    %684 = tpu.matmul %683, %528, %cst_196 {dimension_numbers = #tpu.dot_dimension_numbers<[1], [0], [0], [1], [0, 0, 1, 1], [], []>} : vector<2x32xf32>, vector<32x96xf32>, vector<2x96xf32> -> vector<2x96xf32>
    %685 = vector.broadcast %530 : vector<1x96xf32> to vector<2x96xf32>
    %686 = arith.addf %684, %685 : vector<2x96xf32>
    %cst_197 = arith.constant dense<0.000000e+00> : vector<2x96xf32>
    %687 = tpu.matmul %683, %522, %cst_197 {dimension_numbers = #tpu.dot_dimension_numbers<[1], [0], [0], [1], [0, 0, 1, 1], [], []>} : vector<2x32xf32>, vector<32x96xf32>, vector<2x96xf32> -> vector<2x96xf32>
    %688 = vector.broadcast %524 : vector<1x96xf32> to vector<2x96xf32>
    %689 = arith.addf %687, %688 : vector<2x96xf32>
    %690 = vector.extract_strided_slice %494 {offsets = [0, 0], sizes = [2, 64], strides = [1, 1]} : vector<2x96xf32> to vector<2x64xf32>
    %691 = vector.extract_strided_slice %689 {offsets = [0, 0], sizes = [2, 64], strides = [1, 1]} : vector<2x96xf32> to vector<2x64xf32>
    %692 = arith.addf %690, %691 : vector<2x64xf32>
    %693 = arith.negf %692 : vector<2x64xf32>
    %694 = math.exp %693 : vector<2x64xf32>
    %cst_198 = arith.constant 1.000000e+00 : f32
    %695 = vector.broadcast %cst_198 : f32 to vector<2x64xf32>
    %696 = arith.addf %695, %694 : vector<2x64xf32>
    %697 = arith.divf %695, %696 : vector<2x64xf32>
    %698 = vector.extract_strided_slice %697 {offsets = [0, 0], sizes = [2, 32], strides = [1, 1]} : vector<2x64xf32> to vector<2x32xf32>
    %699 = vector.extract_strided_slice %697 {offsets = [0, 32], sizes = [2, 32], strides = [1, 1]} : vector<2x64xf32> to vector<2x32xf32>
    %700 = vector.extract_strided_slice %494 {offsets = [0, 64], sizes = [2, 32], strides = [1, 1]} : vector<2x96xf32> to vector<2x32xf32>
    %701 = vector.extract_strided_slice %689 {offsets = [0, 64], sizes = [2, 32], strides = [1, 1]} : vector<2x96xf32> to vector<2x32xf32>
    %702 = arith.mulf %698, %701 : vector<2x32xf32>
    %703 = arith.addf %700, %702 : vector<2x32xf32>
    %704 = math.tanh %703 : vector<2x32xf32>
    %cst_199 = arith.constant 1.000000e+00 : f32
    %705 = vector.broadcast %cst_199 : f32 to vector<2x32xf32>
    %706 = arith.subf %705, %699 : vector<2x32xf32>
    %707 = arith.mulf %706, %704 : vector<2x32xf32>
    %708 = arith.mulf %699, %683 : vector<2x32xf32>
    %709 = arith.addf %707, %708 : vector<2x32xf32>
    %cst_200 = arith.constant dense<0.000000e+00> : vector<2x96xf32>
    %710 = tpu.matmul %709, %528, %cst_200 {dimension_numbers = #tpu.dot_dimension_numbers<[1], [0], [0], [1], [0, 0, 1, 1], [], []>} : vector<2x32xf32>, vector<32x96xf32>, vector<2x96xf32> -> vector<2x96xf32>
    %711 = vector.broadcast %530 : vector<1x96xf32> to vector<2x96xf32>
    %712 = arith.addf %710, %711 : vector<2x96xf32>
    %cst_201 = arith.constant dense<0.000000e+00> : vector<2x96xf32>
    %713 = tpu.matmul %709, %522, %cst_201 {dimension_numbers = #tpu.dot_dimension_numbers<[1], [0], [0], [1], [0, 0, 1, 1], [], []>} : vector<2x32xf32>, vector<32x96xf32>, vector<2x96xf32> -> vector<2x96xf32>
    %714 = vector.broadcast %524 : vector<1x96xf32> to vector<2x96xf32>
    %715 = arith.addf %713, %714 : vector<2x96xf32>
    %716 = vector.extract_strided_slice %520 {offsets = [0, 0], sizes = [2, 64], strides = [1, 1]} : vector<2x96xf32> to vector<2x64xf32>
    %717 = vector.extract_strided_slice %715 {offsets = [0, 0], sizes = [2, 64], strides = [1, 1]} : vector<2x96xf32> to vector<2x64xf32>
    %718 = arith.addf %716, %717 : vector<2x64xf32>
    %719 = arith.negf %718 : vector<2x64xf32>
    %720 = math.exp %719 : vector<2x64xf32>
    %cst_202 = arith.constant 1.000000e+00 : f32
    %721 = vector.broadcast %cst_202 : f32 to vector<2x64xf32>
    %722 = arith.addf %721, %720 : vector<2x64xf32>
    %723 = arith.divf %721, %722 : vector<2x64xf32>
    %724 = vector.extract_strided_slice %723 {offsets = [0, 0], sizes = [2, 32], strides = [1, 1]} : vector<2x64xf32> to vector<2x32xf32>
    %725 = vector.extract_strided_slice %723 {offsets = [0, 32], sizes = [2, 32], strides = [1, 1]} : vector<2x64xf32> to vector<2x32xf32>
    %726 = vector.extract_strided_slice %520 {offsets = [0, 64], sizes = [2, 32], strides = [1, 1]} : vector<2x96xf32> to vector<2x32xf32>
    %727 = vector.extract_strided_slice %715 {offsets = [0, 64], sizes = [2, 32], strides = [1, 1]} : vector<2x96xf32> to vector<2x32xf32>
    %728 = arith.mulf %724, %727 : vector<2x32xf32>
    %729 = arith.addf %726, %728 : vector<2x32xf32>
    %730 = math.tanh %729 : vector<2x32xf32>
    %cst_203 = arith.constant 1.000000e+00 : f32
    %731 = vector.broadcast %cst_203 : f32 to vector<2x32xf32>
    %732 = arith.subf %731, %725 : vector<2x32xf32>
    %733 = arith.mulf %732, %730 : vector<2x32xf32>
    %734 = arith.mulf %725, %709 : vector<2x32xf32>
    %735 = arith.addf %733, %734 : vector<2x32xf32>
    %cst_204 = arith.constant dense<0.000000e+00> : vector<2x96xf32>
    %736 = tpu.matmul %735, %528, %cst_204 {dimension_numbers = #tpu.dot_dimension_numbers<[1], [0], [0], [1], [0, 0, 1, 1], [], []>} : vector<2x32xf32>, vector<32x96xf32>, vector<2x96xf32> -> vector<2x96xf32>
    %737 = vector.broadcast %530 : vector<1x96xf32> to vector<2x96xf32>
    %738 = arith.addf %736, %737 : vector<2x96xf32>
    %c3_205 = arith.constant 3 : index
    %c0_206 = arith.constant 0 : index
    %c0_207 = arith.constant 0 : index
    %739 = vector.load %arg17[%c3_205, %c0_206, %c0_207] : memref<4x32x96xf32, #tpu.memory_space<vmem>>, vector<1x32x96xf32>
    %740 = vector.shape_cast %739 : vector<1x32x96xf32> to vector<32x96xf32>
    %c3_208 = arith.constant 3 : index
    %c0_209 = arith.constant 0 : index
    %c0_210 = arith.constant 0 : index
    %741 = vector.load %arg19[%c3_208, %c0_209, %c0_210] : memref<4x1x96xf32, #tpu.memory_space<vmem>>, vector<1x1x96xf32>
    %742 = vector.shape_cast %741 : vector<1x1x96xf32> to vector<1x96xf32>
    %c3_211 = arith.constant 3 : index
    %c0_212 = arith.constant 0 : index
    %c0_213 = arith.constant 0 : index
    %743 = vector.load %arg20[%c3_211, %c0_212, %c0_213] : memref<4x2x32xf32, #tpu.memory_space<vmem>>, vector<1x2x32xf32>
    %744 = vector.shape_cast %743 : vector<1x2x32xf32> to vector<2x32xf32>
    %cst_214 = arith.constant dense<0.000000e+00> : vector<2x96xf32>
    %745 = tpu.matmul %744, %740, %cst_214 {dimension_numbers = #tpu.dot_dimension_numbers<[1], [0], [0], [1], [0, 0, 1, 1], [], []>} : vector<2x32xf32>, vector<32x96xf32>, vector<2x96xf32> -> vector<2x96xf32>
    %746 = vector.broadcast %742 : vector<1x96xf32> to vector<2x96xf32>
    %747 = arith.addf %745, %746 : vector<2x96xf32>
    %748 = vector.extract_strided_slice %556 {offsets = [0, 0], sizes = [2, 64], strides = [1, 1]} : vector<2x96xf32> to vector<2x64xf32>
    %749 = vector.extract_strided_slice %747 {offsets = [0, 0], sizes = [2, 64], strides = [1, 1]} : vector<2x96xf32> to vector<2x64xf32>
    %750 = arith.addf %748, %749 : vector<2x64xf32>
    %751 = arith.negf %750 : vector<2x64xf32>
    %752 = math.exp %751 : vector<2x64xf32>
    %cst_215 = arith.constant 1.000000e+00 : f32
    %753 = vector.broadcast %cst_215 : f32 to vector<2x64xf32>
    %754 = arith.addf %753, %752 : vector<2x64xf32>
    %755 = arith.divf %753, %754 : vector<2x64xf32>
    %756 = vector.extract_strided_slice %755 {offsets = [0, 0], sizes = [2, 32], strides = [1, 1]} : vector<2x64xf32> to vector<2x32xf32>
    %757 = vector.extract_strided_slice %755 {offsets = [0, 32], sizes = [2, 32], strides = [1, 1]} : vector<2x64xf32> to vector<2x32xf32>
    %758 = vector.extract_strided_slice %556 {offsets = [0, 64], sizes = [2, 32], strides = [1, 1]} : vector<2x96xf32> to vector<2x32xf32>
    %759 = vector.extract_strided_slice %747 {offsets = [0, 64], sizes = [2, 32], strides = [1, 1]} : vector<2x96xf32> to vector<2x32xf32>
    %760 = arith.mulf %756, %759 : vector<2x32xf32>
    %761 = arith.addf %758, %760 : vector<2x32xf32>
    %762 = math.tanh %761 : vector<2x32xf32>
    %cst_216 = arith.constant 1.000000e+00 : f32
    %763 = vector.broadcast %cst_216 : f32 to vector<2x32xf32>
    %764 = arith.subf %763, %757 : vector<2x32xf32>
    %765 = arith.mulf %764, %762 : vector<2x32xf32>
    %766 = arith.mulf %757, %744 : vector<2x32xf32>
    %767 = arith.addf %765, %766 : vector<2x32xf32>
    %cst_217 = arith.constant dense<0.000000e+00> : vector<2x96xf32>
    %768 = tpu.matmul %767, %740, %cst_217 {dimension_numbers = #tpu.dot_dimension_numbers<[1], [0], [0], [1], [0, 0, 1, 1], [], []>} : vector<2x32xf32>, vector<32x96xf32>, vector<2x96xf32> -> vector<2x96xf32>
    %769 = vector.broadcast %742 : vector<1x96xf32> to vector<2x96xf32>
    %770 = arith.addf %768, %769 : vector<2x96xf32>
    %771 = vector.extract_strided_slice %582 {offsets = [0, 0], sizes = [2, 64], strides = [1, 1]} : vector<2x96xf32> to vector<2x64xf32>
    %772 = vector.extract_strided_slice %770 {offsets = [0, 0], sizes = [2, 64], strides = [1, 1]} : vector<2x96xf32> to vector<2x64xf32>
    %773 = arith.addf %771, %772 : vector<2x64xf32>
    %774 = arith.negf %773 : vector<2x64xf32>
    %775 = math.exp %774 : vector<2x64xf32>
    %cst_218 = arith.constant 1.000000e+00 : f32
    %776 = vector.broadcast %cst_218 : f32 to vector<2x64xf32>
    %777 = arith.addf %776, %775 : vector<2x64xf32>
    %778 = arith.divf %776, %777 : vector<2x64xf32>
    %779 = vector.extract_strided_slice %778 {offsets = [0, 0], sizes = [2, 32], strides = [1, 1]} : vector<2x64xf32> to vector<2x32xf32>
    %780 = vector.extract_strided_slice %778 {offsets = [0, 32], sizes = [2, 32], strides = [1, 1]} : vector<2x64xf32> to vector<2x32xf32>
    %781 = vector.extract_strided_slice %582 {offsets = [0, 64], sizes = [2, 32], strides = [1, 1]} : vector<2x96xf32> to vector<2x32xf32>
    %782 = vector.extract_strided_slice %770 {offsets = [0, 64], sizes = [2, 32], strides = [1, 1]} : vector<2x96xf32> to vector<2x32xf32>
    %783 = arith.mulf %779, %782 : vector<2x32xf32>
    %784 = arith.addf %781, %783 : vector<2x32xf32>
    %785 = math.tanh %784 : vector<2x32xf32>
    %cst_219 = arith.constant 1.000000e+00 : f32
    %786 = vector.broadcast %cst_219 : f32 to vector<2x32xf32>
    %787 = arith.subf %786, %780 : vector<2x32xf32>
    %788 = arith.mulf %787, %785 : vector<2x32xf32>
    %789 = arith.mulf %780, %767 : vector<2x32xf32>
    %790 = arith.addf %788, %789 : vector<2x32xf32>
    %cst_220 = arith.constant dense<0.000000e+00> : vector<2x96xf32>
    %791 = tpu.matmul %790, %740, %cst_220 {dimension_numbers = #tpu.dot_dimension_numbers<[1], [0], [0], [1], [0, 0, 1, 1], [], []>} : vector<2x32xf32>, vector<32x96xf32>, vector<2x96xf32> -> vector<2x96xf32>
    %792 = vector.broadcast %742 : vector<1x96xf32> to vector<2x96xf32>
    %793 = arith.addf %791, %792 : vector<2x96xf32>
    %794 = vector.extract_strided_slice %608 {offsets = [0, 0], sizes = [2, 64], strides = [1, 1]} : vector<2x96xf32> to vector<2x64xf32>
    %795 = vector.extract_strided_slice %793 {offsets = [0, 0], sizes = [2, 64], strides = [1, 1]} : vector<2x96xf32> to vector<2x64xf32>
    %796 = arith.addf %794, %795 : vector<2x64xf32>
    %797 = arith.negf %796 : vector<2x64xf32>
    %798 = math.exp %797 : vector<2x64xf32>
    %cst_221 = arith.constant 1.000000e+00 : f32
    %799 = vector.broadcast %cst_221 : f32 to vector<2x64xf32>
    %800 = arith.addf %799, %798 : vector<2x64xf32>
    %801 = arith.divf %799, %800 : vector<2x64xf32>
    %802 = vector.extract_strided_slice %801 {offsets = [0, 0], sizes = [2, 32], strides = [1, 1]} : vector<2x64xf32> to vector<2x32xf32>
    %803 = vector.extract_strided_slice %801 {offsets = [0, 32], sizes = [2, 32], strides = [1, 1]} : vector<2x64xf32> to vector<2x32xf32>
    %804 = vector.extract_strided_slice %608 {offsets = [0, 64], sizes = [2, 32], strides = [1, 1]} : vector<2x96xf32> to vector<2x32xf32>
    %805 = vector.extract_strided_slice %793 {offsets = [0, 64], sizes = [2, 32], strides = [1, 1]} : vector<2x96xf32> to vector<2x32xf32>
    %806 = arith.mulf %802, %805 : vector<2x32xf32>
    %807 = arith.addf %804, %806 : vector<2x32xf32>
    %808 = math.tanh %807 : vector<2x32xf32>
    %cst_222 = arith.constant 1.000000e+00 : f32
    %809 = vector.broadcast %cst_222 : f32 to vector<2x32xf32>
    %810 = arith.subf %809, %803 : vector<2x32xf32>
    %811 = arith.mulf %810, %808 : vector<2x32xf32>
    %812 = arith.mulf %803, %790 : vector<2x32xf32>
    %813 = arith.addf %811, %812 : vector<2x32xf32>
    %cst_223 = arith.constant dense<0.000000e+00> : vector<2x96xf32>
    %814 = tpu.matmul %813, %740, %cst_223 {dimension_numbers = #tpu.dot_dimension_numbers<[1], [0], [0], [1], [0, 0, 1, 1], [], []>} : vector<2x32xf32>, vector<32x96xf32>, vector<2x96xf32> -> vector<2x96xf32>
    %815 = vector.broadcast %742 : vector<1x96xf32> to vector<2x96xf32>
    %816 = arith.addf %814, %815 : vector<2x96xf32>
    %817 = vector.extract_strided_slice %634 {offsets = [0, 0], sizes = [2, 64], strides = [1, 1]} : vector<2x96xf32> to vector<2x64xf32>
    %818 = vector.extract_strided_slice %816 {offsets = [0, 0], sizes = [2, 64], strides = [1, 1]} : vector<2x96xf32> to vector<2x64xf32>
    %819 = arith.addf %817, %818 : vector<2x64xf32>
    %820 = arith.negf %819 : vector<2x64xf32>
    %821 = math.exp %820 : vector<2x64xf32>
    %cst_224 = arith.constant 1.000000e+00 : f32
    %822 = vector.broadcast %cst_224 : f32 to vector<2x64xf32>
    %823 = arith.addf %822, %821 : vector<2x64xf32>
    %824 = arith.divf %822, %823 : vector<2x64xf32>
    %825 = vector.extract_strided_slice %824 {offsets = [0, 0], sizes = [2, 32], strides = [1, 1]} : vector<2x64xf32> to vector<2x32xf32>
    %826 = vector.extract_strided_slice %824 {offsets = [0, 32], sizes = [2, 32], strides = [1, 1]} : vector<2x64xf32> to vector<2x32xf32>
    %827 = vector.extract_strided_slice %634 {offsets = [0, 64], sizes = [2, 32], strides = [1, 1]} : vector<2x96xf32> to vector<2x32xf32>
    %828 = vector.extract_strided_slice %816 {offsets = [0, 64], sizes = [2, 32], strides = [1, 1]} : vector<2x96xf32> to vector<2x32xf32>
    %829 = arith.mulf %825, %828 : vector<2x32xf32>
    %830 = arith.addf %827, %829 : vector<2x32xf32>
    %831 = math.tanh %830 : vector<2x32xf32>
    %cst_225 = arith.constant 1.000000e+00 : f32
    %832 = vector.broadcast %cst_225 : f32 to vector<2x32xf32>
    %833 = arith.subf %832, %826 : vector<2x32xf32>
    %834 = arith.mulf %833, %831 : vector<2x32xf32>
    %835 = arith.mulf %826, %813 : vector<2x32xf32>
    %836 = arith.addf %834, %835 : vector<2x32xf32>
    %cst_226 = arith.constant dense<0.000000e+00> : vector<2x96xf32>
    %837 = tpu.matmul %836, %740, %cst_226 {dimension_numbers = #tpu.dot_dimension_numbers<[1], [0], [0], [1], [0, 0, 1, 1], [], []>} : vector<2x32xf32>, vector<32x96xf32>, vector<2x96xf32> -> vector<2x96xf32>
    %838 = vector.broadcast %742 : vector<1x96xf32> to vector<2x96xf32>
    %839 = arith.addf %837, %838 : vector<2x96xf32>
    %840 = vector.extract_strided_slice %660 {offsets = [0, 0], sizes = [2, 64], strides = [1, 1]} : vector<2x96xf32> to vector<2x64xf32>
    %841 = vector.extract_strided_slice %839 {offsets = [0, 0], sizes = [2, 64], strides = [1, 1]} : vector<2x96xf32> to vector<2x64xf32>
    %842 = arith.addf %840, %841 : vector<2x64xf32>
    %843 = arith.negf %842 : vector<2x64xf32>
    %844 = math.exp %843 : vector<2x64xf32>
    %cst_227 = arith.constant 1.000000e+00 : f32
    %845 = vector.broadcast %cst_227 : f32 to vector<2x64xf32>
    %846 = arith.addf %845, %844 : vector<2x64xf32>
    %847 = arith.divf %845, %846 : vector<2x64xf32>
    %848 = vector.extract_strided_slice %847 {offsets = [0, 0], sizes = [2, 32], strides = [1, 1]} : vector<2x64xf32> to vector<2x32xf32>
    %849 = vector.extract_strided_slice %847 {offsets = [0, 32], sizes = [2, 32], strides = [1, 1]} : vector<2x64xf32> to vector<2x32xf32>
    %850 = vector.extract_strided_slice %660 {offsets = [0, 64], sizes = [2, 32], strides = [1, 1]} : vector<2x96xf32> to vector<2x32xf32>
    %851 = vector.extract_strided_slice %839 {offsets = [0, 64], sizes = [2, 32], strides = [1, 1]} : vector<2x96xf32> to vector<2x32xf32>
    %852 = arith.mulf %848, %851 : vector<2x32xf32>
    %853 = arith.addf %850, %852 : vector<2x32xf32>
    %854 = math.tanh %853 : vector<2x32xf32>
    %cst_228 = arith.constant 1.000000e+00 : f32
    %855 = vector.broadcast %cst_228 : f32 to vector<2x32xf32>
    %856 = arith.subf %855, %849 : vector<2x32xf32>
    %857 = arith.mulf %856, %854 : vector<2x32xf32>
    %858 = arith.mulf %849, %836 : vector<2x32xf32>
    %859 = arith.addf %857, %858 : vector<2x32xf32>
    %cst_229 = arith.constant dense<0.000000e+00> : vector<2x96xf32>
    %860 = tpu.matmul %859, %740, %cst_229 {dimension_numbers = #tpu.dot_dimension_numbers<[1], [0], [0], [1], [0, 0, 1, 1], [], []>} : vector<2x32xf32>, vector<32x96xf32>, vector<2x96xf32> -> vector<2x96xf32>
    %861 = vector.broadcast %742 : vector<1x96xf32> to vector<2x96xf32>
    %862 = arith.addf %860, %861 : vector<2x96xf32>
    %863 = vector.extract_strided_slice %686 {offsets = [0, 0], sizes = [2, 64], strides = [1, 1]} : vector<2x96xf32> to vector<2x64xf32>
    %864 = vector.extract_strided_slice %862 {offsets = [0, 0], sizes = [2, 64], strides = [1, 1]} : vector<2x96xf32> to vector<2x64xf32>
    %865 = arith.addf %863, %864 : vector<2x64xf32>
    %866 = arith.negf %865 : vector<2x64xf32>
    %867 = math.exp %866 : vector<2x64xf32>
    %cst_230 = arith.constant 1.000000e+00 : f32
    %868 = vector.broadcast %cst_230 : f32 to vector<2x64xf32>
    %869 = arith.addf %868, %867 : vector<2x64xf32>
    %870 = arith.divf %868, %869 : vector<2x64xf32>
    %871 = vector.extract_strided_slice %870 {offsets = [0, 0], sizes = [2, 32], strides = [1, 1]} : vector<2x64xf32> to vector<2x32xf32>
    %872 = vector.extract_strided_slice %870 {offsets = [0, 32], sizes = [2, 32], strides = [1, 1]} : vector<2x64xf32> to vector<2x32xf32>
    %873 = vector.extract_strided_slice %686 {offsets = [0, 64], sizes = [2, 32], strides = [1, 1]} : vector<2x96xf32> to vector<2x32xf32>
    %874 = vector.extract_strided_slice %862 {offsets = [0, 64], sizes = [2, 32], strides = [1, 1]} : vector<2x96xf32> to vector<2x32xf32>
    %875 = arith.mulf %871, %874 : vector<2x32xf32>
    %876 = arith.addf %873, %875 : vector<2x32xf32>
    %877 = math.tanh %876 : vector<2x32xf32>
    %cst_231 = arith.constant 1.000000e+00 : f32
    %878 = vector.broadcast %cst_231 : f32 to vector<2x32xf32>
    %879 = arith.subf %878, %872 : vector<2x32xf32>
    %880 = arith.mulf %879, %877 : vector<2x32xf32>
    %881 = arith.mulf %872, %859 : vector<2x32xf32>
    %882 = arith.addf %880, %881 : vector<2x32xf32>
    %cst_232 = arith.constant dense<0.000000e+00> : vector<2x96xf32>
    %883 = tpu.matmul %882, %740, %cst_232 {dimension_numbers = #tpu.dot_dimension_numbers<[1], [0], [0], [1], [0, 0, 1, 1], [], []>} : vector<2x32xf32>, vector<32x96xf32>, vector<2x96xf32> -> vector<2x96xf32>
    %884 = vector.broadcast %742 : vector<1x96xf32> to vector<2x96xf32>
    %885 = arith.addf %883, %884 : vector<2x96xf32>
    %886 = vector.extract_strided_slice %712 {offsets = [0, 0], sizes = [2, 64], strides = [1, 1]} : vector<2x96xf32> to vector<2x64xf32>
    %887 = vector.extract_strided_slice %885 {offsets = [0, 0], sizes = [2, 64], strides = [1, 1]} : vector<2x96xf32> to vector<2x64xf32>
    %888 = arith.addf %886, %887 : vector<2x64xf32>
    %889 = arith.negf %888 : vector<2x64xf32>
    %890 = math.exp %889 : vector<2x64xf32>
    %cst_233 = arith.constant 1.000000e+00 : f32
    %891 = vector.broadcast %cst_233 : f32 to vector<2x64xf32>
    %892 = arith.addf %891, %890 : vector<2x64xf32>
    %893 = arith.divf %891, %892 : vector<2x64xf32>
    %894 = vector.extract_strided_slice %893 {offsets = [0, 0], sizes = [2, 32], strides = [1, 1]} : vector<2x64xf32> to vector<2x32xf32>
    %895 = vector.extract_strided_slice %893 {offsets = [0, 32], sizes = [2, 32], strides = [1, 1]} : vector<2x64xf32> to vector<2x32xf32>
    %896 = vector.extract_strided_slice %712 {offsets = [0, 64], sizes = [2, 32], strides = [1, 1]} : vector<2x96xf32> to vector<2x32xf32>
    %897 = vector.extract_strided_slice %885 {offsets = [0, 64], sizes = [2, 32], strides = [1, 1]} : vector<2x96xf32> to vector<2x32xf32>
    %898 = arith.mulf %894, %897 : vector<2x32xf32>
    %899 = arith.addf %896, %898 : vector<2x32xf32>
    %900 = math.tanh %899 : vector<2x32xf32>
    %cst_234 = arith.constant 1.000000e+00 : f32
    %901 = vector.broadcast %cst_234 : f32 to vector<2x32xf32>
    %902 = arith.subf %901, %895 : vector<2x32xf32>
    %903 = arith.mulf %902, %900 : vector<2x32xf32>
    %904 = arith.mulf %895, %882 : vector<2x32xf32>
    %905 = arith.addf %903, %904 : vector<2x32xf32>
    %cst_235 = arith.constant dense<0.000000e+00> : vector<2x96xf32>
    %906 = tpu.matmul %905, %740, %cst_235 {dimension_numbers = #tpu.dot_dimension_numbers<[1], [0], [0], [1], [0, 0, 1, 1], [], []>} : vector<2x32xf32>, vector<32x96xf32>, vector<2x96xf32> -> vector<2x96xf32>
    %907 = vector.broadcast %742 : vector<1x96xf32> to vector<2x96xf32>
    %908 = arith.addf %906, %907 : vector<2x96xf32>
    %909 = vector.extract_strided_slice %738 {offsets = [0, 0], sizes = [2, 64], strides = [1, 1]} : vector<2x96xf32> to vector<2x64xf32>
    %910 = vector.extract_strided_slice %908 {offsets = [0, 0], sizes = [2, 64], strides = [1, 1]} : vector<2x96xf32> to vector<2x64xf32>
    %911 = arith.addf %909, %910 : vector<2x64xf32>
    %912 = arith.negf %911 : vector<2x64xf32>
    %913 = math.exp %912 : vector<2x64xf32>
    %cst_236 = arith.constant 1.000000e+00 : f32
    %914 = vector.broadcast %cst_236 : f32 to vector<2x64xf32>
    %915 = arith.addf %914, %913 : vector<2x64xf32>
    %916 = arith.divf %914, %915 : vector<2x64xf32>
    %917 = vector.extract_strided_slice %916 {offsets = [0, 0], sizes = [2, 32], strides = [1, 1]} : vector<2x64xf32> to vector<2x32xf32>
    %918 = vector.extract_strided_slice %916 {offsets = [0, 32], sizes = [2, 32], strides = [1, 1]} : vector<2x64xf32> to vector<2x32xf32>
    %919 = vector.extract_strided_slice %738 {offsets = [0, 64], sizes = [2, 32], strides = [1, 1]} : vector<2x96xf32> to vector<2x32xf32>
    %920 = vector.extract_strided_slice %908 {offsets = [0, 64], sizes = [2, 32], strides = [1, 1]} : vector<2x96xf32> to vector<2x32xf32>
    %921 = arith.mulf %917, %920 : vector<2x32xf32>
    %922 = arith.addf %919, %921 : vector<2x32xf32>
    %923 = math.tanh %922 : vector<2x32xf32>
    %cst_237 = arith.constant 1.000000e+00 : f32
    %924 = vector.broadcast %cst_237 : f32 to vector<2x32xf32>
    %925 = arith.subf %924, %918 : vector<2x32xf32>
    %926 = arith.mulf %925, %923 : vector<2x32xf32>
    %927 = arith.mulf %918, %905 : vector<2x32xf32>
    %928 = arith.addf %926, %927 : vector<2x32xf32>
    %c0_238 = arith.constant 0 : index
    %c0_239 = arith.constant 0 : index
    %929 = vector.load %arg22[%c0_238, %c0_239] : memref<2x32xf32, #tpu.memory_space<vmem>>, vector<2x32xf32>
    tpu.vector_store %arg22[%c0_238, %c0_239], %928 {strides = array<i32>} : memref<2x32xf32, #tpu.memory_space<vmem>>, vector<2x32xf32>,
    return
  }
}

</mosaic_0001>

<bundles_post_ra>
// kernel: item_model_forward.5
= control target key start
LH: loop header
LB: loop body
LE: loop exit
PB: predicated region body
PF: predicated region fallthrough
CT: control target
= control target key end

     0   :  { %s769_s0 = inlined_call_operand.vmem [shape: f32[8,32], index: 0, kind: input, shape index: {}]   ;;  %s770_s1 = inlined_call_operand.vmem [shape: f32[8,32], index: 1, kind: input, shape index: {}]   ;;  %s771_s2 = inlined_call_operand.vmem [shape: f32[8,1], index: 2, kind: input, shape index: {}]   ;;  %s772_s3 = inlined_call_operand.vmem [shape: f32[2,32], index: 3, kind: input, shape index: {}]   ;;  %s773_s4 = inlined_call_operand.vmem [shape: f32[2,32], index: 4, kind: input, shape index: {}]   ;;  %s774_s5 = inlined_call_operand.vmem [shape: f32[8,2], index: 5, kind: input, shape index: {}]   ;;  %s775_s6 = inlined_call_operand.vmem [shape: f32[2,8], index: 6, kind: input, shape index: {}]   ;;  %s776_s7 = inlined_call_operand.vmem [shape: f32[32,32], index: 7, kind: input, shape index: {}]   ;;  %s777_s8 = inlined_call_operand.vmem [shape: f32[1,32], index: 8, kind: input, shape index: {}]   ;;  %s778_s9 = inlined_call_operand.vmem [shape: f32[64,32], index: 9, kind: input, shape index: {}]   ;;  %s779_s10 = inlined_call_operand.vmem [shape: f32[1,32], index: 10, kind: input, shape index: {}]   ;;  %s780_s11 = inlined_call_operand.vmem [shape: f32[32,1], index: 11, kind: input, shape index: {}]   ;;  %s781_s12 = inlined_call_operand.<no memory space> [shape: f32[1,1], index: 12, kind: input, shape index: {}]   ;;  %s782_s13 = inlined_call_operand.vmem [shape: f32[32,32], index: 13, kind: input, shape index: {}]   ;;  %s783_s14 = inlined_call_operand.vmem [shape: f32[1,32], index: 14, kind: input, shape index: {}]   ;;  %s784_s15 = inlined_call_operand.vmem [shape: f32[64,64], index: 15, kind: input, shape index: {}]   ;;  %s785_s16 = inlined_call_operand.vmem [shape: f32[1,64], index: 16, kind: input, shape index: {}]   ;;  %s786_s17 = inlined_call_operand.vmem [shape: f32[64,32], index: 17, kind: input, shape index: {}]   ;;  %s787_s18 = inlined_call_operand.vmem [shape: f32[1,32], index: 18, kind: input, shape index: {}]   ;;  %s788_s19 = inlined_call_operand.hbm [shape: f32[2,32], index: 19, kind: output, shape index: {}]  }
   0x1   :  { %789 = sst [smem:[#allocation6_spill]] %s769_s0  ;;  %v24_v0 = vstv %s781_s12 }
   0x2   :  { %790 = sst [smem:[#allocation7_spill]] %s770_s1  ;;  %25 = vst [vmem:[#allocation2] sm:$0x1] %v24_v0 }
   0x3   :  { %791 = sst [smem:[#allocation8_spill]] %s771_s2 }
   0x4   :  { %792 = sst [smem:[#allocation9_spill]] %s772_s3 }
   0x5   :  { %v609_v1 = vld [vmem:[%s773_s4] sm:$0x3]  ;;  %vm71_vm0 = vcmask 1041408   ;;  %vm67_vm1 = vcmask 15360   ;;  %v101_v3 = vld [vmem:[%s776_s7 + $0x18] sm:$0xff]  ;;  %v100_v4 = vld [vmem:[%s776_s7 + $0x10] sm:$0xff] }
   0x6   :  { %v65_v2 = vld [vmem:[%s774_s5] sm:$0xff]  ;;  %449 = vmatpush.msk.msra.mxu0 %vm71_vm0, %v609_v1  ;;  %125 = vmatpush.msra.mxu1 %v101_v3 }
   0x7   :  { %450 = vmatmul.msk.f32.vlgmr.msra.gmra.mxu0 %vm67_vm1, %v65_v2 }
   0x8   :  { %26 = vsyncpa [#allocation4], 0  ;;  %126 = vmatpush.msra.mxu1 %v100_v4  ;;  %v99_v5 = vld [vmem:[%s776_s7 + $0x8] sm:$0xff]  ;;  %v98_v6 = vld [vmem:[%s776_s7] sm:$0xff]  ;;  %s793_s20 = sld [smem:[#allocation6_spill]]  ;;  %vm106_vm2 = vcmask 261120  }
   0x9   :  { %v139_v7 = vld [vmem:[%s778_s9 + $0x18] sm:$0xff]  ;;  %v138_v8 = vld [vmem:[%s778_s9 + $0x10] sm:$0xff]  ;;  %s794_s1 = sld [smem:[#allocation7_spill]]  ;;  %v137_v13 = vld [vmem:[%s778_s9 + $0x8] sm:$0xff]  ;;  %v501_v35 = vmov 0   ;;  %vm231_vm4 = vcmask 7168  }
   0xa   :  { %127 = vmatpush.msra.mxu1 %v99_v5  ;;  %188 = vmatpush.msrb.mxu0 %v139_v7  ;;  %v136_v14 = vld [vmem:[%s778_s9] sm:$0xff]  ;;  %v143_v15 = vld [vmem:[%s778_s9 + $0x38] sm:$0xff]  ;;  %v142_v16 = vld [vmem:[%s778_s9 + $0x30] sm:$0xff]  ;;  %s795_s24 = sld [smem:[#allocation8_spill]]  ;;  %vm249_vm5 = vcmask 64512   ;;  %vm406_vm6 = vcmask 523264  }
   0xb   :  { %165 = vmatpush.msra.mxu2 %v143_v15  ;;  %v141_v17 = vld [vmem:[%s778_s9 + $0x28] sm:$0xff]  ;;  %v140_v18 = vld [vmem:[%s778_s9 + $0x20] sm:$0xff]  ;;  %v148_v24 = vld [vmem:[%s780_s11 + $0x18] sm:$0xff]  ;;  %464 = vset.pattern.permute.xlu0 %v501_v35  ;;  %s796_s22 = sld [smem:[#allocation9_spill]]  ;;  %s440_s25 = sshll.u32 %s788_s19, 4  ;;  %vm431_vm7 = vcmask 254976   ;;  %s441_s25 = int_to_ptr.hbm [resolvable:$true] %s440_s25 }
   0xc   :  { %128 = vmatpush.msra.mxu1 %v98_v6  ;;  %189 = vmatpush.msrb.mxu0 %v138_v8  ;;  %v465_v19 = vld [vmem:[%s777_s8] ss:$0 sm:$0xff]  ;;  %v147_v25 = vld [vmem:[%s780_s11 + $0x10] sm:$0xff]  ;;  %v146_v26 = vld [vmem:[%s780_s11 + $0x8] sm:$0xff] }
   0xd   :  { %166 = vmatpush.msra.mxu2 %v142_v16  ;;  %v145_v27 = vld [vmem:[%s780_s11] sm:$0xff]  ;;  %v303_v52 = vld [vmem:[%s782_s13 + $0x18] sm:$0xff]  ;;  %v302_v53 = vld [vmem:[%s782_s13 + $0x10] sm:$0xff] }
   0xe   :  { %v95_v9 = vld [vmem:[%s793_s20] sm:$0xff]  ;;  %190 = vmatpush.msrb.mxu0 %v137_v13  ;;  %v301_v54 = vld [vmem:[%s782_s13 + $0x8] sm:$0xff]  ;;  %v341_v61 = vld [vmem:[%s784_s15 + $0x38] sm:$0xff] }
   0xf   :  { %v97_v12 = vld [vmem:[%s794_s1] sm:$0xff]  ;;  %167 = vmatpush.msra.mxu2 %v141_v17  ;;  %v337_v62 = vld [vmem:[%s784_s15 + $0x18] sm:$0xff]  ;;  %v340_v63 = vld [vmem:[%s784_s15 + $0x30] sm:$0xff]  ;;  %357 = vmatpush.msrb.mxu1 %v341_v61 }
  0x10   :  { %191 = vmatpush.msrb.mxu0 %v136_v14  ;;  %v466_v28 = vld [vmem:[%s779_s10] ss:$0 sm:$0xff]  ;;  %v336_v2 = vld [vmem:[%s784_s15 + $0x10] sm:$0xff]  ;;  %v335_v3 = vld [vmem:[%s784_s15 + $0x8] sm:$0xff] }
  0x11   :  { %168 = vmatpush.msra.mxu2 %v140_v18  ;;  %v467_v36 = vld [vmem:[#allocation2] ss:$0 sm:$0xff]  ;;  %v339_v4 = vld [vmem:[%s784_s15 + $0x28] sm:$0xff]  ;;  %358 = vmatpush.msrb.mxu1 %v340_v63  ;;  %v397_v18 = vld [vmem:[%s786_s17 + $0x18] sm:$0xff] }
  0x12   :  { %221 = vmatpush.msra.mxu0 %v148_v24  ;;  %v229_v48 = vld [vmem:[%s795_s24] sm:$0xff]  ;;  %s502_s24 = smov [#allocation3]  }
  0x13   :  { %v230_v51 = vld [vmem:[%s775_s6] sm:$0x3]  ;;  %359 = vmatpush.msrb.mxu1 %v339_v4  ;;  %s438_s12 = sshll.u32 %s502_s24, 4  ;;  %s439_s12 = int_to_ptr.vmem [resolvable:$true] %s438_s12 }
  0x14   :  { %222 = vmatpush.msra.mxu0 %v147_v25  ;;  %v300_v60 = vld [vmem:[%s782_s13] sm:$0xff] }
  0x15   :  { %v332_v0 = vld [vmem:[%s796_s22] sm:$0x3] }
  0x16   :  { %223 = vmatpush.msra.mxu0 %v146_v26  ;;  %v333_v5 = vmul.f32 %v332_v0, %v609_v1  ;;  %v334_v6 = vld [vmem:[%s784_s15] sm:$0xff]  ;;  %v401_v1 = vld [vmem:[%s786_s17 + $0x38] sm:$0xff] }
  0x17   :  { %v398_v13 = vld [vmem:[%s786_s17 + $0x20] sm:$0xff] }
  0x18   :  { %224 = vmatpush.msra.mxu0 %v145_v27  ;;  %v468_v14 = vld [vmem:[%s783_s14] ss:$0 sm:$0xff] }
  0x84   :  { %v92_v10 = vpop.f32.mrf.mxu0 }
  0x85   :  { %v636_v11 = vmul.f32 %v95_v9, %v92_v10  ;;  %v338_v10 = vld [vmem:[%s784_s15 + $0x20] sm:$0xff] }
  0x86   :  { %360 = vmatpush.msrb.mxu1 %v338_v10 }
  0x87   :  { %451 = vmatmul.msk.f32.vlgmr.msra.gmra.mxu1 %vm106_vm2, %v636_v11 }
  0x8f   :  { %452 = vmatmul.msk.f32.gmra.mxu1 %vm106_vm2, %v97_v12  ;;  %v399_v12 = vld [vmem:[%s786_s17 + $0x28] sm:$0xff] }
 0x104   :  { %v130_v20 = vpop.f32.mrf.mxu1 }
 0x105   :  { %v131_v21 = vadd.f32 %v465_v19, %v130_v20  ;;  %v395_v20 = vld [vmem:[%s786_s17 + $0x8] sm:$0xff] }
 0x107   :  { %454 = vmatmul.msk.f32.vlgmr.msrb.gmra.mxu0 %vm106_vm2, %v131_v21  ;;  %v394_v21 = vld [vmem:[%s786_s17] sm:$0xff] }
 0x108   :  { %323 = vmatpush.msrb.mxu0 %v303_v52 }
 0x10a   :  { %324 = vmatpush.msrb.mxu0 %v302_v53 }
 0x10c   :  { %v133_v22 = vpop.f32.mrf.mxu1  ;;  %325 = vmatpush.msrb.mxu0 %v301_v54 }
 0x10d   :  { %v134_v23 = vadd.f32 %v465_v19, %v133_v22  ;;  %v396_v19 = vld [vmem:[%s786_s17 + $0x10] sm:$0xff] }
 0x10e   :  { %326 = vmatpush.msrb.mxu0 %v300_v60 }
 0x10f   :  { %453 = vmatmul.msk.f32.vlgmr.msra.gmra.mxu2 %vm106_vm2, %v134_v23  ;;  %v469_v23 = vld [vmem:[%s785_s16] ss:$0 sm:$0xff] }
 0x184   :  { %v193_v29 = vpop.f32.mrf.mxu0 }
 0x192   :  { %v170_v30 = vpop.f32.mrf.mxu2 }
 0x193   :  { %v194_v31 = vadd.f32 %v193_v29, %v170_v30 }
 0x195   :  { %v199_v32 = vadd.f32 %v466_v28, %v194_v31  ;;  %v470_v28 = vld [vmem:[%s787_s18] ss:$0 sm:$0xff] }
 0x197   :  { %vm200_vm3 = vcmp.ge.f32.partialorder %v199_v32, 0.0  ;;  %v201_v33 = vmul.f32 0.2, %v199_v32 }
 0x199   :  { %v202_v34 = vsel %vm200_vm3, %v199_v32, %v201_v33 }
 0x19a   :  { %455 = vmatmul.msk.f32.vlgmr.msra.gmra.mxu0 %vm106_vm2, %v202_v34 }
 0x217   :  { %v226_v37 = vpop.f32.mrf.mxu0 }
 0x218   :  { %v227_v38 = vadd.f32 %v467_v36, %v226_v37 }
 0x21a   :  { %v232_v39 = vsel %vm231_vm4, %v227_v38, -inf }
 0x21b   :  { %v233_v40 = vrot.slane %v232_v39, 4 }
 0x21d   :  { %v234_v41 = vmax.f32 %v232_v39, %v233_v40 }
 0x21f   :  { %v235_v42 = vrot.slane %v234_v41, 2 }
 0x221   :  { %v236_v43 = vmax.f32 %v234_v41, %v235_v42 }
 0x223   :  { %v237_v44 = vrot.slane %v236_v43, 1 }
 0x225   :  { %v238_v45 = vmax.f32 %v236_v43, %v237_v44 }
 0x227   :  { %v239_v46 = vsub.f32 %v227_v38, %v238_v45 }
 0x229   :  { %v240_v47 = vmul.f32 1.442695, %v239_v46 }
 0x22b   :  { %471 = vpow2.f32 %v240_v47 }
 0x231   :  { %v472_v49 = vpop.eup %471 }
 0x232   :  { %v242_v50 = vmul.f32 %v472_v49, %v229_v48 }
 0x234   :  { %245 = vperm.xlu0 %464, %v242_v50   ;;  %288 = vmatpush.msra.mxu3 %v242_v50 }
 0x235   :  { %457 = vmatmul.msk.f32.vlgmr.msra.gmra.mxu3 %vm249_vm5, %v230_v51 }
 0x236   :  { %418 = vmatpush.msrb.mxu3 %v401_v1 }
 0x2a6   :  { %v246_v55 = vpop.permute.xlu0 %245 }
 0x2a7   :  { %v248_v56 = vmul.f32 %v246_v55, %v636_v11  ;;  %v400_v11 = vld [vmem:[%s786_s17 + $0x30] sm:$0xff] }
 0x2a8   :  { %419 = vmatpush.msrb.mxu3 %v400_v11 }
 0x2a9   :  { %268 = vmatpush.msrb.mxu2 %v248_v56 }
 0x2aa   :  { %456 = vmatmul.msk.f32.vlgmr.msrb.gmra.mxu2 %vm249_vm5, %v230_v51  ;;  %420 = vmatpush.msrb.mxu3 %v399_v12 }
 0x2ab   :  { %380 = vmatpush.msra.mxu2 %v337_v62 }
 0x2ac   :  { %421 = vmatpush.msrb.mxu3 %v398_v13 }
 0x2ad   :  { %381 = vmatpush.msra.mxu2 %v336_v2 }
 0x2ae   :  { %422 = vmatpush.msrb.mxu3 %v397_v18 }
 0x2af   :  { %382 = vmatpush.msra.mxu2 %v335_v3 }
 0x2b0   :  { %423 = vmatpush.msrb.mxu3 %v396_v19 }
 0x2b1   :  { %383 = vmatpush.msra.mxu2 %v334_v6 }
 0x2b2   :  { %460 = vmatmul.msk.f32.vlgmr.msra.gmra.mxu2 %vm106_vm2, %v333_v5  ;;  %424 = vmatpush.msrb.mxu3 %v395_v20 }
 0x2b4   :  { %425 = vmatpush.msrb.mxu3 %v394_v21 }
 0x2b8   :  { %v290_v57 = vpop.f32.mrf.mxu3 }
 0x2b9   :  { %v291_v58 = vadd.f32 1e-10, %v290_v57 }
 0x2bb   :  { %473 = vrcp.f32 %v291_v58 }
 0x2c1   :  { %v474_v59 = vpop.eup %473 }
 0x2c2   :  { %296 = vperm.xlu0 %464, %v474_v59  }
 0x32d   :  { %v270_v7 = vpop.f32.mrf.mxu2 }
 0x334   :  { %v297_v8 = vpop.permute.xlu0 %296 }
 0x335   :  { %v299_v9 = vmul.f32 %v297_v8, %v270_v7  ;;  %v385_v22 = vpop.f32.mrf.mxu2 }
 0x337   :  { %458 = vmatmul.msk.f32.vlgmr.msrb.gmra.mxu0 %vm106_vm2, %v299_v9 }
 0x3b4   :  { %v328_v15 = vpop.f32.mrf.mxu0 }
 0x3b5   :  { %v329_v16 = vadd.f32 %v468_v14, %v328_v15 }
 0x3b7   :  { %v331_v17 = vmax.f32 %v329_v16, 0.0 }
 0x3b9   :  { %459 = vmatmul.msk.f32.vlgmr.msrb.gmra.mxu1 %vm106_vm2, %v331_v17 }
 0x436   :  { %v362_v24 = vpop.f32.mrf.mxu1 }
 0x437   :  { %v386_v25 = vadd.f32 %v385_v22, %v362_v24 }
 0x439   :  { %v392_v26 = vadd.f32 %v469_v23, %v386_v25 }
 0x43b   :  { %v393_v27 = vmax.f32 %v392_v26, 0.0 }
 0x43d   :  { %461 = vmatmul.msk.f32.vlgmr.msrb.gmra.mxu3 %vm406_vm6, %v393_v27 }
 0x4c0   :  { %v427_v29 = vpop.f32.mrf.mxu3 }
 0x4c1   :  { %v428_v30 = vadd.f32 %v470_v28, %v427_v29 }
 0x4c3   :  { %v430_v31 = vmax.f32 %v428_v30, 0.0 }
 0x4c5   :  { %432 = vst.msk [vmem:[#allocation3] sm:$0x3] %vm431_vm7, %v430_v31 }
 0x4c6   :  { %443 = dma.vmem_to_hbm [thread:$0]  %s439_s12, 32, %s441_s25, [#allocation4]  }
 0x4c7   :  { %499 = dma.done.wait [#allocation4], 32  }
 0x4c8   :  { %500 = vsyncadd [#allocation4], 4294967264 }
 0x4c9   :  { %448 = vsyncpa [#allocation4], 1 }

// kernel: item_model_forward.4
= control target key start
LH: loop header
LB: loop body
LE: loop exit
PB: predicated region body
PF: predicated region fallthrough
CT: control target
= control target key end

     0   :  { %vm80_vm0 = vcmask 523264   ;;  %vm173_vm2 = vcmask 261120   ;;  %s1270_s4 = inlined_call_operand.vmem [shape: f32[64,32], index: 4, kind: input, shape index: {}]   ;;  %s1271_s5 = inlined_call_operand.vmem [shape: f32[1,32], index: 5, kind: input, shape index: {}]   ;;  %s1272_s0 = inlined_call_operand.vmem [shape: f32[64,64], index: 0, kind: input, shape index: {}]   ;;  %s1273_s6 = inlined_call_operand.vmem [shape: f32[32,32], index: 6, kind: input, shape index: {}]   ;;  %s1274_s7 = inlined_call_operand.vmem [shape: f32[1,32], index: 7, kind: input, shape index: {}]   ;;  %s1275_s8 = inlined_call_operand.vmem [shape: f32[32,32], index: 8, kind: input, shape index: {}]   ;;  %s1276_s9 = inlined_call_operand.vmem [shape: f32[1,32], index: 9, kind: input, shape index: {}]   ;;  %s1277_s1 = inlined_call_operand.vmem [shape: f32[64,32], index: 1, kind: input, shape index: {}]   ;;  %s1278_s10 = inlined_call_operand.vmem [shape: f32[64,32], index: 10, kind: input, shape index: {}]   ;;  %s1279_s11 = inlined_call_operand.vmem [shape: f32[1,32], index: 11, kind: input, shape index: {}]   ;;  %s1280_s12 = inlined_call_operand.vmem [shape: f32[32,1], index: 12, kind: input, shape index: {}]   ;;  %s1281_s13 = inlined_call_operand.<no memory space> [shape: f32[1,1], index: 13, kind: input, shape index: {}]   ;;  %s1282_s2 = inlined_call_operand.vmem [shape: f32[64,1], index: 2, kind: input, shape index: {}]   ;;  %s1283_s3 = inlined_call_operand.vmem [shape: f32[8,64], index: 3, kind: input, shape index: {}]   ;;  %s1284_s14 = inlined_call_operand.vmem [shape: f32[32,32], index: 14, kind: input, shape index: {}]   ;;  %s1285_s15 = inlined_call_operand.vmem [shape: f32[1,32], index: 15, kind: input, shape index: {}]   ;;  %s1286_s16 = inlined_call_operand.vmem [shape: f32[8,32], index: 16, kind: output, shape index: {}]  }
   0x1   :  { %1288 = sst [smem:[#allocation3_spill]] %s1270_s4  ;;  %v55_v8 = vld [vmem:[%s1272_s0] sm:$0xff]  ;;  %v56_v9 = vld [vmem:[%s1272_s0 + $0x8] sm:$0xff]  ;;  %v57_v10 = vld [vmem:[%s1272_s0 + $0x10] sm:$0xff] }
   0x2   :  { %s1289_s23 = sld [smem:[#allocation3_spill]]  ;;  %v58_v11 = vld [vmem:[%s1272_s0 + $0x18] sm:$0xff]  ;;  %v59_v13 = vld [vmem:[%s1272_s0 + $0x20] sm:$0xff]  ;;  %v60_v14 = vld [vmem:[%s1272_s0 + $0x28] sm:$0xff] }
   0x3   :  { %v75_v12 = vld [vmem:[%s1273_s6 + $0x18] sm:$0xff]  ;;  %v61_v15 = vld [vmem:[%s1272_s0 + $0x30] sm:$0xff]  ;;  %v73_v18 = vld [vmem:[%s1273_s6 + $0x8] sm:$0xff] }
   0x4   :  { %210 = vmatpush.msra.mxu1 %v75_v12  ;;  %v62_v16 = vld [vmem:[%s1272_s0 + $0x38] sm:$0xff]  ;;  %v74_v17 = vld [vmem:[%s1273_s6 + $0x10] sm:$0xff]  ;;  %v72_v19 = vld [vmem:[%s1273_s6] sm:$0xff] }
   0x5   :  { %v876_v20 = vld [vmem:[%s1271_s5] ss:$0 sm:$0xff]  ;;  %v250_v37 = vld [vmem:[%s1275_s8 + $0x18] sm:$0xff]  ;;  %v249_v38 = vld [vmem:[%s1275_s8 + $0x10] sm:$0xff] }
   0x6   :  { %211 = vmatpush.msra.mxu1 %v74_v17  ;;  %315 = vmatpush.msra.mxu2 %v250_v37  ;;  %v248_v55 = vld [vmem:[%s1275_s8 + $0x8] sm:$0xff]  ;;  %v247_v56 = vld [vmem:[%s1275_s8] sm:$0xff]  ;;  %v241_v12 = vld [vmem:[%s1277_s1 + $0x10] sm:$0xff] }
   0x7   :  { %v877_v57 = vld [vmem:[%s1274_s7] ss:$0 sm:$0xff]  ;;  %v369_v17 = vld [vmem:[%s1278_s10 + $0x8] sm:$0xff] }
   0x8   :  { %v70_v0 = vld [vmem:[%s1289_s23 + $0x38] sm:$0xff]  ;;  %v69_v1 = vld [vmem:[%s1289_s23 + $0x30] sm:$0xff]  ;;  %v68_v2 = vld [vmem:[%s1289_s23 + $0x28] sm:$0xff]  ;;  %212 = vmatpush.msra.mxu1 %v73_v18  ;;  %316 = vmatpush.msra.mxu2 %v249_v38 }
   0x9   :  { %113 = vmatpush.msra.mxu0 %v70_v0  ;;  %v67_v3 = vld [vmem:[%s1289_s23 + $0x20] sm:$0xff]  ;;  %v66_v4 = vld [vmem:[%s1289_s23 + $0x18] sm:$0xff]  ;;  %v65_v5 = vld [vmem:[%s1289_s23 + $0x10] sm:$0xff] }
   0xa   :  { %v64_v6 = vld [vmem:[%s1289_s23 + $0x8] sm:$0xff]  ;;  %v63_v7 = vld [vmem:[%s1289_s23] sm:$0xff]  ;;  %213 = vmatpush.msra.mxu1 %v72_v19  ;;  %317 = vmatpush.msra.mxu2 %v248_v55 }
   0xb   :  { %114 = vmatpush.msra.mxu0 %v69_v1  ;;  %v368_v18 = vld [vmem:[%s1278_s10] sm:$0xff]  ;;  %v244_v19 = vld [vmem:[%s1277_s1 + $0x28] sm:$0xff] }
   0xc   :  { %318 = vmatpush.msra.mxu2 %v247_v56 }
   0xd   :  { %115 = vmatpush.msra.mxu0 %v68_v2 }
   0xf   :  { %116 = vmatpush.msra.mxu0 %v67_v3 }
  0x11   :  { %117 = vmatpush.msra.mxu0 %v66_v4 }
  0x13   :  { %118 = vmatpush.msra.mxu0 %v65_v5 }
  0x15   :  { %119 = vmatpush.msra.mxu0 %v64_v6 }
  0x17   :  { %120 = vmatpush.msra.mxu0 %v63_v7 }
  0x18   :  { %813 = vmatmul.msk.f32.vlgmr.msra.gmra.mxu0 %vm80_vm0, %v55_v8 }
  0x20   :  { %814 = vmatmul.msk.f32.gmra.mxu0 %vm80_vm0, %v56_v9 }
  0x28   :  { %815 = vmatmul.msk.f32.gmra.mxu0 %vm80_vm0, %v57_v10  ;;  %v239_v10 = vld [vmem:[%s1277_s1] sm:$0xff] }
  0x30   :  { %816 = vmatmul.msk.f32.gmra.mxu0 %vm80_vm0, %v58_v11  ;;  %v240_v11 = vld [vmem:[%s1277_s1 + $0x8] sm:$0xff] }
  0x38   :  { %817 = vmatmul.msk.f32.gmra.mxu0 %vm80_vm0, %v59_v13  ;;  %v242_v13 = vld [vmem:[%s1277_s1 + $0x18] sm:$0xff] }
  0x40   :  { %818 = vmatmul.msk.f32.gmra.mxu0 %vm80_vm0, %v60_v14  ;;  %v371_v14 = vld [vmem:[%s1278_s10 + $0x18] sm:$0xff] }
  0x41   :  { %483 = vmatpush.msrb.mxu1 %v371_v14 }
  0x48   :  { %819 = vmatmul.msk.f32.gmra.mxu0 %vm80_vm0, %v61_v15  ;;  %v370_v15 = vld [vmem:[%s1278_s10 + $0x10] sm:$0xff] }
  0x49   :  { %484 = vmatpush.msrb.mxu1 %v370_v15 }
  0x4b   :  { %485 = vmatpush.msrb.mxu1 %v369_v17 }
  0x4d   :  { %486 = vmatpush.msrb.mxu1 %v368_v18 }
  0x50   :  { %820 = vmatmul.msk.f32.gmra.mxu0 %vm80_vm0, %v62_v16  ;;  %v243_v16 = vld [vmem:[%s1277_s1 + $0x20] sm:$0xff] }
  0x95   :  { %v122_v21 = vpop.f32.mrf.mxu0 }
  0x96   :  { %v123_v22 = vadd.f32 %v876_v20, %v122_v21  ;;  %v246_v21 = vld [vmem:[%s1277_s1 + $0x38] sm:$0xff] }
  0x98   :  { %v154_v23 = vmul.f32 0.2, %v123_v22  ;;  %vm146_vm1 = vcmp.ge.f32.partialorder %v123_v22, 0.0 }
  0x9a   :  { %v162_v24 = vsel %vm146_vm1, %v123_v22, %v154_v23  ;;  %v878_v22 = vld [vmem:[%s1276_s9] ss:$0 sm:$0xff] }
  0x9b   :  { %821 = vmatmul.msk.f32.vlgmr.msra.gmra.mxu1 %vm173_vm2, %v162_v24 }
  0x9d   :  { %v125_v25 = vpop.f32.mrf.mxu0 }
  0x9e   :  { %v126_v26 = vadd.f32 %v876_v20, %v125_v25 }
  0xa0   :  { %v155_v27 = vmul.f32 0.2, %v126_v26  ;;  %vm147_vm3 = vcmp.ge.f32.partialorder %v126_v26, 0.0 }
  0xa2   :  { %v163_v28 = vsel %vm147_vm3, %v126_v26, %v155_v27 }
  0xa3   :  { %822 = vmatmul.msk.f32.gmra.mxu1 %vm173_vm2, %v163_v28 }
  0xa5   :  { %v128_v29 = vpop.f32.mrf.mxu0 }
  0xa6   :  { %v129_v30 = vadd.f32 %v876_v20, %v128_v29 }
  0xa8   :  { %v156_v31 = vmul.f32 0.2, %v129_v30  ;;  %vm148_vm4 = vcmp.ge.f32.partialorder %v129_v30, 0.0 }
  0xaa   :  { %v164_v32 = vsel %vm148_vm4, %v129_v30, %v156_v31  ;;  %v375_v31 = vld [vmem:[%s1278_s10 + $0x38] sm:$0xff]  ;;  %vm624_vm4 = vcmask 7168  }
  0xab   :  { %823 = vmatmul.msk.f32.gmra.mxu1 %vm173_vm2, %v164_v32  ;;  %v374_v32 = vld [vmem:[%s1278_s10 + $0x30] sm:$0xff]  ;;  %418 = vmatpush.msra.mxu3 %v375_v31 }
  0xad   :  { %v131_v33 = vpop.f32.mrf.mxu0  ;;  %419 = vmatpush.msra.mxu3 %v374_v32 }
  0xae   :  { %v132_v34 = vadd.f32 %v876_v20, %v131_v33  ;;  %v373_v33 = vld [vmem:[%s1278_s10 + $0x28] sm:$0xff] }
  0xaf   :  { %420 = vmatpush.msra.mxu3 %v373_v33 }
  0xb0   :  { %v157_v35 = vmul.f32 0.2, %v132_v34  ;;  %vm149_vm5 = vcmp.ge.f32.partialorder %v132_v34, 0.0 }
  0xb2   :  { %v165_v36 = vsel %vm149_vm5, %v132_v34, %v157_v35 }
  0xb3   :  { %824 = vmatmul.msk.f32.gmra.mxu1 %vm173_vm2, %v165_v36  ;;  %v372_v36 = vld [vmem:[%s1278_s10 + $0x20] sm:$0xff] }
  0xb4   :  { %421 = vmatpush.msra.mxu3 %v372_v36 }
  0xb5   :  { %v134_v39 = vpop.f32.mrf.mxu0 }
  0xb6   :  { %v135_v40 = vadd.f32 %v876_v20, %v134_v39 }
  0xb8   :  { %v158_v41 = vmul.f32 0.2, %v135_v40  ;;  %vm150_vm6 = vcmp.ge.f32.partialorder %v135_v40, 0.0 }
  0xba   :  { %v166_v42 = vsel %vm150_vm6, %v135_v40, %v158_v41 }
  0xbb   :  { %825 = vmatmul.msk.f32.gmra.mxu1 %vm173_vm2, %v166_v42 }
  0xbd   :  { %v137_v43 = vpop.f32.mrf.mxu0 }
  0xbe   :  { %v138_v44 = vadd.f32 %v876_v20, %v137_v43 }
  0xc0   :  { %v159_v45 = vmul.f32 0.2, %v138_v44  ;;  %vm151_vm7 = vcmp.ge.f32.partialorder %v138_v44, 0.0 }
  0xc2   :  { %v167_v46 = vsel %vm151_vm7, %v138_v44, %v159_v45 }
  0xc3   :  { %826 = vmatmul.msk.f32.gmra.mxu1 %vm173_vm2, %v167_v46 }
  0xc5   :  { %v140_v47 = vpop.f32.mrf.mxu0 }
  0xc6   :  { %v141_v48 = vadd.f32 %v876_v20, %v140_v47 }
  0xc8   :  { %v160_v49 = vmul.f32 0.2, %v141_v48  ;;  %vm152_vm8 = vcmp.ge.f32.partialorder %v141_v48, 0.0 }
  0xca   :  { %v168_v50 = vsel %vm152_vm8, %v141_v48, %v160_v49 }
  0xcb   :  { %827 = vmatmul.msk.f32.gmra.mxu1 %vm173_vm2, %v168_v50 }
  0xcd   :  { %v143_v51 = vpop.f32.mrf.mxu0 }
  0xce   :  { %v144_v52 = vadd.f32 %v876_v20, %v143_v51  ;;  %v245_v20 = vld [vmem:[%s1277_s1 + $0x30] sm:$0xff] }
  0xd0   :  { %v161_v53 = vmul.f32 0.2, %v144_v52  ;;  %vm153_vm9 = vcmp.ge.f32.partialorder %v144_v52, 0.0 }
  0xd2   :  { %v169_v54 = vsel %vm153_vm9, %v144_v52, %v161_v53 }
  0xd3   :  { %828 = vmatmul.msk.f32.gmra.mxu1 %vm173_vm2, %v169_v54 }
 0x118   :  { %v215_v58 = vpop.f32.mrf.mxu1 }
 0x119   :  { %v1080_v59 = vadd.f32 %v877_v57, %v215_v58 }
 0x11b   :  { %829 = vmatmul.msk.f32.vlgmr.msra.gmra.mxu2 %vm173_vm2, %v1080_v59 }
 0x120   :  { %v218_v60 = vpop.f32.mrf.mxu1 }
 0x121   :  { %v1084_v61 = vadd.f32 %v877_v57, %v218_v60  ;;  %v380_v60 = vld [vmem:[%s1280_s12 + $0x18] sm:$0xff] }
 0x122   :  { %586 = vmatpush.msrb.mxu3 %v380_v60 }
 0x123   :  { %830 = vmatmul.msk.f32.gmra.mxu2 %vm173_vm2, %v1084_v61 }
 0x128   :  { %v221_v62 = vpop.f32.mrf.mxu1 }
 0x129   :  { %v1088_v63 = vadd.f32 %v877_v57, %v221_v62  ;;  %v379_v62 = vld [vmem:[%s1280_s12 + $0x10] sm:$0xff] }
 0x12a   :  { %587 = vmatpush.msrb.mxu3 %v379_v62 }
 0x12b   :  { %831 = vmatmul.msk.f32.gmra.mxu2 %vm173_vm2, %v1088_v63 }
 0x130   :  { %v224_v0 = vpop.f32.mrf.mxu1 }
 0x131   :  { %v1092_v1 = vadd.f32 %v877_v57, %v224_v0  ;;  %v378_v0 = vld [vmem:[%s1280_s12 + $0x8] sm:$0xff] }
 0x132   :  { %588 = vmatpush.msrb.mxu3 %v378_v0 }
 0x133   :  { %832 = vmatmul.msk.f32.gmra.mxu2 %vm173_vm2, %v1092_v1 }
 0x138   :  { %v227_v2 = vpop.f32.mrf.mxu1 }
 0x139   :  { %v1096_v3 = vadd.f32 %v877_v57, %v227_v2  ;;  %v377_v2 = vld [vmem:[%s1280_s12] sm:$0xff] }
 0x13a   :  { %589 = vmatpush.msrb.mxu3 %v377_v2 }
 0x13b   :  { %833 = vmatmul.msk.f32.gmra.mxu2 %vm173_vm2, %v1096_v3 }
 0x140   :  { %v230_v4 = vpop.f32.mrf.mxu1 }
 0x141   :  { %v1100_v5 = vadd.f32 %v877_v57, %v230_v4 }
 0x143   :  { %834 = vmatmul.msk.f32.gmra.mxu2 %vm173_vm2, %v1100_v5 }
 0x148   :  { %v233_v6 = vpop.f32.mrf.mxu1 }
 0x149   :  { %v1104_v7 = vadd.f32 %v877_v57, %v233_v6 }
 0x14b   :  { %835 = vmatmul.msk.f32.gmra.mxu2 %vm173_vm2, %v1104_v7 }
 0x150   :  { %v236_v8 = vpop.f32.mrf.mxu1 }
 0x151   :  { %v1108_v9 = vadd.f32 %v877_v57, %v236_v8  ;;  %v879_v8 = vld [vmem:[%s1279_s11] ss:$0 sm:$0xff] }
 0x153   :  { %836 = vmatmul.msk.f32.gmra.mxu2 %vm173_vm2, %v1108_v9 }
 0x15b   :  { %837 = vmatmul.msk.f32.gmra.mxu2 %vm173_vm2, %v239_v10 }
 0x163   :  { %838 = vmatmul.msk.f32.gmra.mxu2 %vm173_vm2, %v240_v11 }
 0x16b   :  { %839 = vmatmul.msk.f32.gmra.mxu2 %vm173_vm2, %v241_v12 }
 0x173   :  { %840 = vmatmul.msk.f32.gmra.mxu2 %vm173_vm2, %v242_v13 }
 0x17b   :  { %841 = vmatmul.msk.f32.gmra.mxu2 %vm173_vm2, %v243_v16 }
 0x183   :  { %842 = vmatmul.msk.f32.gmra.mxu2 %vm173_vm2, %v244_v19 }
 0x18b   :  { %843 = vmatmul.msk.f32.gmra.mxu2 %vm173_vm2, %v245_v20 }
 0x193   :  { %844 = vmatmul.msk.f32.gmra.mxu2 %vm173_vm2, %v246_v21 }
 0x19e   :  { %v320_v23 = vpop.f32.mrf.mxu2 }
 0x19f   :  { %v321_v24 = vadd.f32 %v878_v22, %v320_v23 }
 0x1a1   :  { %853 = vmatmul.msk.f32.vlgmr.msrb.gmra.mxu1 %vm173_vm2, %v321_v24 }
 0x1a6   :  { %v323_v25 = vpop.f32.mrf.mxu2 }
 0x1a7   :  { %v324_v26 = vadd.f32 %v878_v22, %v323_v25 }
 0x1a9   :  { %854 = vmatmul.msk.f32.gmra.mxu1 %vm173_vm2, %v324_v26 }
 0x1ae   :  { %v326_v27 = vpop.f32.mrf.mxu2 }
 0x1af   :  { %v327_v28 = vadd.f32 %v878_v22, %v326_v27 }
 0x1b1   :  { %855 = vmatmul.msk.f32.gmra.mxu1 %vm173_vm2, %v327_v28 }
 0x1b6   :  { %v329_v29 = vpop.f32.mrf.mxu2 }
 0x1b7   :  { %v330_v30 = vadd.f32 %v878_v22, %v329_v29 }
 0x1b9   :  { %856 = vmatmul.msk.f32.gmra.mxu1 %vm173_vm2, %v330_v30 }
 0x1be   :  { %v332_v34 = vpop.f32.mrf.mxu2 }
 0x1bf   :  { %v333_v35 = vadd.f32 %v878_v22, %v332_v34  ;;  %v21_v34 = vstv %s1281_s13 }
 0x1c0   :  { %22 = vst [vmem:[#allocation2] sm:$0x1] %v21_v34 }
 0x1c1   :  { %857 = vmatmul.msk.f32.gmra.mxu1 %vm173_vm2, %v333_v35 }
 0x1c6   :  { %v335_v37 = vpop.f32.mrf.mxu2 }
 0x1c7   :  { %v336_v38 = vadd.f32 %v878_v22, %v335_v37 }
 0x1c9   :  { %858 = vmatmul.msk.f32.gmra.mxu1 %vm173_vm2, %v336_v38 }
 0x1ce   :  { %v338_v39 = vpop.f32.mrf.mxu2 }
 0x1cf   :  { %v339_v40 = vadd.f32 %v878_v22, %v338_v39 }
 0x1d1   :  { %859 = vmatmul.msk.f32.gmra.mxu1 %vm173_vm2, %v339_v40 }
 0x1d6   :  { %v341_v41 = vpop.f32.mrf.mxu2 }
 0x1d7   :  { %v342_v42 = vadd.f32 %v878_v22, %v341_v41 }
 0x1d9   :  { %860 = vmatmul.msk.f32.gmra.mxu1 %vm173_vm2, %v342_v42 }
 0x1de   :  { %v344_v43 = vpop.f32.mrf.mxu2 }
 0x1df   :  { %v345_v44 = vadd.f32 %v878_v22, %v344_v43 }
 0x1e1   :  { %845 = vmatmul.msk.f32.vlgmr.msra.gmra.mxu3 %vm173_vm2, %v345_v44 }
 0x1e6   :  { %v347_v45 = vpop.f32.mrf.mxu2 }
 0x1e7   :  { %v348_v46 = vadd.f32 %v878_v22, %v347_v45 }
 0x1e9   :  { %846 = vmatmul.msk.f32.gmra.mxu3 %vm173_vm2, %v348_v46 }
 0x1ee   :  { %v350_v47 = vpop.f32.mrf.mxu2 }
 0x1ef   :  { %v351_v48 = vadd.f32 %v878_v22, %v350_v47 }
 0x1f1   :  { %847 = vmatmul.msk.f32.gmra.mxu3 %vm173_vm2, %v351_v48 }
 0x1f6   :  { %v353_v49 = vpop.f32.mrf.mxu2 }
 0x1f7   :  { %v354_v50 = vadd.f32 %v878_v22, %v353_v49 }
 0x1f9   :  { %848 = vmatmul.msk.f32.gmra.mxu3 %vm173_vm2, %v354_v50 }
 0x1fe   :  { %v356_v51 = vpop.f32.mrf.mxu2 }
 0x1ff   :  { %v357_v52 = vadd.f32 %v878_v22, %v356_v51 }
 0x201   :  { %849 = vmatmul.msk.f32.gmra.mxu3 %vm173_vm2, %v357_v52 }
 0x206   :  { %v359_v53 = vpop.f32.mrf.mxu2 }
 0x207   :  { %v360_v54 = vadd.f32 %v878_v22, %v359_v53 }
 0x209   :  { %850 = vmatmul.msk.f32.gmra.mxu3 %vm173_vm2, %v360_v54 }
 0x20e   :  { %v362_v55 = vpop.f32.mrf.mxu2 }
 0x20f   :  { %v363_v56 = vadd.f32 %v878_v22, %v362_v55 }
 0x211   :  { %851 = vmatmul.msk.f32.gmra.mxu3 %vm173_vm2, %v363_v56 }
 0x216   :  { %v365_v57 = vpop.f32.mrf.mxu2 }
 0x217   :  { %v366_v58 = vadd.f32 %v878_v22, %v365_v57 }
 0x219   :  { %852 = vmatmul.msk.f32.gmra.mxu3 %vm173_vm2, %v366_v58 }
 0x21e   :  { %v488_v4 = vpop.f32.mrf.mxu1 }
 0x226   :  { %v491_v6 = vpop.f32.mrf.mxu1 }
 0x22e   :  { %v494_v14 = vpop.f32.mrf.mxu1 }
 0x236   :  { %v497_v21 = vpop.f32.mrf.mxu1 }
 0x23e   :  { %v500_v29 = vpop.f32.mrf.mxu1 }
 0x246   :  { %v503_v37 = vpop.f32.mrf.mxu1 }
 0x24e   :  { %v506_v44 = vpop.f32.mrf.mxu1 }
 0x256   :  { %v509_v51 = vpop.f32.mrf.mxu1 }
 0x264   :  { %v423_v10 = vpop.f32.mrf.mxu3 }
 0x265   :  { %v489_v11 = vadd.f32 %v488_v4, %v423_v10 }
 0x267   :  { %v515_v12 = vadd.f32 %v879_v8, %v489_v11  ;;  %v900_v11 = vmov 0  }
 0x268   :  { %875 = vset.pattern.permute.xlu2 %v900_v11  ;;  %874 = vset.pattern.permute.xlu1 %v900_v11 }
 0x269   :  { %v531_v13 = vmul.f32 0.2, %v515_v12  ;;  %vm523_vm10 = vcmp.ge.f32.partialorder %v515_v12, 0.0  ;;  %873 = vset.pattern.permute.xlu0 %v900_v11  ;;  %v621_v11 = vld [vmem:[%s1282_s2 + $0x30] sm:$0xff] }
 0x26b   :  { %v539_v15 = vsel %vm523_vm10, %v515_v12, %v531_v13 }
 0x26c   :  { %v426_v16 = vpop.f32.mrf.mxu3  ;;  %861 = vmatmul.msk.f32.vlgmr.msrb.gmra.mxu3 %vm173_vm2, %v539_v15 }
 0x26d   :  { %v492_v17 = vadd.f32 %v491_v6, %v426_v16  ;;  %v880_v6 = vld [vmem:[#allocation2] ss:$0 sm:$0xff] }
 0x26f   :  { %v516_v18 = vadd.f32 %v879_v8, %v492_v17 }
 0x271   :  { %vm524_vm11 = vcmp.ge.f32.partialorder %v516_v18, 0.0  ;;  %v532_v19 = vmul.f32 0.2, %v516_v18 }
 0x273   :  { %v540_v20 = vsel %vm524_vm11, %v516_v18, %v532_v19 }
 0x274   :  { %v429_v22 = vpop.f32.mrf.mxu3  ;;  %862 = vmatmul.msk.f32.gmra.mxu3 %vm173_vm2, %v540_v20 }
 0x275   :  { %v495_v23 = vadd.f32 %v494_v14, %v429_v22 }
 0x277   :  { %v517_v24 = vadd.f32 %v879_v8, %v495_v23 }
 0x279   :  { %vm525_vm12 = vcmp.ge.f32.partialorder %v517_v24, 0.0  ;;  %v533_v25 = vmul.f32 0.2, %v517_v24 }
 0x27b   :  { %v541_v26 = vsel %vm525_vm12, %v517_v24, %v533_v25 }
 0x27c   :  { %v432_v27 = vpop.f32.mrf.mxu3  ;;  %863 = vmatmul.msk.f32.gmra.mxu3 %vm173_vm2, %v541_v26 }
 0x27d   :  { %v498_v28 = vadd.f32 %v497_v21, %v432_v27 }
 0x27f   :  { %v518_v30 = vadd.f32 %v879_v8, %v498_v28 }
 0x281   :  { %vm526_vm13 = vcmp.ge.f32.partialorder %v518_v30, 0.0  ;;  %v534_v31 = vmul.f32 0.2, %v518_v30 }
 0x283   :  { %v542_v32 = vsel %vm526_vm13, %v518_v30, %v534_v31 }
 0x284   :  { %v435_v33 = vpop.f32.mrf.mxu3  ;;  %864 = vmatmul.msk.f32.gmra.mxu3 %vm173_vm2, %v542_v32 }
 0x285   :  { %v501_v35 = vadd.f32 %v500_v29, %v435_v33 }
 0x287   :  { %v519_v36 = vadd.f32 %v879_v8, %v501_v35 }
 0x289   :  { %vm527_vm14 = vcmp.ge.f32.partialorder %v519_v36, 0.0  ;;  %v535_v38 = vmul.f32 0.2, %v519_v36 }
 0x28b   :  { %v543_v39 = vsel %vm527_vm14, %v519_v36, %v535_v38 }
 0x28c   :  { %v438_v40 = vpop.f32.mrf.mxu3  ;;  %865 = vmatmul.msk.f32.gmra.mxu3 %vm173_vm2, %v543_v39 }
 0x28d   :  { %v504_v41 = vadd.f32 %v503_v37, %v438_v40 }
 0x28f   :  { %v520_v42 = vadd.f32 %v879_v8, %v504_v41 }
 0x291   :  { %vm528_vm15 = vcmp.ge.f32.partialorder %v520_v42, 0.0  ;;  %v536_v43 = vmul.f32 0.2, %v520_v42 }
 0x293   :  { %v544_v45 = vsel %vm528_vm15, %v520_v42, %v536_v43 }
 0x294   :  { %v441_v46 = vpop.f32.mrf.mxu3  ;;  %866 = vmatmul.msk.f32.gmra.mxu3 %vm173_vm2, %v544_v45 }
 0x295   :  { %v507_v47 = vadd.f32 %v506_v44, %v441_v46 }
 0x297   :  { %v521_v48 = vadd.f32 %v879_v8, %v507_v47 }
 0x299   :  { %vm529_vm1 = vcmp.ge.f32.partialorder %v521_v48, 0.0  ;;  %v537_v49 = vmul.f32 0.2, %v521_v48 }
 0x29b   :  { %v545_v50 = vsel %vm529_vm1, %v521_v48, %v537_v49 }
 0x29c   :  { %v444_v52 = vpop.f32.mrf.mxu3  ;;  %867 = vmatmul.msk.f32.gmra.mxu3 %vm173_vm2, %v545_v50 }
 0x29d   :  { %v510_v53 = vadd.f32 %v509_v51, %v444_v52  ;;  %v622_v51 = vld [vmem:[%s1282_s2 + $0x38] sm:$0xff] }
 0x29f   :  { %v522_v54 = vadd.f32 %v879_v8, %v510_v53  ;;  %v620_v53 = vld [vmem:[%s1282_s2 + $0x28] sm:$0xff] }
 0x2a1   :  { %vm530_vm3 = vcmp.ge.f32.partialorder %v522_v54, 0.0  ;;  %v538_v55 = vmul.f32 0.2, %v522_v54 }
 0x2a3   :  { %v546_v56 = vsel %vm530_vm3, %v522_v54, %v538_v55  ;;  %v618_v55 = vld [vmem:[%s1282_s2 + $0x18] sm:$0xff] }
 0x2a4   :  { %868 = vmatmul.msk.f32.gmra.mxu3 %vm173_vm2, %v546_v56 }
 0x2ef   :  { %v591_v57 = vpop.f32.mrf.mxu3 }
 0x2f0   :  { %v592_v14 = vadd.f32 %v880_v6, %v591_v57 }
 0x2f2   :  { %v625_v24 = vsel %vm624_vm4, %v592_v14, -inf }
 0x2f7   :  { %v594_v58 = vpop.f32.mrf.mxu3 }
 0x2f8   :  { %v595_v12 = vadd.f32 %v880_v6, %v594_v58 }
 0x2fa   :  { %v626_v19 = vsel %vm624_vm4, %v595_v12, -inf }
 0x2ff   :  { %v597_v60 = vpop.f32.mrf.mxu3 }
 0x300   :  { %v598_v15 = vadd.f32 %v880_v6, %v597_v60 }
 0x302   :  { %v627_v25 = vsel %vm624_vm4, %v598_v15, -inf }
 0x307   :  { %v600_v62 = vpop.f32.mrf.mxu3 }
 0x308   :  { %v601_v16 = vadd.f32 %v880_v6, %v600_v62 }
 0x30a   :  { %v628_v26 = vsel %vm624_vm4, %v601_v16, -inf }
 0x30f   :  { %v603_v0 = vpop.f32.mrf.mxu3 }
 0x310   :  { %v604_v8 = vadd.f32 %v880_v6, %v603_v0 }
 0x312   :  { %v629_v20 = vsel %vm624_vm4, %v604_v8, -inf }
 0x313   :  { %v630_v28 = vmax.f32 %v625_v24, %v629_v20 }
 0x317   :  { %v606_v2 = vpop.f32.mrf.mxu3 }
 0x318   :  { %v607_v10 = vadd.f32 %v880_v6, %v606_v2 }
 0x31a   :  { %v631_v17 = vsel %vm624_vm4, %v607_v10, -inf }
 0x31b   :  { %v632_v23 = vmax.f32 %v626_v19, %v631_v17  ;;  %v616_v19 = vld [vmem:[%s1282_s2 + $0x8] sm:$0xff] }
 0x31d   :  { %v637_v31 = vmax.f32 %v630_v28, %v632_v23 }
 0x31f   :  { %v609_v4 = vpop.f32.mrf.mxu3 }
 0x320   :  { %v610_v13 = vadd.f32 %v880_v6, %v609_v4 }
 0x322   :  { %v633_v21 = vsel %vm624_vm4, %v610_v13, -inf }
 0x323   :  { %v634_v29 = vmax.f32 %v627_v25, %v633_v21  ;;  %v615_v21 = vld [vmem:[%s1282_s2] sm:$0xff] }
 0x327   :  { %v612_v18 = vpop.f32.mrf.mxu3 }
 0x328   :  { %v613_v22 = vadd.f32 %v880_v6, %v612_v18 }
 0x32a   :  { %v635_v27 = vsel %vm624_vm4, %v613_v22, -inf }
 0x32b   :  { %v636_v30 = vmax.f32 %v628_v26, %v635_v27 }
 0x32d   :  { %v638_v32 = vmax.f32 %v634_v29, %v636_v30 }
 0x32f   :  { %v639_v33 = vmax.f32 %v637_v31, %v638_v32 }
 0x331   :  { %v640_v34 = vrot.slane %v639_v33, 4 }
 0x333   :  { %v641_v35 = vmax.f32 %v639_v33, %v640_v34 }
 0x335   :  { %v642_v36 = vrot.slane %v641_v35, 2 }
 0x337   :  { %v643_v37 = vmax.f32 %v641_v35, %v642_v36 }
 0x339   :  { %v644_v38 = vrot.slane %v643_v37, 1 }
 0x33b   :  { %v645_v39 = vmax.f32 %v643_v37, %v644_v38 }
 0x33d   :  { %v653_v40 = vsub.f32 %v613_v22, %v645_v39  ;;  %v651_v41 = vsub.f32 %v607_v10, %v645_v39  ;;  %v649_v42 = vsub.f32 %v601_v16, %v645_v39  ;;  %v652_v46 = vsub.f32 %v610_v13, %v645_v39 }
 0x33e   :  { %v650_v47 = vsub.f32 %v604_v8, %v645_v39  ;;  %v648_v48 = vsub.f32 %v598_v15, %v645_v39  ;;  %v647_v56 = vsub.f32 %v595_v12, %v645_v39  ;;  %v646_v60 = vsub.f32 %v592_v14, %v645_v39  ;;  %v619_v12 = vld [vmem:[%s1282_s2 + $0x20] sm:$0xff]  ;;  %v617_v14 = vld [vmem:[%s1282_s2 + $0x10] sm:$0xff] }
 0x33f   :  { %v668_v43 = vmul.f32 1.442695, %v653_v40  ;;  %v664_v44 = vmul.f32 1.442695, %v651_v41  ;;  %v660_v45 = vmul.f32 1.442695, %v649_v42 }
 0x340   :  { %v666_v49 = vmul.f32 1.442695, %v652_v46  ;;  %v662_v50 = vmul.f32 1.442695, %v650_v47  ;;  %v658_v52 = vmul.f32 1.442695, %v648_v48 }
 0x341   :  { %882 = vpow2.f32 %v668_v43  ;;  %v656_v4 = vmul.f32 1.442695, %v647_v56  ;;  %v654_v6 = vmul.f32 1.442695, %v646_v60  ;;  %v776_v40 = vld [vmem:[%s1284_s14] sm:$0xff] }
 0x342   :  { %884 = vpow2.f32 %v664_v44  ;;  %v881_v43 = vld [vmem:[%s1285_s15] ss:$0 sm:$0xff] }
 0x343   :  { %886 = vpow2.f32 %v660_v45 }
 0x344   :  { %888 = vpow2.f32 %v666_v49 }
 0x345   :  { %890 = vpow2.f32 %v662_v50 }
 0x346   :  { %892 = vpow2.f32 %v658_v52 }
 0x347   :  { %v883_v54 = vpop.eup %882  ;;  %894 = vpow2.f32 %v656_v4 }
 0x348   :  { %v885_v57 = vpop.eup %884  ;;  %v677_v58 = vmul.f32 %v883_v54, %v622_v51  ;;  %896 = vpow2.f32 %v654_v6 }
 0x349   :  { %v887_v62 = vpop.eup %886  ;;  %v675_v0 = vmul.f32 %v885_v57, %v620_v53 }
 0x34a   :  { %715 = vperm.xlu0 %873, %v677_v58   ;;  %v673_v2 = vmul.f32 %v887_v62, %v618_v55  ;;  %v889_v10 = vpop.eup %888 }
 0x34b   :  { %705 = vperm.xlu1 %874, %v675_v0   ;;  %v891_v8 = vpop.eup %890  ;;  %v676_v15 = vmul.f32 %v889_v10, %v621_v11 }
 0x34c   :  { %695 = vperm.xlu2 %875, %v673_v2   ;;  %v893_v13 = vpop.eup %892  ;;  %v674_v16 = vmul.f32 %v891_v8, %v619_v12 }
 0x34d   :  { %v672_v17 = vmul.f32 %v893_v13, %v617_v14  ;;  %v895_v18 = vpop.eup %894 }
 0x34e   :  { %v897_v20 = vpop.eup %896  ;;  %v671_v22 = vmul.f32 %v895_v18, %v616_v19 }
 0x34f   :  { %v670_v23 = vmul.f32 %v897_v20, %v615_v21 }
 0x352   :  { %710 = vperm.xlu0 %873, %v676_v15  }
 0x353   :  { %700 = vperm.xlu1 %874, %v674_v16  }
 0x354   :  { %690 = vperm.xlu2 %875, %v672_v17  }
 0x35a   :  { %685 = vperm.xlu0 %873, %v671_v22  }
 0x35b   :  { %680 = vperm.xlu1 %874, %v670_v23  }
 0x3a6   :  { %v696_v27 = vpop.permute.xlu2 %695 }
 0x3a7   :  { %v721_v34 = vmul.f32 %v696_v27, %v1092_v1 }
 0x3ae   :  { %v691_v33 = vpop.permute.xlu2 %690 }
 0x3bc   :  { %v716_v24 = vpop.permute.xlu0 %715 }
 0x3bd   :  { %v725_v25 = vmul.f32 %v716_v24, %v1108_v9  ;;  %v706_v26 = vpop.permute.xlu1 %705  ;;  %v720_v9 = vmul.f32 %v691_v33, %v1088_v63  ;;  %v777_v63 = vld [vmem:[%s1284_s14 + $0x8] sm:$0xff] }
 0x3be   :  { %v723_v31 = vmul.f32 %v706_v26, %v1100_v5 }
 0x3bf   :  { %737 = vmatpush.msrb.mxu0 %v725_v25 }
 0x3c4   :  { %v711_v28 = vpop.permute.xlu0 %710 }
 0x3c5   :  { %v724_v29 = vmul.f32 %v711_v28, %v1104_v7  ;;  %v701_v30 = vpop.permute.xlu1 %700 }
 0x3c6   :  { %v722_v32 = vmul.f32 %v701_v30, %v1096_v3  ;;  %v623_v3 = vld [vmem:[%s1283_s3] sm:$0xff] }
 0x3c7   :  { %738 = vmatpush.msrb.mxu0 %v724_v29 }
 0x3c9   :  { %739 = vmatpush.msrb.mxu0 %v723_v31 }
 0x3cb   :  { %740 = vmatpush.msrb.mxu0 %v722_v32 }
 0x3cc   :  { %v686_v35 = vpop.permute.xlu0 %685 }
 0x3cd   :  { %741 = vmatpush.msrb.mxu0 %v721_v34  ;;  %v681_v36 = vpop.permute.xlu1 %680  ;;  %v719_v37 = vmul.f32 %v686_v35, %v1084_v61  ;;  %v778_v61 = vld [vmem:[%s1284_s14 + $0x10] sm:$0xff] }
 0x3ce   :  { %v718_v7 = vmul.f32 %v681_v36, %v1080_v59  ;;  %v779_v59 = vld [vmem:[%s1284_s14 + $0x18] sm:$0xff] }
 0x3cf   :  { %742 = vmatpush.msrb.mxu0 %v720_v9 }
 0x3d1   :  { %743 = vmatpush.msrb.mxu0 %v719_v37 }
 0x3d3   :  { %744 = vmatpush.msrb.mxu0 %v718_v7 }
 0x3d4   :  { %869 = vmatmul.msk.f32.vlgmr.msrb.gmra.mxu0 %vm80_vm0, %v623_v3 }
 0x3d5   :  { %757 = vmatpush.msra.mxu0 %v677_v58 }
 0x3d7   :  { %758 = vmatpush.msra.mxu0 %v676_v15 }
 0x3d9   :  { %759 = vmatpush.msra.mxu0 %v675_v0 }
 0x3db   :  { %760 = vmatpush.msra.mxu0 %v674_v16 }
 0x3dd   :  { %761 = vmatpush.msra.mxu0 %v673_v2 }
 0x3df   :  { %762 = vmatpush.msra.mxu0 %v672_v17 }
 0x3e1   :  { %763 = vmatpush.msra.mxu0 %v671_v22 }
 0x3e3   :  { %764 = vmatpush.msra.mxu0 %v670_v23 }
 0x3e4   :  { %870 = vmatmul.msk.f32.vlgmr.msra.gmra.mxu0 %vm80_vm0, %v623_v3 }
 0x3e5   :  { %799 = vmatpush.msrb.mxu0 %v779_v59 }
 0x3e7   :  { %800 = vmatpush.msrb.mxu0 %v778_v61 }
 0x3e9   :  { %801 = vmatpush.msrb.mxu0 %v777_v63 }
 0x3eb   :  { %802 = vmatpush.msrb.mxu0 %v776_v40 }
 0x451   :  { %v746_v1 = vpop.f32.mrf.mxu0 }
 0x461   :  { %v766_v5 = vpop.f32.mrf.mxu0 }
 0x462   :  { %v767_v38 = vadd.f32 1e-10, %v766_v5 }
 0x464   :  { %898 = vrcp.f32 %v767_v38 }
 0x46a   :  { %v899_v39 = vpop.eup %898 }
 0x46b   :  { %772 = vperm.xlu2 %875, %v899_v39  }
 0x4c5   :  { %v773_v41 = vpop.permute.xlu2 %772 }
 0x4c6   :  { %v775_v42 = vmul.f32 %v773_v41, %v746_v1 }
 0x4c8   :  { %871 = vmatmul.msk.f32.vlgmr.msrb.gmra.mxu0 %vm173_vm2, %v775_v42 }
 0x545   :  { %v804_v44 = vpop.f32.mrf.mxu0 }
 0x546   :  { %v805_v45 = vadd.f32 %v881_v43, %v804_v44 }
 0x548   :  { %v807_v46 = vmax.f32 %v805_v45, 0.0 }
 0x54a   :  { %808 = vst.msk [vmem:[%s1286_s16] sm:$0xff] %vm173_vm2, %v807_v46 }

// kernel: item_model_forward.3
= control target key start
LH: loop header
LB: loop body
LE: loop exit
PB: predicated region body
PF: predicated region fallthrough
CT: control target
= control target key end

     0   :  { %vm91_vm0 = vcmask 523264   ;;  %vm130_vm2 = vcmask 261120   ;;  %vm475_vm4 = vcmask 785408   ;;  %vm329_vm7 = vcmask 7168   ;;  %s3486_s27 = smov 32   ;;  %s4570_s4 = inlined_call_operand.vmem [shape: f32[64,32], index: 4, kind: input, shape index: {}]   ;;  %s4571_s6 = inlined_call_operand.vmem [shape: f32[32,32], index: 6, kind: input, shape index: {}]   ;;  %s4572_s5 = inlined_call_operand.vmem [shape: f32[1,32], index: 5, kind: input, shape index: {}]   ;;  %s4573_s0 = inlined_call_operand.vmem [shape: f32[16,64], index: 0, kind: input, shape index: {}]   ;;  %s4574_s7 = inlined_call_operand.vmem [shape: f32[1,32], index: 7, kind: input, shape index: {}]   ;;  %s4575_s8 = inlined_call_operand.vmem [shape: f32[32,32], index: 8, kind: input, shape index: {}]   ;;  %s4576_s9 = inlined_call_operand.vmem [shape: f32[1,32], index: 9, kind: input, shape index: {}]   ;;  %s4577_s16 = inlined_call_operand.vmem [shape: f32[4,32,96], index: 16, kind: input, shape index: {}]   ;;  %s4578_s10 = inlined_call_operand.vmem [shape: f32[64,32], index: 10, kind: input, shape index: {}]   ;;  %s4579_s1 = inlined_call_operand.vmem [shape: f32[16,32], index: 1, kind: input, shape index: {}]   ;;  %s4580_s18 = inlined_call_operand.vmem [shape: f32[4,1,96], index: 18, kind: input, shape index: {}]   ;;  %s4581_s11 = inlined_call_operand.vmem [shape: f32[1,32], index: 11, kind: input, shape index: {}]   ;;  %s4582_s12 = inlined_call_operand.vmem [shape: f32[32,1], index: 12, kind: input, shape index: {}]   ;;  %s4583_s17 = inlined_call_operand.vmem [shape: f32[4,32,96], index: 17, kind: input, shape index: {}]   ;;  %s4584_s13 = inlined_call_operand.<no memory space> [shape: f32[1,1], index: 13, kind: input, shape index: {}]   ;;  %s4585_s20 = inlined_call_operand.vmem [shape: f32[4,2,32], index: 20, kind: input, shape index: {}]   ;;  %s4586_s19 = inlined_call_operand.vmem [shape: f32[4,1,96], index: 19, kind: input, shape index: {}]   ;;  %s4587_s2 = inlined_call_operand.vmem [shape: f32[16,1], index: 2, kind: input, shape index: {}]   ;;  %s4588_s3 = inlined_call_operand.vmem [shape: f32[2,16], index: 3, kind: input, shape index: {}]   ;;  %s4589_s14 = inlined_call_operand.vmem [shape: f32[32,32], index: 14, kind: input, shape index: {}]   ;;  %s4590_s15 = inlined_call_operand.vmem [shape: f32[1,32], index: 15, kind: input, shape index: {}]   ;;  %s4591_s21 = inlined_call_operand.vmem [shape: f32[2,32], index: 21, kind: output, shape index: {0}]   ;;  %s4592_s22 = inlined_call_operand.vmem [shape: f32[2,32], index: 22, kind: output, shape index: {1}]  }
   0x1   :  { %4597 = sst [smem:[#allocation4_spill]] %s4570_s4  ;;  %v447_v27 = vld [vmem:[%s4577_s16 + $0x18] sm:$0xff]  ;;  %v446_v28 = vld [vmem:[%s4577_s16 + $0x10] sm:$0xff]  ;;  %v445_v30 = vld [vmem:[%s4577_s16 + $0x8] sm:$0xff]  ;;  %vm359_vm12 = vcmask 130048   ;;  %vm442_vm13 = vcmask 254976  }
   0x2   :  { %4598 = sst [smem:[#allocation5_spill]] %s4571_s6  ;;  %v444_v31 = vld [vmem:[%s4577_s16] sm:$0xff]  ;;  %v214_v36 = vld [vmem:[%s4578_s10 + $0x18] sm:$0xff]  ;;  %v213_v37 = vld [vmem:[%s4578_s10 + $0x10] sm:$0xff] }
   0x3   :  { %4599 = sst [smem:[#allocation6_spill]] %s4572_s5  ;;  %v160_v38 = vld [vmem:[%s4579_s1] sm:$0xff]  ;;  %v161_v39 = vld [vmem:[%s4579_s1 + $0x8] sm:$0xff]  ;;  %v218_v42 = vld [vmem:[%s4578_s10 + $0x38] sm:$0xff]  ;;  %s3485_s5 = smov 96  }
   0x4   :  { %4600 = sst [smem:[#allocation7_spill]] %s4573_s0  ;;  %v212_v40 = vld [vmem:[%s4578_s10 + $0x8] sm:$0xff]  ;;  %v211_v41 = vld [vmem:[%s4578_s10] sm:$0xff]  ;;  %v217_v43 = vld [vmem:[%s4578_s10 + $0x30] sm:$0xff]  ;;  %243 = vmatpush.msra.mxu3 %v218_v42 }
   0x5   :  { %4601 = sst [smem:[#allocation8_spill]] %s4574_s7  ;;  %v216_v44 = vld [vmem:[%s4578_s10 + $0x28] sm:$0xff]  ;;  %v215_v45 = vld [vmem:[%s4578_s10 + $0x20] sm:$0xff]  ;;  %v223_v60 = vld [vmem:[%s4582_s12 + $0x18] sm:$0xff] }
   0x6   :  { %4602 = sst [smem:[#allocation9_spill]] %s4575_s8  ;;  %244 = vmatpush.msra.mxu3 %v217_v43  ;;  %v3269_v55 = vld [vmem:[%s4580_s18] ss:$0 sm:$0xff]  ;;  %v222_v61 = vld [vmem:[%s4582_s12 + $0x10] sm:$0xff]  ;;  %v221_v62 = vld [vmem:[%s4582_s12 + $0x8] sm:$0xff] }
   0x7   :  { %4603 = sst [smem:[#allocation10_spill]] %s4576_s9  ;;  %v220_v63 = vld [vmem:[%s4582_s12] sm:$0xff]  ;;  %s3484_s9 = smov 64  }
   0x8   :  { %s4604_s29 = sld [smem:[#allocation4_spill]]  ;;  %245 = vmatpush.msra.mxu3 %v216_v44 }
   0x9   :  { %s4605_s24 = sld [smem:[#allocation5_spill]] }
   0xa   :  { %s4606_s8 = sld [smem:[#allocation7_spill]]  ;;  %246 = vmatpush.msra.mxu3 %v215_v45  ;;  %v326_v45 = vld [vmem:[%s4587_s2] sm:$0xff] }
   0xb   :  { %s4607_s4 = sld [smem:[#allocation9_spill]] }
   0xc   :  { %s4608_s25 = sld [smem:[#allocation6_spill]]  ;;  %315 = vmatpush.msrb.mxu3 %v223_v60 }
   0xd   :  { %s4609_s6 = sld [smem:[#allocation8_spill]] }
   0xe   :  { %v81_v0 = vld [vmem:[%s4604_s29 + $0x38] sm:$0xff]  ;;  %v80_v1 = vld [vmem:[%s4604_s29 + $0x30] sm:$0xff]  ;;  %v79_v2 = vld [vmem:[%s4604_s29 + $0x28] sm:$0xff]  ;;  %s4610_s28 = sld [smem:[#allocation10_spill]]  ;;  %316 = vmatpush.msrb.mxu3 %v222_v61 }
   0xf   :  { %106 = vmatpush.msra.mxu0 %v81_v0  ;;  %v86_v3 = vld [vmem:[%s4605_s24 + $0x18] sm:$0xff]  ;;  %v78_v4 = vld [vmem:[%s4604_s29 + $0x20] sm:$0xff]  ;;  %v76_v6 = vld [vmem:[%s4604_s29 + $0x10] sm:$0xff] }
  0x10   :  { %149 = vmatpush.msra.mxu1 %v86_v3  ;;  %v77_v5 = vld [vmem:[%s4604_s29 + $0x18] sm:$0xff]  ;;  %v75_v7 = vld [vmem:[%s4604_s29 + $0x8] sm:$0xff]  ;;  %v74_v8 = vld [vmem:[%s4604_s29] sm:$0xff]  ;;  %317 = vmatpush.msrb.mxu3 %v221_v62 }
  0x11   :  { %107 = vmatpush.msra.mxu0 %v80_v1  ;;  %v72_v9 = vld [vmem:[%s4606_s8] sm:$0xff]  ;;  %v73_v10 = vld [vmem:[%s4606_s8 + $0x8] sm:$0xff]  ;;  %v85_v11 = vld [vmem:[%s4605_s24 + $0x10] sm:$0xff] }
  0x12   :  { %150 = vmatpush.msra.mxu1 %v85_v11  ;;  %v84_v12 = vld [vmem:[%s4605_s24 + $0x8] sm:$0xff]  ;;  %v83_v13 = vld [vmem:[%s4605_s24] sm:$0xff]  ;;  %v165_v14 = vld [vmem:[%s4607_s4 + $0x18] sm:$0xff]  ;;  %318 = vmatpush.msrb.mxu3 %v220_v63 }
  0x13   :  { %108 = vmatpush.msra.mxu0 %v79_v2  ;;  %v164_v15 = vld [vmem:[%s4607_s4 + $0x10] sm:$0xff]  ;;  %194 = vmatpush.msra.mxu2 %v165_v14  ;;  %v3266_v16 = vld [vmem:[%s4608_s25] ss:$0 sm:$0xff]  ;;  %v163_v25 = vld [vmem:[%s4607_s4 + $0x8] sm:$0xff] }
  0x14   :  { %151 = vmatpush.msra.mxu1 %v84_v12  ;;  %v162_v26 = vld [vmem:[%s4607_s4] sm:$0xff]  ;;  %v3743_v0 = vld [vmem:[%s4583_s17 + $0x18] sm:$0xff]  ;;  %v3748_v1 = vld [vmem:[%s4583_s17 + $0x10] sm:$0xff] }
  0x15   :  { %109 = vmatpush.msra.mxu0 %v78_v4  ;;  %195 = vmatpush.msra.mxu2 %v164_v15  ;;  %v3267_v29 = vld [vmem:[%s4609_s6] ss:$0 sm:$0xff]  ;;  %v3757_v2 = vld [vmem:[%s4583_s17 + $0x8] sm:$0xff]  ;;  %v28_v4 = vstv %s4584_s13 }
  0x16   :  { %152 = vmatpush.msra.mxu1 %v83_v13  ;;  %v3268_v46 = vld [vmem:[%s4610_s28] ss:$0 sm:$0xff]  ;;  %29 = vst [vmem:[#allocation3] sm:$0x1] %v28_v4 }
  0x17   :  { %110 = vmatpush.msra.mxu0 %v77_v5  ;;  %196 = vmatpush.msra.mxu2 %v163_v25  ;;  %v3762_v3 = vld [vmem:[%s4583_s17] sm:$0xff] }
  0x18   :  { %272 = vmatpush.msrb.mxu1 %v214_v36 }
  0x19   :  { %111 = vmatpush.msra.mxu0 %v76_v6  ;;  %197 = vmatpush.msra.mxu2 %v162_v26  ;;  %v3273_v6 = vld [vmem:[%s4581_s11] ss:$0 sm:$0xff] }
  0x1a   :  { %273 = vmatpush.msrb.mxu1 %v213_v37 }
  0x1b   :  { %112 = vmatpush.msra.mxu0 %v75_v7  ;;  %464 = vmatpush.msrb.mxu2 %v447_v27 }
  0x1c   :  { %274 = vmatpush.msrb.mxu1 %v212_v40 }
  0x1d   :  { %113 = vmatpush.msra.mxu0 %v74_v8  ;;  %465 = vmatpush.msrb.mxu2 %v446_v28  ;;  %v3790_v28 = vld [vmem:[%s4586_s19] ss:$0 sm:$0xff] }
  0x1e   :  { %3121 = vmatmul.msk.f32.vlgmr.msra.gmra.mxu0 %vm91_vm0, %v72_v9  ;;  %275 = vmatpush.msrb.mxu1 %v211_v41  ;;  %v327_v41 = vld [vmem:[%s4587_s2 + $0x8] sm:$0xff] }
  0x1f   :  { %466 = vmatpush.msrb.mxu2 %v445_v30 }
  0x21   :  { %467 = vmatpush.msrb.mxu2 %v444_v31 }
  0x26   :  { %3122 = vmatmul.msk.f32.gmra.mxu0 %vm91_vm0, %v73_v10 }
  0x9b   :  { %v115_v17 = vpop.f32.mrf.mxu0 }
  0x9c   :  { %v116_v18 = vadd.f32 %v3266_v16, %v115_v17 }
  0x9e   :  { %v123_v19 = vmul.f32 0.2, %v116_v18  ;;  %vm121_vm1 = vcmp.ge.f32.partialorder %v116_v18, 0.0 }
  0xa0   :  { %v125_v20 = vsel %vm121_vm1, %v116_v18, %v123_v19  ;;  %v3783_v18 = vld [vmem:[%s4585_s20] sm:$0x3] }
  0xa1   :  { %3123 = vmatmul.msk.f32.vlgmr.msra.gmra.mxu1 %vm130_vm2, %v125_v20  ;;  %v3483_v20 = vmov 0  }
  0xa2   :  { %3265 = vset.pattern.permute.xlu0 %v3483_v20 }
  0xa3   :  { %v118_v21 = vpop.f32.mrf.mxu0 }
  0xa4   :  { %v119_v22 = vadd.f32 %v3266_v16, %v118_v21  ;;  %v3274_v21 = vld [vmem:[#allocation3] ss:$0 sm:$0xff] }
  0xa6   :  { %v124_v23 = vmul.f32 0.2, %v119_v22  ;;  %vm122_vm3 = vcmp.ge.f32.partialorder %v119_v22, 0.0 }
  0xa8   :  { %v126_v24 = vsel %vm122_vm3, %v119_v22, %v124_v23 }
  0xa9   :  { %3124 = vmatmul.msk.f32.gmra.mxu1 %vm130_vm2, %v126_v24 }
 0x11e   :  { %v154_v32 = vpop.f32.mrf.mxu1 }
 0x11f   :  { %v155_v33 = vadd.f32 %v3267_v29, %v154_v32 }
 0x121   :  { %3125 = vmatmul.msk.f32.vlgmr.msra.gmra.mxu2 %vm130_vm2, %v155_v33 }
 0x122   :  { %775 = vmatpush.msra.mxu2 %v3743_v0 }
 0x124   :  { %776 = vmatpush.msra.mxu2 %v3748_v1 }
 0x126   :  { %v157_v34 = vpop.f32.mrf.mxu1  ;;  %777 = vmatpush.msra.mxu2 %v3757_v2 }
 0x127   :  { %v158_v35 = vadd.f32 %v3267_v29, %v157_v34 }
 0x128   :  { %778 = vmatpush.msra.mxu2 %v3762_v3 }
 0x129   :  { %3126 = vmatmul.msk.f32.gmra.mxu2 %vm130_vm2, %v158_v35 }
 0x131   :  { %3127 = vmatmul.msk.f32.gmra.mxu2 %vm130_vm2, %v160_v38 }
 0x139   :  { %3128 = vmatmul.msk.f32.gmra.mxu2 %vm130_vm2, %v161_v39 }
 0x141   :  { %3138 = vmatmul.msk.f32.vlgmr.msrb.gmra.mxu2 %vm130_vm2, %v155_v33 }
 0x142   :  { %943 = vmatpush.msrb.mxu2 %v3743_v0 }
 0x144   :  { %944 = vmatpush.msrb.mxu2 %v3748_v1 }
 0x146   :  { %945 = vmatpush.msrb.mxu2 %v3757_v2 }
 0x148   :  { %946 = vmatpush.msrb.mxu2 %v3762_v3 }
 0x149   :  { %3139 = vmatmul.msk.f32.gmra.mxu2 %vm130_vm2, %v158_v35 }
 0x1a4   :  { %v199_v47 = vpop.f32.mrf.mxu2 }
 0x1a5   :  { %v3715_v48 = vadd.f32 %v3268_v46, %v199_v47 }
 0x1a7   :  { %3131 = vmatmul.msk.f32.vlgmr.msrb.gmra.mxu1 %vm130_vm2, %v3715_v48 }
 0x1ac   :  { %v202_v49 = vpop.f32.mrf.mxu2 }
 0x1ad   :  { %v3719_v50 = vadd.f32 %v3268_v46, %v202_v49 }
 0x1af   :  { %3132 = vmatmul.msk.f32.gmra.mxu1 %vm130_vm2, %v3719_v50 }
 0x1b4   :  { %v205_v51 = vpop.f32.mrf.mxu2 }
 0x1b5   :  { %v206_v52 = vadd.f32 %v3268_v46, %v205_v51 }
 0x1b7   :  { %3129 = vmatmul.msk.f32.vlgmr.msra.gmra.mxu3 %vm130_vm2, %v206_v52 }
 0x1b8   :  { %517 = vmatpush.msra.mxu3 %v3743_v0 }
 0x1ba   :  { %518 = vmatpush.msra.mxu3 %v3748_v1 }
 0x1bc   :  { %v208_v53 = vpop.f32.mrf.mxu2  ;;  %519 = vmatpush.msra.mxu3 %v3757_v2 }
 0x1bd   :  { %v209_v54 = vadd.f32 %v3268_v46, %v208_v53 }
 0x1be   :  { %520 = vmatpush.msra.mxu3 %v3762_v3 }
 0x1bf   :  { %3130 = vmatmul.msk.f32.gmra.mxu3 %vm130_vm2, %v209_v54 }
 0x1c4   :  { %v469_v56 = vpop.f32.mrf.mxu2 }
 0x1c5   :  { %v470_v57 = vadd.f32 %v3269_v55, %v469_v56 }
 0x1c7   :  { %476 = vst.msk [vmem:[#allocation2] sm:$0xff] %vm475_vm4, %v470_v57 }
 0x1cc   :  { %v472_v58 = vpop.f32.mrf.mxu2 }
 0x1cd   :  { %v473_v59 = vadd.f32 %v3269_v55, %v472_v58 }
 0x1ce   :  { %v478_v47 = vld [vmem:[#allocation2] sm:$0x3] }
 0x1cf   :  { %477 = vst.msk [vmem:[#allocation2 + $0x8] sm:$0xff] %vm475_vm4, %v473_v59 }
 0x224   :  { %v277_v5 = vpop.f32.mrf.mxu1 }
 0x22c   :  { %v280_v12 = vpop.f32.mrf.mxu1 }
 0x23a   :  { %v248_v7 = vpop.f32.mrf.mxu3 }
 0x23b   :  { %v278_v8 = vadd.f32 %v277_v5, %v248_v7 }
 0x23d   :  { %v286_v9 = vadd.f32 %v3273_v6, %v278_v8 }
 0x23f   :  { %v290_v10 = vmul.f32 0.2, %v286_v9  ;;  %vm288_vm5 = vcmp.ge.f32.partialorder %v286_v9, 0.0 }
 0x241   :  { %v292_v11 = vsel %vm288_vm5, %v286_v9, %v290_v10  ;;  %v328_v10 = vld [vmem:[%s4588_s3] sm:$0x3] }
 0x242   :  { %v251_v13 = vpop.f32.mrf.mxu3  ;;  %3133 = vmatmul.msk.f32.vlgmr.msrb.gmra.mxu3 %vm130_vm2, %v292_v11 }
 0x243   :  { %v281_v14 = vadd.f32 %v280_v12, %v251_v13 }
 0x245   :  { %v287_v15 = vadd.f32 %v3273_v6, %v281_v14 }
 0x247   :  { %vm289_vm6 = vcmp.ge.f32.partialorder %v287_v15, 0.0  ;;  %v291_v16 = vmul.f32 0.2, %v287_v15 }
 0x249   :  { %v293_v17 = vsel %vm289_vm6, %v287_v15, %v291_v16  ;;  %v413_v16 = vld [vmem:[%s4589_s14 + $0x18] sm:$0xff] }
 0x24a   :  { %3134 = vmatmul.msk.f32.gmra.mxu3 %vm130_vm2, %v293_v17  ;;  %v412_v17 = vld [vmem:[%s4589_s14 + $0x10] sm:$0xff]  ;;  %433 = vmatpush.msra.mxu1 %v413_v16 }
 0x24c   :  { %434 = vmatpush.msra.mxu1 %v412_v17 }
 0x252   :  { %3145 = vmatmul.msk.f32.vlgmr.msra.gmra.mxu3 %vm130_vm2, %v3783_v18 }
 0x2c5   :  { %v320_v19 = vpop.f32.mrf.mxu3 }
 0x2c6   :  { %v321_v22 = vadd.f32 %v3274_v21, %v320_v19  ;;  %v411_v19 = vld [vmem:[%s4589_s14 + $0x8] sm:$0xff] }
 0x2c7   :  { %435 = vmatpush.msra.mxu1 %v411_v19 }
 0x2c8   :  { %v330_v25 = vsel %vm329_vm7, %v321_v22, -inf }
 0x2cd   :  { %v323_v23 = vpop.f32.mrf.mxu3 }
 0x2ce   :  { %v324_v24 = vadd.f32 %v3274_v21, %v323_v23 }
 0x2d0   :  { %v331_v26 = vsel %vm329_vm7, %v324_v24, -inf }
 0x2d1   :  { %v332_v27 = vmax.f32 %v330_v25, %v331_v26  ;;  %v410_v25 = vld [vmem:[%s4589_s14] sm:$0xff]  ;;  %v3829_v26 = vld [vmem:[%s4577_s16 + $0x38] sm:$0xff] }
 0x2d2   :  { %436 = vmatpush.msra.mxu1 %v410_v25  ;;  %671 = vmatpush.msrb.mxu3 %v3829_v26 }
 0x2d3   :  { %v333_v29 = vrot.slane %v332_v27, 4 }
 0x2d4   :  { %607 = vmatpush.msrb.mxu1 %v3743_v0 }
 0x2d5   :  { %v334_v30 = vmax.f32 %v332_v27, %v333_v29  ;;  %v522_v31 = vpop.f32.mrf.mxu3  ;;  %v3834_v27 = vld [vmem:[%s4577_s16 + $0x30] sm:$0xff]  ;;  %v3842_v29 = vld [vmem:[%s4577_s16 + $0x28] sm:$0xff] }
 0x2d6   :  { %v523_v32 = vadd.f32 %v3790_v28, %v522_v31  ;;  %608 = vmatpush.msrb.mxu1 %v3748_v1  ;;  %672 = vmatpush.msrb.mxu3 %v3834_v27 }
 0x2d7   :  { %v335_v33 = vrot.slane %v334_v30, 2 }
 0x2d8   :  { %546 = vrot.lane.b32.xlu1 %v523_v32, %s3484_s9  ;;  %v525_v49 = vadd.f32 %v523_v32, %v478_v47  ;;  %609 = vmatpush.msrb.mxu1 %v3757_v2  ;;  %v3857_v32 = vld [vmem:[%s4577_s16 + $0x20] sm:$0xff] }
 0x2d9   :  { %v336_v34 = vmax.f32 %v334_v30, %v335_v33  ;;  %673 = vmatpush.msrb.mxu3 %v3842_v29 }
 0x2da   :  { %v3146_v51 = vmul.f32 -1.442695, %v525_v49  ;;  %610 = vmatpush.msrb.mxu1 %v3762_v3 }
 0x2db   :  { %v337_v35 = vrot.slane %v336_v34, 1  ;;  %674 = vmatpush.msrb.mxu3 %v3857_v32 }
 0x2dd   :  { %v338_v36 = vmax.f32 %v336_v34, %v337_v35  ;;  %839 = vmatpush.msra.mxu3 %v3829_v26  ;;  %v3276_v34 = vld [vmem:[%s4590_s15] ss:$0 sm:$0xff] }
 0x2df   :  { %v340_v37 = vsub.f32 %v324_v24, %v338_v36  ;;  %v339_v39 = vsub.f32 %v321_v22, %v338_v36  ;;  %840 = vmatpush.msra.mxu3 %v3834_v27 }
 0x2e1   :  { %v343_v38 = vmul.f32 1.442695, %v340_v37  ;;  %v341_v40 = vmul.f32 1.442695, %v339_v39  ;;  %841 = vmatpush.msra.mxu3 %v3842_v29 }
 0x2e3   :  { %3280 = vpow2.f32 %v343_v38  ;;  %842 = vmatpush.msra.mxu3 %v3857_v32 }
 0x2e4   :  { %3282 = vpow2.f32 %v341_v40  ;;  %v479_v40 = vld [vmem:[#allocation2 + $0x2] sm:$0x3] }
 0x2e5   :  { %3284 = vpow2.f32 %v3146_v51 }
 0x2e9   :  { %v3281_v42 = vpop.eup %3280 }
 0x2ea   :  { %v346_v43 = vmul.f32 %v3281_v42, %v327_v41  ;;  %v3283_v44 = vpop.eup %3282 }
 0x2eb   :  { %v345_v46 = vmul.f32 %v3283_v44, %v326_v45  ;;  %v3285_v52 = vpop.eup %3284 }
 0x2ec   :  { %354 = vperm.xlu0 %3265, %v346_v43   ;;  %v529_v53 = vadd.f32 1.0, %v3285_v52 }
 0x2ee   :  { %3286 = vrcp.f32 %v529_v53  ;;  %v541_v59 = vand.u32 2147483648, %v529_v53  ;;  %vm535_vm9 = vweird.f32 %v529_v53  ;;  %v539_v60 = vand.u32 2147483647, %v529_v53 }
 0x2f0   :  { %v542_v62 = vor.u32 1.1754944e-38, %v541_v59  ;;  %vm540_vm11 = vcmp.eq.f32.partialorder %v539_v60, 8.507059e+37 }
 0x2f4   :  { %349 = vperm.xlu0 %3265, %v345_v46   ;;  %v3287_v54 = vpop.eup %3286 }
 0x2f5   :  { %v531_v55 = vmul.f32 %v3287_v54, %v529_v53  ;;  %vm536_vm8 = vweird.f32 %v3287_v54 }
 0x2f6   :  { %vm537_vm10 = vmor %vm535_vm9, %vm536_vm8 }
 0x2f7   :  { %v532_v56 = vsub.f32 1.0, %v531_v55 }
 0x2f9   :  { %v533_v57 = vmul.f32 %v3287_v54, %v532_v56 }
 0x2fb   :  { %v534_v58 = vadd.f32 %v3287_v54, %v533_v57 }
 0x2fd   :  { %v538_v61 = vsel %vm537_vm10, %v3287_v54, %v534_v58 }
 0x2fe   :  { %v543_v4 = vsel %vm540_vm11, %v542_v62, %v538_v61 }
 0x2ff   :  { %v556_v20 = vsub.f32 1.0, %v543_v4 }
 0x34a   :  { %v547_v63 = vpop.permute.xlu1 %546 }
 0x34b   :  { %v549_v5 = vmul.f32 %v547_v63, %v543_v4 }
 0x34d   :  { %551 = vrot.lane.b32.xlu1 %v549_v5, %s3484_s9 }
 0x35e   :  { %v355_v6 = vpop.permute.xlu0 %354 }
 0x35f   :  { %v358_v7 = vmul.f32 %v355_v6, %v3719_v50 }
 0x361   :  { %377 = vmatpush.msrb.mxu0 %v358_v7 }
 0x366   :  { %v350_v8 = vpop.permute.xlu0 %349 }
 0x367   :  { %v357_v9 = vmul.f32 %v350_v8, %v3715_v48 }
 0x369   :  { %378 = vmatpush.msrb.mxu0 %v357_v9 }
 0x36a   :  { %3135 = vmatmul.msk.f32.vlgmr.msrb.gmra.mxu0 %vm359_vm12, %v328_v10 }
 0x36b   :  { %397 = vmatpush.msra.mxu0 %v346_v43 }
 0x36d   :  { %398 = vmatpush.msra.mxu0 %v345_v46 }
 0x36f   :  { %587 = vmatpush.msrb.mxu0 %v3829_v26 }
 0x371   :  { %588 = vmatpush.msrb.mxu0 %v3834_v27 }
 0x372   :  { %3136 = vmatmul.msk.f32.vlgmr.msra.gmra.mxu0 %vm359_vm12, %v328_v10 }
 0x373   :  { %589 = vmatpush.msrb.mxu0 %v3842_v29 }
 0x375   :  { %590 = vmatpush.msrb.mxu0 %v3857_v32 }
 0x377   :  { %691 = vmatpush.msra.mxu0 %v3743_v0 }
 0x379   :  { %692 = vmatpush.msra.mxu0 %v3748_v1 }
 0x37b   :  { %693 = vmatpush.msra.mxu0 %v3757_v2 }
 0x37d   :  { %694 = vmatpush.msra.mxu0 %v3762_v3 }
 0x3bf   :  { %v552_v11 = vpop.permute.xlu1 %551 }
 0x3c0   :  { %v554_v12 = vadd.f32 %v552_v11, %v478_v47  ;;  %v480_v11 = vld [vmem:[#allocation2 + $0x4] sm:$0x3] }
 0x3c2   :  { %3288 = vtanh.f32 %v554_v12 }
 0x3c8   :  { %v3289_v13 = vpop.eup %3288 }
 0x3c9   :  { %558 = vrot.lane.b32.xlu2 %v3289_v13, %s3485_s5 }
 0x3d1   :  { %562 = vrot.lane.b32.xlu2 %v3783_v18, %s3486_s27 }
 0x3e7   :  { %v380_v48 = vpop.f32.mrf.mxu0 }
 0x3ef   :  { %v400_v50 = vpop.f32.mrf.mxu0 }
 0x3f0   :  { %v401_v14 = vadd.f32 1e-10, %v400_v50 }
 0x3f2   :  { %3290 = vrcp.f32 %v401_v14 }
 0x3f8   :  { %v3291_v15 = vpop.eup %3290 }
 0x3f9   :  { %406 = vperm.xlu0 %3265, %v3291_v15  }
 0x423   :  { %v559_v18 = vpop.permute.xlu2 %558 }
 0x424   :  { %v561_v22 = vmul.f32 %v559_v18, %v556_v20 }
 0x42b   :  { %v563_v21 = vpop.permute.xlu2 %562 }
 0x42c   :  { %v565_v23 = vmul.f32 %v563_v21, %v543_v4 }
 0x42e   :  { %v3818_v24 = vadd.f32 %v565_v23, %v561_v22 }
 0x430   :  { %571 = vrot.lane.b32.xlu1 %v3818_v24, %s3485_s5 }
 0x46b   :  { %v407_v30 = vpop.permute.xlu0 %406 }
 0x46c   :  { %v409_v31 = vmul.f32 %v407_v30, %v380_v48 }
 0x46e   :  { %3137 = vmatmul.msk.f32.vlgmr.msra.gmra.mxu1 %vm130_vm2, %v409_v31 }
 0x46f   :  { %755 = vmatpush.msra.mxu1 %v3829_v26 }
 0x471   :  { %756 = vmatpush.msra.mxu1 %v3834_v27 }
 0x473   :  { %757 = vmatpush.msra.mxu1 %v3842_v29 }
 0x475   :  { %758 = vmatpush.msra.mxu1 %v3857_v32 }
 0x4a2   :  { %v572_v33 = vpop.permute.xlu1 %571 }
 0x4a3   :  { %3147 = vmatmul.msk.f32.vlgmr.msrb.gmra.mxu0 %vm130_vm2, %v572_v33  ;;  %3148 = vmatmul.msk.f32.vlgmr.msrb.gmra.mxu1 %vm130_vm2, %v572_v33 }
 0x4a4   :  { %859 = vmatpush.msrb.mxu0 %v3743_v0  ;;  %923 = vmatpush.msrb.mxu1 %v3829_v26 }
 0x4a6   :  { %860 = vmatpush.msrb.mxu0 %v3748_v1  ;;  %924 = vmatpush.msrb.mxu1 %v3834_v27 }
 0x4a8   :  { %861 = vmatpush.msrb.mxu0 %v3757_v2  ;;  %925 = vmatpush.msrb.mxu1 %v3842_v29 }
 0x4aa   :  { %862 = vmatpush.msrb.mxu0 %v3762_v3  ;;  %926 = vmatpush.msrb.mxu1 %v3857_v32 }
 0x4eb   :  { %v438_v35 = vpop.f32.mrf.mxu1 }
 0x4ec   :  { %v439_v36 = vadd.f32 %v3276_v34, %v438_v35 }
 0x4ee   :  { %v441_v37 = vmax.f32 %v439_v36, 0.0 }
 0x4f0   :  { %443 = vst.msk [vmem:[%s4591_s21] sm:$0x3] %vm442_vm13, %v441_v37 }
 0x520   :  { %v612_v38 = vpop.f32.mrf.mxu1  ;;  %v3903_v8 = vpop.f32.mrf.mxu0 }
 0x521   :  { %v613_v39 = vadd.f32 %v3790_v28, %v612_v38 }
 0x523   :  { %636 = vrot.lane.b32.xlu2 %v613_v39, %s3484_s9  ;;  %v615_v41 = vadd.f32 %v613_v39, %v479_v40 }
 0x525   :  { %v3149_v42 = vmul.f32 -1.442695, %v615_v41 }
 0x527   :  { %3292 = vpow2.f32 %v3149_v42  ;;  %v481_v42 = vld [vmem:[#allocation2 + $0x6] sm:$0x3] }
 0x52d   :  { %v3293_v43 = vpop.eup %3292 }
 0x52e   :  { %v619_v44 = vadd.f32 1.0, %v3293_v43 }
 0x530   :  { %3294 = vrcp.f32 %v619_v44  ;;  %v631_v52 = vand.u32 2147483648, %v619_v44  ;;  %vm625_vm15 = vweird.f32 %v619_v44  ;;  %v629_v53 = vand.u32 2147483647, %v619_v44 }
 0x532   :  { %v632_v55 = vor.u32 1.1754944e-38, %v631_v52  ;;  %vm630_vm1 = vcmp.eq.f32.partialorder %v629_v53, 8.507059e+37 }
 0x536   :  { %v3295_v45 = vpop.eup %3294 }
 0x537   :  { %v621_v46 = vmul.f32 %v3295_v45, %v619_v44  ;;  %vm626_vm14 = vweird.f32 %v3295_v45 }
 0x538   :  { %vm627_vm0 = vmor %vm625_vm15, %vm626_vm14 }
 0x539   :  { %v622_v47 = vsub.f32 1.0, %v621_v46 }
 0x53b   :  { %v623_v49 = vmul.f32 %v3295_v45, %v622_v47 }
 0x53d   :  { %v624_v51 = vadd.f32 %v3295_v45, %v623_v49 }
 0x53f   :  { %v628_v54 = vsel %vm627_vm0, %v3295_v45, %v624_v51 }
 0x540   :  { %v633_v57 = vsel %vm630_vm1, %v632_v55, %v628_v54 }
 0x541   :  { %v646_v62 = vsub.f32 1.0, %v633_v57  ;;  %v652_v4 = vmul.f32 %v633_v57, %v3818_v24 }
 0x57d   :  { %v637_v56 = vpop.permute.xlu2 %636 }
 0x57e   :  { %v639_v58 = vmul.f32 %v637_v56, %v633_v57 }
 0x580   :  { %641 = vrot.lane.b32.xlu0 %v639_v58, %s3484_s9 }
 0x5f2   :  { %v642_v59 = vpop.permute.xlu0 %641 }
 0x5f3   :  { %v644_v60 = vadd.f32 %v642_v59, %v479_v40 }
 0x5f5   :  { %3296 = vtanh.f32 %v644_v60 }
 0x5fb   :  { %v3297_v61 = vpop.eup %3296 }
 0x5fc   :  { %648 = vrot.lane.b32.xlu1 %v3297_v61, %s3485_s5 }
 0x66e   :  { %v649_v63 = vpop.permute.xlu1 %648 }
 0x66f   :  { %v651_v5 = vmul.f32 %v649_v63, %v646_v62 }
 0x671   :  { %v653_v6 = vadd.f32 %v652_v4, %v651_v5 }
 0x673   :  { %655 = vrot.lane.b32.xlu2 %v653_v6, %s3485_s5 }
 0x6cd   :  { %v656_v7 = vpop.permute.xlu2 %655 }
 0x6ce   :  { %3150 = vmatmul.msk.f32.vlgmr.msrb.gmra.mxu3 %vm130_vm2, %v656_v7  ;;  %3151 = vmatmul.msk.f32.vlgmr.msra.gmra.mxu0 %vm130_vm2, %v656_v7 }
 0x6cf   :  { %1027 = vmatpush.msra.mxu0 %v3743_v0  ;;  %1007 = vmatpush.msrb.mxu3 %v3829_v26 }
 0x6d1   :  { %1028 = vmatpush.msra.mxu0 %v3748_v1  ;;  %1008 = vmatpush.msrb.mxu3 %v3834_v27 }
 0x6d3   :  { %1029 = vmatpush.msra.mxu0 %v3757_v2  ;;  %1009 = vmatpush.msrb.mxu3 %v3842_v29 }
 0x6d5   :  { %1030 = vmatpush.msra.mxu0 %v3762_v3  ;;  %1010 = vmatpush.msrb.mxu3 %v3857_v32 }
 0x74b   :  { %v696_v9 = vpop.f32.mrf.mxu0 }
 0x74c   :  { %v697_v10 = vadd.f32 %v3790_v28, %v696_v9  ;;  %v482_v9 = vld [vmem:[#allocation2 + $0x8] sm:$0x3] }
 0x74e   :  { %720 = vrot.lane.b32.xlu0 %v697_v10, %s3484_s9  ;;  %v699_v12 = vadd.f32 %v697_v10, %v480_v11 }
 0x750   :  { %v3152_v13 = vmul.f32 -1.442695, %v699_v12 }
 0x752   :  { %3298 = vpow2.f32 %v3152_v13 }
 0x758   :  { %v3299_v48 = vpop.eup %3298 }
 0x759   :  { %v703_v50 = vadd.f32 1.0, %v3299_v48 }
 0x75b   :  { %3300 = vrcp.f32 %v703_v50  ;;  %v715_v18 = vand.u32 2147483648, %v703_v50  ;;  %vm709_vm4 = vweird.f32 %v703_v50  ;;  %v713_v20 = vand.u32 2147483647, %v703_v50 }
 0x75d   :  { %v716_v22 = vor.u32 1.1754944e-38, %v715_v18  ;;  %vm714_vm6 = vcmp.eq.f32.partialorder %v713_v20, 8.507059e+37 }
 0x761   :  { %v3301_v14 = vpop.eup %3300 }
 0x762   :  { %v705_v15 = vmul.f32 %v3301_v14, %v703_v50  ;;  %vm710_vm3 = vweird.f32 %v3301_v14 }
 0x763   :  { %vm711_vm5 = vmor %vm709_vm4, %vm710_vm3 }
 0x764   :  { %v706_v16 = vsub.f32 1.0, %v705_v15 }
 0x766   :  { %v707_v17 = vmul.f32 %v3301_v14, %v706_v16 }
 0x768   :  { %v708_v19 = vadd.f32 %v3301_v14, %v707_v17 }
 0x76a   :  { %v712_v21 = vsel %vm711_vm5, %v3301_v14, %v708_v19 }
 0x76b   :  { %v717_v24 = vsel %vm714_vm6, %v716_v22, %v712_v21 }
 0x76c   :  { %v730_v34 = vsub.f32 1.0, %v717_v24  ;;  %v736_v36 = vmul.f32 %v717_v24, %v653_v6 }
 0x7c0   :  { %v721_v23 = vpop.permute.xlu0 %720 }
 0x7c1   :  { %v723_v25 = vmul.f32 %v721_v23, %v717_v24 }
 0x7c3   :  { %725 = vrot.lane.b32.xlu1 %v723_v25, %s3484_s9 }
 0x835   :  { %v726_v30 = vpop.permute.xlu1 %725 }
 0x836   :  { %v728_v31 = vadd.f32 %v726_v30, %v480_v11 }
 0x838   :  { %3302 = vtanh.f32 %v728_v31 }
 0x83e   :  { %v3303_v33 = vpop.eup %3302 }
 0x83f   :  { %732 = vrot.lane.b32.xlu2 %v3303_v33, %s3485_s5 }
 0x899   :  { %v733_v35 = vpop.permute.xlu2 %732 }
 0x89a   :  { %v735_v37 = vmul.f32 %v733_v35, %v730_v34 }
 0x89c   :  { %v737_v38 = vadd.f32 %v736_v36, %v735_v37  ;;  %v483_v36 = vld [vmem:[#allocation2 + $0xa] sm:$0x3] }
 0x89e   :  { %739 = vrot.lane.b32.xlu0 %v737_v38, %s3485_s5 }
 0x910   :  { %v740_v39 = vpop.permute.xlu0 %739 }
 0x911   :  { %3153 = vmatmul.msk.f32.vlgmr.msra.gmra.mxu1 %vm130_vm2, %v740_v39  ;;  %3154 = vmatmul.msk.f32.vlgmr.msra.gmra.mxu2 %vm130_vm2, %v740_v39 }
 0x912   :  { %1091 = vmatpush.msra.mxu1 %v3829_v26  ;;  %1111 = vmatpush.msra.mxu2 %v3743_v0 }
 0x914   :  { %1092 = vmatpush.msra.mxu1 %v3834_v27  ;;  %1112 = vmatpush.msra.mxu2 %v3748_v1 }
 0x916   :  { %1093 = vmatpush.msra.mxu1 %v3842_v29  ;;  %1113 = vmatpush.msra.mxu2 %v3757_v2 }
 0x918   :  { %1114 = vmatpush.msra.mxu2 %v3762_v3  ;;  %1094 = vmatpush.msra.mxu1 %v3857_v32 }
 0x994   :  { %v780_v40 = vpop.f32.mrf.mxu2 }
 0x995   :  { %v781_v41 = vadd.f32 %v3790_v28, %v780_v40 }
 0x997   :  { %804 = vrot.lane.b32.xlu1 %v781_v41, %s3484_s9  ;;  %v783_v43 = vadd.f32 %v781_v41, %v481_v42 }
 0x999   :  { %v3155_v0 = vmul.f32 -1.442695, %v783_v43 }
 0x99b   :  { %3304 = vpow2.f32 %v3155_v0 }
 0x9a1   :  { %v3305_v44 = vpop.eup %3304 }
 0x9a2   :  { %v787_v45 = vadd.f32 1.0, %v3305_v44 }
 0x9a4   :  { %3306 = vrcp.f32 %v787_v45  ;;  %v799_v3 = vand.u32 2147483648, %v787_v45  ;;  %vm793_vm8 = vweird.f32 %v787_v45  ;;  %v797_v51 = vand.u32 2147483647, %v787_v45 }
 0x9a6   :  { %v800_v53 = vor.u32 1.1754944e-38, %v799_v3  ;;  %vm798_vm10 = vcmp.eq.f32.partialorder %v797_v51, 8.507059e+37 }
 0x9aa   :  { %v3307_v1 = vpop.eup %3306 }
 0x9ab   :  { %v789_v46 = vmul.f32 %v3307_v1, %v787_v45  ;;  %vm794_vm7 = vweird.f32 %v3307_v1 }
 0x9ac   :  { %vm795_vm9 = vmor %vm793_vm8, %vm794_vm7 }
 0x9ad   :  { %v790_v47 = vsub.f32 1.0, %v789_v46 }
 0x9af   :  { %v791_v2 = vmul.f32 %v3307_v1, %v790_v47 }
 0x9b1   :  { %v792_v49 = vadd.f32 %v3307_v1, %v791_v2 }
 0x9b3   :  { %v796_v52 = vsel %vm795_vm9, %v3307_v1, %v792_v49 }
 0x9b4   :  { %v801_v55 = vsel %vm798_vm10, %v800_v53, %v796_v52 }
 0x9b5   :  { %v814_v60 = vsub.f32 1.0, %v801_v55  ;;  %v820_v62 = vmul.f32 %v801_v55, %v737_v38 }
 0xa09   :  { %v805_v54 = vpop.permute.xlu1 %804 }
 0xa0a   :  { %v807_v56 = vmul.f32 %v805_v54, %v801_v55 }
 0xa0c   :  { %809 = vrot.lane.b32.xlu2 %v807_v56, %s3484_s9 }
 0xa66   :  { %v810_v57 = vpop.permute.xlu2 %809 }
 0xa67   :  { %v812_v58 = vadd.f32 %v810_v57, %v481_v42 }
 0xa69   :  { %3308 = vtanh.f32 %v812_v58 }
 0xa6f   :  { %v3309_v59 = vpop.eup %3308 }
 0xa70   :  { %816 = vrot.lane.b32.xlu0 %v3309_v59, %s3485_s5  ;;  %v3949_v59 = vld [vmem:[%s4583_s17 + $0x38] sm:$0xff] }
 0xae2   :  { %v817_v61 = vpop.permute.xlu0 %816 }
 0xae3   :  { %v819_v63 = vmul.f32 %v817_v61, %v814_v60  ;;  %v3954_v60 = vld [vmem:[%s4583_s17 + $0x30] sm:$0xff]  ;;  %v3961_v61 = vld [vmem:[%s4583_s17 + $0x28] sm:$0xff] }
 0xae5   :  { %v821_v4 = vadd.f32 %v820_v62, %v819_v63  ;;  %v3968_v62 = vld [vmem:[%s4583_s17 + $0x20] sm:$0xff] }
 0xae7   :  { %823 = vrot.lane.b32.xlu1 %v821_v4, %s3485_s5 }
 0xb59   :  { %v824_v5 = vpop.permute.xlu1 %823 }
 0xb5a   :  { %3156 = vmatmul.msk.f32.vlgmr.msra.gmra.mxu3 %vm130_vm2, %v824_v5  ;;  %3157 = vmatmul.msk.f32.vlgmr.msrb.gmra.mxu0 %vm130_vm2, %v824_v5 }
 0xb5b   :  { %1175 = vmatpush.msra.mxu3 %v3829_v26  ;;  %1217 = vmatpush.msrb.mxu0 %v3949_v59 }
 0xb5d   :  { %1176 = vmatpush.msra.mxu3 %v3834_v27  ;;  %1218 = vmatpush.msrb.mxu0 %v3954_v60 }
 0xb5f   :  { %1177 = vmatpush.msra.mxu3 %v3842_v29  ;;  %1219 = vmatpush.msrb.mxu0 %v3961_v61 }
 0xb61   :  { %1178 = vmatpush.msra.mxu3 %v3857_v32  ;;  %1220 = vmatpush.msrb.mxu0 %v3968_v62 }
 0xbd7   :  { %v864_v6 = vpop.f32.mrf.mxu0 }
 0xbd8   :  { %v865_v7 = vadd.f32 %v3790_v28, %v864_v6 }
 0xbda   :  { %888 = vrot.lane.b32.xlu2 %v865_v7, %s3484_s9  ;;  %v867_v10 = vadd.f32 %v865_v7, %v482_v9  ;;  %v3993_v7 = vld [vmem:[%s4586_s19 + $0x1] ss:$0 sm:$0xff] }
 0xbdc   :  { %v3158_v11 = vmul.f32 -1.442695, %v867_v10 }
 0xbde   :  { %3310 = vpow2.f32 %v3158_v11  ;;  %v4000_v11 = vld [vmem:[%s4580_s18 + $0x1] ss:$0 sm:$0xff] }
 0xbe4   :  { %v3311_v12 = vpop.eup %3310 }
 0xbe5   :  { %v871_v13 = vadd.f32 1.0, %v3311_v12 }
 0xbe7   :  { %3312 = vrcp.f32 %v871_v13  ;;  %v883_v29 = vand.u32 2147483648, %v871_v13  ;;  %vm877_vm12 = vweird.f32 %v871_v13  ;;  %v881_v32 = vand.u32 2147483647, %v871_v13 }
 0xbe9   :  { %v884_v16 = vor.u32 1.1754944e-38, %v883_v29  ;;  %vm882_vm15 = vcmp.eq.f32.partialorder %v881_v32, 8.507059e+37 }
 0xbed   :  { %v3313_v48 = vpop.eup %3312 }
 0xbee   :  { %v873_v26 = vmul.f32 %v3313_v48, %v871_v13  ;;  %vm878_vm11 = vweird.f32 %v3313_v48 }
 0xbef   :  { %vm879_vm14 = vmor %vm877_vm12, %vm878_vm11 }
 0xbf0   :  { %v874_v50 = vsub.f32 1.0, %v873_v26  ;;  %v484_v26 = vld [vmem:[#allocation2 + $0xc] sm:$0x3] }
 0xbf2   :  { %v875_v27 = vmul.f32 %v3313_v48, %v874_v50 }
 0xbf4   :  { %v876_v14 = vadd.f32 %v3313_v48, %v875_v27 }
 0xbf6   :  { %v880_v15 = vsel %vm879_vm14, %v3313_v48, %v876_v14 }
 0xbf7   :  { %v885_v19 = vsel %vm882_vm15, %v884_v16, %v880_v15 }
 0xbf8   :  { %v898_v23 = vsub.f32 1.0, %v885_v19  ;;  %v904_v25 = vmul.f32 %v885_v19, %v821_v4  ;;  %v3174_v4 = vld [vmem:[%s4585_s20 + $0x2] sm:$0x3] }
 0xc34   :  { %v889_v17 = vpop.permute.xlu2 %888 }
 0xc35   :  { %v891_v18 = vmul.f32 %v889_v17, %v885_v19 }
 0xc37   :  { %893 = vrot.lane.b32.xlu0 %v891_v18, %s3484_s9 }
 0xca9   :  { %v894_v20 = vpop.permute.xlu0 %893 }
 0xcaa   :  { %v896_v21 = vadd.f32 %v894_v20, %v482_v9 }
 0xcac   :  { %3314 = vtanh.f32 %v896_v21 }
 0xcb2   :  { %v3315_v22 = vpop.eup %3314 }
 0xcb3   :  { %900 = vrot.lane.b32.xlu1 %v3315_v22, %s3485_s5 }
 0xd25   :  { %v901_v24 = vpop.permute.xlu1 %900 }
 0xd26   :  { %v903_v30 = vmul.f32 %v901_v24, %v898_v23 }
 0xd28   :  { %v905_v31 = vadd.f32 %v904_v25, %v903_v30 }
 0xd2a   :  { %907 = vrot.lane.b32.xlu2 %v905_v31, %s3485_s5 }
 0xd84   :  { %v908_v33 = vpop.permute.xlu2 %907 }
 0xd85   :  { %3159 = vmatmul.msk.f32.vlgmr.msrb.gmra.mxu1 %vm130_vm2, %v908_v33  ;;  %3160 = vmatmul.msk.f32.vlgmr.msrb.gmra.mxu2 %vm130_vm2, %v908_v33 }
 0xd86   :  { %1307 = vmatpush.msrb.mxu2 %v3949_v59 }
 0xd88   :  { %1308 = vmatpush.msrb.mxu2 %v3954_v60 }
 0xd8a   :  { %1309 = vmatpush.msrb.mxu2 %v3961_v61 }
 0xd8c   :  { %1310 = vmatpush.msrb.mxu2 %v3968_v62 }
 0xe08   :  { %v948_v34 = vpop.f32.mrf.mxu2 }
 0xe09   :  { %v949_v35 = vadd.f32 %v3790_v28, %v948_v34 }
 0xe0b   :  { %972 = vrot.lane.b32.xlu0 %v949_v35, %s3484_s9  ;;  %v951_v37 = vadd.f32 %v949_v35, %v483_v36 }
 0xe0d   :  { %v3161_v38 = vmul.f32 -1.442695, %v951_v37 }
 0xe0f   :  { %3316 = vpow2.f32 %v3161_v38 }
 0xe15   :  { %v3317_v39 = vpop.eup %3316 }
 0xe16   :  { %v955_v40 = vadd.f32 1.0, %v3317_v39 }
 0xe18   :  { %3318 = vrcp.f32 %v955_v40  ;;  %v967_v45 = vand.u32 2147483648, %v955_v40  ;;  %vm961_vm1 = vweird.f32 %v955_v40  ;;  %v965_v1 = vand.u32 2147483647, %v955_v40 }
 0xe1a   :  { %v968_v47 = vor.u32 1.1754944e-38, %v967_v45  ;;  %vm966_vm4 = vcmp.eq.f32.partialorder %v965_v1, 8.507059e+37 }
 0xe1e   :  { %v3319_v41 = vpop.eup %3318 }
 0xe1f   :  { %v957_v42 = vmul.f32 %v3319_v41, %v955_v40  ;;  %vm962_vm0 = vweird.f32 %v3319_v41 }
 0xe20   :  { %vm963_vm3 = vmor %vm961_vm1, %vm962_vm0 }
 0xe21   :  { %v958_v43 = vsub.f32 1.0, %v957_v42 }
 0xe23   :  { %v959_v0 = vmul.f32 %v3319_v41, %v958_v43 }
 0xe25   :  { %v960_v44 = vadd.f32 %v3319_v41, %v959_v0 }
 0xe27   :  { %v964_v46 = vsel %vm963_vm3, %v3319_v41, %v960_v44 }
 0xe28   :  { %v969_v49 = vsel %vm966_vm4, %v968_v47, %v964_v46 }
 0xe29   :  { %v982_v54 = vsub.f32 1.0, %v969_v49  ;;  %v988_v56 = vmul.f32 %v969_v49, %v905_v31 }
 0xe7d   :  { %v973_v2 = vpop.permute.xlu0 %972 }
 0xe7e   :  { %v975_v3 = vmul.f32 %v973_v2, %v969_v49 }
 0xe80   :  { %977 = vrot.lane.b32.xlu1 %v975_v3, %s3484_s9 }
 0xef2   :  { %v978_v51 = vpop.permute.xlu1 %977 }
 0xef3   :  { %v980_v52 = vadd.f32 %v978_v51, %v483_v36 }
 0xef5   :  { %3320 = vtanh.f32 %v980_v52 }
 0xefb   :  { %v3321_v53 = vpop.eup %3320 }
 0xefc   :  { %984 = vrot.lane.b32.xlu2 %v3321_v53, %s3485_s5 }
 0xf56   :  { %v985_v55 = vpop.permute.xlu2 %984 }
 0xf57   :  { %v987_v57 = vmul.f32 %v985_v55, %v982_v54 }
 0xf59   :  { %v3942_v58 = vadd.f32 %v988_v56, %v987_v57 }
 0xf5b   :  { %991 = vrot.lane.b32.xlu0 %v3942_v58, %s3485_s5 }
 0xfcd   :  { %v992_v63 = vpop.permute.xlu0 %991 }
 0xfce   :  { %3162 = vmatmul.msk.f32.vlgmr.msrb.gmra.mxu3 %vm130_vm2, %v992_v63  ;;  %3163 = vmatmul.msk.f32.vlgmr.msra.gmra.mxu0 %vm130_vm2, %v992_v63  ;;  %v4026_v63 = vld [vmem:[%s4577_s16 + $0x50] sm:$0xff] }
 0xfcf   :  { %1391 = vmatpush.msra.mxu0 %v3949_v59 }
 0xfd1   :  { %1392 = vmatpush.msra.mxu0 %v3954_v60 }
 0xfd3   :  { %1393 = vmatpush.msra.mxu0 %v3961_v61 }
 0xfd5   :  { %1394 = vmatpush.msra.mxu0 %v3968_v62 }
 0xfd6   :  { %3180 = vmatmul.msk.f32.vlgmr.msrb.gmra.mxu0 %vm130_vm2, %v3174_v4 }
 0xfd7   :  { %1559 = vmatpush.msrb.mxu0 %v3949_v59 }
 0xfd9   :  { %1560 = vmatpush.msrb.mxu0 %v3954_v60 }
 0xfdb   :  { %1561 = vmatpush.msrb.mxu0 %v3961_v61 }
 0xfdd   :  { %1562 = vmatpush.msrb.mxu0 %v3968_v62 }
0x104b   :  { %v1032_v5 = vpop.f32.mrf.mxu0 }
0x104c   :  { %v1033_v6 = vadd.f32 %v3790_v28, %v1032_v5  ;;  %v593_v28 = vadd.f32 %v4000_v11, %v3903_v8 }
0x104e   :  { %1056 = vrot.lane.b32.xlu1 %v1033_v6, %s3484_s9  ;;  %v1035_v50 = vadd.f32 %v1033_v6, %v484_v26  ;;  %v4042_v6 = vld [vmem:[%s4577_s16 + $0x40] sm:$0xff] }
0x1050   :  { %v3164_v14 = vmul.f32 -1.442695, %v1035_v50 }
0x1053   :  { %v1222_v9 = vpop.f32.mrf.mxu0 }
0x1054   :  { %v1223_v10 = vadd.f32 %v3993_v7, %v1222_v9 }
0x1056   :  { %1246 = vrot.lane.b32.xlu2 %v1223_v10, %s3484_s9  ;;  %v1225_v12 = vadd.f32 %v1223_v10, %v593_v28 }
0x1058   :  { %v3181_v13 = vmul.f32 -1.442695, %v1225_v12 }
0x105a   :  { %3322 = vpow2.f32 %v3181_v13  ;;  %v676_v13 = vpop.f32.mrf.mxu3 }
0x1060   :  { %v3323_v48 = vpop.eup %3322 }
0x1061   :  { %v1229_v27 = vadd.f32 1.0, %v3323_v48  ;;  %v677_v48 = vadd.f32 %v4000_v11, %v676_v13 }
0x1063   :  { %3324 = vrcp.f32 %v1229_v27  ;;  %v1241_v20 = vand.u32 2147483648, %v1229_v27  ;;  %vm1235_vm6 = vweird.f32 %v1229_v27  ;;  %v1239_v21 = vand.u32 2147483647, %v1229_v27 }
0x1064   :  { %3326 = vpow2.f32 %v3164_v14 }
0x1065   :  { %v1242_v24 = vor.u32 1.1754944e-38, %v1241_v20  ;;  %vm1240_vm8 = vcmp.eq.f32.partialorder %v1239_v21, 8.507059e+37 }
0x1069   :  { %v3325_v29 = vpop.eup %3324 }
0x106a   :  { %v3327_v32 = vpop.eup %3326  ;;  %v1231_v15 = vmul.f32 %v3325_v29, %v1229_v27  ;;  %vm1236_vm5 = vweird.f32 %v3325_v29 }
0x106b   :  { %v1039_v16 = vadd.f32 1.0, %v3327_v32  ;;  %vm1237_vm7 = vmor %vm1235_vm6, %vm1236_vm5 }
0x106c   :  { %v1232_v17 = vsub.f32 1.0, %v1231_v15 }
0x106d   :  { %3328 = vrcp.f32 %v1039_v16  ;;  %v1051_v36 = vand.u32 2147483648, %v1039_v16  ;;  %vm1045_vm10 = vweird.f32 %v1039_v16  ;;  %v1049_v37 = vand.u32 2147483647, %v1039_v16 }
0x106e   :  { %v1233_v19 = vmul.f32 %v3325_v29, %v1232_v17 }
0x106f   :  { %v1052_v39 = vor.u32 1.1754944e-38, %v1051_v36  ;;  %vm1050_vm12 = vcmp.eq.f32.partialorder %v1049_v37, 8.507059e+37 }
0x1070   :  { %v1234_v18 = vadd.f32 %v3325_v29, %v1233_v19 }
0x1072   :  { %v1238_v22 = vsel %vm1237_vm7, %v3325_v29, %v1234_v18 }
0x1073   :  { %v3329_v8 = vpop.eup %3328  ;;  %v1243_v30 = vsel %vm1240_vm8, %v1242_v24, %v1238_v22 }
0x1074   :  { %v1041_v23 = vmul.f32 %v3329_v8, %v1039_v16  ;;  %vm1046_vm9 = vweird.f32 %v3329_v8  ;;  %v1256_v53 = vsub.f32 1.0, %v1243_v30 }
0x1075   :  { %vm1047_vm11 = vmor %vm1045_vm10, %vm1046_vm9 }
0x1076   :  { %v1042_v33 = vsub.f32 1.0, %v1041_v23 }
0x1078   :  { %v1043_v34 = vmul.f32 %v3329_v8, %v1042_v33 }
0x107a   :  { %v1044_v35 = vadd.f32 %v3329_v8, %v1043_v34 }
0x107c   :  { %v1048_v38 = vsel %vm1047_vm11, %v3329_v8, %v1044_v35 }
0x107d   :  { %v1053_v41 = vsel %vm1050_vm12, %v1052_v39, %v1048_v38 }
0x107e   :  { %v1066_v47 = vsub.f32 1.0, %v1053_v41  ;;  %v1072_v49 = vmul.f32 %v1053_v41, %v3942_v58  ;;  %v4021_v58 = vld [vmem:[%s4577_s16 + $0x58] sm:$0xff] }
0x107f   :  { %1287 = vmatpush.msrb.mxu1 %v4021_v58  ;;  %1371 = vmatpush.msrb.mxu3 %v4021_v58 }
0x1081   :  { %1288 = vmatpush.msrb.mxu1 %v4026_v63  ;;  %1372 = vmatpush.msrb.mxu3 %v4026_v63 }
0x10b0   :  { %v1247_v25 = vpop.permute.xlu2 %1246 }
0x10b1   :  { %v1249_v31 = vmul.f32 %v1247_v25, %v1243_v30 }
0x10b3   :  { %1251 = vrot.lane.b32.xlu1 %v1249_v31, %s3484_s9 }
0x10bb   :  { %1262 = vrot.lane.b32.xlu1 %v3174_v4, %s3486_s27  ;;  %v4033_v4 = vld [vmem:[%s4577_s16 + $0x48] sm:$0xff] }
0x10bc   :  { %1289 = vmatpush.msrb.mxu1 %v4033_v4  ;;  %1373 = vmatpush.msrb.mxu3 %v4033_v4 }
0x10be   :  { %1290 = vmatpush.msrb.mxu1 %v4042_v6  ;;  %1374 = vmatpush.msrb.mxu3 %v4042_v6 }
0x10c0   :  { %v1057_v40 = vpop.permute.xlu1 %1056 }
0x10c1   :  { %v1059_v42 = vmul.f32 %v1057_v40, %v1053_v41  ;;  %v760_v40 = vpop.f32.mrf.mxu1 }
0x10c2   :  { %v761_v41 = vadd.f32 %v4000_v11, %v760_v40 }
0x10c3   :  { %1061 = vrot.lane.b32.xlu0 %v1059_v42, %s3484_s9 }
0x1125   :  { %v1252_v43 = vpop.permute.xlu1 %1251 }
0x1126   :  { %v1254_v0 = vadd.f32 %v1252_v43, %v593_v28 }
0x1128   :  { %3330 = vtanh.f32 %v1254_v0 }
0x112d   :  { %v1263_v52 = vpop.permute.xlu1 %1262 }
0x112e   :  { %v3331_v44 = vpop.eup %3330  ;;  %v1265_v55 = vmul.f32 %v1263_v52, %v1243_v30 }
0x112f   :  { %1258 = vrot.lane.b32.xlu0 %v3331_v44, %s3485_s5 }
0x1135   :  { %v1062_v45 = vpop.permute.xlu0 %1061 }
0x1136   :  { %v1064_v1 = vadd.f32 %v1062_v45, %v484_v26 }
0x1138   :  { %3332 = vtanh.f32 %v1064_v1 }
0x113e   :  { %v3333_v46 = vpop.eup %3332 }
0x113f   :  { %1068 = vrot.lane.b32.xlu2 %v3333_v46, %s3485_s5 }
0x1199   :  { %v1069_v2 = vpop.permute.xlu2 %1068 }
0x119a   :  { %v1071_v3 = vmul.f32 %v1069_v2, %v1066_v47 }
0x119c   :  { %v4010_v51 = vadd.f32 %v1072_v49, %v1071_v3 }
0x119e   :  { %1075 = vrot.lane.b32.xlu2 %v4010_v51, %s3485_s5 }
0x11a1   :  { %v1259_v54 = vpop.permute.xlu0 %1258 }
0x11a2   :  { %v1261_v56 = vmul.f32 %v1259_v54, %v1256_v53 }
0x11a4   :  { %v4014_v57 = vadd.f32 %v1265_v55, %v1261_v56 }
0x11a6   :  { %1271 = vrot.lane.b32.xlu0 %v4014_v57, %s3485_s5 }
0x11f8   :  { %v1076_v5 = vpop.permute.xlu2 %1075 }
0x11f9   :  { %3165 = vmatmul.msk.f32.vlgmr.msra.gmra.mxu1 %vm130_vm2, %v1076_v5  ;;  %3166 = vmatmul.msk.f32.vlgmr.msra.gmra.mxu2 %vm130_vm2, %v1076_v5 }
0x11fa   :  { %1475 = vmatpush.msra.mxu2 %v3949_v59  ;;  %1455 = vmatpush.msra.mxu1 %v4021_v58 }
0x11fc   :  { %1476 = vmatpush.msra.mxu2 %v3954_v60  ;;  %1456 = vmatpush.msra.mxu1 %v4026_v63 }
0x11fe   :  { %1477 = vmatpush.msra.mxu2 %v3961_v61  ;;  %1457 = vmatpush.msra.mxu1 %v4033_v4 }
0x1200   :  { %1478 = vmatpush.msra.mxu2 %v3968_v62  ;;  %1458 = vmatpush.msra.mxu1 %v4042_v6 }
0x1218   :  { %v1272_v9 = vpop.permute.xlu0 %1271 }
0x1219   :  { %3182 = vmatmul.msk.f32.vlgmr.msrb.gmra.mxu1 %vm130_vm2, %v1272_v9  ;;  %3183 = vmatmul.msk.f32.vlgmr.msrb.gmra.mxu2 %vm130_vm2, %v1272_v9 }
0x121a   :  { %1643 = vmatpush.msrb.mxu2 %v3949_v59  ;;  %1623 = vmatpush.msrb.mxu1 %v4021_v58 }
0x121c   :  { %1644 = vmatpush.msrb.mxu2 %v3954_v60  ;;  %1624 = vmatpush.msrb.mxu1 %v4026_v63 }
0x121e   :  { %1645 = vmatpush.msrb.mxu2 %v3961_v61  ;;  %1625 = vmatpush.msrb.mxu1 %v4033_v4 }
0x1220   :  { %1646 = vmatpush.msrb.mxu2 %v3968_v62  ;;  %1626 = vmatpush.msrb.mxu1 %v4042_v6 }
0x127c   :  { %v4066_v10 = vpop.f32.mrf.mxu2 }
0x129c   :  { %v1312_v28 = vpop.f32.mrf.mxu2 }
0x129d   :  { %v1313_v12 = vadd.f32 %v3993_v7, %v1312_v28 }
0x129f   :  { %1336 = vrot.lane.b32.xlu1 %v1313_v12, %s3484_s9  ;;  %v1315_v26 = vadd.f32 %v1313_v12, %v677_v48 }
0x12a1   :  { %v3184_v50 = vmul.f32 -1.442695, %v1315_v26 }
0x12a3   :  { %3334 = vpow2.f32 %v3184_v50 }
0x12a9   :  { %v3335_v27 = vpop.eup %3334 }
0x12aa   :  { %v1319_v14 = vadd.f32 1.0, %v3335_v27 }
0x12ac   :  { %3336 = vrcp.f32 %v1319_v14  ;;  %v1331_v19 = vand.u32 2147483648, %v1319_v14  ;;  %vm1325_vm15 = vweird.f32 %v1319_v14  ;;  %v1329_v18 = vand.u32 2147483647, %v1319_v14 }
0x12ae   :  { %v1332_v20 = vor.u32 1.1754944e-38, %v1331_v19  ;;  %vm1330_vm1 = vcmp.eq.f32.partialorder %v1329_v18, 8.507059e+37 }
0x12b2   :  { %v3337_v29 = vpop.eup %3336 }
0x12b3   :  { %v1321_v32 = vmul.f32 %v3337_v29, %v1319_v14  ;;  %vm1326_vm14 = vweird.f32 %v3337_v29 }
0x12b4   :  { %vm1327_vm0 = vmor %vm1325_vm15, %vm1326_vm14 }
0x12b5   :  { %v1322_v15 = vsub.f32 1.0, %v1321_v32 }
0x12b7   :  { %v1323_v16 = vmul.f32 %v3337_v29, %v1322_v15 }
0x12b9   :  { %v1324_v17 = vadd.f32 %v3337_v29, %v1323_v16 }
0x12bb   :  { %v1328_v8 = vsel %vm1327_vm0, %v3337_v29, %v1324_v17 }
0x12bc   :  { %v1333_v22 = vsel %vm1330_vm1, %v1332_v20, %v1328_v8 }
0x12bd   :  { %v1346_v31 = vsub.f32 1.0, %v1333_v22  ;;  %v1352_v34 = vmul.f32 %v1333_v22, %v4014_v57 }
0x1311   :  { %v1337_v21 = vpop.permute.xlu1 %1336 }
0x1312   :  { %v1339_v23 = vmul.f32 %v1337_v21, %v1333_v22 }
0x1314   :  { %1341 = vrot.lane.b32.xlu2 %v1339_v23, %s3484_s9 }
0x136e   :  { %v1342_v24 = vpop.permute.xlu2 %1341 }
0x136f   :  { %v1344_v25 = vadd.f32 %v1342_v24, %v677_v48 }
0x1371   :  { %3338 = vtanh.f32 %v1344_v25 }
0x1377   :  { %v3339_v30 = vpop.eup %3338 }
0x1378   :  { %1348 = vrot.lane.b32.xlu0 %v3339_v30, %s3485_s5 }
0x13ea   :  { %v1349_v33 = vpop.permute.xlu0 %1348 }
0x13eb   :  { %v1351_v35 = vmul.f32 %v1349_v33, %v1346_v31 }
0x13ed   :  { %v1353_v36 = vadd.f32 %v1352_v34, %v1351_v35 }
0x13ef   :  { %1355 = vrot.lane.b32.xlu1 %v1353_v36, %s3485_s5 }
0x1461   :  { %v4075_v37 = vpop.permute.xlu1 %1355 }
0x1462   :  { %3186 = vmatmul.msk.f32.vlgmr.msra.gmra.mxu0 %vm130_vm2, %v4075_v37 }
0x1463   :  { %1727 = vmatpush.msra.mxu0 %v3949_v59 }
0x1465   :  { %1728 = vmatpush.msra.mxu0 %v3954_v60 }
0x1467   :  { %1729 = vmatpush.msra.mxu0 %v3961_v61 }
0x1469   :  { %1730 = vmatpush.msra.mxu0 %v3968_v62 }
0x14df   :  { %v1396_v38 = vpop.f32.mrf.mxu0 }
0x14e0   :  { %v1397_v39 = vadd.f32 %v3993_v7, %v1396_v38 }
0x14e2   :  { %1420 = vrot.lane.b32.xlu2 %v1397_v39, %s3484_s9  ;;  %v1399_v42 = vadd.f32 %v1397_v39, %v761_v41 }
0x14e4   :  { %v3187_v43 = vmul.f32 -1.442695, %v1399_v42 }
0x14e6   :  { %3340 = vpow2.f32 %v3187_v43  ;;  %v928_v43 = vpop.f32.mrf.mxu1 }
0x14ec   :  { %v3341_v0 = vpop.eup %3340 }
0x14ed   :  { %v1403_v44 = vadd.f32 1.0, %v3341_v0  ;;  %v929_v0 = vadd.f32 %v4000_v11, %v928_v43 }
0x14ef   :  { %3342 = vrcp.f32 %v1403_v44  ;;  %v1415_v49 = vand.u32 2147483648, %v1403_v44  ;;  %vm1409_vm4 = vweird.f32 %v1403_v44  ;;  %v1413_v3 = vand.u32 2147483647, %v1403_v44 }
0x14f1   :  { %v1416_v53 = vor.u32 1.1754944e-38, %v1415_v49  ;;  %vm1414_vm6 = vcmp.eq.f32.partialorder %v1413_v3, 8.507059e+37 }
0x14f5   :  { %v3343_v45 = vpop.eup %3342 }
0x14f6   :  { %v1405_v1 = vmul.f32 %v3343_v45, %v1403_v44  ;;  %vm1410_vm3 = vweird.f32 %v3343_v45 }
0x14f7   :  { %vm1411_vm5 = vmor %vm1409_vm4, %vm1410_vm3 }
0x14f8   :  { %v1406_v46 = vsub.f32 1.0, %v1405_v1 }
0x14fa   :  { %v1407_v47 = vmul.f32 %v3343_v45, %v1406_v46 }
0x14fc   :  { %v1408_v2 = vadd.f32 %v3343_v45, %v1407_v47 }
0x14fe   :  { %v1412_v52 = vsel %vm1411_vm5, %v3343_v45, %v1408_v2 }
0x14ff   :  { %v1417_v55 = vsel %vm1414_vm6, %v1416_v53, %v1412_v52 }
0x1500   :  { %v1430_v28 = vsub.f32 1.0, %v1417_v55  ;;  %v1436_v13 = vmul.f32 %v1417_v55, %v1353_v36 }
0x153c   :  { %v1421_v54 = vpop.permute.xlu2 %1420 }
0x153d   :  { %v1423_v56 = vmul.f32 %v1421_v54, %v1417_v55 }
0x153f   :  { %1425 = vrot.lane.b32.xlu0 %v1423_v56, %s3484_s9 }
0x15b1   :  { %v1426_v57 = vpop.permute.xlu0 %1425 }
0x15b2   :  { %v1428_v5 = vadd.f32 %v1426_v57, %v761_v41 }
0x15b4   :  { %3344 = vtanh.f32 %v1428_v5 }
0x15ba   :  { %v3345_v9 = vpop.eup %3344 }
0x15bb   :  { %1432 = vrot.lane.b32.xlu1 %v3345_v9, %s3485_s5 }
0x162d   :  { %v1433_v12 = vpop.permute.xlu1 %1432 }
0x162e   :  { %v1435_v48 = vmul.f32 %v1433_v12, %v1430_v28 }
0x1630   :  { %v1437_v26 = vadd.f32 %v1436_v13, %v1435_v48 }
0x1632   :  { %1439 = vrot.lane.b32.xlu2 %v1437_v26, %s3485_s5 }
0x168c   :  { %v1440_v50 = vpop.permute.xlu2 %1439 }
0x168d   :  { %3188 = vmatmul.msk.f32.vlgmr.msra.gmra.mxu1 %vm130_vm2, %v1440_v50  ;;  %3189 = vmatmul.msk.f32.vlgmr.msra.gmra.mxu2 %vm130_vm2, %v1440_v50 }
0x168e   :  { %1811 = vmatpush.msra.mxu2 %v3949_v59  ;;  %1791 = vmatpush.msra.mxu1 %v4021_v58  ;;  %v844_v59 = vpop.f32.mrf.mxu3 }
0x168f   :  { %v845_v29 = vadd.f32 %v4000_v11, %v844_v59 }
0x1690   :  { %1812 = vmatpush.msra.mxu2 %v3954_v60  ;;  %1792 = vmatpush.msra.mxu1 %v4026_v63 }
0x1692   :  { %1813 = vmatpush.msra.mxu2 %v3961_v61  ;;  %1793 = vmatpush.msra.mxu1 %v4033_v4 }
0x1694   :  { %1814 = vmatpush.msra.mxu2 %v3968_v62  ;;  %1794 = vmatpush.msra.mxu1 %v4042_v6 }
0x1710   :  { %v1480_v27 = vpop.f32.mrf.mxu2 }
0x1711   :  { %v1481_v14 = vadd.f32 %v3993_v7, %v1480_v27 }
0x1713   :  { %1504 = vrot.lane.b32.xlu0 %v1481_v14, %s3484_s9  ;;  %v1483_v32 = vadd.f32 %v1481_v14, %v845_v29 }
0x1715   :  { %v3190_v60 = vmul.f32 -1.442695, %v1483_v32 }
0x1717   :  { %3346 = vpow2.f32 %v3190_v60  ;;  %v1012_v60 = vpop.f32.mrf.mxu3 }
0x171d   :  { %v3347_v15 = vpop.eup %3346 }
0x171e   :  { %v1487_v16 = vadd.f32 1.0, %v3347_v15  ;;  %v1013_v15 = vadd.f32 %v4000_v11, %v1012_v60 }
0x1720   :  { %3348 = vrcp.f32 %v1487_v16  ;;  %v1499_v8 = vand.u32 2147483648, %v1487_v16  ;;  %vm1493_vm8 = vweird.f32 %v1487_v16  ;;  %v1497_v20 = vand.u32 2147483647, %v1487_v16 }
0x1722   :  { %v1500_v22 = vor.u32 1.1754944e-38, %v1499_v8  ;;  %vm1498_vm10 = vcmp.eq.f32.partialorder %v1497_v20, 8.507059e+37 }
0x1726   :  { %v3349_v61 = vpop.eup %3348 }
0x1727   :  { %v1489_v17 = vmul.f32 %v3349_v61, %v1487_v16  ;;  %vm1494_vm7 = vweird.f32 %v3349_v61 }
0x1728   :  { %vm1495_vm9 = vmor %vm1493_vm8, %vm1494_vm7 }
0x1729   :  { %v1490_v19 = vsub.f32 1.0, %v1489_v17 }
0x172b   :  { %v1491_v62 = vmul.f32 %v3349_v61, %v1490_v19 }
0x172d   :  { %v1492_v18 = vadd.f32 %v3349_v61, %v1491_v62 }
0x172f   :  { %v1496_v21 = vsel %vm1495_vm9, %v3349_v61, %v1492_v18 }
0x1730   :  { %v1501_v24 = vsel %vm1498_vm10, %v1500_v22, %v1496_v21 }
0x1731   :  { %v1514_v34 = vsub.f32 1.0, %v1501_v24  ;;  %v1520_v36 = vmul.f32 %v1501_v24, %v1437_v26 }
0x1785   :  { %v1505_v23 = vpop.permute.xlu0 %1504 }
0x1786   :  { %v1507_v25 = vmul.f32 %v1505_v23, %v1501_v24 }
0x1788   :  { %1509 = vrot.lane.b32.xlu1 %v1507_v25, %s3484_s9 }
0x17fa   :  { %v1510_v30 = vpop.permute.xlu1 %1509 }
0x17fb   :  { %v1512_v31 = vadd.f32 %v1510_v30, %v845_v29 }
0x17fd   :  { %3350 = vtanh.f32 %v1512_v31 }
0x1803   :  { %v3351_v33 = vpop.eup %3350 }
0x1804   :  { %1516 = vrot.lane.b32.xlu2 %v3351_v33, %s3485_s5 }
0x185e   :  { %v1517_v35 = vpop.permute.xlu2 %1516 }
0x185f   :  { %v1519_v38 = vmul.f32 %v1517_v35, %v1514_v34 }
0x1861   :  { %v1521_v39 = vadd.f32 %v1520_v36, %v1519_v38 }
0x1863   :  { %1523 = vrot.lane.b32.xlu0 %v1521_v39, %s3485_s5 }
0x18d5   :  { %v4105_v40 = vpop.permute.xlu0 %1523 }
0x18d6   :  { %3192 = vmatmul.msk.f32.vlgmr.msrb.gmra.mxu0 %vm130_vm2, %v4105_v40 }
0x1953   :  { %v1564_v41 = vpop.f32.mrf.mxu0 }
0x1954   :  { %v1565_v42 = vadd.f32 %v3993_v7, %v1564_v41 }
0x1956   :  { %1588 = vrot.lane.b32.xlu1 %v1565_v42, %s3484_s9  ;;  %v1567_v44 = vadd.f32 %v1565_v42, %v929_v0 }
0x1958   :  { %v3193_v45 = vmul.f32 -1.442695, %v1567_v44 }
0x195a   :  { %3352 = vpow2.f32 %v3193_v45  ;;  %v4131_v45 = vld [vmem:[#allocation2 + $0xe] sm:$0x3] }
0x1960   :  { %v3353_v1 = vpop.eup %3352 }
0x1961   :  { %v1571_v46 = vadd.f32 1.0, %v3353_v1 }
0x1963   :  { %3354 = vrcp.f32 %v1571_v46  ;;  %v1583_v53 = vand.u32 2147483648, %v1571_v46  ;;  %vm1577_vm12 = vweird.f32 %v1571_v46  ;;  %v1581_v54 = vand.u32 2147483647, %v1571_v46 }
0x1965   :  { %v1584_v56 = vor.u32 1.1754944e-38, %v1583_v53  ;;  %vm1582_vm15 = vcmp.eq.f32.partialorder %v1581_v54, 8.507059e+37 }
0x1969   :  { %v3355_v47 = vpop.eup %3354 }
0x196a   :  { %v1573_v2 = vmul.f32 %v3355_v47, %v1571_v46  ;;  %vm1578_vm11 = vweird.f32 %v3355_v47 }
0x196b   :  { %vm1579_vm14 = vmor %vm1577_vm12, %vm1578_vm11 }
0x196c   :  { %v1574_v49 = vsub.f32 1.0, %v1573_v2  ;;  %v4142_v2 = vld [vmem:[%s4583_s17 + $0x50] sm:$0xff] }
0x196e   :  { %v1575_v3 = vmul.f32 %v3355_v47, %v1574_v49 }
0x1970   :  { %v1576_v52 = vadd.f32 %v3355_v47, %v1575_v3  ;;  %v4156_v3 = vld [vmem:[%s4583_s17 + $0x40] sm:$0xff] }
0x1972   :  { %v1580_v55 = vsel %vm1579_vm14, %v3355_v47, %v1576_v52  ;;  %v4137_v47 = vld [vmem:[%s4583_s17 + $0x58] sm:$0xff] }
0x1973   :  { %v1585_v5 = vsel %vm1582_vm15, %v1584_v56, %v1580_v55  ;;  %1917 = vmatpush.msrb.mxu0 %v4137_v47 }
0x1974   :  { %v1598_v48 = vsub.f32 1.0, %v1585_v5  ;;  %v1604_v50 = vmul.f32 %v1585_v5, %v1521_v39 }
0x1975   :  { %1918 = vmatpush.msrb.mxu0 %v4142_v2 }
0x19c8   :  { %v1589_v57 = vpop.permute.xlu1 %1588 }
0x19c9   :  { %v1591_v9 = vmul.f32 %v1589_v57, %v1585_v5 }
0x19cb   :  { %1593 = vrot.lane.b32.xlu2 %v1591_v9, %s3484_s9 }
0x1a25   :  { %v1594_v28 = vpop.permute.xlu2 %1593 }
0x1a26   :  { %v1596_v12 = vadd.f32 %v1594_v28, %v929_v0  ;;  %v3478_v0 = vld [vmem:[%s4586_s19] ss:$0 sm:$0xff] }
0x1a27   :  { %v1117_v44 = vadd.f32 %v3478_v0, %v4066_v10  ;;  %v4149_v10 = vld [vmem:[%s4583_s17 + $0x48] sm:$0xff] }
0x1a28   :  { %3356 = vtanh.f32 %v1596_v12  ;;  %1919 = vmatpush.msrb.mxu0 %v4149_v10 }
0x1a29   :  { %v1119_v1 = vadd.f32 %v1117_v44, %v4131_v45 }
0x1a2a   :  { %1920 = vmatpush.msrb.mxu0 %v4156_v3 }
0x1a2b   :  { %v3167_v46 = vmul.f32 -1.442695, %v1119_v1 }
0x1a2e   :  { %v3357_v13 = vpop.eup %3356 }
0x1a2f   :  { %1600 = vrot.lane.b32.xlu0 %v3357_v13, %s3485_s5 }
0x1aa1   :  { %v1601_v26 = vpop.permute.xlu0 %1600 }
0x1aa2   :  { %v1603_v27 = vmul.f32 %v1601_v26, %v1598_v48  ;;  %v3209_v48 = vld [vmem:[%s4585_s20 + $0x4] sm:$0x3] }
0x1aa4   :  { %v1605_v14 = vadd.f32 %v1604_v50, %v1603_v27 }
0x1aa6   :  { %1607 = vrot.lane.b32.xlu1 %v1605_v14, %s3485_s5 }
0x1b18   :  { %v1608_v59 = vpop.permute.xlu1 %1607 }
0x1b19   :  { %3194 = vmatmul.msk.f32.vlgmr.msrb.gmra.mxu1 %vm130_vm2, %v1608_v59  ;;  %3195 = vmatmul.msk.f32.vlgmr.msrb.gmra.mxu2 %vm130_vm2, %v1608_v59 }
0x1b1a   :  { %2007 = vmatpush.msrb.mxu2 %v4137_v47 }
0x1b1c   :  { %2008 = vmatpush.msrb.mxu2 %v4142_v2 }
0x1b1e   :  { %2009 = vmatpush.msrb.mxu2 %v4149_v10 }
0x1b20   :  { %2010 = vmatpush.msrb.mxu2 %v4156_v3 }
0x1b9c   :  { %v1648_v29 = vpop.f32.mrf.mxu2 }
0x1b9d   :  { %v1649_v32 = vadd.f32 %v3993_v7, %v1648_v29  ;;  %v4188_v29 = vld [vmem:[%s4586_s19 + $0x2] ss:$0 sm:$0xff] }
0x1b9f   :  { %1672 = vrot.lane.b32.xlu2 %v1649_v32, %s3484_s9  ;;  %v1651_v16 = vadd.f32 %v1649_v32, %v1013_v15 }
0x1ba1   :  { %v3196_v61 = vmul.f32 -1.442695, %v1651_v16 }
0x1ba3   :  { %3358 = vpow2.f32 %v3196_v61 }
0x1ba9   :  { %v3359_v17 = vpop.eup %3358 }
0x1baa   :  { %v1655_v19 = vadd.f32 1.0, %v3359_v17 }
0x1bac   :  { %3360 = vrcp.f32 %v1655_v19  ;;  %v1667_v22 = vand.u32 2147483648, %v1655_v19  ;;  %vm1661_vm1 = vweird.f32 %v1655_v19  ;;  %v1665_v23 = vand.u32 2147483647, %v1655_v19 }
0x1bae   :  { %v1668_v25 = vor.u32 1.1754944e-38, %v1667_v22  ;;  %vm1666_vm4 = vcmp.eq.f32.partialorder %v1665_v23, 8.507059e+37 }
0x1bb2   :  { %v3361_v62 = vpop.eup %3360 }
0x1bb3   :  { %v1657_v18 = vmul.f32 %v3361_v62, %v1655_v19  ;;  %vm1662_vm0 = vweird.f32 %v3361_v62 }
0x1bb4   :  { %vm1663_vm3 = vmor %vm1661_vm1, %vm1662_vm0 }
0x1bb5   :  { %v1658_v8 = vsub.f32 1.0, %v1657_v18 }
0x1bb7   :  { %v1659_v20 = vmul.f32 %v3361_v62, %v1658_v8 }
0x1bb9   :  { %v1660_v21 = vadd.f32 %v3361_v62, %v1659_v20 }
0x1bbb   :  { %v1664_v24 = vsel %vm1663_vm3, %v3361_v62, %v1660_v21 }
0x1bbc   :  { %v1669_v31 = vsel %vm1666_vm4, %v1668_v25, %v1664_v24 }
0x1bbd   :  { %v1682_v38 = vsub.f32 1.0, %v1669_v31  ;;  %v1688_v41 = vmul.f32 %v1669_v31, %v1605_v14 }
0x1bf9   :  { %v1673_v30 = vpop.permute.xlu2 %1672 }
0x1bfa   :  { %v1675_v33 = vmul.f32 %v1673_v30, %v1669_v31 }
0x1bfc   :  { %1677 = vrot.lane.b32.xlu0 %v1675_v33, %s3484_s9 }
0x1c6e   :  { %v1678_v34 = vpop.permute.xlu0 %1677 }
0x1c6f   :  { %v1680_v35 = vadd.f32 %v1678_v34, %v1013_v15  ;;  %v1096_v15 = vpop.f32.mrf.mxu1 }
0x1c70   :  { %v1097_v16 = vadd.f32 %v4000_v11, %v1096_v15 }
0x1c71   :  { %3362 = vtanh.f32 %v1680_v35 }
0x1c72   :  { %3364 = vpow2.f32 %v3167_v46 }
0x1c77   :  { %v3363_v36 = vpop.eup %3362  ;;  %v1292_v17 = vpop.f32.mrf.mxu1 }
0x1c78   :  { %1684 = vrot.lane.b32.xlu1 %v3363_v36, %s3485_s5  ;;  %v3365_v49 = vpop.eup %3364 }
0x1c79   :  { %v1123_v52 = vadd.f32 1.0, %v3365_v49 }
0x1c7b   :  { %3366 = vrcp.f32 %v1123_v52  ;;  %v1135_v9 = vand.u32 2147483648, %v1123_v52  ;;  %vm1129_vm6 = vweird.f32 %v1123_v52  ;;  %v1133_v28 = vand.u32 2147483647, %v1123_v52 }
0x1c7d   :  { %v1136_v13 = vor.u32 1.1754944e-38, %v1135_v9  ;;  %vm1134_vm8 = vcmp.eq.f32.partialorder %v1133_v28, 8.507059e+37 }
0x1c81   :  { %v3367_v53 = vpop.eup %3366 }
0x1c82   :  { %v1125_v54 = vmul.f32 %v3367_v53, %v1123_v52  ;;  %vm1130_vm5 = vweird.f32 %v3367_v53 }
0x1c83   :  { %vm1131_vm7 = vmor %vm1129_vm6, %vm1130_vm5 }
0x1c84   :  { %v1126_v55 = vsub.f32 1.0, %v1125_v54 }
0x1c86   :  { %v1127_v56 = vmul.f32 %v3367_v53, %v1126_v55 }
0x1c88   :  { %v1128_v5 = vadd.f32 %v3367_v53, %v1127_v56 }
0x1c8a   :  { %v1132_v12 = vsel %vm1131_vm7, %v3367_v53, %v1128_v5 }
0x1c8b   :  { %v4172_v26 = vsel %vm1134_vm8, %v1136_v13, %v1132_v12 }
0x1cea   :  { %v1685_v39 = vpop.permute.xlu1 %1684 }
0x1ceb   :  { %v1687_v42 = vmul.f32 %v1685_v39, %v1682_v38 }
0x1ced   :  { %v4122_v43 = vadd.f32 %v1688_v41, %v1687_v42 }
0x1cef   :  { %1691 = vrot.lane.b32.xlu2 %v4122_v43, %s3485_s5 }
0x1cf7   :  { %1140 = vrot.lane.b32.xlu2 %v1117_v44, %s3484_s9 }
0x1d49   :  { %v4162_v57 = vpop.permute.xlu2 %1691 }
0x1d4a   :  { %3198 = vmatmul.msk.f32.vlgmr.msra.gmra.mxu0 %vm130_vm2, %v4162_v57 }
0x1d4b   :  { %2091 = vmatpush.msra.mxu0 %v4137_v47 }
0x1d4d   :  { %2092 = vmatpush.msra.mxu0 %v4142_v2 }
0x1d4f   :  { %2093 = vmatpush.msra.mxu0 %v4149_v10 }
0x1d51   :  { %v1141_v50 = vpop.permute.xlu2 %1140  ;;  %2094 = vmatpush.msra.mxu0 %v4156_v3 }
0x1d52   :  { %v1143_v27 = vmul.f32 %v1141_v50, %v4172_v26  ;;  %3215 = vmatmul.msk.f32.vlgmr.msrb.gmra.mxu0 %vm130_vm2, %v3209_v48 }
0x1d53   :  { %2259 = vmatpush.msrb.mxu0 %v4137_v47 }
0x1d54   :  { %1145 = vrot.lane.b32.xlu2 %v1143_v27, %s3484_s9 }
0x1d55   :  { %2260 = vmatpush.msrb.mxu0 %v4142_v2 }
0x1d57   :  { %2261 = vmatpush.msrb.mxu0 %v4149_v10 }
0x1d59   :  { %2262 = vmatpush.msrb.mxu0 %v4156_v3 }
0x1d5c   :  { %1962 = vrot.lane.b32.xlu2 %v3209_v48, %s3486_s27 }
0x1dae   :  { %v1146_v12 = vpop.permute.xlu2 %1145 }
0x1daf   :  { %v1148_v13 = vadd.f32 %v1146_v12, %v4131_v45 }
0x1db6   :  { %v1963_v45 = vpop.permute.xlu2 %1962 }
0x1dc7   :  { %v1732_v14 = vpop.f32.mrf.mxu0 }
0x1dc8   :  { %v1733_v59 = vadd.f32 %v3993_v7, %v1732_v14  ;;  %v4196_v7 = vld [vmem:[%s4580_s18 + $0x2] ss:$0 sm:$0xff] }
0x1dc9   :  { %v1293_v62 = vadd.f32 %v4196_v7, %v1292_v17 }
0x1dca   :  { %1756 = vrot.lane.b32.xlu0 %v1733_v59, %s3484_s9  ;;  %v1735_v61 = vadd.f32 %v1733_v59, %v1097_v16 }
0x1dcc   :  { %v3199_v19 = vmul.f32 -1.442695, %v1735_v61 }
0x1dce   :  { %3368 = vpow2.f32 %v3199_v19  ;;  %v1150_v19 = vsub.f32 1.0, %v4172_v26 }
0x1dcf   :  { %v1922_v32 = vpop.f32.mrf.mxu0 }
0x1dd0   :  { %v1923_v60 = vadd.f32 %v4188_v29, %v1922_v32 }
0x1dd2   :  { %1946 = vrot.lane.b32.xlu1 %v1923_v60, %s3484_s9  ;;  %v1925_v18 = vadd.f32 %v1923_v60, %v1293_v62 }
0x1dd4   :  { %v3216_v8 = vmul.f32 -1.442695, %v1925_v18  ;;  %v3369_v20 = vpop.eup %3368 }
0x1dd5   :  { %v1739_v21 = vadd.f32 1.0, %v3369_v20 }
0x1dd6   :  { %3370 = vpow2.f32 %v3216_v8 }
0x1dd7   :  { %3372 = vrcp.f32 %v1739_v21  ;;  %v1751_v36 = vand.u32 2147483648, %v1739_v21  ;;  %vm1745_vm10 = vweird.f32 %v1739_v21  ;;  %v1749_v38 = vand.u32 2147483647, %v1739_v21 }
0x1dd9   :  { %v1752_v42 = vor.u32 1.1754944e-38, %v1751_v36  ;;  %vm1750_vm12 = vcmp.eq.f32.partialorder %v1749_v38, 8.507059e+37 }
0x1ddc   :  { %v3371_v22 = vpop.eup %3370 }
0x1ddd   :  { %v1929_v23 = vadd.f32 1.0, %v3371_v22  ;;  %v3373_v11 = vpop.eup %3372 }
0x1dde   :  { %v1741_v24 = vmul.f32 %v3373_v11, %v1739_v21  ;;  %vm1746_vm9 = vweird.f32 %v3373_v11  ;;  %v1156_v21 = vmul.f32 %v4172_v26, %v4010_v51  ;;  %v4232_v51 = vld [vmem:[%s4577_s16 + $0x68] sm:$0xff]  ;;  %v4239_v26 = vld [vmem:[%s4577_s16 + $0x60] sm:$0xff] }
0x1ddf   :  { %3374 = vrcp.f32 %v1929_v23  ;;  %vm1747_vm11 = vmor %vm1745_vm10, %vm1746_vm9  ;;  %v1941_v49 = vand.u32 2147483648, %v1929_v23  ;;  %vm1935_vm15 = vweird.f32 %v1929_v23  ;;  %v1939_v52 = vand.u32 2147483647, %v1929_v23 }
0x1de0   :  { %v1742_v25 = vsub.f32 1.0, %v1741_v24  ;;  %v4226_v24 = vld [vmem:[%s4577_s16 + $0x70] sm:$0xff] }
0x1de1   :  { %v1942_v54 = vor.u32 1.1754944e-38, %v1941_v49  ;;  %vm1940_vm1 = vcmp.eq.f32.partialorder %v1939_v52, 8.507059e+37 }
0x1de2   :  { %v1743_v33 = vmul.f32 %v3373_v11, %v1742_v25 }
0x1de4   :  { %v1744_v35 = vadd.f32 %v3373_v11, %v1743_v33 }
0x1de5   :  { %v3375_v30 = vpop.eup %3374 }
0x1de6   :  { %v1931_v31 = vmul.f32 %v3375_v30, %v1929_v23  ;;  %v1748_v41 = vsel %vm1747_vm11, %v3373_v11, %v1744_v35  ;;  %vm1936_vm14 = vweird.f32 %v3375_v30  ;;  %v4221_v11 = vld [vmem:[%s4577_s16 + $0x78] sm:$0xff] }
0x1de7   :  { %v1753_v44 = vsel %vm1750_vm12, %v1752_v42, %v1748_v41  ;;  %vm1937_vm0 = vmor %vm1935_vm15, %vm1936_vm14  ;;  %1987 = vmatpush.msrb.mxu1 %v4221_v11 }
0x1de8   :  { %v1932_v34 = vsub.f32 1.0, %v1931_v31  ;;  %v1766_v32 = vsub.f32 1.0, %v1753_v44  ;;  %v1772_v15 = vmul.f32 %v1753_v44, %v4122_v43 }
0x1de9   :  { %1988 = vmatpush.msrb.mxu1 %v4226_v24 }
0x1dea   :  { %v1933_v39 = vmul.f32 %v3375_v30, %v1932_v34 }
0x1deb   :  { %1989 = vmatpush.msrb.mxu1 %v4232_v51 }
0x1dec   :  { %v1934_v1 = vadd.f32 %v3375_v30, %v1933_v39 }
0x1ded   :  { %1990 = vmatpush.msrb.mxu1 %v4239_v26 }
0x1dee   :  { %v1938_v53 = vsel %vm1937_vm0, %v3375_v30, %v1934_v1 }
0x1def   :  { %v1943_v55 = vsel %vm1940_vm1, %v1942_v54, %v1938_v53 }
0x1df0   :  { %v1956_v17 = vsub.f32 1.0, %v1943_v55  ;;  %v1965_v8 = vmul.f32 %v1963_v45, %v1943_v55 }
0x1e3c   :  { %v1757_v0 = vpop.permute.xlu0 %1756 }
0x1e3d   :  { %v1759_v46 = vmul.f32 %v1757_v0, %v1753_v44 }
0x1e3f   :  { %1761 = vrot.lane.b32.xlu0 %v1759_v46, %s3484_s9 }
0x1e44   :  { %v1947_v56 = vpop.permute.xlu1 %1946 }
0x1e45   :  { %v1949_v5 = vmul.f32 %v1947_v56, %v1943_v55 }
0x1e47   :  { %1951 = vrot.lane.b32.xlu1 %v1949_v5, %s3484_s9 }
0x1eb1   :  { %v1762_v9 = vpop.permute.xlu0 %1761 }
0x1eb2   :  { %v1764_v28 = vadd.f32 %v1762_v9, %v1097_v16 }
0x1eb4   :  { %3376 = vtanh.f32 %v1764_v28 }
0x1eb5   :  { %3378 = vtanh.f32 %v1148_v13 }
0x1eb9   :  { %v1952_v48 = vpop.permute.xlu1 %1951 }
0x1eba   :  { %v3377_v50 = vpop.eup %3376  ;;  %v1954_v27 = vadd.f32 %v1952_v48, %v1293_v62 }
0x1ebb   :  { %1768 = vrot.lane.b32.xlu0 %v3377_v50, %s3485_s5  ;;  %v3379_v14 = vpop.eup %3378 }
0x1ebc   :  { %3380 = vtanh.f32 %v1954_v27 }
0x1ec2   :  { %v3381_v59 = vpop.eup %3380 }
0x1ec3   :  { %1958 = vrot.lane.b32.xlu1 %v3381_v59, %s3485_s5  ;;  %1152 = vrot.lane.b32.xlu0 %v3379_v14, %s3485_s5  ;;  %v1460_v14 = vpop.f32.mrf.mxu1 }
0x1ec4   :  { %v1461_v59 = vadd.f32 %v4196_v7, %v1460_v14 }
0x1f2d   :  { %v1769_v60 = vpop.permute.xlu0 %1768 }
0x1f2e   :  { %v1771_v16 = vmul.f32 %v1769_v60, %v1766_v32 }
0x1f30   :  { %v4206_v61 = vadd.f32 %v1772_v15, %v1771_v16 }
0x1f32   :  { %1775 = vrot.lane.b32.xlu1 %v4206_v61, %s3485_s5 }
0x1f35   :  { %v1959_v62 = vpop.permute.xlu1 %1958  ;;  %v1153_v18 = vpop.permute.xlu0 %1152 }
0x1f36   :  { %v1961_v20 = vmul.f32 %v1959_v62, %v1956_v17  ;;  %v1155_v22 = vmul.f32 %v1153_v18, %v1150_v19 }
0x1f38   :  { %v4213_v23 = vadd.f32 %v1965_v8, %v1961_v20  ;;  %v1157_v43 = vadd.f32 %v1156_v21, %v1155_v22 }
0x1f3a   :  { %1159 = vrot.lane.b32.xlu0 %v1157_v43, %s3485_s5  ;;  %1971 = vrot.lane.b32.xlu2 %v4213_v23, %s3485_s5 }
0x1f94   :  { %v1972_v30 = vpop.permute.xlu2 %1971 }
0x1fa4   :  { %v1776_v25 = vpop.permute.xlu1 %1775 }
0x1fa5   :  { %3200 = vmatmul.msk.f32.vlgmr.msra.gmra.mxu1 %vm130_vm2, %v1776_v25  ;;  %3201 = vmatmul.msk.f32.vlgmr.msra.gmra.mxu2 %vm130_vm2, %v1776_v25 }
0x1fa6   :  { %2175 = vmatpush.msra.mxu2 %v4137_v47  ;;  %2155 = vmatpush.msra.mxu1 %v4221_v11 }
0x1fa8   :  { %2176 = vmatpush.msra.mxu2 %v4142_v2  ;;  %2156 = vmatpush.msra.mxu1 %v4226_v24 }
0x1faa   :  { %2177 = vmatpush.msra.mxu2 %v4149_v10  ;;  %2157 = vmatpush.msra.mxu1 %v4232_v51 }
0x1fac   :  { %v1160_v31 = vpop.permute.xlu0 %1159  ;;  %2178 = vmatpush.msra.mxu2 %v4156_v3  ;;  %2158 = vmatpush.msra.mxu1 %v4239_v26 }
0x1fad   :  { %3168 = vmatmul.msk.f32.vlgmr.msra.gmra.mxu3 %vm130_vm2, %v1160_v31  ;;  %3217 = vmatmul.msk.f32.vlgmr.msrb.gmra.mxu1 %vm130_vm2, %v1972_v30 }
0x1fae   :  { %3218 = vmatmul.msk.f32.vlgmr.msrb.gmra.mxu2 %vm130_vm2, %v1972_v30  ;;  %1539 = vmatpush.msra.mxu3 %v4021_v58 }
0x1faf   :  { %2343 = vmatpush.msrb.mxu2 %v4137_v47  ;;  %2323 = vmatpush.msrb.mxu1 %v4221_v11 }
0x1fb0   :  { %1540 = vmatpush.msra.mxu3 %v4026_v63 }
0x1fb1   :  { %2344 = vmatpush.msrb.mxu2 %v4142_v2  ;;  %2324 = vmatpush.msrb.mxu1 %v4226_v24 }
0x1fb2   :  { %1541 = vmatpush.msra.mxu3 %v4033_v4 }
0x1fb3   :  { %2345 = vmatpush.msrb.mxu2 %v4149_v10  ;;  %2325 = vmatpush.msrb.mxu1 %v4232_v51 }
0x1fb4   :  { %1542 = vmatpush.msra.mxu3 %v4042_v6 }
0x1fb5   :  { %3185 = vmatmul.msk.f32.vlgmr.msrb.gmra.mxu3 %vm130_vm2, %v4075_v37  ;;  %2346 = vmatpush.msrb.mxu2 %v4156_v3 }
0x1fb6   :  { %1707 = vmatpush.msrb.mxu3 %v4021_v58  ;;  %2326 = vmatpush.msrb.mxu1 %v4239_v26 }
0x1fb8   :  { %1708 = vmatpush.msrb.mxu3 %v4026_v63 }
0x1fba   :  { %1709 = vmatpush.msrb.mxu3 %v4033_v4 }
0x1fbc   :  { %1710 = vmatpush.msrb.mxu3 %v4042_v6 }
0x1fbd   :  { %3191 = vmatmul.msk.f32.vlgmr.msra.gmra.mxu3 %vm130_vm2, %v4105_v40 }
0x1fbe   :  { %1875 = vmatpush.msra.mxu3 %v4021_v58 }
0x1fc0   :  { %1876 = vmatpush.msra.mxu3 %v4026_v63 }
0x1fc2   :  { %1877 = vmatpush.msra.mxu3 %v4033_v4 }
0x1fc4   :  { %1878 = vmatpush.msra.mxu3 %v4042_v6 }
0x1fc5   :  { %3197 = vmatmul.msk.f32.vlgmr.msrb.gmra.mxu3 %vm130_vm2, %v4162_v57 }
0x1fc6   :  { %2071 = vmatpush.msrb.mxu3 %v4221_v11 }
0x1fc8   :  { %2072 = vmatpush.msrb.mxu3 %v4226_v24 }
0x1fca   :  { %2073 = vmatpush.msrb.mxu3 %v4232_v51 }
0x1fcc   :  { %2074 = vmatpush.msrb.mxu3 %v4239_v26 }
0x2028   :  { %v4285_v37 = vpop.f32.mrf.mxu2 }
0x2030   :  { %v4289_v4 = vpop.f32.mrf.mxu3 }
0x2031   :  { %v2012_v58 = vpop.f32.mrf.mxu2 }
0x2032   :  { %v2013_v63 = vadd.f32 %v4188_v29, %v2012_v58 }
0x2034   :  { %2036 = vrot.lane.b32.xlu1 %v2013_v63, %s3484_s9 }
0x2038   :  { %v1376_v6 = vpop.f32.mrf.mxu3 }
0x2039   :  { %v1377_v40 = vadd.f32 %v4196_v7, %v1376_v6 }
0x203b   :  { %v2015_v57 = vadd.f32 %v2013_v63, %v1377_v40 }
0x203d   :  { %v3219_v33 = vmul.f32 -1.442695, %v2015_v57 }
0x203f   :  { %3382 = vpow2.f32 %v3219_v33 }
0x2045   :  { %v3383_v34 = vpop.eup %3382 }
0x2046   :  { %v2019_v35 = vadd.f32 1.0, %v3383_v34 }
0x2048   :  { %3384 = vrcp.f32 %v2019_v35  ;;  %v2031_v0 = vand.u32 2147483648, %v2019_v35  ;;  %vm2025_vm4 = vweird.f32 %v2019_v35  ;;  %v2029_v44 = vand.u32 2147483647, %v2019_v35 }
0x204a   :  { %v2032_v46 = vor.u32 1.1754944e-38, %v2031_v0  ;;  %vm2030_vm6 = vcmp.eq.f32.partialorder %v2029_v44, 8.507059e+37 }
0x204e   :  { %v3385_v36 = vpop.eup %3384 }
0x204f   :  { %v2021_v38 = vmul.f32 %v3385_v36, %v2019_v35  ;;  %vm2026_vm3 = vweird.f32 %v3385_v36 }
0x2050   :  { %vm2027_vm5 = vmor %vm2025_vm4, %vm2026_vm3 }
0x2051   :  { %v2022_v39 = vsub.f32 1.0, %v2021_v38  ;;  %v1544_v38 = vpop.f32.mrf.mxu3 }
0x2053   :  { %v2023_v41 = vmul.f32 %v3385_v36, %v2022_v39 }
0x2055   :  { %v2024_v42 = vadd.f32 %v3385_v36, %v2023_v41 }
0x2057   :  { %v2028_v1 = vsel %vm2027_vm5, %v3385_v36, %v2024_v42 }
0x2058   :  { %v2033_v52 = vsel %vm2030_vm6, %v2032_v46, %v2028_v1 }
0x2059   :  { %v2046_v5 = vsub.f32 1.0, %v2033_v52  ;;  %v2052_v28 = vmul.f32 %v2033_v52, %v4213_v23 }
0x20a6   :  { %v2037_v49 = vpop.permute.xlu1 %2036 }
0x20a7   :  { %v2039_v53 = vmul.f32 %v2037_v49, %v2033_v52 }
0x20a9   :  { %2041 = vrot.lane.b32.xlu2 %v2039_v53, %s3484_s9 }
0x2103   :  { %v2042_v54 = vpop.permute.xlu2 %2041 }
0x2104   :  { %v2044_v55 = vadd.f32 %v2042_v54, %v1377_v40 }
0x2106   :  { %3386 = vtanh.f32 %v2044_v55 }
0x210c   :  { %v3387_v56 = vpop.eup %3386 }
0x210d   :  { %2048 = vrot.lane.b32.xlu0 %v3387_v56, %s3485_s5 }
0x217f   :  { %v2049_v9 = vpop.permute.xlu0 %2048 }
0x2180   :  { %v2051_v12 = vmul.f32 %v2049_v9, %v2046_v5 }
0x2182   :  { %v2053_v13 = vadd.f32 %v2052_v28, %v2051_v12 }
0x2184   :  { %2055 = vrot.lane.b32.xlu1 %v2053_v13, %s3485_s5 }
0x21f6   :  { %v4296_v48 = vpop.permute.xlu1 %2055 }
0x21f7   :  { %3221 = vmatmul.msk.f32.vlgmr.msra.gmra.mxu0 %vm130_vm2, %v4296_v48 }
0x21f8   :  { %2427 = vmatpush.msra.mxu0 %v4137_v47 }
0x21fa   :  { %2428 = vmatpush.msra.mxu0 %v4142_v2 }
0x21fc   :  { %2429 = vmatpush.msra.mxu0 %v4149_v10 }
0x21fe   :  { %2430 = vmatpush.msra.mxu0 %v4156_v3 }
0x2274   :  { %v2096_v50 = vpop.f32.mrf.mxu0 }
0x2275   :  { %v2097_v27 = vadd.f32 %v4188_v29, %v2096_v50 }
0x2277   :  { %2120 = vrot.lane.b32.xlu2 %v2097_v27, %s3484_s9  ;;  %v2099_v32 = vadd.f32 %v2097_v27, %v1461_v59 }
0x2279   :  { %v3222_v60 = vmul.f32 -1.442695, %v2099_v32 }
0x227b   :  { %3388 = vpow2.f32 %v3222_v60 }
0x2281   :  { %v3389_v15 = vpop.eup %3388 }
0x2282   :  { %v2103_v16 = vadd.f32 1.0, %v3389_v15  ;;  %v1628_v15 = vpop.f32.mrf.mxu1 }
0x2284   :  { %3390 = vrcp.f32 %v2103_v16  ;;  %v2115_v8 = vand.u32 2147483648, %v2103_v16  ;;  %vm2109_vm8 = vweird.f32 %v2103_v16  ;;  %v2113_v20 = vand.u32 2147483647, %v2103_v16 }
0x2286   :  { %v2116_v22 = vor.u32 1.1754944e-38, %v2115_v8  ;;  %vm2114_vm10 = vcmp.eq.f32.partialorder %v2113_v20, 8.507059e+37 }
0x228a   :  { %v3391_v45 = vpop.eup %3390 }
0x228b   :  { %v2105_v17 = vmul.f32 %v3391_v45, %v2103_v16  ;;  %vm2110_vm7 = vweird.f32 %v3391_v45  ;;  %v1629_v16 = vadd.f32 %v4196_v7, %v1628_v15 }
0x228c   :  { %vm2111_vm9 = vmor %vm2109_vm8, %vm2110_vm7 }
0x228d   :  { %v2106_v19 = vsub.f32 1.0, %v2105_v17 }
0x228f   :  { %v2107_v62 = vmul.f32 %v3391_v45, %v2106_v19 }
0x2291   :  { %v2108_v18 = vadd.f32 %v3391_v45, %v2107_v62 }
0x2293   :  { %v2112_v21 = vsel %vm2111_vm9, %v3391_v45, %v2108_v18 }
0x2294   :  { %v2117_v43 = vsel %vm2114_vm10, %v2116_v22, %v2112_v21 }
0x2295   :  { %v2130_v63 = vsub.f32 1.0, %v2117_v43  ;;  %v2136_v40 = vmul.f32 %v2117_v43, %v2053_v13 }
0x22d1   :  { %v2121_v23 = vpop.permute.xlu2 %2120 }
0x22d2   :  { %v2123_v25 = vmul.f32 %v2121_v23, %v2117_v43 }
0x22d4   :  { %2125 = vrot.lane.b32.xlu0 %v2123_v25, %s3484_s9 }
0x2346   :  { %v2126_v30 = vpop.permute.xlu0 %2125 }
0x2347   :  { %v2128_v31 = vadd.f32 %v2126_v30, %v1461_v59 }
0x2349   :  { %3392 = vtanh.f32 %v2128_v31 }
0x234f   :  { %v3393_v58 = vpop.eup %3392 }
0x2350   :  { %2132 = vrot.lane.b32.xlu1 %v3393_v58, %s3485_s5 }
0x23c2   :  { %v2133_v6 = vpop.permute.xlu1 %2132 }
0x23c3   :  { %v2135_v57 = vmul.f32 %v2133_v6, %v2130_v63 }
0x23c5   :  { %v2137_v33 = vadd.f32 %v2136_v40, %v2135_v57 }
0x23c7   :  { %2139 = vrot.lane.b32.xlu2 %v2137_v33, %s3485_s5 }
0x2421   :  { %v2140_v34 = vpop.permute.xlu2 %2139 }
0x2422   :  { %3223 = vmatmul.msk.f32.vlgmr.msra.gmra.mxu1 %vm130_vm2, %v2140_v34  ;;  %3224 = vmatmul.msk.f32.vlgmr.msra.gmra.mxu2 %vm130_vm2, %v2140_v34 }
0x2423   :  { %2491 = vmatpush.msra.mxu1 %v4221_v11  ;;  %2511 = vmatpush.msra.mxu2 %v4137_v47  ;;  %v1545_v47 = vadd.f32 %v4196_v7, %v1544_v38 }
0x2425   :  { %2492 = vmatpush.msra.mxu1 %v4226_v24  ;;  %2512 = vmatpush.msra.mxu2 %v4142_v2 }
0x2427   :  { %2493 = vmatpush.msra.mxu1 %v4232_v51  ;;  %2513 = vmatpush.msra.mxu2 %v4149_v10 }
0x2429   :  { %2494 = vmatpush.msra.mxu1 %v4239_v26  ;;  %2514 = vmatpush.msra.mxu2 %v4156_v3 }
0x24a5   :  { %v2180_v35 = vpop.f32.mrf.mxu2 }
0x24a6   :  { %v2181_v36 = vadd.f32 %v4188_v29, %v2180_v35 }
0x24a8   :  { %2204 = vrot.lane.b32.xlu0 %v2181_v36, %s3484_s9  ;;  %v2183_v39 = vadd.f32 %v2181_v36, %v1545_v47 }
0x24aa   :  { %v3225_v41 = vmul.f32 -1.442695, %v2183_v39 }
0x24ac   :  { %3394 = vpow2.f32 %v3225_v41 }
0x24b2   :  { %v3395_v2 = vpop.eup %3394 }
0x24b3   :  { %v2187_v42 = vadd.f32 1.0, %v3395_v2  ;;  %v1712_v2 = vpop.f32.mrf.mxu3 }
0x24b5   :  { %3396 = vrcp.f32 %v2187_v42  ;;  %v2199_v3 = vand.u32 2147483648, %v2187_v42  ;;  %vm2193_vm12 = vweird.f32 %v2187_v42  ;;  %v2197_v49 = vand.u32 2147483647, %v2187_v42 }
0x24b7   :  { %v2200_v53 = vor.u32 1.1754944e-38, %v2199_v3  ;;  %vm2198_vm15 = vcmp.eq.f32.partialorder %v2197_v49, 8.507059e+37 }
0x24bb   :  { %v3397_v0 = vpop.eup %3396 }
0x24bc   :  { %v2189_v10 = vmul.f32 %v3397_v0, %v2187_v42  ;;  %vm2194_vm11 = vweird.f32 %v3397_v0  ;;  %v1713_v42 = vadd.f32 %v4196_v7, %v1712_v2 }
0x24bd   :  { %vm2195_vm14 = vmor %vm2193_vm12, %vm2194_vm11 }
0x24be   :  { %v2190_v44 = vsub.f32 1.0, %v2189_v10 }
0x24c0   :  { %v2191_v1 = vmul.f32 %v3397_v0, %v2190_v44 }
0x24c2   :  { %v2192_v46 = vadd.f32 %v3397_v0, %v2191_v1 }
0x24c4   :  { %v2196_v52 = vsel %vm2195_vm14, %v3397_v0, %v2192_v46 }
0x24c5   :  { %v2201_v55 = vsel %vm2198_vm15, %v2200_v53, %v2196_v52 }
0x24c6   :  { %v2214_v12 = vsub.f32 1.0, %v2201_v55  ;;  %v2220_v50 = vmul.f32 %v2201_v55, %v2137_v33 }
0x251a   :  { %v2205_v54 = vpop.permute.xlu0 %2204 }
0x251b   :  { %v2207_v56 = vmul.f32 %v2205_v54, %v2201_v55 }
0x251d   :  { %2209 = vrot.lane.b32.xlu1 %v2207_v56, %s3484_s9 }
0x258f   :  { %v2210_v5 = vpop.permute.xlu1 %2209 }
0x2590   :  { %v2212_v9 = vadd.f32 %v2210_v5, %v1545_v47 }
0x2592   :  { %3398 = vtanh.f32 %v2212_v9 }
0x2598   :  { %v3399_v28 = vpop.eup %3398 }
0x2599   :  { %2216 = vrot.lane.b32.xlu2 %v3399_v28, %s3485_s5 }
0x25f3   :  { %v2217_v13 = vpop.permute.xlu2 %2216 }
0x25f4   :  { %v2219_v27 = vmul.f32 %v2217_v13, %v2214_v12 }
0x25f6   :  { %v2221_v14 = vadd.f32 %v2220_v50, %v2219_v27 }
0x25f8   :  { %2223 = vrot.lane.b32.xlu0 %v2221_v14, %s3485_s5 }
0x266a   :  { %v4326_v59 = vpop.permute.xlu0 %2223 }
0x266b   :  { %3227 = vmatmul.msk.f32.vlgmr.msrb.gmra.mxu0 %vm130_vm2, %v4326_v59 }
0x26e8   :  { %v2264_v32 = vpop.f32.mrf.mxu0 }
0x26e9   :  { %v2265_v60 = vadd.f32 %v4188_v29, %v2264_v32 }
0x26eb   :  { %2288 = vrot.lane.b32.xlu1 %v2265_v60, %s3484_s9  ;;  %v2267_v45 = vadd.f32 %v2265_v60, %v1629_v16  ;;  %v3480_v60 = vld [vmem:[%s4580_s18 + $0x1] ss:$0 sm:$0xff] }
0x26ec   :  { %v1181_v15 = vadd.f32 %v3480_v60, %v4289_v4 }
0x26ed   :  { %v3228_v17 = vmul.f32 -1.442695, %v2267_v45 }
0x26ef   :  { %3400 = vpow2.f32 %v3228_v17 }
0x26f5   :  { %v3401_v19 = vpop.eup %3400 }
0x26f6   :  { %v2271_v62 = vadd.f32 1.0, %v3401_v19 }
0x26f8   :  { %3402 = vrcp.f32 %v2271_v62  ;;  %v2283_v23 = vand.u32 2147483648, %v2271_v62  ;;  %vm2277_vm1 = vweird.f32 %v2271_v62  ;;  %v2281_v43 = vand.u32 2147483647, %v2271_v62 }
0x26fa   :  { %v2284_v30 = vor.u32 1.1754944e-38, %v2283_v23  ;;  %vm2282_vm4 = vcmp.eq.f32.partialorder %v2281_v43, 8.507059e+37 }
0x26fe   :  { %v3403_v18 = vpop.eup %3402 }
0x26ff   :  { %v2273_v8 = vmul.f32 %v3403_v18, %v2271_v62  ;;  %vm2278_vm0 = vweird.f32 %v3403_v18 }
0x2700   :  { %vm2279_vm3 = vmor %vm2277_vm1, %vm2278_vm0 }
0x2701   :  { %v2274_v20 = vsub.f32 1.0, %v2273_v8 }
0x2703   :  { %v2275_v21 = vmul.f32 %v3403_v18, %v2274_v20 }
0x2705   :  { %v2276_v22 = vadd.f32 %v3403_v18, %v2275_v21 }
0x2707   :  { %v2280_v25 = vsel %vm2279_vm3, %v3403_v18, %v2276_v22 }
0x2708   :  { %v2285_v58 = vsel %vm2282_vm4, %v2284_v30, %v2280_v25 }
0x2709   :  { %v2298_v33 = vsub.f32 1.0, %v2285_v58  ;;  %v2304_v35 = vmul.f32 %v2285_v58, %v2221_v14  ;;  %v3479_v14 = vld [vmem:[%s4586_s19 + $0x1] ss:$0 sm:$0xff] }
0x270a   :  { %v1817_v32 = vadd.f32 %v3479_v14, %v4285_v37 }
0x275d   :  { %v2289_v31 = vpop.permute.xlu1 %2288 }
0x275e   :  { %v2291_v63 = vmul.f32 %v2289_v31, %v2285_v58 }
0x2760   :  { %2293 = vrot.lane.b32.xlu2 %v2291_v63, %s3484_s9 }
0x27ba   :  { %v2294_v6 = vpop.permute.xlu2 %2293 }
0x27bb   :  { %v2296_v40 = vadd.f32 %v2294_v6, %v1629_v16  ;;  %v1819_v16 = vadd.f32 %v1817_v32, %v1181_v15 }
0x27bd   :  { %3404 = vtanh.f32 %v2296_v40  ;;  %v3202_v45 = vmul.f32 -1.442695, %v1819_v16 }
0x27c3   :  { %v3405_v57 = vpop.eup %3404 }
0x27c4   :  { %2300 = vrot.lane.b32.xlu0 %v3405_v57, %s3485_s5  ;;  %v4363_v57 = vld [vmem:[%s4583_s17 + $0x78] sm:$0xff] }
0x27c5   :  { %2610 = vmatpush.msrb.mxu0 %v4363_v57 }
0x2836   :  { %v2301_v34 = vpop.permute.xlu0 %2300 }
0x2837   :  { %v2303_v36 = vmul.f32 %v2301_v34, %v2298_v33  ;;  %v4368_v33 = vld [vmem:[%s4583_s17 + $0x70] sm:$0xff]  ;;  %v4375_v34 = vld [vmem:[%s4583_s17 + $0x68] sm:$0xff] }
0x2838   :  { %2611 = vmatpush.msrb.mxu0 %v4368_v33 }
0x2839   :  { %v2305_v38 = vadd.f32 %v2304_v35, %v2303_v36  ;;  %v4383_v35 = vld [vmem:[%s4583_s17 + $0x60] sm:$0xff] }
0x283a   :  { %2612 = vmatpush.msrb.mxu0 %v4375_v34 }
0x283b   :  { %2307 = vrot.lane.b32.xlu1 %v2305_v38, %s3485_s5 }
0x283c   :  { %2613 = vmatpush.msrb.mxu0 %v4383_v35 }
0x28ad   :  { %v2308_v47 = vpop.permute.xlu1 %2307 }
0x28ae   :  { %3229 = vmatmul.msk.f32.vlgmr.msrb.gmra.mxu1 %vm130_vm2, %v2308_v47  ;;  %3230 = vmatmul.msk.f32.vlgmr.msrb.gmra.mxu2 %vm130_vm2, %v2308_v47 }
0x28af   :  { %2677 = vmatpush.msrb.mxu1 %v4363_v57  ;;  %2741 = vmatpush.msrb.mxu2 %v4363_v57 }
0x28b1   :  { %2678 = vmatpush.msrb.mxu1 %v4368_v33  ;;  %2742 = vmatpush.msrb.mxu2 %v4368_v33 }
0x28b3   :  { %2679 = vmatpush.msrb.mxu1 %v4375_v34  ;;  %2743 = vmatpush.msrb.mxu2 %v4375_v34 }
0x28b5   :  { %2680 = vmatpush.msrb.mxu1 %v4383_v35  ;;  %2744 = vmatpush.msrb.mxu2 %v4383_v35 }
0x2931   :  { %v2348_v39 = vpop.f32.mrf.mxu2 }
0x2932   :  { %v2349_v41 = vadd.f32 %v4188_v29, %v2348_v39 }
0x2934   :  { %2372 = vrot.lane.b32.xlu2 %v2349_v41, %s3484_s9  ;;  %v2351_v0 = vadd.f32 %v2349_v41, %v1713_v42 }
0x2936   :  { %v3231_v10 = vmul.f32 -1.442695, %v2351_v0  ;;  %v4413_v0 = vld [vmem:[%s4586_s19 + $0x3] ss:$0 sm:$0xff] }
0x2938   :  { %3406 = vpow2.f32 %v3231_v10 }
0x293e   :  { %v3407_v44 = vpop.eup %3406 }
0x293f   :  { %v2355_v1 = vadd.f32 1.0, %v3407_v44 }
0x2941   :  { %3408 = vrcp.f32 %v2355_v1  ;;  %v2367_v54 = vand.u32 2147483648, %v2355_v1  ;;  %vm2361_vm6 = vweird.f32 %v2355_v1  ;;  %v2365_v55 = vand.u32 2147483647, %v2355_v1 }
0x2943   :  { %v2368_v5 = vor.u32 1.1754944e-38, %v2367_v54  ;;  %vm2366_vm8 = vcmp.eq.f32.partialorder %v2365_v55, 8.507059e+37 }
0x2947   :  { %v3409_v46 = vpop.eup %3408 }
0x2948   :  { %v2357_v3 = vmul.f32 %v3409_v46, %v2355_v1  ;;  %vm2362_vm5 = vweird.f32 %v3409_v46  ;;  %v1796_v1 = vpop.f32.mrf.mxu1 }
0x2949   :  { %vm2363_vm7 = vmor %vm2361_vm6, %vm2362_vm5  ;;  %v1797_v54 = vadd.f32 %v4196_v7, %v1796_v1 }
0x294a   :  { %v2358_v49 = vsub.f32 1.0, %v2357_v3 }
0x294c   :  { %v2359_v52 = vmul.f32 %v3409_v46, %v2358_v49 }
0x294e   :  { %v2360_v53 = vadd.f32 %v3409_v46, %v2359_v52 }
0x2950   :  { %v2364_v56 = vsel %vm2363_vm7, %v3409_v46, %v2360_v53  ;;  %v4420_v46 = vld [vmem:[%s4580_s18 + $0x3] ss:$0 sm:$0xff]  ;;  %v1992_v3 = vpop.f32.mrf.mxu1 }
0x2951   :  { %v2369_v28 = vsel %vm2366_vm8, %v2368_v5, %v2364_v56 }
0x2952   :  { %v2382_v21 = vsub.f32 1.0, %v2369_v28  ;;  %v2388_v22 = vmul.f32 %v2369_v28, %v2305_v38  ;;  %v4401_v38 = vld [vmem:[%s4585_s20 + $0x6] sm:$0x3] }
0x298e   :  { %v2373_v9 = vpop.permute.xlu2 %2372 }
0x298f   :  { %v2375_v12 = vmul.f32 %v2373_v9, %v2369_v28 }
0x2991   :  { %2377 = vrot.lane.b32.xlu0 %v2375_v12, %s3484_s9 }
0x2a03   :  { %v2378_v13 = vpop.permute.xlu0 %2377 }
0x2a04   :  { %v2380_v50 = vadd.f32 %v2378_v13, %v1713_v42 }
0x2a06   :  { %3410 = vtanh.f32 %v2380_v50 }
0x2a07   :  { %3412 = vpow2.f32 %v3202_v45 }
0x2a0c   :  { %v3411_v27 = vpop.eup %3410 }
0x2a0d   :  { %2384 = vrot.lane.b32.xlu1 %v3411_v27, %s3485_s5  ;;  %v3413_v17 = vpop.eup %3412 }
0x2a0e   :  { %v1823_v19 = vadd.f32 1.0, %v3413_v17 }
0x2a10   :  { %3414 = vrcp.f32 %v1823_v19  ;;  %v1835_v25 = vand.u32 2147483648, %v1823_v19  ;;  %vm1829_vm10 = vweird.f32 %v1823_v19  ;;  %v1833_v4 = vand.u32 2147483647, %v1823_v19 }
0x2a12   :  { %v1836_v58 = vor.u32 1.1754944e-38, %v1835_v25  ;;  %vm1834_vm12 = vcmp.eq.f32.partialorder %v1833_v4, 8.507059e+37 }
0x2a15   :  { %1840 = vrot.lane.b32.xlu1 %v1817_v32, %s3484_s9 }
0x2a16   :  { %v3415_v62 = vpop.eup %3414 }
0x2a17   :  { %v1825_v18 = vmul.f32 %v3415_v62, %v1823_v19  ;;  %vm1830_vm9 = vweird.f32 %v3415_v62 }
0x2a18   :  { %vm1831_vm11 = vmor %vm1829_vm10, %vm1830_vm9 }
0x2a19   :  { %v1826_v8 = vsub.f32 1.0, %v1825_v18 }
0x2a1b   :  { %v1827_v20 = vmul.f32 %v3415_v62, %v1826_v8 }
0x2a1d   :  { %v1828_v43 = vadd.f32 %v3415_v62, %v1827_v20 }
0x2a1f   :  { %v1832_v31 = vsel %vm1831_vm11, %v3415_v62, %v1828_v43 }
0x2a20   :  { %v4356_v63 = vsel %vm1834_vm12, %v1836_v58, %v1832_v31 }
0x2a7f   :  { %v2385_v37 = vpop.permute.xlu1 %2384 }
0x2a80   :  { %v2387_v23 = vmul.f32 %v2385_v37, %v2382_v21 }
0x2a82   :  { %v4352_v30 = vadd.f32 %v2388_v22, %v2387_v23 }
0x2a84   :  { %2391 = vrot.lane.b32.xlu2 %v4352_v30, %s3485_s5 }
0x2a87   :  { %v1841_v6 = vpop.permute.xlu1 %1840 }
0x2a88   :  { %v1843_v40 = vmul.f32 %v1841_v6, %v4356_v63 }
0x2a8a   :  { %1845 = vrot.lane.b32.xlu1 %v1843_v40, %s3484_s9 }
0x2ade   :  { %v4392_v36 = vpop.permute.xlu2 %2391 }
0x2adf   :  { %3233 = vmatmul.msk.f32.vlgmr.msra.gmra.mxu0 %vm130_vm2, %v4392_v36 }
0x2ae0   :  { %2869 = vmatpush.msra.mxu0 %v4363_v57 }
0x2ae2   :  { %2870 = vmatpush.msra.mxu0 %v4368_v33 }
0x2ae4   :  { %2871 = vmatpush.msra.mxu0 %v4375_v34 }
0x2ae6   :  { %2872 = vmatpush.msra.mxu0 %v4383_v35 }
0x2ae7   :  { %3245 = vmatmul.msk.f32.vlgmr.msrb.gmra.mxu0 %vm130_vm2, %v4401_v38 }
0x2afc   :  { %v1846_v47 = vpop.permute.xlu1 %1845 }
0x2afd   :  { %v1848_v39 = vadd.f32 %v1846_v47, %v1181_v15  ;;  %v1850_v47 = vsub.f32 1.0, %v4356_v63 }
0x2aff   :  { %3416 = vtanh.f32 %v1848_v39 }
0x2b05   :  { %v3417_v41 = vpop.eup %3416 }
0x2b06   :  { %1852 = vrot.lane.b32.xlu1 %v3417_v41, %s3485_s5  ;;  %v1856_v41 = vmul.f32 %v4356_v63, %v4206_v61 }
0x2b5c   :  { %v2432_v2 = vpop.f32.mrf.mxu0 }
0x2b5d   :  { %v2433_v42 = vadd.f32 %v4188_v29, %v2432_v2  ;;  %v1993_v29 = vadd.f32 %v4420_v46, %v1992_v3 }
0x2b5f   :  { %2456 = vrot.lane.b32.xlu0 %v2433_v42, %s3484_s9  ;;  %v2435_v55 = vadd.f32 %v2433_v42, %v1797_v54 }
0x2b61   :  { %v3234_v5 = vmul.f32 -1.442695, %v2435_v55 }
0x2b64   :  { %v2615_v10 = vpop.f32.mrf.mxu0 }
0x2b65   :  { %v2616_v44 = vadd.f32 %v4413_v0, %v2615_v10 }
0x2b67   :  { %2639 = vrot.lane.b32.xlu2 %v2616_v44, %s3484_s9  ;;  %v2618_v49 = vadd.f32 %v2616_v44, %v1993_v29 }
0x2b69   :  { %v3246_v52 = vmul.f32 -1.442695, %v2618_v49  ;;  %v4482_v49 = vpop.f32.mrf.mxu1 }
0x2b6b   :  { %3418 = vpow2.f32 %v3246_v52 }
0x2b71   :  { %v3419_v53 = vpop.eup %3418  ;;  %v4484_v52 = vpop.f32.mrf.mxu1 }
0x2b72   :  { %v2622_v56 = vadd.f32 1.0, %v3419_v53 }
0x2b74   :  { %3420 = vrcp.f32 %v2622_v56  ;;  %v2634_v60 = vand.u32 2147483648, %v2622_v56  ;;  %vm2628_vm15 = vweird.f32 %v2622_v56  ;;  %v2632_v15 = vand.u32 2147483647, %v2622_v56 }
0x2b75   :  { %3422 = vpow2.f32 %v3234_v5 }
0x2b76   :  { %v2635_v45 = vor.u32 1.1754944e-38, %v2634_v60  ;;  %vm2633_vm1 = vcmp.eq.f32.partialorder %v2632_v15, 8.507059e+37 }
0x2b78   :  { %v1853_v40 = vpop.permute.xlu1 %1852 }
0x2b79   :  { %v1855_v39 = vmul.f32 %v1853_v40, %v1850_v47 }
0x2b7a   :  { %v3421_v9 = vpop.eup %3420 }
0x2b7b   :  { %v3423_v28 = vpop.eup %3422  ;;  %v2624_v12 = vmul.f32 %v3421_v9, %v2622_v56  ;;  %vm2629_vm14 = vweird.f32 %v3421_v9  ;;  %v1857_v2 = vadd.f32 %v1856_v41, %v1855_v39 }
0x2b7c   :  { %v2439_v13 = vadd.f32 1.0, %v3423_v28  ;;  %vm2630_vm0 = vmor %vm2628_vm15, %vm2629_vm14 }
0x2b7d   :  { %v2625_v50 = vsub.f32 1.0, %v2624_v12 }
0x2b7e   :  { %3424 = vrcp.f32 %v2439_v13  ;;  %v2451_v21 = vand.u32 2147483648, %v2439_v13  ;;  %vm2445_vm4 = vweird.f32 %v2439_v13  ;;  %v2449_v37 = vand.u32 2147483647, %v2439_v13 }
0x2b7f   :  { %v2626_v27 = vmul.f32 %v3421_v9, %v2625_v50 }
0x2b80   :  { %v2452_v23 = vor.u32 1.1754944e-38, %v2451_v21  ;;  %vm2450_vm6 = vcmp.eq.f32.partialorder %v2449_v37, 8.507059e+37 }
0x2b81   :  { %v2627_v14 = vadd.f32 %v3421_v9, %v2626_v27 }
0x2b83   :  { %v2631_v7 = vsel %vm2630_vm0, %v3421_v9, %v2627_v14 }
0x2b84   :  { %v3425_v32 = vpop.eup %3424  ;;  %v4424_v19 = vsel %vm2633_vm1, %v2635_v45, %v2631_v7 }
0x2b85   :  { %v2441_v16 = vmul.f32 %v3425_v32, %v2439_v13  ;;  %vm2446_vm3 = vweird.f32 %v3425_v32 }
0x2b86   :  { %vm2447_vm5 = vmor %vm2445_vm4, %vm2446_vm3 }
0x2b87   :  { %v2442_v18 = vsub.f32 1.0, %v2441_v16 }
0x2b89   :  { %v2443_v8 = vmul.f32 %v3425_v32, %v2442_v18 }
0x2b8b   :  { %v2444_v20 = vadd.f32 %v3425_v32, %v2443_v8 }
0x2b8d   :  { %v2448_v22 = vsel %vm2447_vm5, %v3425_v32, %v2444_v20  ;;  %v3481_v20 = vld [vmem:[%s4586_s19 + $0x2] ss:$0 sm:$0xff] }
0x2b8e   :  { %v2453_v25 = vsel %vm2450_vm6, %v2452_v23, %v2448_v22 }
0x2b8f   :  { %v2466_v61 = vsub.f32 1.0, %v2453_v25 }
0x2bc1   :  { %v2640_v17 = vpop.permute.xlu2 %2639 }
0x2bc2   :  { %v2642_v62 = vmul.f32 %v2640_v17, %v4424_v19 }
0x2bc4   :  { %2644 = vrot.lane.b32.xlu2 %v2642_v62, %s3484_s9 }
0x2bd1   :  { %v2457_v43 = vpop.permute.xlu0 %2456 }
0x2bd2   :  { %v2459_v4 = vmul.f32 %v2457_v43, %v2453_v25  ;;  %v3482_v43 = vld [vmem:[%s4580_s18 + $0x2] ss:$0 sm:$0xff] }
0x2bd4   :  { %2461 = vrot.lane.b32.xlu0 %v2459_v4, %s3484_s9 }
0x2c1e   :  { %v2645_v31 = vpop.permute.xlu2 %2644 }
0x2c1f   :  { %v2647_v58 = vadd.f32 %v2645_v31, %v1993_v29 }
0x2c21   :  { %3426 = vtanh.f32 %v2647_v58 }
0x2c27   :  { %v3427_v6 = vpop.eup %3426 }
0x2c28   :  { %2651 = vrot.lane.b32.xlu2 %v3427_v6, %s3485_s5 }
0x2c30   :  { %1859 = vrot.lane.b32.xlu2 %v1857_v2, %s3485_s5 }
0x2c46   :  { %v2462_v42 = vpop.permute.xlu0 %2461 }
0x2c47   :  { %v2464_v10 = vadd.f32 %v2462_v42, %v1797_v54 }
0x2c49   :  { %3428 = vtanh.f32 %v2464_v10 }
0x2c4f   :  { %v3429_v44 = vpop.eup %3428 }
0x2c50   :  { %2468 = vrot.lane.b32.xlu0 %v3429_v44, %s3485_s5 }
0x2c58   :  { %2655 = vrot.lane.b32.xlu0 %v4401_v38, %s3486_s27 }
0x2c82   :  { %v2652_v1 = vpop.permute.xlu2 %2651 }
0x2c8a   :  { %v1860_v3 = vpop.permute.xlu2 %1859 }
0x2c8b   :  { %3203 = vmatmul.msk.f32.vlgmr.msra.gmra.mxu3 %vm130_vm2, %v1860_v3 }
0x2c8c   :  { %2239 = vmatpush.msra.mxu3 %v4221_v11 }
0x2c8e   :  { %2240 = vmatpush.msra.mxu3 %v4226_v24 }
0x2c90   :  { %2241 = vmatpush.msra.mxu3 %v4232_v51 }
0x2c92   :  { %2242 = vmatpush.msra.mxu3 %v4239_v26 }
0x2c93   :  { %3220 = vmatmul.msk.f32.vlgmr.msrb.gmra.mxu3 %vm130_vm2, %v4296_v48 }
0x2c94   :  { %2407 = vmatpush.msrb.mxu3 %v4221_v11 }
0x2c96   :  { %2408 = vmatpush.msrb.mxu3 %v4226_v24 }
0x2c98   :  { %2409 = vmatpush.msrb.mxu3 %v4232_v51 }
0x2c9a   :  { %2410 = vmatpush.msrb.mxu3 %v4239_v26 }
0x2c9b   :  { %3226 = vmatmul.msk.f32.vlgmr.msra.gmra.mxu3 %vm130_vm2, %v4326_v59 }
0x2c9c   :  { %2575 = vmatpush.msra.mxu3 %v4221_v11  ;;  %v2472_v11 = vmul.f32 %v2453_v25, %v4352_v30 }
0x2c9e   :  { %2576 = vmatpush.msra.mxu3 %v4226_v24 }
0x2ca0   :  { %2577 = vmatpush.msra.mxu3 %v4232_v51  ;;  %v2649_v51 = vsub.f32 1.0, %v4424_v19 }
0x2ca2   :  { %2578 = vmatpush.msra.mxu3 %v4239_v26  ;;  %v2654_v63 = vmul.f32 %v2652_v1, %v2649_v51 }
0x2ca3   :  { %3232 = vmatmul.msk.f32.vlgmr.msrb.gmra.mxu3 %vm130_vm2, %v4392_v36 }
0x2ca4   :  { %2805 = vmatpush.msrb.mxu3 %v4363_v57 }
0x2ca6   :  { %2806 = vmatpush.msrb.mxu3 %v4368_v33 }
0x2ca8   :  { %2807 = vmatpush.msrb.mxu3 %v4375_v34 }
0x2caa   :  { %2808 = vmatpush.msrb.mxu3 %v4383_v35 }
0x2cc2   :  { %v2469_v48 = vpop.permute.xlu0 %2468 }
0x2cc3   :  { %v2471_v24 = vmul.f32 %v2469_v48, %v2466_v61 }
0x2cc5   :  { %v4461_v59 = vadd.f32 %v2472_v11, %v2471_v24 }
0x2cc7   :  { %2475 = vrot.lane.b32.xlu1 %v4461_v59, %s3485_s5 }
0x2cca   :  { %v2656_v26 = vpop.permute.xlu0 %2655 }
0x2ccb   :  { %v2658_v36 = vmul.f32 %v2656_v26, %v4424_v19 }
0x2ccd   :  { %v4467_v38 = vadd.f32 %v2658_v36, %v2654_v63 }
0x2ccf   :  { %2661 = vrot.lane.b32.xlu0 %v4467_v38, %s3485_s5 }
0x2d0e   :  { %v1880_v56 = vpop.f32.mrf.mxu3 }
0x2d0f   :  { %v1881_v25 = vadd.f32 %v3482_v43, %v1880_v56  ;;  %v2161_v56 = vadd.f32 %v4420_v46, %v4482_v49 }
0x2d16   :  { %v2076_v5 = vpop.f32.mrf.mxu3 }
0x2d17   :  { %v2077_v9 = vadd.f32 %v4420_v46, %v2076_v5 }
0x2d39   :  { %v2476_v29 = vpop.permute.xlu1 %2475 }
0x2d3a   :  { %3235 = vmatmul.msk.f32.vlgmr.msra.gmra.mxu1 %vm130_vm2, %v2476_v29  ;;  %3236 = vmatmul.msk.f32.vlgmr.msra.gmra.mxu2 %vm130_vm2, %v2476_v29 }
0x2d3b   :  { %2933 = vmatpush.msra.mxu1 %v4363_v57  ;;  %2997 = vmatpush.msra.mxu2 %v4363_v57 }
0x2d3d   :  { %2934 = vmatpush.msra.mxu1 %v4368_v33  ;;  %2998 = vmatpush.msra.mxu2 %v4368_v33 }
0x2d3f   :  { %2935 = vmatpush.msra.mxu1 %v4375_v34  ;;  %2999 = vmatpush.msra.mxu2 %v4375_v34 }
0x2d41   :  { %v2662_v30 = vpop.permute.xlu0 %2661  ;;  %2936 = vmatpush.msra.mxu1 %v4383_v35  ;;  %3000 = vmatpush.msra.mxu2 %v4383_v35 }
0x2d42   :  { %3247 = vmatmul.msk.f32.vlgmr.msrb.gmra.mxu1 %vm130_vm2, %v2662_v30 }
0x2db7   :  { %v4486_v53 = vpop.f32.mrf.mxu1 }
0x2dbd   :  { %v2516_v8 = vpop.f32.mrf.mxu2 }
0x2dbe   :  { %v2517_v21 = vadd.f32 %v3481_v20, %v2516_v8 }
0x2dbf   :  { %v2682_v54 = vpop.f32.mrf.mxu1 }
0x2dc0   :  { %v2683_v55 = vadd.f32 %v4413_v0, %v2682_v54  ;;  %v2519_v4 = vadd.f32 %v2517_v21, %v1881_v25 }
0x2dc2   :  { %2706 = vrot.lane.b32.xlu1 %v2683_v55, %s3484_s9  ;;  %v2685_v28 = vadd.f32 %v2683_v55, %v2077_v9  ;;  %v3237_v31 = vmul.f32 -1.442695, %v2519_v4 }
0x2dc4   :  { %v3248_v12 = vmul.f32 -1.442695, %v2685_v28 }
0x2dc6   :  { %3430 = vpow2.f32 %v3248_v12 }
0x2dcc   :  { %v3431_v13 = vpop.eup %3430 }
0x2dcd   :  { %v2689_v50 = vadd.f32 1.0, %v3431_v13 }
0x2dcf   :  { %3432 = vrcp.f32 %v2689_v50  ;;  %v2701_v7 = vand.u32 2147483648, %v2689_v50  ;;  %vm2695_vm8 = vweird.f32 %v2689_v50  ;;  %v2699_v16 = vand.u32 2147483647, %v2689_v50 }
0x2dd1   :  { %v2702_v17 = vor.u32 1.1754944e-38, %v2701_v7  ;;  %vm2700_vm10 = vcmp.eq.f32.partialorder %v2699_v16, 8.507059e+37 }
0x2dd5   :  { %v3433_v27 = vpop.eup %3432 }
0x2dd6   :  { %v2691_v14 = vmul.f32 %v3433_v27, %v2689_v50  ;;  %vm2696_vm7 = vweird.f32 %v3433_v27 }
0x2dd7   :  { %vm2697_vm9 = vmor %vm2695_vm8, %vm2696_vm7 }
0x2dd8   :  { %v2692_v32 = vsub.f32 1.0, %v2691_v14 }
0x2dda   :  { %v2693_v60 = vmul.f32 %v3433_v27, %v2692_v32 }
0x2ddc   :  { %v2694_v15 = vadd.f32 %v3433_v27, %v2693_v60 }
0x2dde   :  { %v2698_v45 = vsel %vm2697_vm9, %v3433_v27, %v2694_v15 }
0x2ddf   :  { %v2703_v62 = vsel %vm2700_vm10, %v2702_v17, %v2698_v45 }
0x2de0   :  { %v2716_v2 = vsub.f32 1.0, %v2703_v62  ;;  %v2722_v10 = vmul.f32 %v2703_v62, %v4467_v38 }
0x2e34   :  { %v2707_v19 = vpop.permute.xlu1 %2706 }
0x2e35   :  { %v2709_v18 = vmul.f32 %v2707_v19, %v2703_v62 }
0x2e37   :  { %2711 = vrot.lane.b32.xlu2 %v2709_v18, %s3484_s9 }
0x2e3f   :  { %2540 = vrot.lane.b32.xlu2 %v2517_v21, %s3484_s9 }
0x2e91   :  { %v2712_v37 = vpop.permute.xlu2 %2711 }
0x2e92   :  { %v2714_v22 = vadd.f32 %v2712_v37, %v2077_v9 }
0x2e94   :  { %3434 = vtanh.f32 %v2714_v22 }
0x2e95   :  { %3436 = vpow2.f32 %v3237_v31 }
0x2e99   :  { %v2541_v51 = vpop.permute.xlu2 %2540 }
0x2e9a   :  { %v3435_v23 = vpop.eup %3434 }
0x2e9b   :  { %2718 = vrot.lane.b32.xlu0 %v3435_v23, %s3485_s5  ;;  %v3437_v58 = vpop.eup %3436 }
0x2e9c   :  { %v2523_v6 = vadd.f32 1.0, %v3437_v58 }
0x2e9e   :  { %3438 = vrcp.f32 %v2523_v6  ;;  %v2535_v61 = vand.u32 2147483648, %v2523_v6  ;;  %vm2529_vm12 = vweird.f32 %v2523_v6  ;;  %v2533_v48 = vand.u32 2147483647, %v2523_v6 }
0x2ea0   :  { %v2536_v24 = vor.u32 1.1754944e-38, %v2535_v61  ;;  %vm2534_vm15 = vcmp.eq.f32.partialorder %v2533_v48, 8.507059e+37 }
0x2ea4   :  { %v3439_v40 = vpop.eup %3438 }
0x2ea5   :  { %v2525_v47 = vmul.f32 %v3439_v40, %v2523_v6  ;;  %vm2530_vm11 = vweird.f32 %v3439_v40  ;;  %v2244_v6 = vpop.f32.mrf.mxu3 }
0x2ea6   :  { %vm2531_vm14 = vmor %vm2529_vm12, %vm2530_vm11 }
0x2ea7   :  { %v2526_v39 = vsub.f32 1.0, %v2525_v47 }
0x2ea9   :  { %v2527_v41 = vmul.f32 %v3439_v40, %v2526_v39 }
0x2eab   :  { %v2528_v1 = vadd.f32 %v3439_v40, %v2527_v41 }
0x2ead   :  { %v2532_v11 = vsel %vm2531_vm14, %v3439_v40, %v2528_v1  ;;  %v4524_v40 = vpop.f32.mrf.mxu3 }
0x2eae   :  { %v2537_v26 = vsel %vm2534_vm15, %v2536_v24, %v2532_v11 }
0x2eaf   :  { %v2543_v63 = vmul.f32 %v2541_v51, %v2537_v26  ;;  %v2550_v19 = vsub.f32 1.0, %v2537_v26  ;;  %v2556_v18 = vmul.f32 %v2537_v26, %v4461_v59 }
0x2f0d   :  { %v2719_v42 = vpop.permute.xlu0 %2718 }
0x2f0e   :  { %v2721_v44 = vmul.f32 %v2719_v42, %v2716_v2 }
0x2f10   :  { %v4501_v3 = vadd.f32 %v2722_v10, %v2721_v44 }
0x2f12   :  { %2725 = vrot.lane.b32.xlu1 %v4501_v3, %s3485_s5 }
0x2f1a   :  { %2545 = vrot.lane.b32.xlu1 %v2543_v63, %s3484_s9 }
0x2f84   :  { %v2726_v36 = vpop.permute.xlu1 %2725 }
0x2f85   :  { %3249 = vmatmul.msk.f32.vlgmr.msrb.gmra.mxu2 %vm130_vm2, %v2726_v36 }
0x2f8c   :  { %v2546_v38 = vpop.permute.xlu1 %2545 }
0x2f8d   :  { %v2548_v29 = vadd.f32 %v2546_v38, %v1881_v25 }
0x2f8f   :  { %3440 = vtanh.f32 %v2548_v29 }
0x2f95   :  { %v3441_v55 = vpop.eup %3440 }
0x3008   :  { %v2746_v30 = vpop.f32.mrf.mxu2 }
0x3009   :  { %v2747_v54 = vadd.f32 %v4413_v0, %v2746_v30 }
0x300b   :  { %2770 = vrot.lane.b32.xlu0 %v2747_v54, %s3484_s9  ;;  %v2749_v5 = vadd.f32 %v2747_v54, %v2161_v56 }
0x300d   :  { %v3250_v9 = vmul.f32 -1.442695, %v2749_v5 }
0x300f   :  { %3442 = vpow2.f32 %v3250_v9 }
0x3013   :  { %2552 = vrot.lane.b32.xlu0 %v3441_v55, %s3485_s5 }
0x3015   :  { %v3443_v28 = vpop.eup %3442 }
0x3016   :  { %v2753_v12 = vadd.f32 1.0, %v3443_v28 }
0x3018   :  { %3444 = vrcp.f32 %v2753_v12  ;;  %v2765_v60 = vand.u32 2147483648, %v2753_v12  ;;  %vm2759_vm1 = vweird.f32 %v2753_v12  ;;  %v2763_v15 = vand.u32 2147483647, %v2753_v12 }
0x301a   :  { %v2766_v16 = vor.u32 1.1754944e-38, %v2765_v60  ;;  %vm2764_vm4 = vcmp.eq.f32.partialorder %v2763_v15, 8.507059e+37 }
0x301e   :  { %v3445_v13 = vpop.eup %3444 }
0x301f   :  { %v2755_v50 = vmul.f32 %v3445_v13, %v2753_v12  ;;  %vm2760_vm0 = vweird.f32 %v3445_v13 }
0x3020   :  { %vm2761_vm3 = vmor %vm2759_vm1, %vm2760_vm0 }
0x3021   :  { %v2756_v27 = vsub.f32 1.0, %v2755_v50 }
0x3023   :  { %v2757_v14 = vmul.f32 %v3445_v13, %v2756_v27 }
0x3025   :  { %v2758_v32 = vadd.f32 %v3445_v13, %v2757_v14 }
0x3027   :  { %v2762_v7 = vsel %vm2761_vm3, %v3445_v13, %v2758_v32  ;;  %v2329_v13 = vadd.f32 %v4420_v46, %v4484_v52 }
0x3028   :  { %v2767_v45 = vsel %vm2764_vm4, %v2766_v16, %v2762_v7 }
0x3029   :  { %v2780_v59 = vsub.f32 1.0, %v2767_v45  ;;  %v2786_v25 = vmul.f32 %v2767_v45, %v4501_v3 }
0x307d   :  { %v2771_v49 = vpop.permute.xlu0 %2770 }
0x307e   :  { %v2773_v17 = vmul.f32 %v2771_v49, %v2767_v45 }
0x3080   :  { %2775 = vrot.lane.b32.xlu2 %v2773_v17, %s3484_s9 }
0x3085   :  { %v2553_v62 = vpop.permute.xlu0 %2552 }
0x3086   :  { %v2555_v8 = vmul.f32 %v2553_v62, %v2550_v19 }
0x3088   :  { %v2557_v20 = vadd.f32 %v2556_v18, %v2555_v8 }
0x308a   :  { %2559 = vrot.lane.b32.xlu2 %v2557_v20, %s3485_s5 }
0x30da   :  { %v2776_v21 = vpop.permute.xlu2 %2775 }
0x30db   :  { %v2778_v37 = vadd.f32 %v2776_v21, %v2161_v56 }
0x30dd   :  { %3446 = vtanh.f32 %v2778_v37 }
0x30e3   :  { %v3447_v22 = vpop.eup %3446 }
0x30e4   :  { %2782 = vrot.lane.b32.xlu1 %v3447_v22, %s3485_s5  ;;  %v2560_v23 = vpop.permute.xlu2 %2559 }
0x30e5   :  { %3238 = vmatmul.msk.f32.vlgmr.msra.gmra.mxu3 %vm130_vm2, %v2560_v23 }
0x30e6   :  { %3061 = vmatpush.msra.mxu3 %v4363_v57 }
0x30e8   :  { %3062 = vmatpush.msra.mxu3 %v4368_v33 }
0x30ea   :  { %3063 = vmatpush.msra.mxu3 %v4375_v34 }
0x30ec   :  { %3064 = vmatpush.msra.mxu3 %v4383_v35  ;;  %v2245_v35 = vadd.f32 %v4420_v46, %v2244_v6  ;;  %v2413_v6 = vadd.f32 %v4420_v46, %v4524_v40 }
0x3156   :  { %v2783_v43 = vpop.permute.xlu1 %2782 }
0x3157   :  { %v2785_v4 = vmul.f32 %v2783_v43, %v2780_v59 }
0x3159   :  { %v2787_v31 = vadd.f32 %v2786_v25, %v2785_v4 }
0x315b   :  { %2789 = vrot.lane.b32.xlu0 %v2787_v31, %s3485_s5 }
0x3168   :  { %v4526_v57 = vpop.f32.mrf.mxu3 }
0x31cd   :  { %v2790_v58 = vpop.permute.xlu0 %2789 }
0x31ce   :  { %3251 = vmatmul.msk.f32.vlgmr.msrb.gmra.mxu3 %vm130_vm2, %v2790_v58 }
0x3251   :  { %v2810_v33 = vpop.f32.mrf.mxu3 }
0x3252   :  { %v2811_v34 = vadd.f32 %v4413_v0, %v2810_v33 }
0x3254   :  { %2834 = vrot.lane.b32.xlu1 %v2811_v34, %s3484_s9  ;;  %v2813_v47 = vadd.f32 %v2811_v34, %v2245_v35 }
0x3256   :  { %v3252_v39 = vmul.f32 -1.442695, %v2813_v47 }
0x3258   :  { %3448 = vpow2.f32 %v3252_v39 }
0x325e   :  { %v3449_v41 = vpop.eup %3448 }
0x325f   :  { %v2817_v2 = vadd.f32 1.0, %v3449_v41 }
0x3261   :  { %3450 = vrcp.f32 %v2817_v2  ;;  %v2829_v61 = vand.u32 2147483648, %v2817_v2  ;;  %vm2823_vm6 = vweird.f32 %v2817_v2  ;;  %v2827_v48 = vand.u32 2147483647, %v2817_v2 }
0x3263   :  { %v2830_v24 = vor.u32 1.1754944e-38, %v2829_v61  ;;  %vm2828_vm8 = vcmp.eq.f32.partialorder %v2827_v48, 8.507059e+37 }
0x3267   :  { %v3451_v42 = vpop.eup %3450 }
0x3268   :  { %v2819_v10 = vmul.f32 %v3451_v42, %v2817_v2  ;;  %vm2824_vm5 = vweird.f32 %v3451_v42 }
0x3269   :  { %vm2825_vm7 = vmor %vm2823_vm6, %vm2824_vm5 }
0x326a   :  { %v2820_v44 = vsub.f32 1.0, %v2819_v10 }
0x326c   :  { %v2821_v1 = vmul.f32 %v3451_v42, %v2820_v44 }
0x326e   :  { %v2822_v3 = vadd.f32 %v3451_v42, %v2821_v1 }
0x3270   :  { %v2826_v11 = vsel %vm2825_vm7, %v3451_v42, %v2822_v3 }
0x3271   :  { %v2831_v26 = vsel %vm2828_vm8, %v2830_v24, %v2826_v11 }
0x3272   :  { %v2844_v30 = vsub.f32 1.0, %v2831_v26  ;;  %v2850_v55 = vmul.f32 %v2831_v26, %v2787_v31 }
0x32c6   :  { %v2835_v51 = vpop.permute.xlu1 %2834 }
0x32c7   :  { %v2837_v63 = vmul.f32 %v2835_v51, %v2831_v26 }
0x32c9   :  { %2839 = vrot.lane.b32.xlu2 %v2837_v63, %s3484_s9 }
0x3323   :  { %v2840_v36 = vpop.permute.xlu2 %2839 }
0x3324   :  { %v2842_v38 = vadd.f32 %v2840_v36, %v2245_v35 }
0x3326   :  { %3452 = vtanh.f32 %v2842_v38 }
0x332c   :  { %v3453_v29 = vpop.eup %3452 }
0x332d   :  { %2846 = vrot.lane.b32.xlu0 %v3453_v29, %s3485_s5 }
0x339f   :  { %v2847_v54 = vpop.permute.xlu0 %2846 }
0x33a0   :  { %v2849_v56 = vmul.f32 %v2847_v54, %v2844_v30 }
0x33a2   :  { %v2851_v5 = vadd.f32 %v2850_v55, %v2849_v56 }
0x33a4   :  { %2853 = vrot.lane.b32.xlu1 %v2851_v5, %s3485_s5 }
0x3416   :  { %v2854_v9 = vpop.permute.xlu1 %2853 }
0x3417   :  { %3253 = vmatmul.msk.f32.vlgmr.msra.gmra.mxu0 %vm130_vm2, %v2854_v9 }
0x3494   :  { %v2874_v28 = vpop.f32.mrf.mxu0 }
0x3495   :  { %v2875_v12 = vadd.f32 %v4413_v0, %v2874_v28 }
0x3497   :  { %2898 = vrot.lane.b32.xlu2 %v2875_v12, %s3484_s9  ;;  %v2877_v50 = vadd.f32 %v2875_v12, %v2329_v13 }
0x3499   :  { %v3254_v27 = vmul.f32 -1.442695, %v2877_v50 }
0x349b   :  { %3454 = vpow2.f32 %v3254_v27 }
0x34a1   :  { %v3455_v14 = vpop.eup %3454 }
0x34a2   :  { %v2881_v32 = vadd.f32 1.0, %v3455_v14 }
0x34a4   :  { %3456 = vrcp.f32 %v2881_v32  ;;  %v2893_v45 = vand.u32 2147483648, %v2881_v32  ;;  %vm2887_vm10 = vweird.f32 %v2881_v32  ;;  %v2891_v17 = vand.u32 2147483647, %v2881_v32 }
0x34a6   :  { %v2894_v62 = vor.u32 1.1754944e-38, %v2893_v45  ;;  %vm2892_vm12 = vcmp.eq.f32.partialorder %v2891_v17, 8.507059e+37 }
0x34aa   :  { %v3457_v60 = vpop.eup %3456 }
0x34ab   :  { %v2883_v15 = vmul.f32 %v3457_v60, %v2881_v32  ;;  %vm2888_vm9 = vweird.f32 %v3457_v60 }
0x34ac   :  { %vm2889_vm11 = vmor %vm2887_vm10, %vm2888_vm9 }
0x34ad   :  { %v2884_v7 = vsub.f32 1.0, %v2883_v15 }
0x34af   :  { %v2885_v16 = vmul.f32 %v3457_v60, %v2884_v7 }
0x34b1   :  { %v2886_v49 = vadd.f32 %v3457_v60, %v2885_v16 }
0x34b3   :  { %v2890_v19 = vsel %vm2889_vm11, %v3457_v60, %v2886_v49 }
0x34b4   :  { %v2895_v18 = vsel %vm2892_vm12, %v2894_v62, %v2890_v19 }
0x34b5   :  { %v2908_v22 = vsub.f32 1.0, %v2895_v18  ;;  %v2914_v59 = vmul.f32 %v2895_v18, %v2851_v5  ;;  %v2497_v5 = vadd.f32 %v4420_v46, %v4486_v53 }
0x34f1   :  { %v2899_v52 = vpop.permute.xlu2 %2898 }
0x34f2   :  { %v2901_v8 = vmul.f32 %v2899_v52, %v2895_v18 }
0x34f4   :  { %2903 = vrot.lane.b32.xlu0 %v2901_v8, %s3484_s9 }
0x3566   :  { %v2904_v20 = vpop.permute.xlu0 %2903 }
0x3567   :  { %v2906_v21 = vadd.f32 %v2904_v20, %v2329_v13 }
0x3569   :  { %3458 = vtanh.f32 %v2906_v21 }
0x356f   :  { %v3459_v37 = vpop.eup %3458 }
0x3570   :  { %2910 = vrot.lane.b32.xlu1 %v3459_v37, %s3485_s5 }
0x35e2   :  { %v2911_v23 = vpop.permute.xlu1 %2910 }
0x35e3   :  { %v2913_v43 = vmul.f32 %v2911_v23, %v2908_v22 }
0x35e5   :  { %v2915_v25 = vadd.f32 %v2914_v59, %v2913_v43  ;;  %v2581_v43 = vadd.f32 %v4420_v46, %v4526_v57 }
0x35e7   :  { %2917 = vrot.lane.b32.xlu2 %v2915_v25, %s3485_s5 }
0x3641   :  { %v2918_v4 = vpop.permute.xlu2 %2917 }
0x3642   :  { %3255 = vmatmul.msk.f32.vlgmr.msra.gmra.mxu1 %vm130_vm2, %v2918_v4 }
0x36bf   :  { %v2938_v31 = vpop.f32.mrf.mxu1 }
0x36c0   :  { %v2939_v58 = vadd.f32 %v4413_v0, %v2938_v31 }
0x36c2   :  { %2962 = vrot.lane.b32.xlu0 %v2939_v58, %s3484_s9  ;;  %v2941_v33 = vadd.f32 %v2939_v58, %v2413_v6 }
0x36c4   :  { %v3256_v34 = vmul.f32 -1.442695, %v2941_v33 }
0x36c6   :  { %3460 = vpow2.f32 %v3256_v34 }
0x36cc   :  { %v3461_v35 = vpop.eup %3460 }
0x36cd   :  { %v2945_v47 = vadd.f32 1.0, %v3461_v35 }
0x36cf   :  { %3462 = vrcp.f32 %v2945_v47  ;;  %v2957_v44 = vand.u32 2147483648, %v2945_v47  ;;  %vm2951_vm15 = vweird.f32 %v2945_v47  ;;  %v2955_v1 = vand.u32 2147483647, %v2945_v47 }
0x36d1   :  { %v2958_v61 = vor.u32 1.1754944e-38, %v2957_v44  ;;  %vm2956_vm1 = vcmp.eq.f32.partialorder %v2955_v1, 8.507059e+37 }
0x36d5   :  { %v3463_v39 = vpop.eup %3462 }
0x36d6   :  { %v2947_v41 = vmul.f32 %v3463_v39, %v2945_v47  ;;  %vm2952_vm14 = vweird.f32 %v3463_v39 }
0x36d7   :  { %vm2953_vm0 = vmor %vm2951_vm15, %vm2952_vm14 }
0x36d8   :  { %v2948_v2 = vsub.f32 1.0, %v2947_v41 }
0x36da   :  { %v2949_v42 = vmul.f32 %v3463_v39, %v2948_v2 }
0x36dc   :  { %v2950_v10 = vadd.f32 %v3463_v39, %v2949_v42 }
0x36de   :  { %v2954_v3 = vsel %vm2953_vm0, %v3463_v39, %v2950_v10 }
0x36df   :  { %v2959_v48 = vsel %vm2956_vm1, %v2958_v61, %v2954_v3 }
0x36e0   :  { %v2972_v63 = vsub.f32 1.0, %v2959_v48  ;;  %v2978_v38 = vmul.f32 %v2959_v48, %v2915_v25 }
0x3734   :  { %v2963_v40 = vpop.permute.xlu0 %2962 }
0x3735   :  { %v2965_v11 = vmul.f32 %v2963_v40, %v2959_v48 }
0x3737   :  { %2967 = vrot.lane.b32.xlu1 %v2965_v11, %s3484_s9 }
0x37a9   :  { %v2968_v24 = vpop.permute.xlu1 %2967 }
0x37aa   :  { %v2970_v51 = vadd.f32 %v2968_v24, %v2413_v6 }
0x37ac   :  { %3464 = vtanh.f32 %v2970_v51 }
0x37b2   :  { %v3465_v26 = vpop.eup %3464 }
0x37b3   :  { %2974 = vrot.lane.b32.xlu2 %v3465_v26, %s3485_s5 }
0x380d   :  { %v2975_v36 = vpop.permute.xlu2 %2974 }
0x380e   :  { %v2977_v29 = vmul.f32 %v2975_v36, %v2972_v63 }
0x3810   :  { %v2979_v30 = vadd.f32 %v2978_v38, %v2977_v29 }
0x3812   :  { %2981 = vrot.lane.b32.xlu0 %v2979_v30, %s3485_s5 }
0x3884   :  { %v2982_v54 = vpop.permute.xlu0 %2981 }
0x3885   :  { %3257 = vmatmul.msk.f32.vlgmr.msra.gmra.mxu2 %vm130_vm2, %v2982_v54 }
0x3908   :  { %v3002_v55 = vpop.f32.mrf.mxu2 }
0x3909   :  { %v3003_v56 = vadd.f32 %v4413_v0, %v3002_v55 }
0x390b   :  { %3026 = vrot.lane.b32.xlu1 %v3003_v56, %s3484_s9  ;;  %v3005_v9 = vadd.f32 %v3003_v56, %v2497_v5 }
0x390d   :  { %v3258_v28 = vmul.f32 -1.442695, %v3005_v9 }
0x390f   :  { %3466 = vpow2.f32 %v3258_v28 }
0x3915   :  { %v3467_v12 = vpop.eup %3466 }
0x3916   :  { %v3009_v13 = vadd.f32 1.0, %v3467_v12 }
0x3918   :  { %3468 = vrcp.f32 %v3009_v13  ;;  %v3021_v15 = vand.u32 2147483648, %v3009_v13  ;;  %vm3015_vm4 = vweird.f32 %v3009_v13  ;;  %v3019_v7 = vand.u32 2147483647, %v3009_v13 }
0x391a   :  { %v3022_v49 = vor.u32 1.1754944e-38, %v3021_v15  ;;  %vm3020_vm6 = vcmp.eq.f32.partialorder %v3019_v7, 8.507059e+37 }
0x391e   :  { %v3469_v50 = vpop.eup %3468 }
0x391f   :  { %v3011_v27 = vmul.f32 %v3469_v50, %v3009_v13  ;;  %vm3016_vm3 = vweird.f32 %v3469_v50 }
0x3920   :  { %vm3017_vm5 = vmor %vm3015_vm4, %vm3016_vm3 }
0x3921   :  { %v3012_v14 = vsub.f32 1.0, %v3011_v27 }
0x3923   :  { %v3013_v32 = vmul.f32 %v3469_v50, %v3012_v14 }
0x3925   :  { %v3014_v60 = vadd.f32 %v3469_v50, %v3013_v32 }
0x3927   :  { %v3018_v16 = vsel %vm3017_vm5, %v3469_v50, %v3014_v60 }
0x3928   :  { %v3023_v45 = vsel %vm3020_vm6, %v3022_v49, %v3018_v16 }
0x3929   :  { %v3036_v18 = vsub.f32 1.0, %v3023_v45  ;;  %v3042_v20 = vmul.f32 %v3023_v45, %v2979_v30 }
0x397d   :  { %v3027_v53 = vpop.permute.xlu1 %3026 }
0x397e   :  { %v3029_v17 = vmul.f32 %v3027_v53, %v3023_v45 }
0x3980   :  { %3031 = vrot.lane.b32.xlu2 %v3029_v17, %s3484_s9 }
0x39da   :  { %v3032_v19 = vpop.permute.xlu2 %3031 }
0x39db   :  { %v3034_v62 = vadd.f32 %v3032_v19, %v2497_v5 }
0x39dd   :  { %3470 = vtanh.f32 %v3034_v62 }
0x39e3   :  { %v3471_v52 = vpop.eup %3470 }
0x39e4   :  { %3038 = vrot.lane.b32.xlu0 %v3471_v52, %s3485_s5 }
0x3a56   :  { %v3039_v8 = vpop.permute.xlu0 %3038 }
0x3a57   :  { %v3041_v21 = vmul.f32 %v3039_v8, %v3036_v18 }
0x3a59   :  { %v3043_v37 = vadd.f32 %v3042_v20, %v3041_v21 }
0x3a5b   :  { %3045 = vrot.lane.b32.xlu1 %v3043_v37, %s3485_s5 }
0x3acd   :  { %v3046_v22 = vpop.permute.xlu1 %3045 }
0x3ace   :  { %3259 = vmatmul.msk.f32.vlgmr.msra.gmra.mxu3 %vm130_vm2, %v3046_v22 }
0x3b51   :  { %v3066_v23 = vpop.f32.mrf.mxu3 }
0x3b52   :  { %v3067_v59 = vadd.f32 %v4413_v0, %v3066_v23 }
0x3b54   :  { %3090 = vrot.lane.b32.xlu2 %v3067_v59, %s3484_s9  ;;  %v3069_v25 = vadd.f32 %v3067_v59, %v2581_v43 }
0x3b56   :  { %v3260_v4 = vmul.f32 -1.442695, %v3069_v25 }
0x3b58   :  { %3472 = vpow2.f32 %v3260_v4 }
0x3b5e   :  { %v3473_v31 = vpop.eup %3472 }
0x3b5f   :  { %v3073_v58 = vadd.f32 1.0, %v3473_v31 }
0x3b61   :  { %3474 = vrcp.f32 %v3073_v58  ;;  %v3085_v39 = vand.u32 2147483648, %v3073_v58  ;;  %vm3079_vm7 = vweird.f32 %v3073_v58  ;;  %v3083_v0 = vand.u32 2147483647, %v3073_v58 }
0x3b63   :  { %v3086_v2 = vor.u32 1.1754944e-38, %v3085_v39  ;;  %vm3084_vm9 = vcmp.eq.f32.partialorder %v3083_v0, 8.507059e+37 }
0x3b67   :  { %v3475_v6 = vpop.eup %3474 }
0x3b68   :  { %v3075_v33 = vmul.f32 %v3475_v6, %v3073_v58  ;;  %vm3080_vm2 = vweird.f32 %v3475_v6 }
0x3b69   :  { %vm3081_vm8 = vmor %vm3079_vm7, %vm3080_vm2 }
0x3b6a   :  { %v3076_v34 = vsub.f32 1.0, %v3075_v33 }
0x3b6c   :  { %v3077_v35 = vmul.f32 %v3475_v6, %v3076_v34 }
0x3b6e   :  { %v3078_v47 = vadd.f32 %v3475_v6, %v3077_v35 }
0x3b70   :  { %v3082_v41 = vsel %vm3081_vm8, %v3475_v6, %v3078_v47 }
0x3b71   :  { %v3087_v57 = vsel %vm3084_vm9, %v3086_v2, %v3082_v41 }
0x3b72   :  { %v3100_v3 = vsub.f32 1.0, %v3087_v57  ;;  %v3106_v40 = vmul.f32 %v3087_v57, %v3043_v37 }
0x3bae   :  { %v3091_v46 = vpop.permute.xlu2 %3090 }
0x3baf   :  { %v3093_v42 = vmul.f32 %v3091_v46, %v3087_v57 }
0x3bb1   :  { %3095 = vrot.lane.b32.xlu0 %v3093_v42, %s3484_s9 }
0x3c23   :  { %v3096_v10 = vpop.permute.xlu0 %3095 }
0x3c24   :  { %v3098_v44 = vadd.f32 %v3096_v10, %v2581_v43 }
0x3c26   :  { %3476 = vtanh.f32 %v3098_v44 }
0x3c2c   :  { %v3477_v1 = vpop.eup %3476 }
0x3c2d   :  { %3102 = vrot.lane.b32.xlu1 %v3477_v1, %s3485_s5 }
0x3c9f   :  { %v3103_v61 = vpop.permute.xlu1 %3102 }
0x3ca0   :  { %v3105_v48 = vmul.f32 %v3103_v61, %v3100_v3 }
0x3ca2   :  { %v3107_v11 = vadd.f32 %v3106_v40, %v3105_v48 }
0x3ca4   :  { %3109 = vrot.lane.b32.xlu2 %v3107_v11, %s3485_s5 }
0x3cfe   :  { %v3110_v24 = vpop.permute.xlu2 %3109 }
0x3cff   :  { %3112 = vst.msk [vmem:[%s4592_s22] sm:$0x3] %vm442_vm13, %v3110_v24 }

</bundles_post_ra>
